<compile_context>
chip_gen: v5e
topology: v5e:2x2
jax: 0.10.0
libtpu: 0.0.40
codegen_flags: <defaults>
</compile_context>

<pallas_src>
import functools

import jax
import jax.numpy as jnp
import numpy as np
from jax.experimental import pallas as pl
from jax.experimental.pallas import tpu as pltpu

WIN = 7                       # win_size
K1 = 0.01
K2 = 0.03
NP = WIN * WIN                # 49
COV_NORM = NP / (NP - 1.0)    # 49/48


def _round_up(x, m):
    return (x + m - 1) // m * m


def _cdiv(a, b):
    return -(-a // b)


def _num_tensorcores():
    """Best-effort TensorCores-per-chip; falls back to 1 (v5e/v6e behaviour)."""
    try:
        info = pltpu.get_tpu_info()
    except Exception:
        return 1
    for attr in ("tensorcores_per_chip", "cores_per_chip", "num_tensorcores",
                 "tensor_core_count", "num_cores", "core_count"):
        v = getattr(info, attr, None)
        if v is None:
            continue
        try:
            v = int(v)
        except Exception:
            continue
        if v >= 1:
            return v
    return 1


def _ssim_kernel(params_ref, gt_ref, pred_ref, arow_ref, acol_ref, mask_ref,
                 out_ref, *, ts, h_pad, ho_pad, wo_pad, nb, n_slices):
    c = pl.program_id(0)            # core-parallel slice-block axis
    b = pl.program_id(1)            # sequential slice-block axis (reduction)

    c1s = params_ref[0]             # C1 * 49^2
    c2s = params_ref[1]             # C2 * 49^2

    X = gt_ref[...]                 # (ts*h_pad, w_pad) f32
    Y = pred_ref[...]
    a_row2 = arow_ref[...]          # (ho_pad, 2*h_pad) bf16  [A_row | A_row]
    a_col2 = acol_ref[...]          # (2*w_pad, wo_pad) bf16  [A_col ; A_col]
    mask = mask_ref[...]            # (ho_pad, wo_pad) f32    (row<Ho)&(col<Wo)

    def col_sum(m):
        # 7-wide "valid" column window sum as one lane-dense MXU matmul.  The
        # f32 operand is split hi/lo into bf16 and fused along K (K = 2*w_pad),
        # so f32-level accuracy costs a single matmul per map.
        hi = m.astype(jnp.bfloat16)
        lo = (m - hi.astype(jnp.float32)).astype(jnp.bfloat16)
        mc = jnp.concatenate([hi, lo], axis=1)            # (ts*h_pad, 2*w_pad)
        return jnp.dot(mc, a_col2, preferred_element_type=jnp.float32)

    rx = col_sum(X)                  # (ts*h_pad, wo_pad) f32 window column sums
    ry = col_sum(Y)
    rxx = col_sum(X * X)
    ryy = col_sum(Y * Y)
    rxy = col_sum(X * Y)

    base = (c * nb + b) * ts
    acc = jnp.zeros((8, wo_pad), jnp.float32)

    for t in range(ts):                                   # static unroll over slices
        r0 = t * h_pad
        # Stack the five per-slice column sums along lanes so the row stage is
        # one matmul with N = 5*wo_pad (lane-dense, no block-diagonal waste).
        r_all = jnp.concatenate(
            [rx[r0:r0 + h_pad, :], ry[r0:r0 + h_pad, :],
             rxx[r0:r0 + h_pad, :], ryy[r0:r0 + h_pad, :],
             rxy[r0:r0 + h_pad, :]], axis=1)              # (h_pad, 5*wo_pad) f32
        rh = r_all.astype(jnp.bfloat16)
        rl = (r_all - rh.astype(jnp.float32)).astype(jnp.bfloat16)
        rc = jnp.concatenate([rh, rl], axis=0)            # (2*h_pad, 5*wo_pad) bf16
        box = jnp.dot(a_row2, rc, preferred_element_type=jnp.float32)

        sx = box[:, 0 * wo_pad:1 * wo_pad]
        sy = box[:, 1 * wo_pad:2 * wo_pad]
        sxx = box[:, 2 * wo_pad:3 * wo_pad]
        syy = box[:, 3 * wo_pad:4 * wo_pad]
        sxy = box[:, 4 * wo_pad:5 * wo_pad]

        # SSIM on raw window sums: A1, A2, B1, B2 all carry a common 49^2
        # factor that cancels in the ratio, so the 1/49 normalisation and
        # cov_norm fold into constants instead of per-map rescales.
        sxsy = sx * sy
        sx2 = sx * sx
        sy2 = sy * sy
        a1 = 2.0 * sxsy + c1s
        b1 = sx2 + sy2 + c1s
        a2 = (2.0 * COV_NORM) * (NP * sxy - sxsy) + c2s
        b2 = COV_NORM * (NP * (sxx + syy) - sx2 - sy2) + c2s

        den = b1 * b2
        inv = pl.reciprocal(den, approx=True)             # EUP
        inv = inv * (2.0 - den * inv)                     # one Newton step
        s_map = (a1 * a2) * inv * mask                    # (ho_pad, wo_pad)

        # Pairwise (tree) sublane reduction down to an 8-row partial.
        chunks = [s_map[r:r + 8, :] for r in range(0, ho_pad, 8)]
        while len(chunks) > 1:
            nxt = [chunks[i] + chunks[i + 1]
                   for i in range(0, len(chunks) - 1, 2)]
            if len(chunks) % 2:
                nxt.append(chunks[-1])
            chunks = nxt

        w_t = (base + t < n_slices).astype(jnp.float32)   # dynamic tail-slice gate
        acc = acc + w_t * chunks[0]

    @pl.when(b == 0)
    def _():
        out_ref[...] = jnp.zeros_like(out_ref)

    out_ref[...] = out_ref[...] + acc


def _build_constants(h_pad, ho, ho_pad, w_pad, wo, wo_pad):
    """Banded 0/1 filters (K-duplicated for the hi/lo split) + validity mask."""
    o = np.arange(ho_pad)[:, None]
    i = np.arange(h_pad)[None, :]
    a_row = ((i >= o) & (i < o + WIN) & (o < ho)).astype(np.float32)
    a_row2 = np.concatenate([a_row, a_row], axis=1)           # (ho_pad, 2*h_pad)

    j = np.arange(w_pad)[:, None]
    k = np.arange(wo_pad)[None, :]
    a_col = ((j >= k) & (j < k + WIN) & (k < wo)).astype(np.float32)
    a_col2 = np.concatenate([a_col, a_col], axis=0)           # (2*w_pad, wo_pad)

    mask = ((np.arange(ho_pad)[:, None] < ho) &
            (np.arange(wo_pad)[None, :] < wo)).astype(np.float32)

    return (jnp.asarray(a_row2, dtype=jnp.bfloat16),
            jnp.asarray(a_col2, dtype=jnp.bfloat16),
            jnp.asarray(mask, dtype=jnp.float32))


def challenge_ssim(gt, pred, data_range=None):
    """1 - mean_over_slices(SSIM(gt[s], pred[s])) == ChallengeSSIM.forward (mask=False)."""
    gt = jnp.asarray(gt, jnp.float32)
    pred = jnp.asarray(pred, jnp.float32)
    if gt.ndim != 3:
        gt = jnp.squeeze(gt)
    if pred.ndim != 3:
        pred = jnp.squeeze(pred)
    n_slices, H, W = gt.shape

    Ho, Wo = H - WIN + 1, W - WIN + 1
    H_pad = _round_up(H, 16)          # 16 = bf16 sublane tile (row-stage hi/lo stack)
    Ho_pad = _round_up(Ho, 8)
    W_pad = _round_up(W, 128)         # lane-dense input tiles / col-stage K = 2*W_pad
    Wo_pad = _round_up(Wo, 128)       # lane-dense outputs / matmul N

    maxval = jnp.max(gt) if data_range is None else jnp.asarray(data_range, jnp.float32)
    c1 = (K1 * maxval) ** 2
    c2 = (K2 * maxval) ** 2
    params = jnp.stack([c1 * (NP * NP), c2 * (NP * NP)]).astype(jnp.float32)

    # Core split of the slice axis only on multi-TensorCore chips (pure serial
    # overhead on 1-core v5e/v6e).
    NC = max(1, min(2, _num_tensorcores(), n_slices))

    # Slices per grid step, budgeted against the per-step VMEM working set
    # (double-buffered gt/pred tiles, resident column sums, weights, row-stage
    # and SSIM temporaries).  ~12 MiB/step is safe under v7x's smaller VMEM
    # while big enough to be HBM-roofline friendly on v5e/v6e.
    budget = 12 << 20
    per_slice = (2 * 2 * H_pad * W_pad * 4        # gt+pred blocks, double buffered
                 + 2 * H_pad * W_pad * 4          # map / hi-lo temporaries
                 + 5 * H_pad * Wo_pad * 4)        # resident column-stage sums
    fixed = (2 * 2 * (Ho_pad * 2 * H_pad + 2 * W_pad * Wo_pad)  # bf16 weights x2 bufs
             + 2 * Ho_pad * Wo_pad * 4                          # mask x2 bufs
             + 4 * H_pad * 5 * Wo_pad * 4                       # row-stage concat temps
             + 8 * Ho_pad * Wo_pad * 4)                         # box / SSIM temps
    TS = int(max(1, min(16, (budget - fixed) // max(per_slice, 1),
                        _cdiv(n_slices, NC))))
    NB = _cdiv(n_slices, NC * TS)
    S_pad = NC * NB * TS

    pad = ((0, S_pad - n_slices), (0, H_pad - H), (0, W_pad - W))
    if any(p[1] for p in pad):
        gt = jnp.pad(gt, pad)
        pred = jnp.pad(pred, pad)
    gt2 = gt.reshape(S_pad * H_pad, W_pad)
    pred2 = pred.reshape(S_pad * H_pad, W_pad)

    a_row2, a_col2, mask = _build_constants(H_pad, Ho, Ho_pad, W_pad, Wo, Wo_pad)

    kernel = functools.partial(
        _ssim_kernel, ts=TS, h_pad=H_pad, ho_pad=Ho_pad, wo_pad=Wo_pad,
        nb=NB, n_slices=n_slices)

    partials = pl.pallas_call(
        kernel,
        out_shape=jax.ShapeDtypeStruct((NC * 8, Wo_pad), jnp.float32),
        grid=(NC, NB),
        in_specs=[
            pl.BlockSpec(memory_space=pltpu.MemorySpace.SMEM),                # C1*49^2, C2*49^2
            pl.BlockSpec((TS * H_pad, W_pad), lambda c, b: (c * NB + b, 0)),  # gt block
            pl.BlockSpec((TS * H_pad, W_pad), lambda c, b: (c * NB + b, 0)),  # pred block
            pl.BlockSpec((Ho_pad, 2 * H_pad), lambda c, b: (0, 0)),           # [A_row | A_row]
            pl.BlockSpec((2 * W_pad, Wo_pad), lambda c, b: (0, 0)),           # [A_col ; A_col]
            pl.BlockSpec((Ho_pad, Wo_pad), lambda c, b: (0, 0)),              # validity mask
        ],
        out_specs=pl.BlockSpec((8, Wo_pad), lambda c, b: (c, 0)),             # per-core accumulator
        compiler_params=pltpu.CompilerParams(
            dimension_semantics=("parallel", "arbitrary"),
            vmem_limit_bytes=32 * 1024 * 1024),
    )(params, gt2, pred2, a_row2, a_col2, mask)

    ssim_mean = jnp.sum(partials) / (n_slices * Ho * Wo)
    return 1.0 - ssim_mean


def _reference_ssim(gt, pred, data_range=None):
    """Pure-JAX (no Pallas, no MXU) reference mirroring the PyTorch module."""
    gt = jnp.asarray(gt, jnp.float32)
    pred = jnp.asarray(pred, jnp.float32)
    maxval = jnp.max(gt) if data_range is None else jnp.asarray(data_range, jnp.float32)
    c1 = (K1 * maxval) ** 2
    c2 = (K2 * maxval) ** 2
    n_slices, H, W = gt.shape
    Ho, Wo = H - WIN + 1, W - WIN + 1

    def box_mean(x):
        r = jnp.zeros((Ho, W), jnp.float32)
        for d in range(WIN):
            r = r + x[d:d + Ho, :]
        c = jnp.zeros((Ho, Wo), jnp.float32)
        for d in range(WIN):
            c = c + r[:, d:d + Wo]
        return c / NP

    total = 0.0
    for s in range(n_slices):
        X, Y = gt[s], pred[s]
        ux, uy = box_mean(X), box_mean(Y)
        uxx, uyy, uxy = box_mean(X * X), box_mean(Y * Y), box_mean(X * Y)
        vx = COV_NORM * (uxx - ux * ux)
        vy = COV_NORM * (uyy - uy * uy)
        vxy = COV_NORM * (uxy - ux * uy)
        A1 = 2.0 * ux * uy + c1
        A2 = 2.0 * vxy + c2
        B1 = ux * ux + uy * uy + c1
        B2 = vx + vy + c2
        total = total + jnp.mean(A1 * A2 / (B1 * B2))
    return 1.0 - total / n_slices


if __name__ == "__main__":
    key = jax.random.PRNGKey(0)
    k_gt, k_noise = jax.random.split(key)
    # (slices, H, W): small but representative; 5 slices exercises the
    # tail-slice gating path when the slice axis is blocked/padded.
    S, H, W = 5, 64, 64
    gt = jax.random.uniform(k_gt, (S, H, W), dtype=jnp.float32)
    pred = gt + 0.05 * jax.random.normal(k_noise, (S, H, W), dtype=jnp.float32)

    loss = jax.block_until_ready(challenge_ssim(gt, pred))
    ref = jax.block_until_ready(_reference_ssim(gt, pred))
    assert jnp.allclose(loss, ref, rtol=1e-3, atol=3e-4), (loss, ref)

    print("KERNEL_OK")
</pallas_src>

<mosaic_0001>
module attributes {stable_mosaic.version = 11 : i64} {
  func.func @_ssim_kernel(%arg0: i32, %arg1: i32, %arg2: memref<2xf32, #tpu.memory_space<smem>>, %arg3: memref<320x128xf32, #tpu.memory_space<vmem>>, %arg4: memref<320x128xf32, #tpu.memory_space<vmem>>, %arg5: memref<64x128xbf16, #tpu.memory_space<vmem>>, %arg6: memref<256x128xbf16, #tpu.memory_space<vmem>>, %arg7: memref<64x128xf32, #tpu.memory_space<vmem>>, %arg8: memref<8x128xf32, #tpu.memory_space<vmem>>) attributes {dimension_semantics = [#tpu.dimension_semantics<parallel>, #tpu.dimension_semantics<arbitrary>], iteration_bounds = array<i64: 1, 1>, scalar_prefetch = 0 : i64, scratch_operands = 0 : i64, tpu.core_type = #tpu.core_type<tc>, window_params = [{transform_indices = @transform_0, window_bounds = array<i64: 2>}, {transform_indices = @transform_1, window_bounds = array<i64: 320, 128>}, {transform_indices = @transform_2, window_bounds = array<i64: 320, 128>}, {pipeline_mode = #tpu.pipeline_mode<synchronous>, transform_indices = @transform_3, window_bounds = array<i64: 64, 128>}, {pipeline_mode = #tpu.pipeline_mode<synchronous>, transform_indices = @transform_4, window_bounds = array<i64: 256, 128>}, {pipeline_mode = #tpu.pipeline_mode<synchronous>, transform_indices = @transform_5, window_bounds = array<i64: 64, 128>}, {transform_indices = @transform_6, window_bounds = array<i64: 8, 128>}]} {
    %c0 = arith.constant 0 : index
    %0 = memref.load %arg2[%c0] : memref<2xf32, #tpu.memory_space<smem>>
    %c1 = arith.constant 1 : index
    %1 = memref.load %arg2[%c1] : memref<2xf32, #tpu.memory_space<smem>>
    %c0_0 = arith.constant 0 : index
    %c0_1 = arith.constant 0 : index
    %2 = vector.load %arg3[%c0_0, %c0_1] : memref<320x128xf32, #tpu.memory_space<vmem>>, vector<320x128xf32>
    %c0_2 = arith.constant 0 : index
    %c0_3 = arith.constant 0 : index
    %3 = vector.load %arg4[%c0_2, %c0_3] : memref<320x128xf32, #tpu.memory_space<vmem>>, vector<320x128xf32>
    %c0_4 = arith.constant 0 : index
    %c0_5 = arith.constant 0 : index
    %4 = vector.load %arg5[%c0_4, %c0_5] : memref<64x128xbf16, #tpu.memory_space<vmem>>, vector<64x128xbf16>
    %c0_6 = arith.constant 0 : index
    %c0_7 = arith.constant 0 : index
    %5 = vector.load %arg6[%c0_6, %c0_7] : memref<256x128xbf16, #tpu.memory_space<vmem>>, vector<256x128xbf16>
    %c0_8 = arith.constant 0 : index
    %c0_9 = arith.constant 0 : index
    %6 = vector.load %arg7[%c0_8, %c0_9] : memref<64x128xf32, #tpu.memory_space<vmem>>, vector<64x128xf32>
    %7 = arith.truncf %2 : vector<320x128xf32> to vector<320x128xbf16>
    %8 = arith.extf %7 : vector<320x128xbf16> to vector<320x128xf32>
    %9 = arith.subf %2, %8 : vector<320x128xf32>
    %10 = arith.truncf %9 : vector<320x128xf32> to vector<320x128xbf16>
    %11 = tpu.concatenate %7, %10 in 1 : vector<320x128xbf16>, vector<320x128xbf16> -> vector<320x256xbf16>
    %cst = arith.constant dense<0.000000e+00> : vector<320x128xf32>
    %12 = tpu.matmul %11, %5, %cst {dimension_numbers = #tpu.dot_dimension_numbers<[1], [0], [0], [1], [0, 0, 1, 1], [], []>} : vector<320x256xbf16>, vector<256x128xbf16>, vector<320x128xf32> -> vector<320x128xf32>
    %13 = arith.truncf %3 : vector<320x128xf32> to vector<320x128xbf16>
    %14 = arith.extf %13 : vector<320x128xbf16> to vector<320x128xf32>
    %15 = arith.subf %3, %14 : vector<320x128xf32>
    %16 = arith.truncf %15 : vector<320x128xf32> to vector<320x128xbf16>
    %17 = tpu.concatenate %13, %16 in 1 : vector<320x128xbf16>, vector<320x128xbf16> -> vector<320x256xbf16>
    %cst_10 = arith.constant dense<0.000000e+00> : vector<320x128xf32>
    %18 = tpu.matmul %17, %5, %cst_10 {dimension_numbers = #tpu.dot_dimension_numbers<[1], [0], [0], [1], [0, 0, 1, 1], [], []>} : vector<320x256xbf16>, vector<256x128xbf16>, vector<320x128xf32> -> vector<320x128xf32>
    %19 = arith.mulf %2, %2 : vector<320x128xf32>
    %20 = arith.truncf %19 : vector<320x128xf32> to vector<320x128xbf16>
    %21 = arith.extf %20 : vector<320x128xbf16> to vector<320x128xf32>
    %22 = arith.subf %19, %21 : vector<320x128xf32>
    %23 = arith.truncf %22 : vector<320x128xf32> to vector<320x128xbf16>
    %24 = tpu.concatenate %20, %23 in 1 : vector<320x128xbf16>, vector<320x128xbf16> -> vector<320x256xbf16>
    %cst_11 = arith.constant dense<0.000000e+00> : vector<320x128xf32>
    %25 = tpu.matmul %24, %5, %cst_11 {dimension_numbers = #tpu.dot_dimension_numbers<[1], [0], [0], [1], [0, 0, 1, 1], [], []>} : vector<320x256xbf16>, vector<256x128xbf16>, vector<320x128xf32> -> vector<320x128xf32>
    %26 = arith.mulf %3, %3 : vector<320x128xf32>
    %27 = arith.truncf %26 : vector<320x128xf32> to vector<320x128xbf16>
    %28 = arith.extf %27 : vector<320x128xbf16> to vector<320x128xf32>
    %29 = arith.subf %26, %28 : vector<320x128xf32>
    %30 = arith.truncf %29 : vector<320x128xf32> to vector<320x128xbf16>
    %31 = tpu.concatenate %27, %30 in 1 : vector<320x128xbf16>, vector<320x128xbf16> -> vector<320x256xbf16>
    %cst_12 = arith.constant dense<0.000000e+00> : vector<320x128xf32>
    %32 = tpu.matmul %31, %5, %cst_12 {dimension_numbers = #tpu.dot_dimension_numbers<[1], [0], [0], [1], [0, 0, 1, 1], [], []>} : vector<320x256xbf16>, vector<256x128xbf16>, vector<320x128xf32> -> vector<320x128xf32>
    %33 = arith.mulf %2, %3 : vector<320x128xf32>
    %34 = arith.truncf %33 : vector<320x128xf32> to vector<320x128xbf16>
    %35 = arith.extf %34 : vector<320x128xbf16> to vector<320x128xf32>
    %36 = arith.subf %33, %35 : vector<320x128xf32>
    %37 = arith.truncf %36 : vector<320x128xf32> to vector<320x128xbf16>
    %38 = tpu.concatenate %34, %37 in 1 : vector<320x128xbf16>, vector<320x128xbf16> -> vector<320x256xbf16>
    %cst_13 = arith.constant dense<0.000000e+00> : vector<320x128xf32>
    %39 = tpu.matmul %38, %5, %cst_13 {dimension_numbers = #tpu.dot_dimension_numbers<[1], [0], [0], [1], [0, 0, 1, 1], [], []>} : vector<320x256xbf16>, vector<256x128xbf16>, vector<320x128xf32> -> vector<320x128xf32>
    %c1_i32 = arith.constant 1 : i32
    %40 = arith.muli %arg0, %c1_i32 : i32
    %41 = arith.addi %40, %arg1 : i32
    %c5_i32 = arith.constant 5 : i32
    %42 = arith.muli %41, %c5_i32 : i32
    %cst_14 = arith.constant 0.000000e+00 : f32
    %43 = vector.broadcast %cst_14 : f32 to vector<8x128xf32>
    %44 = vector.extract_strided_slice %12 {offsets = [0, 0], sizes = [64, 128], strides = [1, 1]} : vector<320x128xf32> to vector<64x128xf32>
    %45 = vector.extract_strided_slice %18 {offsets = [0, 0], sizes = [64, 128], strides = [1, 1]} : vector<320x128xf32> to vector<64x128xf32>
    %46 = vector.extract_strided_slice %25 {offsets = [0, 0], sizes = [64, 128], strides = [1, 1]} : vector<320x128xf32> to vector<64x128xf32>
    %47 = vector.extract_strided_slice %32 {offsets = [0, 0], sizes = [64, 128], strides = [1, 1]} : vector<320x128xf32> to vector<64x128xf32>
    %48 = vector.extract_strided_slice %39 {offsets = [0, 0], sizes = [64, 128], strides = [1, 1]} : vector<320x128xf32> to vector<64x128xf32>
    %49 = tpu.concatenate %44, %45, %46, %47, %48 in 1 : vector<64x128xf32>, vector<64x128xf32>, vector<64x128xf32>, vector<64x128xf32>, vector<64x128xf32> -> vector<64x640xf32>
    %50 = arith.truncf %49 : vector<64x640xf32> to vector<64x640xbf16>
    %51 = arith.extf %50 : vector<64x640xbf16> to vector<64x640xf32>
    %52 = arith.subf %49, %51 : vector<64x640xf32>
    %53 = arith.truncf %52 : vector<64x640xf32> to vector<64x640xbf16>
    %54 = tpu.concatenate %50, %53 in 0 : vector<64x640xbf16>, vector<64x640xbf16> -> vector<128x640xbf16>
    %cst_15 = arith.constant dense<0.000000e+00> : vector<64x640xf32>
    %55 = tpu.matmul %4, %54, %cst_15 {dimension_numbers = #tpu.dot_dimension_numbers<[1], [0], [0], [1], [0, 0, 1, 1], [], []>} : vector<64x128xbf16>, vector<128x640xbf16>, vector<64x640xf32> -> vector<64x640xf32>
    %56 = vector.extract_strided_slice %55 {offsets = [0, 0], sizes = [64, 128], strides = [1, 1]} : vector<64x640xf32> to vector<64x128xf32>
    %57 = vector.extract_strided_slice %55 {offsets = [0, 128], sizes = [64, 128], strides = [1, 1]} : vector<64x640xf32> to vector<64x128xf32>
    %58 = vector.extract_strided_slice %55 {offsets = [0, 256], sizes = [64, 128], strides = [1, 1]} : vector<64x640xf32> to vector<64x128xf32>
    %59 = vector.extract_strided_slice %55 {offsets = [0, 384], sizes = [64, 128], strides = [1, 1]} : vector<64x640xf32> to vector<64x128xf32>
    %60 = vector.extract_strided_slice %55 {offsets = [0, 512], sizes = [64, 128], strides = [1, 1]} : vector<64x640xf32> to vector<64x128xf32>
    %61 = arith.mulf %56, %57 : vector<64x128xf32>
    %62 = arith.mulf %56, %56 : vector<64x128xf32>
    %63 = arith.mulf %57, %57 : vector<64x128xf32>
    %cst_16 = arith.constant 2.000000e+00 : f32
    %64 = vector.broadcast %cst_16 : f32 to vector<64x128xf32>
    %65 = arith.mulf %64, %61 : vector<64x128xf32>
    %66 = vector.broadcast %0 : f32 to vector<64x128xf32>
    %67 = arith.addf %65, %66 : vector<64x128xf32>
    %68 = arith.addf %62, %63 : vector<64x128xf32>
    %69 = vector.broadcast %0 : f32 to vector<64x128xf32>
    %70 = arith.addf %68, %69 : vector<64x128xf32>
    %cst_17 = arith.constant 4.900000e+01 : f32
    %71 = vector.broadcast %cst_17 : f32 to vector<64x128xf32>
    %72 = arith.mulf %71, %60 : vector<64x128xf32>
    %73 = arith.subf %72, %61 : vector<64x128xf32>
    %cst_18 = arith.constant 2.04166675 : f32
    %74 = vector.broadcast %cst_18 : f32 to vector<64x128xf32>
    %75 = arith.mulf %74, %73 : vector<64x128xf32>
    %76 = vector.broadcast %1 : f32 to vector<64x128xf32>
    %77 = arith.addf %75, %76 : vector<64x128xf32>
    %78 = arith.addf %58, %59 : vector<64x128xf32>
    %cst_19 = arith.constant 4.900000e+01 : f32
    %79 = vector.broadcast %cst_19 : f32 to vector<64x128xf32>
    %80 = arith.mulf %79, %78 : vector<64x128xf32>
    %81 = arith.subf %80, %62 : vector<64x128xf32>
    %82 = arith.subf %81, %63 : vector<64x128xf32>
    %cst_20 = arith.constant 1.02083337 : f32
    %83 = vector.broadcast %cst_20 : f32 to vector<64x128xf32>
    %84 = arith.mulf %83, %82 : vector<64x128xf32>
    %85 = vector.broadcast %1 : f32 to vector<64x128xf32>
    %86 = arith.addf %84, %85 : vector<64x128xf32>
    %87 = arith.mulf %70, %86 : vector<64x128xf32>
    %88 = tpu.reciprocal %87 {approx = true} : vector<64x128xf32> -> vector<64x128xf32>
    %89 = arith.mulf %87, %88 : vector<64x128xf32>
    %cst_21 = arith.constant 2.000000e+00 : f32
    %90 = vector.broadcast %cst_21 : f32 to vector<64x128xf32>
    %91 = arith.subf %90, %89 : vector<64x128xf32>
    %92 = arith.mulf %88, %91 : vector<64x128xf32>
    %93 = arith.mulf %67, %77 : vector<64x128xf32>
    %94 = arith.mulf %93, %92 : vector<64x128xf32>
    %95 = arith.mulf %94, %6 : vector<64x128xf32>
    %96 = vector.extract_strided_slice %95 {offsets = [0, 0], sizes = [8, 128], strides = [1, 1]} : vector<64x128xf32> to vector<8x128xf32>
    %97 = vector.extract_strided_slice %95 {offsets = [8, 0], sizes = [8, 128], strides = [1, 1]} : vector<64x128xf32> to vector<8x128xf32>
    %98 = vector.extract_strided_slice %95 {offsets = [16, 0], sizes = [8, 128], strides = [1, 1]} : vector<64x128xf32> to vector<8x128xf32>
    %99 = vector.extract_strided_slice %95 {offsets = [24, 0], sizes = [8, 128], strides = [1, 1]} : vector<64x128xf32> to vector<8x128xf32>
    %100 = vector.extract_strided_slice %95 {offsets = [32, 0], sizes = [8, 128], strides = [1, 1]} : vector<64x128xf32> to vector<8x128xf32>
    %101 = vector.extract_strided_slice %95 {offsets = [40, 0], sizes = [8, 128], strides = [1, 1]} : vector<64x128xf32> to vector<8x128xf32>
    %102 = vector.extract_strided_slice %95 {offsets = [48, 0], sizes = [8, 128], strides = [1, 1]} : vector<64x128xf32> to vector<8x128xf32>
    %103 = vector.extract_strided_slice %95 {offsets = [56, 0], sizes = [8, 128], strides = [1, 1]} : vector<64x128xf32> to vector<8x128xf32>
    %104 = arith.addf %96, %97 : vector<8x128xf32>
    %105 = arith.addf %98, %99 : vector<8x128xf32>
    %106 = arith.addf %100, %101 : vector<8x128xf32>
    %107 = arith.addf %102, %103 : vector<8x128xf32>
    %108 = arith.addf %104, %105 : vector<8x128xf32>
    %109 = arith.addf %106, %107 : vector<8x128xf32>
    %110 = arith.addf %108, %109 : vector<8x128xf32>
    %c0_i32 = arith.constant 0 : i32
    %111 = arith.addi %42, %c0_i32 : i32
    %c5_i32_22 = arith.constant 5 : i32
    %112 = arith.cmpi slt, %111, %c5_i32_22 : i32
    %113 = arith.extui %112 : i1 to i32
    %114 = arith.sitofp %113 : i32 to f32
    %115 = vector.broadcast %114 : f32 to vector<8x128xf32>
    %116 = arith.mulf %115, %110 : vector<8x128xf32>
    %117 = arith.addf %43, %116 : vector<8x128xf32>
    %118 = vector.extract_strided_slice %12 {offsets = [64, 0], sizes = [64, 128], strides = [1, 1]} : vector<320x128xf32> to vector<64x128xf32>
    %119 = vector.extract_strided_slice %18 {offsets = [64, 0], sizes = [64, 128], strides = [1, 1]} : vector<320x128xf32> to vector<64x128xf32>
    %120 = vector.extract_strided_slice %25 {offsets = [64, 0], sizes = [64, 128], strides = [1, 1]} : vector<320x128xf32> to vector<64x128xf32>
    %121 = vector.extract_strided_slice %32 {offsets = [64, 0], sizes = [64, 128], strides = [1, 1]} : vector<320x128xf32> to vector<64x128xf32>
    %122 = vector.extract_strided_slice %39 {offsets = [64, 0], sizes = [64, 128], strides = [1, 1]} : vector<320x128xf32> to vector<64x128xf32>
    %123 = tpu.concatenate %118, %119, %120, %121, %122 in 1 : vector<64x128xf32>, vector<64x128xf32>, vector<64x128xf32>, vector<64x128xf32>, vector<64x128xf32> -> vector<64x640xf32>
    %124 = arith.truncf %123 : vector<64x640xf32> to vector<64x640xbf16>
    %125 = arith.extf %124 : vector<64x640xbf16> to vector<64x640xf32>
    %126 = arith.subf %123, %125 : vector<64x640xf32>
    %127 = arith.truncf %126 : vector<64x640xf32> to vector<64x640xbf16>
    %128 = tpu.concatenate %124, %127 in 0 : vector<64x640xbf16>, vector<64x640xbf16> -> vector<128x640xbf16>
    %cst_23 = arith.constant dense<0.000000e+00> : vector<64x640xf32>
    %129 = tpu.matmul %4, %128, %cst_23 {dimension_numbers = #tpu.dot_dimension_numbers<[1], [0], [0], [1], [0, 0, 1, 1], [], []>} : vector<64x128xbf16>, vector<128x640xbf16>, vector<64x640xf32> -> vector<64x640xf32>
    %130 = vector.extract_strided_slice %129 {offsets = [0, 0], sizes = [64, 128], strides = [1, 1]} : vector<64x640xf32> to vector<64x128xf32>
    %131 = vector.extract_strided_slice %129 {offsets = [0, 128], sizes = [64, 128], strides = [1, 1]} : vector<64x640xf32> to vector<64x128xf32>
    %132 = vector.extract_strided_slice %129 {offsets = [0, 256], sizes = [64, 128], strides = [1, 1]} : vector<64x640xf32> to vector<64x128xf32>
    %133 = vector.extract_strided_slice %129 {offsets = [0, 384], sizes = [64, 128], strides = [1, 1]} : vector<64x640xf32> to vector<64x128xf32>
    %134 = vector.extract_strided_slice %129 {offsets = [0, 512], sizes = [64, 128], strides = [1, 1]} : vector<64x640xf32> to vector<64x128xf32>
    %135 = arith.mulf %130, %131 : vector<64x128xf32>
    %136 = arith.mulf %130, %130 : vector<64x128xf32>
    %137 = arith.mulf %131, %131 : vector<64x128xf32>
    %cst_24 = arith.constant 2.000000e+00 : f32
    %138 = vector.broadcast %cst_24 : f32 to vector<64x128xf32>
    %139 = arith.mulf %138, %135 : vector<64x128xf32>
    %140 = vector.broadcast %0 : f32 to vector<64x128xf32>
    %141 = arith.addf %139, %140 : vector<64x128xf32>
    %142 = arith.addf %136, %137 : vector<64x128xf32>
    %143 = vector.broadcast %0 : f32 to vector<64x128xf32>
    %144 = arith.addf %142, %143 : vector<64x128xf32>
    %cst_25 = arith.constant 4.900000e+01 : f32
    %145 = vector.broadcast %cst_25 : f32 to vector<64x128xf32>
    %146 = arith.mulf %145, %134 : vector<64x128xf32>
    %147 = arith.subf %146, %135 : vector<64x128xf32>
    %cst_26 = arith.constant 2.04166675 : f32
    %148 = vector.broadcast %cst_26 : f32 to vector<64x128xf32>
    %149 = arith.mulf %148, %147 : vector<64x128xf32>
    %150 = vector.broadcast %1 : f32 to vector<64x128xf32>
    %151 = arith.addf %149, %150 : vector<64x128xf32>
    %152 = arith.addf %132, %133 : vector<64x128xf32>
    %cst_27 = arith.constant 4.900000e+01 : f32
    %153 = vector.broadcast %cst_27 : f32 to vector<64x128xf32>
    %154 = arith.mulf %153, %152 : vector<64x128xf32>
    %155 = arith.subf %154, %136 : vector<64x128xf32>
    %156 = arith.subf %155, %137 : vector<64x128xf32>
    %cst_28 = arith.constant 1.02083337 : f32
    %157 = vector.broadcast %cst_28 : f32 to vector<64x128xf32>
    %158 = arith.mulf %157, %156 : vector<64x128xf32>
    %159 = vector.broadcast %1 : f32 to vector<64x128xf32>
    %160 = arith.addf %158, %159 : vector<64x128xf32>
    %161 = arith.mulf %144, %160 : vector<64x128xf32>
    %162 = tpu.reciprocal %161 {approx = true} : vector<64x128xf32> -> vector<64x128xf32>
    %163 = arith.mulf %161, %162 : vector<64x128xf32>
    %cst_29 = arith.constant 2.000000e+00 : f32
    %164 = vector.broadcast %cst_29 : f32 to vector<64x128xf32>
    %165 = arith.subf %164, %163 : vector<64x128xf32>
    %166 = arith.mulf %162, %165 : vector<64x128xf32>
    %167 = arith.mulf %141, %151 : vector<64x128xf32>
    %168 = arith.mulf %167, %166 : vector<64x128xf32>
    %169 = arith.mulf %168, %6 : vector<64x128xf32>
    %170 = vector.extract_strided_slice %169 {offsets = [0, 0], sizes = [8, 128], strides = [1, 1]} : vector<64x128xf32> to vector<8x128xf32>
    %171 = vector.extract_strided_slice %169 {offsets = [8, 0], sizes = [8, 128], strides = [1, 1]} : vector<64x128xf32> to vector<8x128xf32>
    %172 = vector.extract_strided_slice %169 {offsets = [16, 0], sizes = [8, 128], strides = [1, 1]} : vector<64x128xf32> to vector<8x128xf32>
    %173 = vector.extract_strided_slice %169 {offsets = [24, 0], sizes = [8, 128], strides = [1, 1]} : vector<64x128xf32> to vector<8x128xf32>
    %174 = vector.extract_strided_slice %169 {offsets = [32, 0], sizes = [8, 128], strides = [1, 1]} : vector<64x128xf32> to vector<8x128xf32>
    %175 = vector.extract_strided_slice %169 {offsets = [40, 0], sizes = [8, 128], strides = [1, 1]} : vector<64x128xf32> to vector<8x128xf32>
    %176 = vector.extract_strided_slice %169 {offsets = [48, 0], sizes = [8, 128], strides = [1, 1]} : vector<64x128xf32> to vector<8x128xf32>
    %177 = vector.extract_strided_slice %169 {offsets = [56, 0], sizes = [8, 128], strides = [1, 1]} : vector<64x128xf32> to vector<8x128xf32>
    %178 = arith.addf %170, %171 : vector<8x128xf32>
    %179 = arith.addf %172, %173 : vector<8x128xf32>
    %180 = arith.addf %174, %175 : vector<8x128xf32>
    %181 = arith.addf %176, %177 : vector<8x128xf32>
    %182 = arith.addf %178, %179 : vector<8x128xf32>
    %183 = arith.addf %180, %181 : vector<8x128xf32>
    %184 = arith.addf %182, %183 : vector<8x128xf32>
    %c1_i32_30 = arith.constant 1 : i32
    %185 = arith.addi %42, %c1_i32_30 : i32
    %c5_i32_31 = arith.constant 5 : i32
    %186 = arith.cmpi slt, %185, %c5_i32_31 : i32
    %187 = arith.extui %186 : i1 to i32
    %188 = arith.sitofp %187 : i32 to f32
    %189 = vector.broadcast %188 : f32 to vector<8x128xf32>
    %190 = arith.mulf %189, %184 : vector<8x128xf32>
    %191 = arith.addf %117, %190 : vector<8x128xf32>
    %192 = vector.extract_strided_slice %12 {offsets = [128, 0], sizes = [64, 128], strides = [1, 1]} : vector<320x128xf32> to vector<64x128xf32>
    %193 = vector.extract_strided_slice %18 {offsets = [128, 0], sizes = [64, 128], strides = [1, 1]} : vector<320x128xf32> to vector<64x128xf32>
    %194 = vector.extract_strided_slice %25 {offsets = [128, 0], sizes = [64, 128], strides = [1, 1]} : vector<320x128xf32> to vector<64x128xf32>
    %195 = vector.extract_strided_slice %32 {offsets = [128, 0], sizes = [64, 128], strides = [1, 1]} : vector<320x128xf32> to vector<64x128xf32>
    %196 = vector.extract_strided_slice %39 {offsets = [128, 0], sizes = [64, 128], strides = [1, 1]} : vector<320x128xf32> to vector<64x128xf32>
    %197 = tpu.concatenate %192, %193, %194, %195, %196 in 1 : vector<64x128xf32>, vector<64x128xf32>, vector<64x128xf32>, vector<64x128xf32>, vector<64x128xf32> -> vector<64x640xf32>
    %198 = arith.truncf %197 : vector<64x640xf32> to vector<64x640xbf16>
    %199 = arith.extf %198 : vector<64x640xbf16> to vector<64x640xf32>
    %200 = arith.subf %197, %199 : vector<64x640xf32>
    %201 = arith.truncf %200 : vector<64x640xf32> to vector<64x640xbf16>
    %202 = tpu.concatenate %198, %201 in 0 : vector<64x640xbf16>, vector<64x640xbf16> -> vector<128x640xbf16>
    %cst_32 = arith.constant dense<0.000000e+00> : vector<64x640xf32>
    %203 = tpu.matmul %4, %202, %cst_32 {dimension_numbers = #tpu.dot_dimension_numbers<[1], [0], [0], [1], [0, 0, 1, 1], [], []>} : vector<64x128xbf16>, vector<128x640xbf16>, vector<64x640xf32> -> vector<64x640xf32>
    %204 = vector.extract_strided_slice %203 {offsets = [0, 0], sizes = [64, 128], strides = [1, 1]} : vector<64x640xf32> to vector<64x128xf32>
    %205 = vector.extract_strided_slice %203 {offsets = [0, 128], sizes = [64, 128], strides = [1, 1]} : vector<64x640xf32> to vector<64x128xf32>
    %206 = vector.extract_strided_slice %203 {offsets = [0, 256], sizes = [64, 128], strides = [1, 1]} : vector<64x640xf32> to vector<64x128xf32>
    %207 = vector.extract_strided_slice %203 {offsets = [0, 384], sizes = [64, 128], strides = [1, 1]} : vector<64x640xf32> to vector<64x128xf32>
    %208 = vector.extract_strided_slice %203 {offsets = [0, 512], sizes = [64, 128], strides = [1, 1]} : vector<64x640xf32> to vector<64x128xf32>
    %209 = arith.mulf %204, %205 : vector<64x128xf32>
    %210 = arith.mulf %204, %204 : vector<64x128xf32>
    %211 = arith.mulf %205, %205 : vector<64x128xf32>
    %cst_33 = arith.constant 2.000000e+00 : f32
    %212 = vector.broadcast %cst_33 : f32 to vector<64x128xf32>
    %213 = arith.mulf %212, %209 : vector<64x128xf32>
    %214 = vector.broadcast %0 : f32 to vector<64x128xf32>
    %215 = arith.addf %213, %214 : vector<64x128xf32>
    %216 = arith.addf %210, %211 : vector<64x128xf32>
    %217 = vector.broadcast %0 : f32 to vector<64x128xf32>
    %218 = arith.addf %216, %217 : vector<64x128xf32>
    %cst_34 = arith.constant 4.900000e+01 : f32
    %219 = vector.broadcast %cst_34 : f32 to vector<64x128xf32>
    %220 = arith.mulf %219, %208 : vector<64x128xf32>
    %221 = arith.subf %220, %209 : vector<64x128xf32>
    %cst_35 = arith.constant 2.04166675 : f32
    %222 = vector.broadcast %cst_35 : f32 to vector<64x128xf32>
    %223 = arith.mulf %222, %221 : vector<64x128xf32>
    %224 = vector.broadcast %1 : f32 to vector<64x128xf32>
    %225 = arith.addf %223, %224 : vector<64x128xf32>
    %226 = arith.addf %206, %207 : vector<64x128xf32>
    %cst_36 = arith.constant 4.900000e+01 : f32
    %227 = vector.broadcast %cst_36 : f32 to vector<64x128xf32>
    %228 = arith.mulf %227, %226 : vector<64x128xf32>
    %229 = arith.subf %228, %210 : vector<64x128xf32>
    %230 = arith.subf %229, %211 : vector<64x128xf32>
    %cst_37 = arith.constant 1.02083337 : f32
    %231 = vector.broadcast %cst_37 : f32 to vector<64x128xf32>
    %232 = arith.mulf %231, %230 : vector<64x128xf32>
    %233 = vector.broadcast %1 : f32 to vector<64x128xf32>
    %234 = arith.addf %232, %233 : vector<64x128xf32>
    %235 = arith.mulf %218, %234 : vector<64x128xf32>
    %236 = tpu.reciprocal %235 {approx = true} : vector<64x128xf32> -> vector<64x128xf32>
    %237 = arith.mulf %235, %236 : vector<64x128xf32>
    %cst_38 = arith.constant 2.000000e+00 : f32
    %238 = vector.broadcast %cst_38 : f32 to vector<64x128xf32>
    %239 = arith.subf %238, %237 : vector<64x128xf32>
    %240 = arith.mulf %236, %239 : vector<64x128xf32>
    %241 = arith.mulf %215, %225 : vector<64x128xf32>
    %242 = arith.mulf %241, %240 : vector<64x128xf32>
    %243 = arith.mulf %242, %6 : vector<64x128xf32>
    %244 = vector.extract_strided_slice %243 {offsets = [0, 0], sizes = [8, 128], strides = [1, 1]} : vector<64x128xf32> to vector<8x128xf32>
    %245 = vector.extract_strided_slice %243 {offsets = [8, 0], sizes = [8, 128], strides = [1, 1]} : vector<64x128xf32> to vector<8x128xf32>
    %246 = vector.extract_strided_slice %243 {offsets = [16, 0], sizes = [8, 128], strides = [1, 1]} : vector<64x128xf32> to vector<8x128xf32>
    %247 = vector.extract_strided_slice %243 {offsets = [24, 0], sizes = [8, 128], strides = [1, 1]} : vector<64x128xf32> to vector<8x128xf32>
    %248 = vector.extract_strided_slice %243 {offsets = [32, 0], sizes = [8, 128], strides = [1, 1]} : vector<64x128xf32> to vector<8x128xf32>
    %249 = vector.extract_strided_slice %243 {offsets = [40, 0], sizes = [8, 128], strides = [1, 1]} : vector<64x128xf32> to vector<8x128xf32>
    %250 = vector.extract_strided_slice %243 {offsets = [48, 0], sizes = [8, 128], strides = [1, 1]} : vector<64x128xf32> to vector<8x128xf32>
    %251 = vector.extract_strided_slice %243 {offsets = [56, 0], sizes = [8, 128], strides = [1, 1]} : vector<64x128xf32> to vector<8x128xf32>
    %252 = arith.addf %244, %245 : vector<8x128xf32>
    %253 = arith.addf %246, %247 : vector<8x128xf32>
    %254 = arith.addf %248, %249 : vector<8x128xf32>
    %255 = arith.addf %250, %251 : vector<8x128xf32>
    %256 = arith.addf %252, %253 : vector<8x128xf32>
    %257 = arith.addf %254, %255 : vector<8x128xf32>
    %258 = arith.addf %256, %257 : vector<8x128xf32>
    %c2_i32 = arith.constant 2 : i32
    %259 = arith.addi %42, %c2_i32 : i32
    %c5_i32_39 = arith.constant 5 : i32
    %260 = arith.cmpi slt, %259, %c5_i32_39 : i32
    %261 = arith.extui %260 : i1 to i32
    %262 = arith.sitofp %261 : i32 to f32
    %263 = vector.broadcast %262 : f32 to vector<8x128xf32>
    %264 = arith.mulf %263, %258 : vector<8x128xf32>
    %265 = arith.addf %191, %264 : vector<8x128xf32>
    %266 = vector.extract_strided_slice %12 {offsets = [192, 0], sizes = [64, 128], strides = [1, 1]} : vector<320x128xf32> to vector<64x128xf32>
    %267 = vector.extract_strided_slice %18 {offsets = [192, 0], sizes = [64, 128], strides = [1, 1]} : vector<320x128xf32> to vector<64x128xf32>
    %268 = vector.extract_strided_slice %25 {offsets = [192, 0], sizes = [64, 128], strides = [1, 1]} : vector<320x128xf32> to vector<64x128xf32>
    %269 = vector.extract_strided_slice %32 {offsets = [192, 0], sizes = [64, 128], strides = [1, 1]} : vector<320x128xf32> to vector<64x128xf32>
    %270 = vector.extract_strided_slice %39 {offsets = [192, 0], sizes = [64, 128], strides = [1, 1]} : vector<320x128xf32> to vector<64x128xf32>
    %271 = tpu.concatenate %266, %267, %268, %269, %270 in 1 : vector<64x128xf32>, vector<64x128xf32>, vector<64x128xf32>, vector<64x128xf32>, vector<64x128xf32> -> vector<64x640xf32>
    %272 = arith.truncf %271 : vector<64x640xf32> to vector<64x640xbf16>
    %273 = arith.extf %272 : vector<64x640xbf16> to vector<64x640xf32>
    %274 = arith.subf %271, %273 : vector<64x640xf32>
    %275 = arith.truncf %274 : vector<64x640xf32> to vector<64x640xbf16>
    %276 = tpu.concatenate %272, %275 in 0 : vector<64x640xbf16>, vector<64x640xbf16> -> vector<128x640xbf16>
    %cst_40 = arith.constant dense<0.000000e+00> : vector<64x640xf32>
    %277 = tpu.matmul %4, %276, %cst_40 {dimension_numbers = #tpu.dot_dimension_numbers<[1], [0], [0], [1], [0, 0, 1, 1], [], []>} : vector<64x128xbf16>, vector<128x640xbf16>, vector<64x640xf32> -> vector<64x640xf32>
    %278 = vector.extract_strided_slice %277 {offsets = [0, 0], sizes = [64, 128], strides = [1, 1]} : vector<64x640xf32> to vector<64x128xf32>
    %279 = vector.extract_strided_slice %277 {offsets = [0, 128], sizes = [64, 128], strides = [1, 1]} : vector<64x640xf32> to vector<64x128xf32>
    %280 = vector.extract_strided_slice %277 {offsets = [0, 256], sizes = [64, 128], strides = [1, 1]} : vector<64x640xf32> to vector<64x128xf32>
    %281 = vector.extract_strided_slice %277 {offsets = [0, 384], sizes = [64, 128], strides = [1, 1]} : vector<64x640xf32> to vector<64x128xf32>
    %282 = vector.extract_strided_slice %277 {offsets = [0, 512], sizes = [64, 128], strides = [1, 1]} : vector<64x640xf32> to vector<64x128xf32>
    %283 = arith.mulf %278, %279 : vector<64x128xf32>
    %284 = arith.mulf %278, %278 : vector<64x128xf32>
    %285 = arith.mulf %279, %279 : vector<64x128xf32>
    %cst_41 = arith.constant 2.000000e+00 : f32
    %286 = vector.broadcast %cst_41 : f32 to vector<64x128xf32>
    %287 = arith.mulf %286, %283 : vector<64x128xf32>
    %288 = vector.broadcast %0 : f32 to vector<64x128xf32>
    %289 = arith.addf %287, %288 : vector<64x128xf32>
    %290 = arith.addf %284, %285 : vector<64x128xf32>
    %291 = vector.broadcast %0 : f32 to vector<64x128xf32>
    %292 = arith.addf %290, %291 : vector<64x128xf32>
    %cst_42 = arith.constant 4.900000e+01 : f32
    %293 = vector.broadcast %cst_42 : f32 to vector<64x128xf32>
    %294 = arith.mulf %293, %282 : vector<64x128xf32>
    %295 = arith.subf %294, %283 : vector<64x128xf32>
    %cst_43 = arith.constant 2.04166675 : f32
    %296 = vector.broadcast %cst_43 : f32 to vector<64x128xf32>
    %297 = arith.mulf %296, %295 : vector<64x128xf32>
    %298 = vector.broadcast %1 : f32 to vector<64x128xf32>
    %299 = arith.addf %297, %298 : vector<64x128xf32>
    %300 = arith.addf %280, %281 : vector<64x128xf32>
    %cst_44 = arith.constant 4.900000e+01 : f32
    %301 = vector.broadcast %cst_44 : f32 to vector<64x128xf32>
    %302 = arith.mulf %301, %300 : vector<64x128xf32>
    %303 = arith.subf %302, %284 : vector<64x128xf32>
    %304 = arith.subf %303, %285 : vector<64x128xf32>
    %cst_45 = arith.constant 1.02083337 : f32
    %305 = vector.broadcast %cst_45 : f32 to vector<64x128xf32>
    %306 = arith.mulf %305, %304 : vector<64x128xf32>
    %307 = vector.broadcast %1 : f32 to vector<64x128xf32>
    %308 = arith.addf %306, %307 : vector<64x128xf32>
    %309 = arith.mulf %292, %308 : vector<64x128xf32>
    %310 = tpu.reciprocal %309 {approx = true} : vector<64x128xf32> -> vector<64x128xf32>
    %311 = arith.mulf %309, %310 : vector<64x128xf32>
    %cst_46 = arith.constant 2.000000e+00 : f32
    %312 = vector.broadcast %cst_46 : f32 to vector<64x128xf32>
    %313 = arith.subf %312, %311 : vector<64x128xf32>
    %314 = arith.mulf %310, %313 : vector<64x128xf32>
    %315 = arith.mulf %289, %299 : vector<64x128xf32>
    %316 = arith.mulf %315, %314 : vector<64x128xf32>
    %317 = arith.mulf %316, %6 : vector<64x128xf32>
    %318 = vector.extract_strided_slice %317 {offsets = [0, 0], sizes = [8, 128], strides = [1, 1]} : vector<64x128xf32> to vector<8x128xf32>
    %319 = vector.extract_strided_slice %317 {offsets = [8, 0], sizes = [8, 128], strides = [1, 1]} : vector<64x128xf32> to vector<8x128xf32>
    %320 = vector.extract_strided_slice %317 {offsets = [16, 0], sizes = [8, 128], strides = [1, 1]} : vector<64x128xf32> to vector<8x128xf32>
    %321 = vector.extract_strided_slice %317 {offsets = [24, 0], sizes = [8, 128], strides = [1, 1]} : vector<64x128xf32> to vector<8x128xf32>
    %322 = vector.extract_strided_slice %317 {offsets = [32, 0], sizes = [8, 128], strides = [1, 1]} : vector<64x128xf32> to vector<8x128xf32>
    %323 = vector.extract_strided_slice %317 {offsets = [40, 0], sizes = [8, 128], strides = [1, 1]} : vector<64x128xf32> to vector<8x128xf32>
    %324 = vector.extract_strided_slice %317 {offsets = [48, 0], sizes = [8, 128], strides = [1, 1]} : vector<64x128xf32> to vector<8x128xf32>
    %325 = vector.extract_strided_slice %317 {offsets = [56, 0], sizes = [8, 128], strides = [1, 1]} : vector<64x128xf32> to vector<8x128xf32>
    %326 = arith.addf %318, %319 : vector<8x128xf32>
    %327 = arith.addf %320, %321 : vector<8x128xf32>
    %328 = arith.addf %322, %323 : vector<8x128xf32>
    %329 = arith.addf %324, %325 : vector<8x128xf32>
    %330 = arith.addf %326, %327 : vector<8x128xf32>
    %331 = arith.addf %328, %329 : vector<8x128xf32>
    %332 = arith.addf %330, %331 : vector<8x128xf32>
    %c3_i32 = arith.constant 3 : i32
    %333 = arith.addi %42, %c3_i32 : i32
    %c5_i32_47 = arith.constant 5 : i32
    %334 = arith.cmpi slt, %333, %c5_i32_47 : i32
    %335 = arith.extui %334 : i1 to i32
    %336 = arith.sitofp %335 : i32 to f32
    %337 = vector.broadcast %336 : f32 to vector<8x128xf32>
    %338 = arith.mulf %337, %332 : vector<8x128xf32>
    %339 = arith.addf %265, %338 : vector<8x128xf32>
    %340 = vector.extract_strided_slice %12 {offsets = [256, 0], sizes = [64, 128], strides = [1, 1]} : vector<320x128xf32> to vector<64x128xf32>
    %341 = vector.extract_strided_slice %18 {offsets = [256, 0], sizes = [64, 128], strides = [1, 1]} : vector<320x128xf32> to vector<64x128xf32>
    %342 = vector.extract_strided_slice %25 {offsets = [256, 0], sizes = [64, 128], strides = [1, 1]} : vector<320x128xf32> to vector<64x128xf32>
    %343 = vector.extract_strided_slice %32 {offsets = [256, 0], sizes = [64, 128], strides = [1, 1]} : vector<320x128xf32> to vector<64x128xf32>
    %344 = vector.extract_strided_slice %39 {offsets = [256, 0], sizes = [64, 128], strides = [1, 1]} : vector<320x128xf32> to vector<64x128xf32>
    %345 = tpu.concatenate %340, %341, %342, %343, %344 in 1 : vector<64x128xf32>, vector<64x128xf32>, vector<64x128xf32>, vector<64x128xf32>, vector<64x128xf32> -> vector<64x640xf32>
    %346 = arith.truncf %345 : vector<64x640xf32> to vector<64x640xbf16>
    %347 = arith.extf %346 : vector<64x640xbf16> to vector<64x640xf32>
    %348 = arith.subf %345, %347 : vector<64x640xf32>
    %349 = arith.truncf %348 : vector<64x640xf32> to vector<64x640xbf16>
    %350 = tpu.concatenate %346, %349 in 0 : vector<64x640xbf16>, vector<64x640xbf16> -> vector<128x640xbf16>
    %cst_48 = arith.constant dense<0.000000e+00> : vector<64x640xf32>
    %351 = tpu.matmul %4, %350, %cst_48 {dimension_numbers = #tpu.dot_dimension_numbers<[1], [0], [0], [1], [0, 0, 1, 1], [], []>} : vector<64x128xbf16>, vector<128x640xbf16>, vector<64x640xf32> -> vector<64x640xf32>
    %352 = vector.extract_strided_slice %351 {offsets = [0, 0], sizes = [64, 128], strides = [1, 1]} : vector<64x640xf32> to vector<64x128xf32>
    %353 = vector.extract_strided_slice %351 {offsets = [0, 128], sizes = [64, 128], strides = [1, 1]} : vector<64x640xf32> to vector<64x128xf32>
    %354 = vector.extract_strided_slice %351 {offsets = [0, 256], sizes = [64, 128], strides = [1, 1]} : vector<64x640xf32> to vector<64x128xf32>
    %355 = vector.extract_strided_slice %351 {offsets = [0, 384], sizes = [64, 128], strides = [1, 1]} : vector<64x640xf32> to vector<64x128xf32>
    %356 = vector.extract_strided_slice %351 {offsets = [0, 512], sizes = [64, 128], strides = [1, 1]} : vector<64x640xf32> to vector<64x128xf32>
    %357 = arith.mulf %352, %353 : vector<64x128xf32>
    %358 = arith.mulf %352, %352 : vector<64x128xf32>
    %359 = arith.mulf %353, %353 : vector<64x128xf32>
    %cst_49 = arith.constant 2.000000e+00 : f32
    %360 = vector.broadcast %cst_49 : f32 to vector<64x128xf32>
    %361 = arith.mulf %360, %357 : vector<64x128xf32>
    %362 = vector.broadcast %0 : f32 to vector<64x128xf32>
    %363 = arith.addf %361, %362 : vector<64x128xf32>
    %364 = arith.addf %358, %359 : vector<64x128xf32>
    %365 = vector.broadcast %0 : f32 to vector<64x128xf32>
    %366 = arith.addf %364, %365 : vector<64x128xf32>
    %cst_50 = arith.constant 4.900000e+01 : f32
    %367 = vector.broadcast %cst_50 : f32 to vector<64x128xf32>
    %368 = arith.mulf %367, %356 : vector<64x128xf32>
    %369 = arith.subf %368, %357 : vector<64x128xf32>
    %cst_51 = arith.constant 2.04166675 : f32
    %370 = vector.broadcast %cst_51 : f32 to vector<64x128xf32>
    %371 = arith.mulf %370, %369 : vector<64x128xf32>
    %372 = vector.broadcast %1 : f32 to vector<64x128xf32>
    %373 = arith.addf %371, %372 : vector<64x128xf32>
    %374 = arith.addf %354, %355 : vector<64x128xf32>
    %cst_52 = arith.constant 4.900000e+01 : f32
    %375 = vector.broadcast %cst_52 : f32 to vector<64x128xf32>
    %376 = arith.mulf %375, %374 : vector<64x128xf32>
    %377 = arith.subf %376, %358 : vector<64x128xf32>
    %378 = arith.subf %377, %359 : vector<64x128xf32>
    %cst_53 = arith.constant 1.02083337 : f32
    %379 = vector.broadcast %cst_53 : f32 to vector<64x128xf32>
    %380 = arith.mulf %379, %378 : vector<64x128xf32>
    %381 = vector.broadcast %1 : f32 to vector<64x128xf32>
    %382 = arith.addf %380, %381 : vector<64x128xf32>
    %383 = arith.mulf %366, %382 : vector<64x128xf32>
    %384 = tpu.reciprocal %383 {approx = true} : vector<64x128xf32> -> vector<64x128xf32>
    %385 = arith.mulf %383, %384 : vector<64x128xf32>
    %cst_54 = arith.constant 2.000000e+00 : f32
    %386 = vector.broadcast %cst_54 : f32 to vector<64x128xf32>
    %387 = arith.subf %386, %385 : vector<64x128xf32>
    %388 = arith.mulf %384, %387 : vector<64x128xf32>
    %389 = arith.mulf %363, %373 : vector<64x128xf32>
    %390 = arith.mulf %389, %388 : vector<64x128xf32>
    %391 = arith.mulf %390, %6 : vector<64x128xf32>
    %392 = vector.extract_strided_slice %391 {offsets = [0, 0], sizes = [8, 128], strides = [1, 1]} : vector<64x128xf32> to vector<8x128xf32>
    %393 = vector.extract_strided_slice %391 {offsets = [8, 0], sizes = [8, 128], strides = [1, 1]} : vector<64x128xf32> to vector<8x128xf32>
    %394 = vector.extract_strided_slice %391 {offsets = [16, 0], sizes = [8, 128], strides = [1, 1]} : vector<64x128xf32> to vector<8x128xf32>
    %395 = vector.extract_strided_slice %391 {offsets = [24, 0], sizes = [8, 128], strides = [1, 1]} : vector<64x128xf32> to vector<8x128xf32>
    %396 = vector.extract_strided_slice %391 {offsets = [32, 0], sizes = [8, 128], strides = [1, 1]} : vector<64x128xf32> to vector<8x128xf32>
    %397 = vector.extract_strided_slice %391 {offsets = [40, 0], sizes = [8, 128], strides = [1, 1]} : vector<64x128xf32> to vector<8x128xf32>
    %398 = vector.extract_strided_slice %391 {offsets = [48, 0], sizes = [8, 128], strides = [1, 1]} : vector<64x128xf32> to vector<8x128xf32>
    %399 = vector.extract_strided_slice %391 {offsets = [56, 0], sizes = [8, 128], strides = [1, 1]} : vector<64x128xf32> to vector<8x128xf32>
    %400 = arith.addf %392, %393 : vector<8x128xf32>
    %401 = arith.addf %394, %395 : vector<8x128xf32>
    %402 = arith.addf %396, %397 : vector<8x128xf32>
    %403 = arith.addf %398, %399 : vector<8x128xf32>
    %404 = arith.addf %400, %401 : vector<8x128xf32>
    %405 = arith.addf %402, %403 : vector<8x128xf32>
    %406 = arith.addf %404, %405 : vector<8x128xf32>
    %c4_i32 = arith.constant 4 : i32
    %407 = arith.addi %42, %c4_i32 : i32
    %c5_i32_55 = arith.constant 5 : i32
    %408 = arith.cmpi slt, %407, %c5_i32_55 : i32
    %409 = arith.extui %408 : i1 to i32
    %410 = arith.sitofp %409 : i32 to f32
    %411 = vector.broadcast %410 : f32 to vector<8x128xf32>
    %412 = arith.mulf %411, %406 : vector<8x128xf32>
    %413 = arith.addf %339, %412 : vector<8x128xf32>
    %c0_i32_56 = arith.constant 0 : i32
    %414 = arith.cmpi eq, %arg1, %c0_i32_56 : i32
    %415 = arith.extui %414 : i1 to i32
    %c0_i32_57 = arith.constant 0 : i32
    %416 = arith.cmpi ne, %415, %c0_i32_57 : i32
    scf.if %416 {
      %cst_62 = arith.constant 0.000000e+00 : f32
      %420 = vector.broadcast %cst_62 : f32 to vector<8x128xf32>
      %c0_63 = arith.constant 0 : index
      %c0_64 = arith.constant 0 : index
      %421 = vector.load %arg8[%c0_63, %c0_64] : memref<8x128xf32, #tpu.memory_space<vmem>>, vector<8x128xf32>
      tpu.vector_store %arg8[%c0_63, %c0_64], %420 {strides = array<i32>} : memref<8x128xf32, #tpu.memory_space<vmem>>, vector<8x128xf32>,
    } else {
    }
    %c0_58 = arith.constant 0 : index
    %c0_59 = arith.constant 0 : index
    %417 = vector.load %arg8[%c0_58, %c0_59] : memref<8x128xf32, #tpu.memory_space<vmem>>, vector<8x128xf32>
    %418 = arith.addf %417, %413 : vector<8x128xf32>
    %c0_60 = arith.constant 0 : index
    %c0_61 = arith.constant 0 : index
    %419 = vector.load %arg8[%c0_60, %c0_61] : memref<8x128xf32, #tpu.memory_space<vmem>>, vector<8x128xf32>
    tpu.vector_store %arg8[%c0_60, %c0_61], %418 {strides = array<i32>} : memref<8x128xf32, #tpu.memory_space<vmem>>, vector<8x128xf32>,
    return
  }
  func.func @transform_0(%arg0: i32, %arg1: i32) -> i32 {
    %c0_i32 = arith.constant 0 : i32
    %c0_i32_0 = arith.constant 0 : i32
    return %c0_i32 : i32
  }
  func.func @transform_1(%arg0: i32, %arg1: i32) -> (i32, i32) {
    %c1_i32 = arith.constant 1 : i32
    %0 = arith.muli %arg0, %c1_i32 : i32
    %1 = arith.addi %0, %arg1 : i32
    %c0_i32 = arith.constant 0 : i32
    %c0_i32_0 = arith.constant 0 : i32
    return %1, %c0_i32 : i32, i32
  }
  func.func @transform_2(%arg0: i32, %arg1: i32) -> (i32, i32) {
    %c1_i32 = arith.constant 1 : i32
    %0 = arith.muli %arg0, %c1_i32 : i32
    %1 = arith.addi %0, %arg1 : i32
    %c0_i32 = arith.constant 0 : i32
    %c0_i32_0 = arith.constant 0 : i32
    return %1, %c0_i32 : i32, i32
  }
  func.func @transform_3(%arg0: i32, %arg1: i32) -> (i32, i32) {
    %c0_i32 = arith.constant 0 : i32
    %c0_i32_0 = arith.constant 0 : i32
    %c0_i32_1 = arith.constant 0 : i32
    return %c0_i32, %c0_i32_0 : i32, i32
  }
  func.func @transform_4(%arg0: i32, %arg1: i32) -> (i32, i32) {
    %c0_i32 = arith.constant 0 : i32
    %c0_i32_0 = arith.constant 0 : i32
    %c0_i32_1 = arith.constant 0 : i32
    return %c0_i32, %c0_i32_0 : i32, i32
  }
  func.func @transform_5(%arg0: i32, %arg1: i32) -> (i32, i32) {
    %c0_i32 = arith.constant 0 : i32
    %c0_i32_0 = arith.constant 0 : i32
    %c0_i32_1 = arith.constant 0 : i32
    return %c0_i32, %c0_i32_0 : i32, i32
  }
  func.func @transform_6(%arg0: i32, %arg1: i32) -> (i32, i32) {
    %c0_i32 = arith.constant 0 : i32
    %c0_i32_0 = arith.constant 0 : i32
    return %arg0, %c0_i32 : i32, i32
  }
}

</mosaic_0001>

<bundles_post_ra>
// kernel: tpu_custom_call.1
= control target key start
LH: loop header
LB: loop body
LE: loop exit
PB: predicated region body
PF: predicated region fallthrough
CT: control target
= control target key end

     0   :  { %11 = vsyncpa [#allocation5], 0  ;;  %s11030_s0 = inlined_call_operand.hbm [shape: f32[2], index: 0, kind: input, shape index: {}]   ;;  %s11031_s1 = inlined_call_operand.hbm [shape: f32[320,128], index: 1, kind: input, shape index: {}]   ;;  %s11032_s2 = inlined_call_operand.hbm [shape: f32[320,128], index: 2, kind: input, shape index: {}]   ;;  %s11033_s3 = inlined_call_operand.hbm [shape: bf16[64,128], index: 3, kind: input, shape index: {}]   ;;  %s11034_s4 = inlined_call_operand.hbm [shape: bf16[256,128], index: 4, kind: input, shape index: {}]   ;;  %s11035_s5 = inlined_call_operand.hbm [shape: f32[64,128], index: 5, kind: input, shape index: {}]   ;;  %s11036_s6 = inlined_call_operand.hbm [shape: f32[8,128], index: 6, kind: output, shape index: {}]  }
   0x1   :  { %12 = vsyncpa [#allocation3], 0 }
   0x2   :  { %13 = vsyncpa [#allocation8], 0 }
   0x3   :  { %14 = vsyncpa [#allocation11], 0 }
   0x4   :  { %15 = vsyncpa [#allocation4], 0  ;;  %s50_s23 = sshll.u32 %s11032_s2, 4  ;;  %s7664_s24 = smov [#allocation7]   ;;  %s51_s23 = int_to_ptr.hbm [resolvable:$true] %s50_s23 }
   0x5   :  { %s52_s25 = sshll.u32 %s7664_s24, 4  ;;  %s7665_s26 = smov 128   ;;  %s53_s25 = int_to_ptr.vmem [resolvable:$true] %s52_s25 }
   0x6   :  { %s7666_s27 = smov 8   ;;  %s76_s30 = sshll.u32 %s11034_s4, 4  ;;  %s77_s30 = int_to_ptr.hbm [resolvable:$true] %s76_s30 }
   0x7   :  { %58 = dma.hbm_to_vmem [thread:$0]  %s51_s23, 5120, %s53_s25, [#allocation8], %s7665_s26, %s7665_s26, %s7666_s27  }
   0x8   :  { %s7667_s7 = smov [#allocation10]   ;;  %s21_s2 = sshll.u32 %s11030_s0, 4  ;;  %s22_s2 = int_to_ptr.hbm [resolvable:$true] %s21_s2 }
   0x9   :  { %s78_s8 = sshll.u32 %s7667_s7, 4  ;;  %s7668_s11 = smov 64   ;;  %s79_s8 = int_to_ptr.vmem [resolvable:$true] %s78_s8 }
   0xa   :  { %s7669_s12 = smov 4   ;;  %s33_s15 = sshll.u32 %s11031_s1, 4  ;;  %s34_s15 = int_to_ptr.hbm [resolvable:$true] %s33_s15 }
   0xb   :  { %84 = dma.hbm_to_vmem [thread:$0]  %s77_s30, 2048, %s79_s8, [#allocation11], %s7668_s11, %s7668_s11, %s7669_s12  }
   0xc   :  { %s7670_s16 = smov [#allocation2]   ;;  %s7671_s4 = smov [#allocation6]  }
   0xd   :  { %24 = dma.hbm_to_smem %s22_s2, 16, %s7670_s16, [#allocation5]  }
   0xe   :  { %s35_s17 = sshll.u32 %s7671_s4, 4  ;;  %s63_s20 = sshll.u32 %s11033_s3, 4  ;;  %s36_s17 = int_to_ptr.vmem [resolvable:$true] %s35_s17  ;;  %s64_s20 = int_to_ptr.hbm [resolvable:$true] %s63_s20 }
   0xf   :  { %41 = dma.hbm_to_vmem [thread:$0]  %s34_s15, 5120, %s36_s17, [#allocation3], %s7665_s26, %s7665_s26, %s7666_s27  }
  0x10   :  { %s89_s22 = sshll.u32 %s11035_s5, 4  ;;  %s7672_s1 = smov [#allocation9]   ;;  %s90_s22 = int_to_ptr.hbm [resolvable:$true] %s89_s22 }
  0x11   :  { %s65_s23 = sshll.u32 %s7672_s1, 4  ;;  %s7673_s24 = smov [#allocation12]   ;;  %s66_s23 = int_to_ptr.vmem [resolvable:$true] %s65_s23 }
  0x12   :  { %71 = dma.hbm_to_vmem [thread:$0]  %s64_s20, 512, %s66_s23, [#allocation8], %s7668_s11, %s7668_s11, %s7669_s12  }
  0x13   :  { %s91_s25 = sshll.u32 %s7673_s24, 4  ;;  %s92_s25 = int_to_ptr.vmem [resolvable:$true] %s91_s25 }
  0x14   :  { %97 = dma.hbm_to_vmem [thread:$0]  %s90_s22, 1024, %s92_s25, [#allocation11], %s7665_s26, %s7665_s26, %s7666_s27  }
  0x15   :  { %7654 = dma.done.wait [#allocation5], 16  }
  0x16   :  { %7655 = vsyncadd [#allocation5], 4294967280 }
  0x17   :  { %7656 = dma.done.wait [#allocation3], 5120  }
  0x18   :  { %7657 = vsyncadd [#allocation3], 4294962176 }
  0x19   :  { %7658 = dma.done.wait [#allocation8], 5632  }
  0x1a   :  { %7659 = vsyncadd [#allocation8], 4294961664 }
  0x1b   :  { %7660 = dma.done.wait [#allocation11], 3072  }
  0x1c   :  { %7661 = vsyncadd [#allocation11], 4294964224 }
  0x1d   :  { %122 = sfence }
  0x1e   :  { %v7737_v0 = vld [vmem:[#allocation10 + $0x38] sm:$0xff]  ;;  %v7743_v2 = vld [vmem:[#allocation10 + $0x30] sm:$0xff]  ;;  %v7749_v4 = vld [vmem:[#allocation10 + $0x28] sm:$0xff]  ;;  %s9612_s3 = sld [smem:[#allocation2]]  ;;  %s7674_s26 = smov [#allocation13]  }
  0x1f   :  { %v7739_v1 = vld [vmem:[#allocation10 + $0x78] sm:$0xff]  ;;  %753 = vmatpush.bf16.msra.mxu0 %v7737_v0  ;;  %v7745_v3 = vld [vmem:[#allocation10 + $0x70] sm:$0xff]  ;;  %1371 = vmatpush.bf16.msra.mxu2 %v7737_v0  ;;  %v7753_v5 = vld [vmem:[#allocation10 + $0x68] sm:$0xff]  ;;  %s7093_s5 = sld [smem:[#allocation2 + $0x1]]  ;;  %s7078_s27 = sshll.u32 %s7674_s26, 4  ;;  %s7079_s27 = int_to_ptr.vmem [resolvable:$true] %s7078_s27 }
  0x20   :  { %862 = vmatpush.bf16.msra.mxu1 %v7739_v1  ;;  %1480 = vmatpush.bf16.msra.mxu3 %v7739_v1  ;;  %v129_v6 = vld [vmem:[#allocation6] sm:$0xff]  ;;  %v130_v7 = vld [vmem:[#allocation6 + $0x8] sm:$0xff]  ;;  %v7772_v18 = vld [vmem:[#allocation10 + $0x18] sm:$0xff]  ;;  %s7080_s30 = sshll.u32 %s11036_s6, 4  ;;  %s7081_s30 = int_to_ptr.hbm [resolvable:$true] %s7080_s30 }
  0x21   :  { %v169_v8 = vld [vmem:[#allocation7] sm:$0xff]  ;;  %v170_v9 = vld [vmem:[#allocation7 + $0x8] sm:$0xff]  ;;  %v7757_v10 = vpack.c.bf16 %v129_v6, %v129_v6  ;;  %v258_v11 = vpack.c.bf16 %v130_v7, %v130_v7  ;;  %v7774_v19 = vld [vmem:[#allocation10 + $0x58] sm:$0xff] }
  0x22   :  { %v7761_v12 = vld [vmem:[#allocation10 + $0x20] sm:$0xff]  ;;  %v7765_v14 = vpack.c.bf16 %v169_v8, %v169_v8  ;;  %v972_v15 = vpack.c.bf16 %v170_v9, %v170_v9  ;;  %v7781_v24 = vld [vmem:[#allocation10 + $0x10] sm:$0xff]  ;;  %v7787_v28 = vld [vmem:[#allocation10 + $0x8] sm:$0xff] }
  0x23   :  { %754 = vmatpush.bf16.msra.mxu0 %v7743_v2  ;;  %1372 = vmatpush.bf16.msra.mxu2 %v7743_v2  ;;  %v7763_v13 = vld [vmem:[#allocation10 + $0x60] sm:$0xff]  ;;  %v297_v16 = vunpack.c.l.bf16 %v7757_v10  ;;  %v298_v17 = vunpack.c.l.bf16 %v258_v11  ;;  %v7783_v25 = vld [vmem:[#allocation10 + $0x50] sm:$0xff]  ;;  %v7791_v31 = vld [vmem:[#allocation10 + $0x48] sm:$0xff]  ;;  %v457_v38 = vunpack.c.l.b16 %v7757_v10  ;;  %v458_v39 = vunpack.c.l.b16 %v258_v11 }
  0x24   :  { %863 = vmatpush.bf16.msra.mxu1 %v7745_v3  ;;  %1481 = vmatpush.bf16.msra.mxu3 %v7745_v3  ;;  %v1011_v20 = vunpack.c.l.bf16 %v7765_v14  ;;  %v1012_v21 = vunpack.c.l.bf16 %v972_v15  ;;  %v131_v34 = vld [vmem:[#allocation6 + $0x10] sm:$0xff]  ;;  %v132_v35 = vld [vmem:[#allocation6 + $0x18] sm:$0xff]  ;;  %v1171_v40 = vunpack.c.l.b16 %v7765_v14  ;;  %v1172_v41 = vunpack.c.l.b16 %v972_v15  ;;  %v7803_v46 = vld [vmem:[#allocation10] sm:$0xff] }
  0x25   :  { %v337_v22 = vsub.f32 %v129_v6, %v297_v16  ;;  %v338_v23 = vsub.f32 %v130_v7, %v298_v17  ;;  %v171_v36 = vld [vmem:[#allocation7 + $0x10] sm:$0xff]  ;;  %v172_v37 = vld [vmem:[#allocation7 + $0x18] sm:$0xff]  ;;  %v7797_v44 = vpack.c.bf16 %v131_v34, %v131_v34  ;;  %v7799_v45 = vpack.c.bf16 %v132_v35, %v132_v35  ;;  %v7805_v47 = vld [vmem:[#allocation10 + $0x40] sm:$0xff] }
  0x26   :  { %v1051_v26 = vsub.f32 %v169_v8, %v1011_v20  ;;  %v1052_v27 = vsub.f32 %v170_v9, %v1012_v21  ;;  %v7807_v50 = vpack.c.bf16 %v171_v36, %v171_v36  ;;  %v974_v51 = vpack.c.bf16 %v172_v37, %v172_v37  ;;  %v133_v10 = vld [vmem:[#allocation6 + $0x20] sm:$0xff]  ;;  %v134_v11 = vld [vmem:[#allocation6 + $0x28] sm:$0xff] }
  0x27   :  { %755 = vmatpush.bf16.msra.mxu0 %v7749_v4  ;;  %1373 = vmatpush.bf16.msra.mxu2 %v7749_v4  ;;  %v377_v29 = vpack.c.bf16 %v337_v22, %v337_v22  ;;  %v378_v30 = vpack.c.bf16 %v338_v23, %v338_v23  ;;  %v497_v52 = vpack.c.b16 %v458_v39, %v457_v38  ;;  %v299_v54 = vunpack.c.l.bf16 %v7797_v44  ;;  %v173_v14 = vld [vmem:[#allocation7 + $0x20] sm:$0xff]  ;;  %v174_v15 = vld [vmem:[#allocation7 + $0x28] sm:$0xff] }
  0x28   :  { %864 = vmatpush.bf16.msra.mxu1 %v7753_v5  ;;  %1482 = vmatpush.bf16.msra.mxu3 %v7753_v5  ;;  %v1091_v32 = vpack.c.bf16 %v1051_v26, %v1051_v26  ;;  %v1092_v33 = vpack.c.bf16 %v1052_v27, %v1052_v27  ;;  %v300_v55 = vunpack.c.l.bf16 %v7799_v45  ;;  %v1211_v56 = vpack.c.b16 %v1172_v41, %v1171_v40 }
  0x29   :  { %v577_v42 = vunpack.c.l.b16 %v377_v29  ;;  %v578_v43 = vunpack.c.l.b16 %v378_v30  ;;  %v1013_v58 = vunpack.c.l.bf16 %v7807_v50  ;;  %v1014_v59 = vunpack.c.l.bf16 %v974_v51 }
  0x2a   :  { %v1291_v48 = vunpack.c.l.b16 %v1091_v32  ;;  %v1292_v49 = vunpack.c.l.b16 %v1092_v33  ;;  %v339_v60 = vsub.f32 %v131_v34, %v299_v54  ;;  %v340_v61 = vsub.f32 %v132_v35, %v300_v55  ;;  %v175_v54 = vld [vmem:[#allocation7 + $0x30] sm:$0xff]  ;;  %v176_v55 = vld [vmem:[#allocation7 + $0x38] sm:$0xff] }
  0x2b   :  { %756 = vmatpush.bf16.msra.mxu0 %v7761_v12  ;;  %1374 = vmatpush.bf16.msra.mxu2 %v7761_v12  ;;  %v617_v53 = vpack.c.b16 %v578_v43, %v577_v42  ;;  %v1053_v62 = vsub.f32 %v171_v36, %v1013_v58  ;;  %v1054_v63 = vsub.f32 %v172_v37, %v1014_v59  ;;  %v459_v16 = vunpack.c.l.b16 %v7797_v44 }
  0x2c   :  { %865 = vmatpush.bf16.msra.mxu1 %v7763_v13  ;;  %1483 = vmatpush.bf16.msra.mxu3 %v7763_v13  ;;  %v1331_v57 = vpack.c.b16 %v1292_v49, %v1291_v48  ;;  %v379_v6 = vpack.c.bf16 %v339_v60, %v339_v60  ;;  %v380_v7 = vpack.c.bf16 %v340_v61, %v340_v61  ;;  %v460_v17 = vunpack.c.l.b16 %v7799_v45 }
  0x2d   :  { %v1093_v8 = vpack.c.bf16 %v1053_v62, %v1053_v62  ;;  %v1094_v9 = vpack.c.bf16 %v1054_v63, %v1054_v63  ;;  %v1173_v20 = vunpack.c.l.b16 %v7807_v50  ;;  %v1174_v21 = vunpack.c.l.b16 %v974_v51  ;;  %v135_v50 = vld [vmem:[#allocation6 + $0x30] sm:$0xff]  ;;  %v136_v51 = vld [vmem:[#allocation6 + $0x38] sm:$0xff] }
  0x2e   :  { %v579_v22 = vunpack.c.l.b16 %v379_v6  ;;  %v580_v23 = vunpack.c.l.b16 %v380_v7  ;;  %v7831_v26 = vpack.c.bf16 %v133_v10, %v133_v10  ;;  %v262_v27 = vpack.c.bf16 %v134_v11, %v134_v11 }
  0x2f   :  { %757 = vmatpush.bf16.msra.mxu0 %v7772_v18  ;;  %1375 = vmatpush.bf16.msra.mxu2 %v7772_v18  ;;  %v1293_v29 = vunpack.c.l.b16 %v1093_v8  ;;  %v1294_v30 = vunpack.c.l.b16 %v1094_v9  ;;  %v975_v32 = vpack.c.bf16 %v173_v14, %v173_v14  ;;  %v976_v33 = vpack.c.bf16 %v174_v15, %v174_v15 }
  0x30   :  { %866 = vmatpush.bf16.msra.mxu1 %v7774_v19  ;;  %1484 = vmatpush.bf16.msra.mxu3 %v7774_v19  ;;  %v498_v34 = vpack.c.b16 %v460_v17, %v459_v16  ;;  %v618_v35 = vpack.c.b16 %v580_v23, %v579_v22  ;;  %v301_v36 = vunpack.c.l.bf16 %v7831_v26  ;;  %v302_v37 = vunpack.c.l.bf16 %v262_v27 }
  0x31   :  { %v1212_v38 = vpack.c.b16 %v1174_v21, %v1173_v20  ;;  %v1332_v39 = vpack.c.b16 %v1294_v30, %v1293_v29  ;;  %v1015_v40 = vunpack.c.l.bf16 %v975_v32  ;;  %v1016_v41 = vunpack.c.l.bf16 %v976_v33 }
  0x32   :  { %v341_v42 = vsub.f32 %v133_v10, %v301_v36  ;;  %v342_v43 = vsub.f32 %v134_v11, %v302_v37  ;;  %v7848_v58 = vpack.c.bf16 %v135_v50, %v135_v50  ;;  %v264_v59 = vpack.c.bf16 %v136_v51, %v136_v51  ;;  %v178_v36 = vld [vmem:[#allocation7 + $0x48] sm:$0xff] }
  0x33   :  { %758 = vmatpush.bf16.msra.mxu0 %v7781_v24  ;;  %1376 = vmatpush.bf16.msra.mxu2 %v7781_v24  ;;  %v1055_v44 = vsub.f32 %v173_v14, %v1015_v40  ;;  %v1056_v45 = vsub.f32 %v174_v15, %v1016_v41  ;;  %v1175_v62 = vunpack.c.l.b16 %v975_v32  ;;  %v1176_v63 = vunpack.c.l.b16 %v976_v33  ;;  %v137_v33 = vld [vmem:[#allocation6 + $0x40] sm:$0xff] }
  0x34   :  { %867 = vmatpush.bf16.msra.mxu1 %v7783_v25  ;;  %1485 = vmatpush.bf16.msra.mxu3 %v7783_v25  ;;  %v381_v48 = vpack.c.bf16 %v341_v42, %v341_v42  ;;  %v382_v49 = vpack.c.bf16 %v342_v43, %v342_v43  ;;  %v977_v8 = vpack.c.bf16 %v175_v54, %v175_v54  ;;  %v303_v10 = vunpack.c.l.bf16 %v7848_v58 }
  0x35   :  { %v978_v9 = vpack.c.bf16 %v176_v55, %v176_v55  ;;  %v304_v11 = vunpack.c.l.bf16 %v264_v59  ;;  %v1213_v16 = vpack.c.b16 %v1176_v63, %v1175_v62  ;;  %v463_v37 = vunpack.c.l.b16 %v7848_v58  ;;  %v179_v62 = vld [vmem:[#allocation7 + $0x50] sm:$0xff] }
  0x36   :  { %v581_v60 = vunpack.c.l.b16 %v381_v48  ;;  %v582_v61 = vunpack.c.l.b16 %v382_v49  ;;  %v1017_v20 = vunpack.c.l.bf16 %v977_v8  ;;  %v343_v22 = vsub.f32 %v135_v50, %v303_v10 }
  0x37   :  { %759 = vmatpush.bf16.msra.mxu0 %v7787_v28  ;;  %1377 = vmatpush.bf16.msra.mxu2 %v7787_v28  ;;  %v1018_v21 = vunpack.c.l.bf16 %v978_v9  ;;  %v344_v23 = vsub.f32 %v136_v51, %v304_v11  ;;  %v1178_v41 = vunpack.c.l.b16 %v978_v9  ;;  %v980_v48 = vpack.c.bf16 %v178_v36, %v178_v36 }
  0x38   :  { %868 = vmatpush.bf16.msra.mxu1 %v7791_v31  ;;  %1486 = vmatpush.bf16.msra.mxu3 %v7791_v31  ;;  %v619_v15 = vpack.c.b16 %v582_v61, %v581_v60  ;;  %v383_v29 = vpack.c.bf16 %v343_v22, %v343_v22  ;;  %v140_v60 = vld [vmem:[#allocation6 + $0x58] sm:$0xff] }
  0x3b   :  { %760 = vmatpush.bf16.msra.mxu0 %v7803_v46  ;;  %1378 = vmatpush.bf16.msra.mxu2 %v7803_v46 }
  0x3c   :  { %869 = vmatpush.bf16.msra.mxu1 %v7805_v47  ;;  %1487 = vmatpush.bf16.msra.mxu3 %v7805_v47 }
  0x3e   :  { %761 = vmatmul.bf16.vlgmr.msra.gmra.mxu0 %v497_v52  ;;  %1379 = vmatmul.bf16.vlgmr.msra.gmra.mxu2 %v1211_v56  ;;  %v1095_v52 = vpack.c.bf16 %v1055_v44, %v1055_v44  ;;  %v461_v56 = vunpack.c.l.b16 %v7831_v26  ;;  %v1057_v26 = vsub.f32 %v175_v54, %v1017_v20  ;;  %v1020_v54 = vunpack.c.l.bf16 %v980_v48 }
  0x3f   :  { %2029 = vmatpush.bf16.msrb.mxu0 %v7737_v0  ;;  %870 = vmatmul.bf16.vlgmr.msra.gmra.mxu1 %v617_v53  ;;  %v1096_v53 = vpack.c.bf16 %v1056_v45, %v1056_v45 }
  0x40   :  { %2138 = vmatpush.bf16.msrb.mxu1 %v7739_v1  ;;  %1488 = vmatmul.bf16.vlgmr.msra.gmra.mxu3 %v1331_v57  ;;  %v462_v57 = vunpack.c.l.b16 %v262_v27  ;;  %v1295_v6 = vunpack.c.l.b16 %v1095_v52  ;;  %v1058_v27 = vsub.f32 %v176_v55, %v1018_v21  ;;  %v1097_v30 = vpack.c.bf16 %v1057_v26, %v1057_v26 }
  0x41   :  { %2687 = vmatpush.bf16.msrb.mxu2 %v7737_v0  ;;  %2796 = vmatpush.bf16.msrb.mxu3 %v7739_v1  ;;  %v1296_v7 = vunpack.c.l.b16 %v1096_v53 }
  0x42   :  { %v499_v14 = vpack.c.b16 %v462_v57, %v461_v56  ;;  %v1098_v32 = vpack.c.bf16 %v1058_v27, %v1058_v27  ;;  %v1297_v43 = vunpack.c.l.b16 %v1097_v30 }
  0x43   :  { %2030 = vmatpush.bf16.msrb.mxu0 %v7743_v2  ;;  %v1333_v17 = vpack.c.b16 %v1296_v7, %v1295_v6 }
  0x44   :  { %2139 = vmatpush.bf16.msrb.mxu1 %v7745_v3  ;;  %v1298_v44 = vunpack.c.l.b16 %v1098_v32 }
  0x45   :  { %2688 = vmatpush.bf16.msrb.mxu2 %v7743_v2  ;;  %2797 = vmatpush.bf16.msrb.mxu3 %v7745_v3 }
  0x46   :  { %v1334_v52 = vpack.c.b16 %v1298_v44, %v1297_v43 }
  0x47   :  { %2031 = vmatpush.bf16.msrb.mxu0 %v7749_v4 }
  0x48   :  { %2140 = vmatpush.bf16.msrb.mxu1 %v7753_v5 }
  0x49   :  { %2689 = vmatpush.bf16.msrb.mxu2 %v7749_v4  ;;  %2798 = vmatpush.bf16.msrb.mxu3 %v7753_v5 }
  0x4b   :  { %2032 = vmatpush.bf16.msrb.mxu0 %v7761_v12 }
  0x4c   :  { %2141 = vmatpush.bf16.msrb.mxu1 %v7763_v13 }
  0x4d   :  { %2690 = vmatpush.bf16.msrb.mxu2 %v7761_v12  ;;  %2799 = vmatpush.bf16.msrb.mxu3 %v7763_v13 }
  0x4e   :  { %766 = vmatmul.bf16.gmra.mxu0 %v498_v34  ;;  %1384 = vmatmul.bf16.gmra.mxu2 %v1212_v38  ;;  %v138_v34 = vld [vmem:[#allocation6 + $0x48] sm:$0xff]  ;;  %v464_v38 = vunpack.c.l.b16 %v264_v59  ;;  %v139_v59 = vld [vmem:[#allocation6 + $0x50] sm:$0xff] }
  0x4f   :  { %2033 = vmatpush.bf16.msrb.mxu0 %v7772_v18  ;;  %875 = vmatmul.bf16.gmra.mxu1 %v618_v35  ;;  %v177_v35 = vld [vmem:[#allocation7 + $0x40] sm:$0xff]  ;;  %v266_v42 = vpack.c.bf16 %v138_v34, %v138_v34  ;;  %v267_v7 = vpack.c.bf16 %v139_v59, %v139_v59 }
  0x50   :  { %1493 = vmatmul.bf16.gmra.mxu3 %v1332_v39  ;;  %2142 = vmatpush.bf16.msrb.mxu1 %v7774_v19  ;;  %v583_v39 = vunpack.c.l.b16 %v383_v29  ;;  %v979_v45 = vpack.c.bf16 %v177_v35, %v177_v35 }
  0x51   :  { %2691 = vmatpush.bf16.msrb.mxu2 %v7772_v18  ;;  %2800 = vmatpush.bf16.msrb.mxu3 %v7774_v19  ;;  %v306_v50 = vunpack.c.l.bf16 %v266_v42  ;;  %v466_v6 = vunpack.c.l.b16 %v266_v42 }
  0x52   :  { %v1019_v53 = vunpack.c.l.bf16 %v979_v45  ;;  %v1179_v10 = vunpack.c.l.b16 %v979_v45 }
  0x53   :  { %2034 = vmatpush.bf16.msrb.mxu0 %v7781_v24  ;;  %v346_v56 = vsub.f32 %v138_v34, %v306_v50  ;;  %v141_v34 = vld [vmem:[#allocation6 + $0x60] sm:$0xff] }
  0x54   :  { %2143 = vmatpush.bf16.msrb.mxu1 %v7783_v25 }
  0x55   :  { %2692 = vmatpush.bf16.msrb.mxu2 %v7781_v24  ;;  %2801 = vmatpush.bf16.msrb.mxu3 %v7783_v25  ;;  %v386_v58 = vpack.c.bf16 %v346_v56, %v346_v56 }
  0x57   :  { %2035 = vmatpush.bf16.msrb.mxu0 %v7787_v28 }
  0x58   :  { %2144 = vmatpush.bf16.msrb.mxu1 %v7791_v31 }
  0x59   :  { %2693 = vmatpush.bf16.msrb.mxu2 %v7787_v28  ;;  %2802 = vmatpush.bf16.msrb.mxu3 %v7791_v31 }
  0x5b   :  { %2036 = vmatpush.bf16.msrb.mxu0 %v7803_v46 }
  0x5c   :  { %2145 = vmatpush.bf16.msrb.mxu1 %v7805_v47 }
  0x5d   :  { %2694 = vmatpush.bf16.msrb.mxu2 %v7803_v46  ;;  %2803 = vmatpush.bf16.msrb.mxu3 %v7805_v47 }
  0x5e   :  { %771 = vmatmul.bf16.gmra.mxu0 %v499_v14  ;;  %1389 = vmatmul.bf16.gmra.mxu2 %v1213_v16 }
  0x5f   :  { %3345 = vmatpush.bf16.msra.mxu0 %v7737_v0  ;;  %880 = vmatmul.bf16.gmra.mxu1 %v619_v15  ;;  %v384_v0 = vpack.c.bf16 %v344_v23, %v344_v23  ;;  %v981_v15 = vpack.c.bf16 %v179_v62, %v179_v62 }
  0x60   :  { %1498 = vmatmul.bf16.gmra.mxu3 %v1333_v17  ;;  %3454 = vmatpush.bf16.msra.mxu1 %v7739_v1  ;;  %v1177_v1 = vunpack.c.l.b16 %v977_v8  ;;  %v268_v8 = vpack.c.bf16 %v140_v60, %v140_v60  ;;  %v307_v17 = vunpack.c.l.bf16 %v267_v7 }
  0x61   :  { %v584_v40 = vunpack.c.l.b16 %v384_v0  ;;  %v1021_v23 = vunpack.c.l.bf16 %v981_v15 }
  0x62   :  { %v1214_v51 = vpack.c.b16 %v1178_v41, %v1177_v1  ;;  %v347_v27 = vsub.f32 %v139_v59, %v307_v17  ;;  %v1181_v1 = vunpack.c.l.b16 %v981_v15  ;;  %v143_v59 = vld [vmem:[#allocation6 + $0x70] sm:$0xff] }
  0x63   :  { %3346 = vmatpush.bf16.msra.mxu0 %v7743_v2  ;;  %v265_v2 = vpack.c.bf16 %v137_v33, %v137_v33  ;;  %v620_v49 = vpack.c.b16 %v584_v40, %v583_v39  ;;  %v1061_v0 = vsub.f32 %v179_v62, %v1021_v23  ;;  %v468_v39 = vunpack.c.l.b16 %v268_v8  ;;  %v183_v62 = vld [vmem:[#allocation7 + $0x70] sm:$0xff] }
  0x64   :  { %3455 = vmatpush.bf16.msra.mxu1 %v7745_v3  ;;  %v500_v3 = vpack.c.b16 %v464_v38, %v463_v37  ;;  %v387_v30 = vpack.c.bf16 %v347_v27, %v347_v27  ;;  %v182_v37 = vld [vmem:[#allocation7 + $0x68] sm:$0xff]  ;;  %v467_v38 = vunpack.c.l.b16 %v267_v7  ;;  %v271_v7 = vpack.c.bf16 %v143_v59, %v143_v59 }
  0x65   :  { %v465_v63 = vunpack.c.l.b16 %v265_v2  ;;  %v1101_v32 = vpack.c.bf16 %v1061_v0, %v1061_v0  ;;  %v985_v15 = vpack.c.bf16 %v183_v62, %v183_v62 }
  0x66   :  { %v587_v40 = vunpack.c.l.b16 %v387_v30  ;;  %v311_v17 = vunpack.c.l.bf16 %v271_v7 }
  0x67   :  { %3347 = vmatpush.bf16.msra.mxu0 %v7749_v4  ;;  %v305_v4 = vunpack.c.l.bf16 %v265_v2  ;;  %v501_v20 = vpack.c.b16 %v466_v6, %v465_v63  ;;  %v269_v2 = vpack.c.bf16 %v141_v34, %v141_v34  ;;  %v1301_v43 = vunpack.c.l.b16 %v1101_v32 }
  0x68   :  { %3456 = vmatpush.bf16.msra.mxu1 %v7753_v5  ;;  %v1059_v5 = vsub.f32 %v177_v35, %v1019_v53  ;;  %v142_v35 = vld [vmem:[#allocation6 + $0x68] sm:$0xff]  ;;  %v1025_v23 = vunpack.c.l.bf16 %v985_v15  ;;  %v351_v27 = vsub.f32 %v143_v59, %v311_v17  ;;  %v147_v59 = vld [vmem:[#allocation6 + $0x90] sm:$0xff] }
  0x69   :  { %v345_v55 = vsub.f32 %v137_v33, %v305_v4  ;;  %v270_v42 = vpack.c.bf16 %v142_v35, %v142_v35  ;;  %v309_v4 = vunpack.c.l.bf16 %v269_v2  ;;  %v469_v63 = vunpack.c.l.b16 %v269_v2 }
  0x6a   :  { %v1099_v61 = vpack.c.bf16 %v1059_v5, %v1059_v5  ;;  %v1065_v0 = vsub.f32 %v183_v62, %v1025_v23  ;;  %v391_v30 = vpack.c.bf16 %v351_v27, %v351_v27  ;;  %v187_v62 = vld [vmem:[#allocation7 + $0x90] sm:$0xff] }
  0x6b   :  { %3348 = vmatpush.bf16.msra.mxu0 %v7761_v12  ;;  %v1060_v12 = vsub.f32 %v178_v36, %v1020_v54  ;;  %v385_v57 = vpack.c.bf16 %v345_v55, %v345_v55  ;;  %v181_v36 = vld [vmem:[#allocation7 + $0x60] sm:$0xff]  ;;  %v310_v50 = vunpack.c.l.bf16 %v270_v42  ;;  %v349_v55 = vsub.f32 %v141_v34, %v309_v4 }
  0x6c   :  { %3457 = vmatpush.bf16.msra.mxu1 %v7763_v13  ;;  %v1299_v11 = vunpack.c.l.b16 %v1099_v61  ;;  %v983_v45 = vpack.c.bf16 %v181_v36, %v181_v36  ;;  %v470_v6 = vunpack.c.l.b16 %v270_v42  ;;  %v1105_v32 = vpack.c.bf16 %v1065_v0, %v1065_v0  ;;  %v145_v34 = vld [vmem:[#allocation6 + $0x80] sm:$0xff] }
  0x6d   :  { %v1100_v13 = vpack.c.bf16 %v1060_v12, %v1060_v12  ;;  %v585_v9 = vunpack.c.l.b16 %v385_v57  ;;  %v350_v56 = vsub.f32 %v142_v35, %v310_v50  ;;  %v389_v57 = vpack.c.bf16 %v349_v55, %v349_v55  ;;  %v146_v35 = vld [vmem:[#allocation6 + $0x88] sm:$0xff] }
  0x6e   :  { %776 = vmatmul.bf16.gmra.mxu0 %v500_v3  ;;  %1394 = vmatmul.bf16.gmra.mxu2 %v1214_v51  ;;  %v502_v3 = vpack.c.b16 %v468_v39, %v467_v38  ;;  %v1023_v53 = vunpack.c.l.bf16 %v983_v45  ;;  %v471_v38 = vunpack.c.l.b16 %v271_v7  ;;  %v273_v2 = vpack.c.bf16 %v145_v34, %v145_v34 }
  0x6f   :  { %3349 = vmatpush.bf16.msra.mxu0 %v7772_v18  ;;  %885 = vmatmul.bf16.gmra.mxu1 %v620_v49  ;;  %v180_v18 = vld [vmem:[#allocation7 + $0x58] sm:$0xff]  ;;  %v1300_v14 = vunpack.c.l.b16 %v1100_v13  ;;  %v274_v42 = vpack.c.bf16 %v146_v35, %v146_v35  ;;  %v7877_v7 = vpack.c.bf16 %v147_v59, %v147_v59 }
  0x70   :  { %1503 = vmatmul.bf16.gmra.mxu3 %v1334_v52  ;;  %3458 = vmatpush.bf16.msra.mxu1 %v7774_v19  ;;  %v586_v19 = vunpack.c.l.b16 %v386_v58  ;;  %v982_v16 = vpack.c.bf16 %v180_v18, %v180_v18  ;;  %v1063_v5 = vsub.f32 %v181_v36, %v1023_v53  ;;  %v390_v58 = vpack.c.bf16 %v350_v56, %v350_v56  ;;  %v185_v36 = vld [vmem:[#allocation7 + $0x80] sm:$0xff] }
  0x71   :  { %v1335_v22 = vpack.c.b16 %v1300_v14, %v1299_v11  ;;  %v313_v4 = vunpack.c.l.bf16 %v273_v2  ;;  %v314_v50 = vunpack.c.l.bf16 %v274_v42  ;;  %v315_v17 = vunpack.c.l.bf16 %v7877_v7 }
  0x72   :  { %v1022_v26 = vunpack.c.l.bf16 %v982_v16  ;;  %v1182_v41 = vunpack.c.l.b16 %v982_v16  ;;  %v1103_v61 = vpack.c.bf16 %v1063_v5, %v1063_v5 }
  0x73   :  { %3350 = vmatpush.bf16.msra.mxu0 %v7781_v24  ;;  %v1180_v24 = vunpack.c.l.b16 %v980_v48  ;;  %v984_v48 = vpack.c.bf16 %v182_v37, %v182_v37  ;;  %v353_v55 = vsub.f32 %v145_v34, %v313_v4  ;;  %v354_v56 = vsub.f32 %v146_v35, %v314_v50  ;;  %v149_v35 = vld [vmem:[#allocation6 + $0xa0] sm:$0xff] }
  0x74   :  { %3459 = vmatpush.bf16.msra.mxu1 %v7783_v25  ;;  %v308_v25 = vunpack.c.l.bf16 %v268_v8  ;;  %v1216_v51 = vpack.c.b16 %v1182_v41, %v1181_v1  ;;  %v1303_v11 = vunpack.c.l.b16 %v1103_v61  ;;  %v1185_v1 = vunpack.c.l.b16 %v985_v15 }
  0x75   :  { %v1215_v21 = vpack.c.b16 %v1180_v24, %v1179_v10  ;;  %v1024_v54 = vunpack.c.l.bf16 %v984_v48  ;;  %v1183_v10 = vunpack.c.l.b16 %v983_v45  ;;  %v1184_v24 = vunpack.c.l.b16 %v984_v48 }
  0x76   :  { %v348_v29 = vsub.f32 %v140_v60, %v308_v25  ;;  %v144_v60 = vld [vmem:[#allocation6 + $0x78] sm:$0xff]  ;;  %v987_v45 = vpack.c.bf16 %v185_v36, %v185_v36  ;;  %v7881_v15 = vpack.c.bf16 %v187_v62, %v187_v62 }
  0x77   :  { %3351 = vmatpush.bf16.msra.mxu0 %v7787_v28  ;;  %v621_v28 = vpack.c.b16 %v586_v19, %v585_v9  ;;  %v1064_v12 = vsub.f32 %v182_v37, %v1024_v54  ;;  %v272_v8 = vpack.c.bf16 %v144_v60, %v144_v60  ;;  %v589_v9 = vunpack.c.l.b16 %v389_v57  ;;  %v186_v37 = vld [vmem:[#allocation7 + $0x88] sm:$0xff] }
  0x78   :  { %3460 = vmatpush.bf16.msra.mxu1 %v7791_v31  ;;  %v1062_v31 = vsub.f32 %v180_v18, %v1022_v26  ;;  %v184_v18 = vld [vmem:[#allocation7 + $0x78] sm:$0xff]  ;;  %v590_v19 = vunpack.c.l.b16 %v390_v58  ;;  %v988_v48 = vpack.c.bf16 %v186_v37, %v186_v37  ;;  %v1027_v53 = vunpack.c.l.bf16 %v987_v45 }
  0x79   :  { %v1104_v13 = vpack.c.bf16 %v1064_v12, %v1064_v12  ;;  %v986_v16 = vpack.c.bf16 %v184_v18, %v184_v18  ;;  %v312_v25 = vunpack.c.l.bf16 %v272_v8  ;;  %v472_v39 = vunpack.c.l.b16 %v272_v8 }
  0x7a   :  { %v1102_v33 = vpack.c.bf16 %v1062_v31, %v1062_v31  ;;  %v1028_v54 = vunpack.c.l.bf16 %v988_v48  ;;  %v1067_v5 = vsub.f32 %v185_v36, %v1027_v53  ;;  %v393_v57 = vpack.c.bf16 %v353_v55, %v353_v55  ;;  %v150_v36 = vld [vmem:[#allocation6 + $0xa8] sm:$0xff] }
  0x7b   :  { %3352 = vmatpush.bf16.msra.mxu0 %v7803_v46  ;;  %v388_v46 = vpack.c.bf16 %v348_v29, %v348_v29  ;;  %v1304_v14 = vunpack.c.l.b16 %v1104_v13  ;;  %v1026_v26 = vunpack.c.l.bf16 %v986_v16  ;;  %v352_v29 = vsub.f32 %v144_v60, %v312_v25  ;;  %v148_v60 = vld [vmem:[#allocation6 + $0x98] sm:$0xff] }
  0x7c   :  { %3461 = vmatpush.bf16.msra.mxu1 %v7805_v47  ;;  %v1302_v44 = vunpack.c.l.b16 %v1102_v33  ;;  %v1186_v41 = vunpack.c.l.b16 %v986_v16  ;;  %v1068_v12 = vsub.f32 %v186_v37, %v1028_v54  ;;  %v394_v58 = vpack.c.bf16 %v354_v56, %v354_v56 }
  0x7d   :  { %v588_v47 = vunpack.c.l.b16 %v388_v46  ;;  %v1066_v31 = vsub.f32 %v184_v18, %v1026_v26  ;;  %v392_v46 = vpack.c.bf16 %v352_v29, %v352_v29  ;;  %v1107_v61 = vpack.c.bf16 %v1067_v5, %v1067_v5  ;;  %v188_v18 = vld [vmem:[#allocation7 + $0x98] sm:$0xff] }
  0x7e   :  { %781 = vmatmul.bf16.gmra.mxu0 %v501_v20  ;;  %1399 = vmatmul.bf16.gmra.mxu2 %v1215_v21  ;;  %v1336_v52 = vpack.c.b16 %v1302_v44, %v1301_v43  ;;  %v503_v20 = vpack.c.b16 %v470_v6, %v469_v63  ;;  %v1217_v21 = vpack.c.b16 %v1184_v24, %v1183_v10  ;;  %v1305_v43 = vunpack.c.l.b16 %v1105_v32 }
  0x7f   :  { %890 = vmatmul.bf16.gmra.mxu1 %v621_v28  ;;  %v622_v49 = vpack.c.b16 %v588_v47, %v587_v40  ;;  %v623_v28 = vpack.c.b16 %v590_v19, %v589_v9  ;;  %v1106_v33 = vpack.c.bf16 %v1066_v31, %v1066_v31  ;;  %v591_v40 = vunpack.c.l.b16 %v391_v30 }
  0x80   :  { %1508 = vmatmul.bf16.gmra.mxu3 %v1335_v22  ;;  %v1337_v22 = vpack.c.b16 %v1304_v14, %v1303_v11  ;;  %v592_v47 = vunpack.c.l.b16 %v392_v46  ;;  %v1108_v13 = vpack.c.bf16 %v1068_v12, %v1068_v12  ;;  %v473_v63 = vunpack.c.l.b16 %v273_v2  ;;  %v189_v2 = vld [vmem:[#allocation7 + $0xa0] sm:$0xff] }
  0x81   :  { %v1306_v44 = vunpack.c.l.b16 %v1106_v33  ;;  %v474_v6 = vunpack.c.l.b16 %v274_v42  ;;  %v7879_v8 = vpack.c.bf16 %v148_v60, %v148_v60  ;;  %v593_v9 = vunpack.c.l.b16 %v393_v57  ;;  %v190_v42 = vld [vmem:[#allocation7 + $0xa8] sm:$0xff] }
  0x82   :  { %v594_v19 = vunpack.c.l.b16 %v394_v58  ;;  %v1187_v10 = vunpack.c.l.b16 %v987_v45  ;;  %v1188_v24 = vunpack.c.l.b16 %v988_v48  ;;  %v1307_v11 = vunpack.c.l.b16 %v1107_v61 }
  0x83   :  { %v1308_v14 = vunpack.c.l.b16 %v1108_v13  ;;  %v7883_v16 = vpack.c.bf16 %v188_v18, %v188_v18  ;;  %v316_v25 = vunpack.c.l.bf16 %v7879_v8  ;;  %v1029_v27 = vunpack.c.l.bf16 %v7881_v15 }
  0x84   :  { %v1219_v23 = vpack.c.b16 %v1188_v24, %v1187_v10  ;;  %v355_v31 = vsub.f32 %v147_v59, %v315_v17  ;;  %v7890_v45 = vpack.c.bf16 %v149_v35, %v149_v35  ;;  %v7892_v48 = vpack.c.bf16 %v150_v36, %v150_v36 }
  0x85   :  { %v1339_v26 = vpack.c.b16 %v1308_v14, %v1307_v11  ;;  %v1030_v29 = vunpack.c.l.bf16 %v7883_v16  ;;  %v356_v30 = vsub.f32 %v148_v60, %v316_v25  ;;  %v1069_v46 = vsub.f32 %v187_v62, %v1029_v27 }
  0x86   :  { %v395_v33 = vpack.c.bf16 %v355_v31, %v355_v31  ;;  %v7897_v53 = vpack.c.bf16 %v189_v2, %v189_v2  ;;  %v7899_v54 = vpack.c.bf16 %v190_v42, %v190_v42  ;;  %v317_v57 = vunpack.c.l.bf16 %v7890_v45 }
  0x87   :  { %v1070_v32 = vsub.f32 %v188_v18, %v1030_v29  ;;  %v396_v34 = vpack.c.bf16 %v356_v30, %v356_v30  ;;  %v318_v58 = vunpack.c.l.bf16 %v7892_v48 }
  0x88   :  { %v595_v4 = vunpack.c.l.b16 %v395_v33  ;;  %v357_v11 = vsub.f32 %v149_v35, %v317_v57  ;;  %v152_v33 = vld [vmem:[#allocation6 + $0xb8] sm:$0xff] }
  0x89   :  { %v596_v50 = vunpack.c.l.b16 %v396_v34  ;;  %v358_v14 = vsub.f32 %v150_v36, %v318_v58  ;;  %v191_v34 = vld [vmem:[#allocation7 + $0xb0] sm:$0xff] }
  0x8b   :  { %v626_v18 = vpack.c.b16 %v596_v50, %v595_v4 }
  0x8e   :  { %786 = vmatmul.bf16.gmra.mxu0 %v502_v3  ;;  %1404 = vmatmul.bf16.gmra.mxu2 %v1216_v51  ;;  %v504_v3 = vpack.c.b16 %v472_v39, %v471_v38  ;;  %v1218_v51 = vpack.c.b16 %v1186_v41, %v1185_v1  ;;  %v1109_v1 = vpack.c.bf16 %v1069_v46, %v1069_v46 }
  0x8f   :  { %895 = vmatmul.bf16.gmra.mxu1 %v622_v49  ;;  %v624_v49 = vpack.c.b16 %v592_v47, %v591_v40  ;;  %v1110_v41 = vpack.c.bf16 %v1070_v32, %v1070_v32  ;;  %v151_v32 = vld [vmem:[#allocation6 + $0xb0] sm:$0xff] }
  0x90   :  { %1513 = vmatmul.bf16.gmra.mxu3 %v1336_v52  ;;  %v1338_v52 = vpack.c.b16 %v1306_v44, %v1305_v43  ;;  %v475_v44 = vunpack.c.l.b16 %v7877_v7  ;;  %v1309_v5 = vunpack.c.l.b16 %v1109_v1  ;;  %v477_v1 = vunpack.c.l.b16 %v7890_v45 }
  0x91   :  { %v1310_v12 = vunpack.c.l.b16 %v1110_v41  ;;  %v478_v41 = vunpack.c.l.b16 %v7892_v48  ;;  %v1192_v45 = vunpack.c.l.b16 %v7899_v54 }
  0x93   :  { %v1340_v24 = vpack.c.b16 %v1310_v12, %v1309_v5 }
  0x9e   :  { %791 = vmatmul.bf16.gmra.mxu0 %v503_v20  ;;  %1409 = vmatmul.bf16.gmra.mxu2 %v1217_v21  ;;  %v505_v20 = vpack.c.b16 %v474_v6, %v473_v63  ;;  %v1031_v63 = vunpack.c.l.bf16 %v7897_v53  ;;  %v1032_v6 = vunpack.c.l.bf16 %v7899_v54 }
  0x9f   :  { %900 = vmatmul.bf16.gmra.mxu1 %v623_v28  ;;  %v625_v28 = vpack.c.b16 %v594_v19, %v593_v9 }
  0xa0   :  { %1518 = vmatmul.bf16.gmra.mxu3 %v1337_v22  ;;  %v1072_v17 = vsub.f32 %v190_v42, %v1032_v6 }
  0xae   :  { %796 = vmatmul.bf16.gmra.mxu0 %v504_v3  ;;  %1414 = vmatmul.bf16.gmra.mxu2 %v1218_v51  ;;  %v1189_v51 = vunpack.c.l.b16 %v7881_v15 }
  0xaf   :  { %905 = vmatmul.bf16.gmra.mxu1 %v624_v49  ;;  %v476_v49 = vunpack.c.l.b16 %v7879_v8 }
  0xb0   :  { %1523 = vmatmul.bf16.gmra.mxu3 %v1338_v52  ;;  %v1190_v52 = vunpack.c.l.b16 %v7883_v16  ;;  %v1071_v16 = vsub.f32 %v189_v2, %v1031_v63 }
  0xb1   :  { %v506_v62 = vpack.c.b16 %v476_v49, %v475_v44  ;;  %v7917_v44 = vpack.c.bf16 %v152_v33, %v152_v33 }
  0xb2   :  { %v1220_v10 = vpack.c.b16 %v1190_v52, %v1189_v51 }
  0xb3   :  { %v320_v58 = vunpack.c.l.bf16 %v7917_v44 }
  0xbb   :  { %v762_v21 = vpop.f32.mrf.mxu0 }
  0xbc   :  { %v871_v22 = vpop.f32.mrf.mxu1 }
  0xbd   :  { %v872_v0 = vadd.f32 %v871_v22, %v762_v21  ;;  %v397_v22 = vpack.c.bf16 %v357_v11, %v357_v11 }
  0xbe   :  { %801 = vmatmul.bf16.gmra.mxu0 %v505_v20  ;;  %1419 = vmatmul.bf16.gmra.mxu2 %v1219_v23  ;;  %v398_v23 = vpack.c.bf16 %v358_v14, %v358_v14 }
  0xbf   :  { %910 = vmatmul.bf16.gmra.mxu1 %v625_v28  ;;  %v597_v2 = vunpack.c.l.b16 %v397_v22 }
  0xc0   :  { %1528 = vmatmul.bf16.gmra.mxu3 %v1339_v26  ;;  %v598_v42 = vunpack.c.l.b16 %v398_v23 }
  0xc1   :  { %v1380_v37 = vpop.f32.mrf.mxu2 }
  0xc3   :  { %v1489_v38 = vpop.f32.mrf.mxu3  ;;  %v764_v40 = vpop.f32.mrf.mxu0 }
  0xc4   :  { %v1490_v39 = vadd.f32 %v1489_v38, %v1380_v37  ;;  %v873_v47 = vpop.f32.mrf.mxu1 }
  0xc5   :  { %v874_v43 = vadd.f32 %v873_v47, %v764_v40  ;;  %v1112_v40 = vpack.c.bf16 %v1072_v17, %v1072_v17  ;;  %v192_v47 = vld [vmem:[#allocation7 + $0xb8] sm:$0xff] }
  0xc6   :  { %v3565_v3 = vpack.c.bf16 %v1490_v39, %v872_v0  ;;  %v7921_v4 = vpack.c.bf16 %v192_v47, %v192_v47 }
  0xc7   :  { %v1312_v48 = vunpack.c.l.b16 %v1112_v40 }
  0xc8   :  { %v3589_v55 = vunpack.c.l.bf16 %v3565_v3  ;;  %v3590_v56 = vunpack.c.h.bf16 %v3565_v3  ;;  %v3717_v28 = vunpack.c.l.b16 %v3565_v3  ;;  %v3718_v26 = vunpack.c.h.b16 %v3565_v3 }
  0xc9   :  { %v1382_v61 = vpop.f32.mrf.mxu2  ;;  %v7919_v3 = vpack.c.bf16 %v191_v34, %v191_v34 }
  0xca   :  { %v3629_v59 = vsub.f32 %v872_v0, %v3589_v55  ;;  %v3630_v60 = vsub.f32 %v1490_v39, %v3590_v56  ;;  %v1111_v39 = vpack.c.bf16 %v1071_v16, %v1071_v16  ;;  %v1191_v55 = vunpack.c.l.b16 %v7897_v53  ;;  %v193_v16 = vld [vmem:[#allocation7 + $0xc0] sm:$0xff] }
  0xcb   :  { %v1491_v13 = vpop.f32.mrf.mxu3  ;;  %v7905_v9 = vpop.f32.mrf.mxu0  ;;  %v1034_v53 = vunpack.c.l.bf16 %v7921_v4 }
  0xcc   :  { %v3669_v7 = vpack.c.bf16 %v3630_v60, %v3629_v59  ;;  %v1492_v8 = vadd.f32 %v1491_v13, %v1382_v61  ;;  %v7907_v19 = vpop.f32.mrf.mxu1  ;;  %v1311_v56 = vunpack.c.l.b16 %v1111_v39  ;;  %v507_v61 = vpack.c.b16 %v478_v41, %v477_v1 }
  0xcd   :  { %v627_v13 = vpack.c.b16 %v598_v42, %v597_v2  ;;  %v1221_v63 = vpack.c.b16 %v1192_v45, %v1191_v55  ;;  %v1074_v14 = vsub.f32 %v192_v47, %v1034_v53 }
  0xce   :  { %v3568_v15 = vpack.c.bf16 %v1492_v8, %v874_v43  ;;  %806 = vmatmul.bf16.gmra.mxu0 %v506_v62  ;;  %1424 = vmatmul.bf16.gmra.mxu2 %v1220_v10  ;;  %v3821_v50 = vunpack.c.l.b16 %v3669_v7  ;;  %v3822_v51 = vunpack.c.h.b16 %v3669_v7  ;;  %v1033_v62 = vunpack.c.l.bf16 %v7919_v3  ;;  %v153_v10 = vld [vmem:[#allocation6 + $0xc0] sm:$0xff] }
  0xcf   :  { %915 = vmatmul.bf16.gmra.mxu1 %v626_v18  ;;  %v1341_v6 = vpack.c.b16 %v1312_v48, %v1311_v56  ;;  %v7937_v17 = vpack.c.bf16 %v153_v10, %v153_v10 }
  0xd0   :  { %v3594_v25 = vunpack.c.l.bf16 %v3568_v15  ;;  %v3595_v20 = vunpack.c.h.bf16 %v3568_v15  ;;  %1533 = vmatmul.bf16.gmra.mxu3 %v1340_v24  ;;  %v3722_v21 = vunpack.c.l.b16 %v3568_v15  ;;  %v3723_v27 = vunpack.c.h.b16 %v3568_v15  ;;  %v154_v24 = vld [vmem:[#allocation6 + $0xc8] sm:$0xff] }
  0xd1   :  { %v1385_v30 = vpop.f32.mrf.mxu2  ;;  %v1073_v11 = vsub.f32 %v191_v34, %v1033_v62  ;;  %v321_v39 = vunpack.c.l.bf16 %v7937_v17 }
  0xd2   :  { %v3634_v29 = vsub.f32 %v874_v43, %v3594_v25  ;;  %v3635_v0 = vsub.f32 %v1492_v8, %v3595_v20  ;;  %v7909_v31 = vpack.c.b16 %v3722_v21, %v3717_v28  ;;  %v7911_v35 = vpack.c.b16 %v3723_v27, %v3718_v26  ;;  %v194_v20 = vld [vmem:[#allocation7 + $0xc8] sm:$0xff] }
  0xd3   :  { %v1494_v46 = vpop.f32.mrf.mxu3  ;;  %v769_v37 = vpop.f32.mrf.mxu0  ;;  %v7915_v43 = vpack.c.bf16 %v151_v32, %v151_v32  ;;  %v360_v8 = vsub.f32 %v152_v33, %v320_v58  ;;  %v7939_v25 = vpack.c.bf16 %v154_v24, %v154_v24  ;;  %v877_v28 = vadd.f32 %v7907_v19, %v7905_v9 }
  0xd4   :  { %v3672_v36 = vpack.c.bf16 %v3635_v0, %v3634_v29  ;;  %v878_v38 = vpop.f32.mrf.mxu1  ;;  %v1495_v15 = vadd.f32 %v1494_v46, %v1385_v30  ;;  %v1113_v29 = vpack.c.bf16 %v1073_v11, %v1073_v11  ;;  %v1114_v0 = vpack.c.bf16 %v1074_v14, %v1074_v14 }
  0xd5   :  { %v319_v57 = vunpack.c.l.bf16 %v7915_v43  ;;  %v400_v23 = vpack.c.bf16 %v360_v8, %v360_v8  ;;  %v879_v46 = vadd.f32 %v878_v38, %v769_v37  ;;  %v479_v9 = vunpack.c.l.b16 %v7915_v43  ;;  %v195_v8 = vld [vmem:[#allocation7 + $0xd0] sm:$0xff] }
  0xd6   :  { %v3826_v49 = vunpack.c.l.b16 %v3672_v36  ;;  %v3827_v52 = vunpack.c.h.b16 %v3672_v36  ;;  %v7945_v30 = vpack.c.bf16 %v1495_v15, %v877_v28  ;;  %v7951_v36 = vpack.c.bf16 %v194_v20, %v194_v20 }
  0xd7   :  { %v359_v7 = vsub.f32 %v151_v32, %v319_v57  ;;  %v7943_v32 = vpack.c.bf16 %v193_v16, %v193_v16  ;;  %v480_v19 = vunpack.c.l.b16 %v7917_v44  ;;  %v322_v40 = vunpack.c.l.bf16 %v7939_v25 }
  0xd8   :  { %v7925_v5 = vpack.c.b16 %v3826_v49, %v3821_v50  ;;  %v7927_v12 = vpack.c.b16 %v3827_v52, %v3822_v51  ;;  %v600_v41 = vunpack.c.l.b16 %v400_v23  ;;  %v1193_v37 = vunpack.c.l.b16 %v7919_v3 }
  0xd9   :  { %v1387_v59 = vpop.f32.mrf.mxu2  ;;  %v399_v22 = vpack.c.bf16 %v359_v7, %v359_v7  ;;  %v1194_v38 = vunpack.c.l.b16 %v7921_v4  ;;  %v1313_v2 = vunpack.c.l.b16 %v1113_v29  ;;  %v1314_v42 = vunpack.c.l.b16 %v1114_v0  ;;  %v156_v7 = vld [vmem:[#allocation6 + $0xd8] sm:$0xff] }
  0xda   :  { %v1035_v49 = vunpack.c.l.bf16 %v7943_v32  ;;  %v3599_v43 = vunpack.c.l.bf16 %v7945_v30  ;;  %v3600_v44 = vunpack.c.h.bf16 %v7945_v30  ;;  %v1036_v50 = vunpack.c.l.bf16 %v7951_v36 }
  0xdb   :  { %v1496_v60 = vpop.f32.mrf.mxu3  ;;  %v7933_v18 = vpop.f32.mrf.mxu0  ;;  %v599_v1 = vunpack.c.l.b16 %v399_v22  ;;  %v361_v51 = vsub.f32 %v153_v10, %v321_v39  ;;  %v362_v52 = vsub.f32 %v154_v24, %v322_v40  ;;  %v508_v56 = vpack.c.b16 %v480_v19, %v479_v9  ;;  %v196_v10 = vld [vmem:[#allocation7 + $0xd8] sm:$0xff] }
  0xdc   :  { %v7935_v54 = vpop.f32.mrf.mxu1  ;;  %v1497_v21 = vadd.f32 %v1496_v60, %v1387_v59  ;;  %v1222_v57 = vpack.c.b16 %v1194_v38, %v1193_v37  ;;  %v1342_v58 = vpack.c.b16 %v1314_v42, %v1313_v2  ;;  %v1075_v59 = vsub.f32 %v193_v16, %v1035_v49  ;;  %v155_v60 = vld [vmem:[#allocation6 + $0xd0] sm:$0xff] }
  0xdd   :  { %v628_v4 = vpack.c.b16 %v600_v41, %v599_v1  ;;  %v481_v24 = vunpack.c.l.b16 %v7937_v17  ;;  %v482_v11 = vunpack.c.l.b16 %v7939_v25  ;;  %v401_v14 = vpack.c.bf16 %v361_v51, %v361_v51 }
  0xde   :  { %811 = vmatmul.bf16.gmra.mxu0 %v507_v61  ;;  %1429 = vmatmul.bf16.gmra.mxu2 %v1221_v63  ;;  %v7957_v47 = vpack.c.bf16 %v1497_v21, %v879_v46  ;;  %v3639_v61 = vsub.f32 %v877_v28, %v3599_v43  ;;  %v402_v22 = vpack.c.bf16 %v362_v52, %v362_v52  ;;  %v1196_v39 = vunpack.c.l.b16 %v7951_v36 }
  0xdf   :  { %920 = vmatmul.bf16.gmra.mxu1 %v627_v13  ;;  %v3640_v13 = vsub.f32 %v1495_v15, %v3600_v44  ;;  %v882_v16 = vadd.f32 %v7935_v54, %v7933_v18  ;;  %v7971_v28 = vpack.c.bf16 %v155_v60, %v155_v60  ;;  %v7973_v15 = vpack.c.bf16 %v156_v7, %v156_v7 }
  0xe0   :  { %1538 = vmatmul.bf16.gmra.mxu3 %v1341_v6  ;;  %v3604_v55 = vunpack.c.l.bf16 %v7957_v47  ;;  %v3605_v45 = vunpack.c.h.bf16 %v7957_v47  ;;  %v1076_v6 = vsub.f32 %v194_v20, %v1036_v50  ;;  %v7975_v20 = vpack.c.bf16 %v195_v8, %v195_v8 }
  0xe1   :  { %v1390_v26 = vpop.f32.mrf.mxu2  ;;  %v1115_v25 = vpack.c.bf16 %v1075_v59, %v1075_v59  ;;  %v3675_v0 = vpack.c.bf16 %v3640_v13, %v3639_v61  ;;  %v7982_v18 = vunpack.c.l.b16 %v401_v14  ;;  %v7984_v54 = vunpack.c.l.b16 %v402_v22 }
  0xe2   :  { %v3644_v23 = vsub.f32 %v879_v46, %v3604_v55  ;;  %v3645_v29 = vsub.f32 %v1497_v21, %v3605_v45  ;;  %v3727_v21 = vunpack.c.l.b16 %v7945_v30  ;;  %v1195_v46 = vunpack.c.l.b16 %v7943_v32 }
  0xe3   :  { %v1499_v27 = vpop.f32.mrf.mxu3  ;;  %v7947_v33 = vpop.f32.mrf.mxu0  ;;  %v7987_v19 = vpack.c.b16 %v482_v11, %v481_v24  ;;  %v323_v40 = vunpack.c.l.bf16 %v7971_v28  ;;  %v324_v38 = vunpack.c.l.bf16 %v7973_v15  ;;  %v1037_v2 = vunpack.c.l.bf16 %v7975_v20 }
  0xe4   :  { %v7949_v34 = vpop.f32.mrf.mxu1  ;;  %v1500_v62 = vadd.f32 %v1499_v27, %v1390_v26  ;;  %v7977_v26 = vpack.c.bf16 %v196_v10, %v196_v10  ;;  %v1116_v27 = vpack.c.bf16 %v1076_v6, %v1076_v6  ;;  %v3678_v9 = vpack.c.bf16 %v3645_v29, %v3644_v23 }
  0xe5   :  { %v884_v36 = vadd.f32 %v7949_v34, %v7947_v33  ;;  %v629_v52 = vpack.c.b16 %v7984_v54, %v7982_v18  ;;  %v1315_v55 = vunpack.c.l.b16 %v1115_v25  ;;  %v8004_v59 = vsub.f32 %v195_v8, %v1037_v2  ;;  %v157_v8 = vld [vmem:[#allocation6 + $0xe0] sm:$0xff] }
  0xe6   :  { %v7979_v17 = vpack.c.bf16 %v1500_v62, %v882_v16  ;;  %v1038_v42 = vunpack.c.l.bf16 %v7977_v26  ;;  %v1316_v45 = vunpack.c.l.b16 %v1116_v27  ;;  %v3831_v61 = vunpack.c.l.b16 %v3675_v0 }
  0xe7   :  { %v3832_v33 = vunpack.c.h.b16 %v3675_v0  ;;  %v1223_v24 = vpack.c.b16 %v1196_v39, %v1195_v46  ;;  %v1117_v25 = vpack.c.bf16 %v8004_v59, %v8004_v59  ;;  %v158_v39 = vld [vmem:[#allocation6 + $0xe8] sm:$0xff] }
  0xe8   :  { %v3609_v49 = vunpack.c.l.bf16 %v7979_v17  ;;  %v3610_v32 = vunpack.c.h.bf16 %v7979_v17  ;;  %v1343_v11 = vpack.c.b16 %v1316_v45, %v1315_v55 }
  0xe9   :  { %v1392_v3 = vpop.f32.mrf.mxu2 }
  0xea   :  { %v3649_v13 = vsub.f32 %v882_v16, %v3609_v49  ;;  %v484_v49 = vunpack.c.l.b16 %v7973_v15  ;;  %v3738_v15 = vunpack.c.h.b16 %v7979_v17 }
  0xeb   :  { %v1501_v48 = vpop.f32.mrf.mxu3  ;;  %v777_v53 = vpop.f32.mrf.mxu0 }
  0xec   :  { %v886_v63 = vpop.f32.mrf.mxu1  ;;  %v1502_v1 = vadd.f32 %v1501_v48, %v1392_v3  ;;  %v363_v3 = vsub.f32 %v155_v60, %v323_v40  ;;  %v3836_v48 = vunpack.c.l.b16 %v3678_v9  ;;  %v3732_v60 = vunpack.c.l.b16 %v7957_v47 }
  0xed   :  { %v887_v43 = vadd.f32 %v886_v63, %v777_v53  ;;  %v3650_v53 = vsub.f32 %v1500_v62, %v3610_v32  ;;  %v8006_v63 = vsub.f32 %v196_v10, %v1038_v42  ;;  %v483_v42 = vunpack.c.l.b16 %v7971_v28 }
  0xee   :  { %816 = vmatmul.bf16.gmra.mxu0 %v508_v56  ;;  %1434 = vmatmul.bf16.gmra.mxu2 %v1222_v57  ;;  %v8002_v57 = vpack.c.bf16 %v1502_v1, %v884_v36  ;;  %v403_v14 = vpack.c.bf16 %v363_v3, %v363_v3  ;;  %v8011_v22 = vpack.c.b16 %v3836_v48, %v3831_v61  ;;  %v3737_v28 = vunpack.c.l.b16 %v7979_v17  ;;  %v198_v61 = vld [vmem:[#allocation7 + $0xe8] sm:$0xff] }
  0xef   :  { %925 = vmatmul.bf16.gmra.mxu1 %v628_v4  ;;  %v3837_v4 = vunpack.c.h.b16 %v3678_v9  ;;  %v8019_v27 = vpack.c.bf16 %v3650_v53, %v3649_v13  ;;  %v1118_v9 = vpack.c.bf16 %v8006_v63, %v8006_v63  ;;  %v8044_v59 = vpack.c.b16 %v484_v49, %v483_v42 }
  0xf0   :  { %1543 = vmatmul.bf16.gmra.mxu3 %v1342_v58  ;;  %v364_v58 = vsub.f32 %v156_v7, %v324_v38  ;;  %v3614_v23 = vunpack.c.l.bf16 %v8002_v57  ;;  %v3615_v62 = vunpack.c.h.bf16 %v8002_v57  ;;  %v8023_v38 = vpack.c.bf16 %v157_v8, %v157_v8 }
  0xf1   :  { %v1395_v41 = vpop.f32.mrf.mxu2  ;;  %v8013_v7 = vpack.c.b16 %v3837_v4, %v3832_v33  ;;  %v8029_v32 = vunpack.c.l.b16 %v403_v14 }
  0xf2   :  { %v404_v16 = vpack.c.bf16 %v364_v58, %v364_v58  ;;  %v3842_v58 = vunpack.c.h.b16 %v8019_v27 }
  0xf3   :  { %v1504_v37 = vpop.f32.mrf.mxu3  ;;  %v779_v50 = vpop.f32.mrf.mxu0 }
  0xf4   :  { %v1505_v44 = vadd.f32 %v1504_v37, %v1395_v41  ;;  %v888_v51 = vpop.f32.mrf.mxu1  ;;  %v8032_v55 = vunpack.c.l.b16 %v404_v16 }
  0xf5   :  { %v889_v0 = vadd.f32 %v888_v51, %v779_v50  ;;  %v3654_v50 = vsub.f32 %v884_v36, %v3614_v23  ;;  %v3655_v51 = vsub.f32 %v1502_v1, %v3615_v62  ;;  %v3841_v1 = vunpack.c.l.b16 %v8019_v27 }
  0xf6   :  { %v8000_v56 = vpack.c.bf16 %v1505_v44, %v887_v43  ;;  %v325_v36 = vunpack.c.l.bf16 %v8023_v38  ;;  %v630_v33 = vpack.c.b16 %v8032_v55, %v8029_v32  ;;  %v1317_v23 = vunpack.c.l.b16 %v1117_v25 }
  0xf7   :  { %v3684_v13 = vpack.c.bf16 %v3655_v51, %v3654_v50  ;;  %v8054_v27 = vpack.c.bf16 %v198_v61, %v198_v61 }
  0xf8   :  { %v3619_v34 = vunpack.c.l.bf16 %v8000_v56  ;;  %v3620_v6 = vunpack.c.h.bf16 %v8000_v56  ;;  %v365_v16 = vsub.f32 %v157_v8, %v325_v36  ;;  %v3742_v8 = vunpack.c.l.b16 %v8002_v57 }
  0xf9   :  { %v1397_v10 = vpop.f32.mrf.mxu2 }
  0xfa   :  { %v3659_v40 = vsub.f32 %v887_v43, %v3619_v34  ;;  %v3660_v41 = vsub.f32 %v1505_v44, %v3620_v6  ;;  %v8034_v43 = vpack.c.bf16 %v158_v39, %v158_v39  ;;  %v1198_v34 = vunpack.c.l.b16 %v7977_v26 }
  0xfb   :  { %v1506_v29 = vpop.f32.mrf.mxu3  ;;  %v782_v54 = vpop.f32.mrf.mxu0  ;;  %v3846_v26 = vunpack.c.l.b16 %v3684_v13 }
  0xfc   :  { %v1507_v18 = vadd.f32 %v1506_v29, %v1397_v10  ;;  %v891_v46 = vpop.f32.mrf.mxu1  ;;  %v3687_v3 = vpack.c.bf16 %v3660_v41, %v3659_v40  ;;  %v3847_v40 = vunpack.c.h.b16 %v3684_v13  ;;  %v1318_v41 = vunpack.c.l.b16 %v1118_v9 }
  0xfd   :  { %v892_v37 = vadd.f32 %v891_v46, %v782_v54  ;;  %v3743_v9 = vunpack.c.h.b16 %v8002_v57 }
  0xfe   :  { %v8025_v2 = vpack.c.bf16 %v1507_v18, %v889_v0  ;;  %821 = vmatmul.bf16.gmra.mxu0 %v7987_v19  ;;  %1439 = vmatmul.bf16.gmra.mxu2 %v1223_v24  ;;  %v1197_v19 = vunpack.c.l.b16 %v7975_v20  ;;  %v326_v20 = vunpack.c.l.bf16 %v8034_v43  ;;  %v3851_v10 = vunpack.c.l.b16 %v3687_v3 }
  0xff   :  { %930 = vmatmul.bf16.gmra.mxu1 %v629_v52  ;;  %v197_v52 = vld [vmem:[#allocation7 + $0xe0] sm:$0xff]  ;;  %v3872_v13 = vpack.c.b16 %v3847_v40, %v3842_v58 }
 0x100   :  { %v3624_v44 = vunpack.c.l.bf16 %v8025_v2  ;;  %v3625_v45 = vunpack.c.h.bf16 %v8025_v2  ;;  %1548 = vmatmul.bf16.gmra.mxu3 %v1343_v11  ;;  %v8050_v62 = vpack.c.bf16 %v197_v52, %v197_v52  ;;  %v366_v42 = vsub.f32 %v158_v39, %v326_v20 }
 0x101   :  { %v1400_v53 = vpop.f32.mrf.mxu2  ;;  %v1224_v51 = vpack.c.b16 %v1198_v34, %v1197_v19  ;;  %v405_v39 = vpack.c.bf16 %v365_v16, %v365_v16  ;;  %v3752_v16 = vunpack.c.l.b16 %v8025_v2 }
 0x102   :  { %v3664_v48 = vsub.f32 %v889_v0, %v3624_v44  ;;  %v3665_v4 = vsub.f32 %v1507_v18, %v3625_v45  ;;  %v3852_v0 = vunpack.c.h.b16 %v3687_v3  ;;  %v1039_v55 = vunpack.c.l.bf16 %v8050_v62 }
 0x103   :  { %v1509_v63 = vpop.f32.mrf.mxu3  ;;  %v784_v11 = vpop.f32.mrf.mxu0  ;;  %v1040_v44 = vunpack.c.l.bf16 %v8054_v27 }
 0x104   :  { %v3690_v6 = vpack.c.bf16 %v3665_v4, %v3664_v48  ;;  %v1510_v24 = vadd.f32 %v1509_v63, %v1400_v53  ;;  %v893_v14 = vpop.f32.mrf.mxu1  ;;  %v3871_v4 = vpack.c.b16 %v3846_v26, %v3841_v1  ;;  %v1344_v53 = vpack.c.b16 %v1318_v41, %v1317_v23  ;;  %v8076_v26 = vld [vmem:[#allocation7 + $0xf0] sm:$0xff] }
 0x105   :  { %v8052_v29 = vadd.f32 %v893_v14, %v784_v11  ;;  %v406_v63 = vpack.c.bf16 %v366_v42, %v366_v42  ;;  %v3747_v11 = vunpack.c.l.b16 %v8000_v56  ;;  %v160_v14 = vld [vmem:[#allocation6 + $0xf8] sm:$0xff]  ;;  %v1080_v1 = vsub.f32 %v198_v61, %v1040_v44 }
 0x106   :  { %v3856_v18 = vunpack.c.l.b16 %v3690_v6  ;;  %v3857_v54 = vunpack.c.h.b16 %v3690_v6  ;;  %v8056_v46 = vpack.c.bf16 %v1510_v24, %v892_v37  ;;  %v485_v23 = vunpack.c.l.b16 %v8023_v38 }
 0x107   :  { %v8080_v40 = vunpack.c.l.b16 %v406_v63  ;;  %v8084_v61 = vpack.c.bf16 %v160_v14, %v160_v14  ;;  %v1199_v38 = vunpack.c.l.b16 %v8050_v62 }
 0x108   :  { %v4309_v49 = vunpack.c.l.bf16 %v8056_v46  ;;  %v4310_v25 = vunpack.c.h.bf16 %v8056_v46  ;;  %v3876_v32 = vpack.c.b16 %v3856_v18, %v3851_v10  ;;  %v3877_v50 = vpack.c.b16 %v3857_v54, %v3852_v0 }
 0x109   :  { %v1402_v36 = vpop.f32.mrf.mxu2  ;;  %v1079_v0 = vsub.f32 %v197_v52, %v1039_v55  ;;  %v486_v18 = vunpack.c.l.b16 %v8034_v43  ;;  %v8074_v54 = vunpack.c.l.b16 %v405_v39  ;;  %v1200_v43 = vunpack.c.l.b16 %v8054_v27 }
 0x10a   :  { %v4349_v45 = vsub.f32 %v892_v37, %v4309_v49  ;;  %v4350_v3 = vsub.f32 %v1510_v24, %v4310_v25  ;;  %3925 = vmatpush.bf16.msra.mxu2 %v3876_v32  ;;  %3954 = vmatpush.bf16.msra.mxu3 %v3877_v50  ;;  %v3748_v37 = vunpack.c.h.b16 %v8000_v56  ;;  %v159_v24 = vld [vmem:[#allocation6 + $0xf0] sm:$0xff]  ;;  %v3753_v56 = vunpack.c.h.b16 %v8025_v2  ;;  %v200_v50 = vld [vmem:[#allocation7 + $0xf8] sm:$0xff] }
 0x10b   :  { %v1511_v48 = vpop.f32.mrf.mxu3  ;;  %v787_v20 = vpop.f32.mrf.mxu0  ;;  %v8082_v52 = vpack.c.bf16 %v159_v24, %v159_v24  ;;  %v3772_v49 = vpack.c.b16 %v3752_v16, %v3747_v11  ;;  %v1119_v25 = vpack.c.bf16 %v1079_v0, %v1079_v0  ;;  %v8090_v2 = vpack.c.bf16 %v8076_v26, %v8076_v26 }
 0x10c   :  { %v8064_v19 = vpack.c.bf16 %v4350_v3, %v4349_v45  ;;  %v1512_v34 = vadd.f32 %v1511_v48, %v1402_v36  ;;  %v896_v6 = vpop.f32.mrf.mxu1  ;;  %v328_v45 = vunpack.c.l.bf16 %v8084_v61  ;;  %v4438_v3 = vunpack.c.h.b16 %v8056_v46 }
 0x10d   :  { %v8068_v10 = vadd.f32 %v896_v6, %v787_v20  ;;  %v327_v44 = vunpack.c.l.bf16 %v8082_v52  ;;  %v8103_v63 = vpack.c.bf16 %v200_v50, %v200_v50  ;;  %v631_v17 = vpack.c.b16 %v8080_v40, %v8074_v54  ;;  %v162_v40 = vld [vmem:[#allocation6 + $0x108] sm:$0xff] }
 0x10e   :  { %v4288_v58 = vpack.c.bf16 %v1512_v34, %v8052_v29  ;;  %3926 = vmatpush.bf16.msra.mxu2 %v3871_v4  ;;  %3955 = vmatpush.bf16.msra.mxu3 %v3872_v13  ;;  %v368_v0 = vsub.f32 %v160_v14, %v328_v45  ;;  %v3762_v54 = vpack.c.b16 %v3732_v60, %v3727_v21  ;;  %v488_v45 = vunpack.c.l.b16 %v8084_v61  ;;  %v202_v21 = vld [vmem:[#allocation7 + $0x108] sm:$0xff] }
 0x10f   :  { %826 = vmatmul.bf16.gmra.mxu0 %v8044_v59  ;;  %935 = vmatmul.bf16.gmra.mxu1 %v630_v33  ;;  %v1120_v59 = vpack.c.bf16 %v1080_v1, %v1080_v1  ;;  %v367_v16 = vsub.f32 %v159_v24, %v327_v44  ;;  %v1041_v1 = vunpack.c.l.bf16 %v8090_v2  ;;  %v511_v24 = vpack.c.b16 %v486_v18, %v485_v23 }
 0x110   :  { %v4314_v41 = vunpack.c.l.bf16 %v4288_v58  ;;  %v4315_v42 = vunpack.c.h.bf16 %v4288_v58  ;;  %1444 = vmatmul.bf16.gmra.mxu2 %v1224_v51  ;;  %1553 = vmatmul.bf16.gmra.mxu3 %v1344_v53  ;;  %v4437_v51 = vunpack.c.l.b16 %v8056_v46  ;;  %v4442_v62 = vunpack.c.l.b16 %v4288_v58 }
 0x111   :  { %v1405_v55 = vpop.f32.mrf.mxu2  ;;  %v4443_v39 = vunpack.c.h.b16 %v4288_v58  ;;  %v1319_v53 = vunpack.c.l.b16 %v1119_v25  ;;  %v4541_v46 = vunpack.c.l.b16 %v8064_v19  ;;  %v1042_v14 = vunpack.c.l.bf16 %v8103_v63 }
 0x112   :  { %v4354_v33 = vsub.f32 %v8052_v29, %v4314_v41  ;;  %v4355_v32 = vsub.f32 %v1512_v34, %v4315_v42  ;;  %3927 = vmatpush.bf16.msra.mxu2 %v8011_v22  ;;  %3956 = vmatpush.bf16.msra.mxu3 %v8013_v7  ;;  %v3773_v22 = vpack.c.b16 %v3753_v56, %v3748_v37  ;;  %v1320_v37 = vunpack.c.l.b16 %v1120_v59 }
 0x113   :  { %v1514_v27 = vpop.f32.mrf.mxu3  ;;  %v789_v48 = vpop.f32.mrf.mxu0  ;;  %v8099_v13 = vpack.c.b16 %v4442_v62, %v4437_v51  ;;  %v8105_v34 = vpack.c.b16 %v4443_v39, %v4438_v3  ;;  %v4542_v42 = vunpack.c.h.b16 %v8064_v19  ;;  %v3733_v19 = vunpack.c.h.b16 %v7957_v47  ;;  %v201_v47 = vld [vmem:[#allocation7 + $0x100] sm:$0xff] }
 0x114   :  { %v4392_v36 = vpack.c.bf16 %v4355_v32, %v4354_v33  ;;  %v1515_v29 = vadd.f32 %v1514_v27, %v1405_v55  ;;  %v898_v4 = vpop.f32.mrf.mxu1  ;;  %v1345_v57 = vpack.c.b16 %v1320_v37, %v1319_v53  ;;  %v407_v18 = vpack.c.bf16 %v367_v16, %v367_v16 }
 0x115   :  { %11079 = vst [vmem:[#allocation19_spill] sm:$0xff] %v8099_v13  ;;  %v8101_v7 = vadd.f32 %v898_v4, %v789_v48  ;;  %v3728_v55 = vunpack.c.h.b16 %v7945_v30  ;;  %v1082_v27 = vsub.f32 %v200_v50, %v1042_v14  ;;  %v1201_v60 = vunpack.c.l.b16 %v8090_v2 }
 0x116   :  { %11080 = vst [vmem:[#allocation20_spill] sm:$0xff] %v8105_v34  ;;  %v8108_v20 = vpack.c.bf16 %v1515_v29, %v8068_v10  ;;  %3928 = vmatpush.bf16.msra.mxu2 %v7925_v5  ;;  %3957 = vmatpush.bf16.msra.mxu3 %v7927_v12  ;;  %v4546_v6 = vunpack.c.l.b16 %v4392_v36  ;;  %v4547_v11 = vunpack.c.h.b16 %v4392_v36  ;;  %v3767_v5 = vpack.c.b16 %v3742_v8, %v3737_v28 }
 0x117   :  { %v3768_v12 = vpack.c.b16 %v3743_v9, %v3738_v15  ;;  %v1225_v28 = vpack.c.b16 %v1200_v43, %v1199_v38  ;;  %v1081_v15 = vsub.f32 %v8076_v26, %v1041_v1  ;;  %v161_v26 = vld [vmem:[#allocation6 + $0x100] sm:$0xff]  ;;  %v3763_v38 = vpack.c.b16 %v3733_v19, %v3728_v55 }
 0x118   :  { %v4319_v58 = vunpack.c.l.bf16 %v8108_v20  ;;  %v4320_v56 = vunpack.c.h.bf16 %v8108_v20  ;;  %v8116_v41 = vpack.c.b16 %v4546_v6, %v4541_v46  ;;  %v8130_v33 = vpack.c.b16 %v4547_v11, %v4542_v42 }
 0x119   :  { %v1407_v32 = vpop.f32.mrf.mxu2  ;;  %v487_v43 = vunpack.c.l.b16 %v8082_v52  ;;  %v1121_v3 = vpack.c.bf16 %v1081_v15, %v1081_v15  ;;  %v8147_v36 = vunpack.c.l.b16 %v407_v18  ;;  %v8152_v48 = vpack.c.bf16 %v161_v26, %v161_v26 }
 0x11a   :  { %v4359_v25 = vsub.f32 %v8068_v10, %v4319_v58  ;;  %v4360_v59 = vsub.f32 %v1515_v29, %v4320_v56  ;;  %3929 = vmatpush.bf16.msra.mxu2 %v3772_v49  ;;  %3958 = vmatpush.bf16.msra.mxu3 %v3773_v22  ;;  %11081 = vst [vmem:[#allocation21_spill] sm:$0xff] %v8130_v33  ;;  %v4447_v22 = vunpack.c.l.b16 %v8108_v20  ;;  %v4448_v2 = vunpack.c.h.b16 %v8108_v20 }
 0x11b   :  { %v1516_v51 = vpop.f32.mrf.mxu3  ;;  %v792_v10 = vpop.f32.mrf.mxu0  ;;  %v408_v49 = vpack.c.bf16 %v368_v0, %v368_v0  ;;  %v1122_v29 = vpack.c.bf16 %v1082_v27, %v1082_v27  ;;  %v8154_v4 = vpack.c.bf16 %v162_v40, %v162_v40  ;;  %v8158_v11 = vpack.c.bf16 %v201_v47, %v201_v47 }
 0x11c   :  { %v8135_v8 = vpack.c.bf16 %v4360_v59, %v4359_v25  ;;  %v1517_v9 = vadd.f32 %v1516_v51, %v1407_v32  ;;  %v901_v23 = vpop.f32.mrf.mxu1  ;;  %v8160_v37 = vpack.c.bf16 %v202_v21, %v202_v21  ;;  %v1321_v19 = vunpack.c.l.b16 %v1121_v3 }
 0x11d   :  { %v8137_v62 = vadd.f32 %v901_v23, %v792_v10  ;;  %v8149_v30 = vunpack.c.l.b16 %v408_v49  ;;  %v1322_v32 = vunpack.c.l.b16 %v1122_v29  ;;  %v1043_v51 = vunpack.c.l.bf16 %v8158_v11 }
 0x11e   :  { %v4294_v44 = vpack.c.bf16 %v1517_v9, %v8101_v7  ;;  %3930 = vmatpush.bf16.msra.mxu2 %v3767_v5  ;;  %3959 = vmatpush.bf16.msra.mxu3 %v3768_v12  ;;  %v329_v12 = vunpack.c.l.bf16 %v8152_v48  ;;  %v4551_v20 = vunpack.c.l.b16 %v8135_v8  ;;  %v512_v27 = vpack.c.b16 %v488_v45, %v487_v43 }
 0x11f   :  { %831 = vmatmul.bf16.gmra.mxu0 %v511_v24  ;;  %940 = vmatmul.bf16.gmra.mxu1 %v631_v17  ;;  %v330_v24 = vunpack.c.l.bf16 %v8154_v4  ;;  %v1044_v17 = vunpack.c.l.bf16 %v8160_v37 }
 0x120   :  { %v4324_v50 = vunpack.c.l.bf16 %v4294_v44  ;;  %v4325_v39 = vunpack.c.h.bf16 %v4294_v44  ;;  %1449 = vmatmul.bf16.gmra.mxu2 %v1225_v28  ;;  %1558 = vmatmul.bf16.gmra.mxu3 %v1345_v57  ;;  %v4452_v53 = vunpack.c.l.b16 %v4294_v44  ;;  %v4453_v16 = vunpack.c.h.b16 %v4294_v44 }
 0x121   :  { %v1410_v46 = vpop.f32.mrf.mxu2  ;;  %v632_v44 = vpack.c.b16 %v8149_v30, %v8147_v36  ;;  %v489_v36 = vunpack.c.l.b16 %v8152_v48 }
 0x122   :  { %v4364_v52 = vsub.f32 %v8101_v7, %v4324_v50  ;;  %v4365_v61 = vsub.f32 %v1517_v9, %v4325_v39  ;;  %3931 = vmatpush.bf16.msra.mxu2 %v3762_v54  ;;  %3960 = vmatpush.bf16.msra.mxu3 %v3763_v38  ;;  %v1202_v7 = vunpack.c.l.b16 %v8103_v63  ;;  %v8164_v42 = vpack.c.b16 %v4452_v53, %v4447_v22 }
 0x123   :  { %v1519_v6 = vpop.f32.mrf.mxu3  ;;  %v794_v58 = vpop.f32.mrf.mxu0  ;;  %v8168_v14 = vpack.c.b16 %v4453_v16, %v4448_v2  ;;  %v369_v9 = vsub.f32 %v161_v26, %v329_v12  ;;  %v1083_v38 = vsub.f32 %v201_v47, %v1043_v51  ;;  %v1346_v26 = vpack.c.b16 %v1322_v32, %v1321_v19  ;;  %v163_v47 = vld [vmem:[#allocation6 + $0x110] sm:$0xff] }
 0x124   :  { %v4398_v0 = vpack.c.bf16 %v4365_v61, %v4364_v52  ;;  %v1520_v1 = vadd.f32 %v1519_v6, %v1410_v46  ;;  %v903_v56 = vpop.f32.mrf.mxu1  ;;  %11082 = vst [vmem:[#allocation22_spill] sm:$0xff] %v8164_v42  ;;  %v1226_v54 = vpack.c.b16 %v1202_v7, %v1201_v60  ;;  %v164_v60 = vld [vmem:[#allocation6 + $0x118] sm:$0xff]  ;;  %v490_v53 = vunpack.c.l.b16 %v8154_v4 }
 0x125   :  { %v904_v5 = vadd.f32 %v903_v56, %v794_v58  ;;  %11083 = vst [vmem:[#allocation23_spill] sm:$0xff] %v8168_v14  ;;  %v1123_v22 = vpack.c.bf16 %v1083_v38, %v1083_v38  ;;  %v1203_v6 = vunpack.c.l.b16 %v8158_v11  ;;  %v8196_v48 = vpack.c.bf16 %v164_v60, %v164_v60 }
 0x126   :  { %v8171_v25 = vpack.c.bf16 %v1520_v1, %v8137_v62  ;;  %3932 = vmatpush.bf16.msra.mxu2 %v7909_v31  ;;  %3961 = vmatpush.bf16.msra.mxu3 %v7911_v35  ;;  %v4556_v59 = vunpack.c.l.b16 %v4398_v0  ;;  %v4557_v63 = vunpack.c.h.b16 %v4398_v0  ;;  %v4552_v31 = vunpack.c.h.b16 %v8135_v8  ;;  %v203_v0 = vld [vmem:[#allocation7 + $0x110] sm:$0xff] }
 0x127   :  { %v370_v35 = vsub.f32 %v162_v40, %v330_v24  ;;  %v1084_v40 = vsub.f32 %v202_v21, %v1044_v17  ;;  %v8194_v24 = vpack.c.bf16 %v163_v47, %v163_v47  ;;  %v8202_v17 = vpack.c.bf16 %v203_v0, %v203_v0 }
 0x128   :  { %v4329_v28 = vunpack.c.l.bf16 %v8171_v25  ;;  %v4330_v57 = vunpack.c.h.bf16 %v8171_v25  ;;  %v8180_v15 = vpack.c.b16 %v4556_v59, %v4551_v20  ;;  %v8184_v18 = vpack.c.b16 %v4557_v63, %v4552_v31 }
 0x129   :  { %v1412_v49 = vpop.f32.mrf.mxu2  ;;  %v410_v52 = vpack.c.bf16 %v370_v35, %v370_v35  ;;  %v1124_v30 = vpack.c.bf16 %v1084_v40, %v1084_v40  ;;  %v4457_v58 = vunpack.c.l.b16 %v8171_v25  ;;  %v4458_v20 = vunpack.c.h.b16 %v8171_v25 }
 0x12a   :  { %v4369_v10 = vsub.f32 %v8137_v62, %v4329_v28  ;;  %v4370_v23 = vsub.f32 %v1520_v1, %v4330_v57  ;;  %11084 = vst [vmem:[#allocation24_spill] sm:$0xff] %v8184_v18  ;;  %v409_v62 = vpack.c.bf16 %v369_v9, %v369_v9  ;;  %v204_v1 = vld [vmem:[#allocation7 + $0x118] sm:$0xff]  ;;  %v1045_v38 = vunpack.c.l.bf16 %v8202_v17  ;;  %v7314_v18 = vld [vmem:[#allocation6 + $0x10] sm:$0xff] }
 0x12b   :  { %v1521_v55 = vpop.f32.mrf.mxu3  ;;  %v797_v39 = vpop.f32.mrf.mxu0  ;;  %v610_v21 = vunpack.c.l.b16 %v410_v52  ;;  %v8204_v28 = vpack.c.bf16 %v204_v1, %v204_v1  ;;  %v513_v52 = vpack.c.b16 %v490_v53, %v489_v36  ;;  %v491_v53 = vunpack.c.l.b16 %v8194_v24 }
 0x12c   :  { %v8188_v3 = vpack.c.bf16 %v4370_v23, %v4369_v10  ;;  %v1522_v50 = vadd.f32 %v1521_v55, %v1412_v49  ;;  %v906_v8 = vpop.f32.mrf.mxu1  ;;  %v609_v46 = vunpack.c.l.b16 %v409_v62  ;;  %v1323_v10 = vunpack.c.l.b16 %v1123_v22 }
 0x12d   :  { %v907_v29 = vadd.f32 %v906_v8, %v797_v39  ;;  %v1324_v23 = vunpack.c.l.b16 %v1124_v30  ;;  %v331_v49 = vunpack.c.l.bf16 %v8194_v24 }
 0x12e   :  { %v4300_v61 = vpack.c.bf16 %v1522_v50, %v904_v5  ;;  %v4561_v25 = vunpack.c.l.b16 %v8188_v3 }
 0x12f   :  { %836 = vmatmul.bf16.gmra.mxu0 %v512_v27  ;;  %945 = vmatmul.bf16.gmra.mxu1 %v632_v44 }
 0x130   :  { %v4334_v43 = vunpack.c.l.bf16 %v4300_v61  ;;  %v4335_v45 = vunpack.c.h.bf16 %v4300_v61  ;;  %1454 = vmatmul.bf16.gmra.mxu2 %v1226_v54  ;;  %1563 = vmatmul.bf16.gmra.mxu3 %v1346_v26  ;;  %v4462_v56 = vunpack.c.l.b16 %v4300_v61  ;;  %v4463_v4 = vunpack.c.h.b16 %v4300_v61 }
 0x131   :  { %v1415_v7 = vpop.f32.mrf.mxu2  ;;  %v4562_v54 = vunpack.c.h.b16 %v8188_v3  ;;  %v633_v61 = vpack.c.b16 %v610_v21, %v609_v46  ;;  %v1347_v3 = vpack.c.b16 %v1324_v23, %v1323_v10  ;;  %v492_v46 = vunpack.c.l.b16 %v8196_v48 }
 0x132   :  { %v4374_v2 = vsub.f32 %v904_v5, %v4334_v43  ;;  %v4375_v16 = vsub.f32 %v1522_v50, %v4335_v45  ;;  %v1204_v5 = vunpack.c.l.b16 %v8160_v37  ;;  %v8200_v32 = vpack.c.b16 %v4462_v56, %v4457_v58 }
 0x133   :  { %v1524_v12 = vpop.f32.mrf.mxu3  ;;  %v799_v19 = vpop.f32.mrf.mxu0  ;;  %v8206_v57 = vpack.c.b16 %v4463_v4, %v4458_v20  ;;  %v332_v37 = vunpack.c.l.bf16 %v8196_v48  ;;  %v1046_v50 = vunpack.c.l.bf16 %v8204_v28  ;;  %v371_v43 = vsub.f32 %v163_v47, %v331_v49  ;;  %v165_v47 = vld [vmem:[#allocation6 + $0x120] sm:$0xff] }
 0x134   :  { %v4404_v59 = vpack.c.bf16 %v4375_v16, %v4374_v2  ;;  %v1525_v63 = vadd.f32 %v1524_v12, %v1415_v7  ;;  %v908_v11 = vpop.f32.mrf.mxu1  ;;  %11085 = vst [vmem:[#allocation25_spill] sm:$0xff] %v8200_v32  ;;  %v1227_v22 = vpack.c.b16 %v1204_v5, %v1203_v6  ;;  %v1085_v7 = vsub.f32 %v203_v0, %v1045_v38  ;;  %v7364_v32 = vld [vmem:[#allocation7 + $0xd0] sm:$0xff] }
 0x135   :  { %v909_v51 = vadd.f32 %v908_v11, %v799_v19  ;;  %11086 = vst [vmem:[#allocation26_spill] sm:$0xff] %v8206_v57  ;;  %v372_v58 = vsub.f32 %v164_v60, %v332_v37  ;;  %v1086_v12 = vsub.f32 %v204_v1, %v1046_v50  ;;  %v411_v20 = vpack.c.bf16 %v371_v43, %v371_v43  ;;  %v166_v60 = vld [vmem:[#allocation6 + $0x128] sm:$0xff]  ;;  %v205_v1 = vld [vmem:[#allocation7 + $0x120] sm:$0xff] }
 0x136   :  { %v8208_v31 = vpack.c.bf16 %v1525_v63, %v907_v29  ;;  %v4566_v9 = vunpack.c.l.b16 %v4404_v59  ;;  %v4567_v35 = vunpack.c.h.b16 %v4404_v59  ;;  %v1125_v21 = vpack.c.bf16 %v1085_v7, %v1085_v7  ;;  %v206_v19 = vld [vmem:[#allocation7 + $0x128] sm:$0xff] }
 0x137   :  { %v412_v36 = vpack.c.bf16 %v372_v58, %v372_v58  ;;  %v1126_v6 = vpack.c.bf16 %v1086_v12, %v1086_v12  ;;  %v8227_v10 = vpack.c.bf16 %v165_v47, %v165_v47  ;;  %v8234_v38 = vpack.c.bf16 %v205_v1, %v205_v1 }
 0x138   :  { %v4339_v55 = vunpack.c.l.bf16 %v8208_v31  ;;  %v4340_v27 = vunpack.c.h.bf16 %v8208_v31  ;;  %v8215_v44 = vpack.c.b16 %v4566_v9, %v4561_v25  ;;  %v8220_v26 = vpack.c.b16 %v4567_v35, %v4562_v54 }
 0x139   :  { %v1417_v40 = vpop.f32.mrf.mxu2  ;;  %v4467_v11 = vunpack.c.l.b16 %v8208_v31  ;;  %v611_v35 = vunpack.c.l.b16 %v411_v20  ;;  %v4468_v23 = vunpack.c.h.b16 %v8208_v31  ;;  %v8236_v50 = vpack.c.bf16 %v206_v19, %v206_v19 }
 0x13a   :  { %v4379_v39 = vsub.f32 %v907_v29, %v4339_v55  ;;  %v4380_v8 = vsub.f32 %v1525_v63, %v4340_v27  ;;  %11087 = vst [vmem:[#allocation27_spill] sm:$0xff] %v8220_v26  ;;  %v8230_v27 = vpack.c.bf16 %v166_v60, %v166_v60  ;;  %v612_v31 = vunpack.c.l.b16 %v412_v36 }
 0x13b   :  { %v1526_v62 = vpop.f32.mrf.mxu3  ;;  %v802_v2 = vpop.f32.mrf.mxu0  ;;  %v1326_v43 = vunpack.c.l.b16 %v1126_v6  ;;  %v1047_v12 = vunpack.c.l.bf16 %v8234_v38  ;;  %v514_v36 = vpack.c.b16 %v492_v46, %v491_v53  ;;  %v167_v46 = vld [vmem:[#allocation6 + $0x130] sm:$0xff] }
 0x13c   :  { %v8222_v45 = vpack.c.bf16 %v4380_v8, %v4379_v39  ;;  %v1527_v30 = vadd.f32 %v1526_v62, %v1417_v40  ;;  %v911_v16 = vpop.f32.mrf.mxu1  ;;  %v1205_v62 = vunpack.c.l.b16 %v8202_v17  ;;  %v334_v7 = vunpack.c.l.bf16 %v8230_v27 }
 0x13d   :  { %v912_v56 = vadd.f32 %v911_v16, %v802_v2  ;;  %v1048_v17 = vunpack.c.l.bf16 %v8236_v50 }
 0x13e   :  { %v4306_v29 = vpack.c.bf16 %v1527_v30, %v909_v51  ;;  %v4572_v58 = vunpack.c.h.b16 %v8222_v45 }
 0x13f   :  { %841 = vmatmul.bf16.gmra.mxu0 %v513_v52  ;;  %950 = vmatmul.bf16.gmra.mxu1 %v633_v61  ;;  %v1206_v61 = vunpack.c.l.b16 %v8204_v28 }
 0x140   :  { %v4344_v4 = vunpack.c.l.bf16 %v4306_v29  ;;  %v4345_v59 = vunpack.c.h.bf16 %v4306_v29  ;;  %1459 = vmatmul.bf16.gmra.mxu2 %v1227_v22  ;;  %1568 = vmatmul.bf16.gmra.mxu3 %v1347_v3  ;;  %v4472_v5 = vunpack.c.l.b16 %v4306_v29  ;;  %v4473_v24 = vunpack.c.h.b16 %v4306_v29 }
 0x141   :  { %v1420_v25 = vpop.f32.mrf.mxu2  ;;  %v1325_v22 = vunpack.c.l.b16 %v1125_v21  ;;  %v333_v3 = vunpack.c.l.bf16 %v8227_v10  ;;  %v634_v21 = vpack.c.b16 %v612_v31, %v611_v35  ;;  %v1228_v6 = vpack.c.b16 %v1206_v61, %v1205_v62  ;;  %v168_v31 = vld [vmem:[#allocation6 + $0x138] sm:$0xff] }
 0x142   :  { %v4384_v63 = vsub.f32 %v909_v51, %v4344_v4  ;;  %v4385_v0 = vsub.f32 %v1527_v30, %v4345_v59  ;;  %v8232_v51 = vpack.c.b16 %v4472_v5, %v4467_v11  ;;  %v8238_v39 = vpack.c.b16 %v4473_v24, %v4468_v23 }
 0x143   :  { %v1529_v9 = vpop.f32.mrf.mxu3  ;;  %v804_v37 = vpop.f32.mrf.mxu0  ;;  %v4571_v30 = vunpack.c.l.b16 %v8222_v45  ;;  %v374_v23 = vsub.f32 %v166_v60, %v334_v7  ;;  %v1087_v24 = vsub.f32 %v205_v1, %v1047_v12  ;;  %v493_v61 = vunpack.c.l.b16 %v8227_v10 }
 0x144   :  { %v4410_v49 = vpack.c.bf16 %v4385_v0, %v4384_v63  ;;  %v1530_v48 = vadd.f32 %v1529_v9, %v1420_v25  ;;  %v913_v55 = vpop.f32.mrf.mxu1  ;;  %11088 = vst [vmem:[#allocation28_spill] sm:$0xff] %v8238_v39  ;;  %v1348_v25 = vpack.c.b16 %v1326_v43, %v1325_v22  ;;  %v373_v9 = vsub.f32 %v165_v47, %v333_v3 }
 0x145   :  { %v914_v54 = vadd.f32 %v913_v55, %v804_v37  ;;  %v414_v35 = vpack.c.bf16 %v374_v23, %v374_v23  ;;  %v1127_v55 = vpack.c.bf16 %v1087_v24, %v1087_v24  ;;  %v494_v22 = vunpack.c.l.b16 %v8230_v27 }
 0x146   :  { %v4576_v8 = vunpack.c.l.b16 %v4410_v49  ;;  %v8240_v40 = vpack.c.bf16 %v1530_v48, %v912_v56  ;;  %v4577_v52 = vunpack.c.h.b16 %v4410_v49  ;;  %v1088_v49 = vsub.f32 %v206_v19, %v1048_v17 }
 0x147   :  { %v413_v53 = vpack.c.bf16 %v373_v9, %v373_v9  ;;  %v8259_v43 = vpack.c.bf16 %v167_v46, %v167_v46  ;;  %v8261_v12 = vpack.c.bf16 %v168_v31, %v168_v31  ;;  %v1208_v10 = vunpack.c.l.b16 %v8236_v50 }
 0x148   :  { %v5004_v2 = vunpack.c.l.bf16 %v8240_v40  ;;  %v5005_v16 = vunpack.c.h.bf16 %v8240_v40  ;;  %v8252_v20 = vpack.c.b16 %v4576_v8, %v4571_v30  ;;  %v8254_v63 = vpack.c.b16 %v4577_v52, %v4572_v58  ;;  %v207_v30 = vld [vmem:[#allocation7 + $0x130] sm:$0xff] }
 0x149   :  { %v1422_v4 = vpop.f32.mrf.mxu2  ;;  %v1128_v8 = vpack.c.bf16 %v1088_v49, %v1088_v49  ;;  %v5132_v47 = vunpack.c.l.b16 %v8240_v40  ;;  %v613_v7 = vunpack.c.l.b16 %v413_v53  ;;  %v5133_v27 = vunpack.c.h.b16 %v8240_v40 }
 0x14a   :  { %v5044_v29 = vsub.f32 %v912_v56, %v5004_v2  ;;  %v5045_v28 = vsub.f32 %v1530_v48, %v5005_v16  ;;  %11089 = vst [vmem:[#allocation29_spill] sm:$0xff] %v8254_v63  ;;  %v1327_v23 = vunpack.c.l.b16 %v1127_v55 }
 0x14b   :  { %v1531_v59 = vpop.f32.mrf.mxu3  ;;  %v807_v45 = vpop.f32.mrf.mxu0  ;;  %v1328_v24 = vunpack.c.l.b16 %v1128_v8 }
 0x14c   :  { %v5084_v0 = vpack.c.bf16 %v5045_v28, %v5044_v29  ;;  %v1532_v11 = vadd.f32 %v1531_v59, %v1422_v4  ;;  %v916_v5 = vpop.f32.mrf.mxu1  ;;  %v614_v29 = vunpack.c.l.b16 %v414_v35  ;;  %v1207_v28 = vunpack.c.l.b16 %v8234_v38 }
 0x14d   :  { %v8268_v4 = vpack.c.bf16 %v207_v30, %v207_v30  ;;  %v336_v38 = vunpack.c.l.bf16 %v8261_v12  ;;  %v917_v35 = vadd.f32 %v916_v5, %v807_v45 }
 0x14e   :  { %v4983_v56 = vpack.c.bf16 %v1532_v11, %v914_v54  ;;  %v5236_v59 = vunpack.c.l.b16 %v5084_v0 }
 0x14f   :  { %846 = vmatmul.bf16.gmra.mxu0 %v514_v36  ;;  %955 = vmatmul.bf16.gmra.mxu1 %v634_v21 }
 0x150   :  { %v5009_v48 = vunpack.c.l.bf16 %v4983_v56  ;;  %v5010_v37 = vunpack.c.h.bf16 %v4983_v56  ;;  %1464 = vmatmul.bf16.gmra.mxu2 %v1228_v6  ;;  %1573 = vmatmul.bf16.gmra.mxu3 %v1348_v25  ;;  %v5137_v60 = vunpack.c.l.b16 %v4983_v56  ;;  %v5138_v2 = vunpack.c.h.b16 %v4983_v56 }
 0x151   :  { %v1425_v1 = vpop.f32.mrf.mxu2  ;;  %v335_v6 = vunpack.c.l.bf16 %v8259_v43  ;;  %v5237_v25 = vunpack.c.h.b16 %v5084_v0  ;;  %v515_v56 = vpack.c.b16 %v494_v22, %v493_v61  ;;  %v1049_v0 = vunpack.c.l.bf16 %v8268_v4  ;;  %v7312_v61 = vld [vmem:[#allocation7] sm:$0xff] }
 0x152   :  { %v5049_v62 = vsub.f32 %v914_v54, %v5009_v48  ;;  %v5050_v52 = vsub.f32 %v1532_v11, %v5010_v37  ;;  %v208_v54 = vld [vmem:[#allocation7 + $0x138] sm:$0xff]  ;;  %v8263_v17 = vpack.c.b16 %v5137_v60, %v5132_v47  ;;  %v8273_v9 = vpack.c.b16 %v5138_v2, %v5133_v27  ;;  %v7310_v37 = vld [vmem:[#allocation6] sm:$0xff] }
 0x153   :  { %v1534_v19 = vpop.f32.mrf.mxu3  ;;  %v809_v3 = vpop.f32.mrf.mxu0  ;;  %v8271_v11 = vpack.c.bf16 %v208_v54, %v208_v54  ;;  %v635_v48 = vpack.c.b16 %v614_v29, %v613_v7  ;;  %v1589_v53 = vmul.f32 %v7310_v37, %v7310_v37  ;;  %v375_v47 = vsub.f32 %v167_v46, %v335_v6  ;;  %v7313_v7 = vld [vmem:[#allocation7 + $0x8] sm:$0xff] }
 0x154   :  { %v5087_v16 = vpack.c.bf16 %v5050_v52, %v5049_v62  ;;  %v918_v58 = vpop.f32.mrf.mxu1  ;;  %11090 = vst [vmem:[#allocation30_spill] sm:$0xff] %v8263_v17  ;;  %v1535_v50 = vadd.f32 %v1534_v19, %v1425_v1  ;;  %v1229_v2 = vpack.c.b16 %v1208_v10, %v1207_v28  ;;  %v376_v27 = vsub.f32 %v168_v31, %v336_v38  ;;  %v7311_v1 = vld [vmem:[#allocation6 + $0x8] sm:$0xff] }
 0x155   :  { %v1050_v55 = vunpack.c.l.bf16 %v8271_v11  ;;  %v1590_v19 = vmul.f32 %v7311_v1, %v7311_v1  ;;  %v2247_v22 = vmul.f32 %v7312_v61, %v7312_v61  ;;  %v2248_v45 = vmul.f32 %v7313_v7, %v7313_v7 }
 0x156   :  { %v5241_v36 = vunpack.c.l.b16 %v5087_v16  ;;  %v5242_v21 = vunpack.c.h.b16 %v5087_v16  ;;  %v1349_v16 = vpack.c.b16 %v1328_v24, %v1327_v23  ;;  %v8284_v29 = vpack.c.bf16 %v1589_v53, %v1589_v53 }
 0x157   :  { %v415_v46 = vpack.c.bf16 %v375_v47, %v375_v47  ;;  %v919_v6 = vadd.f32 %v918_v58, %v809_v3  ;;  %v416_v31 = vpack.c.bf16 %v376_v27, %v376_v27  ;;  %v8286_v28 = vpack.c.bf16 %v1590_v19, %v1590_v19 }
 0x158   :  { %v8276_v49 = vpack.c.b16 %v5241_v36, %v5236_v59  ;;  %v8278_v40 = vpack.c.b16 %v5242_v21, %v5237_v25  ;;  %v8282_v59 = vpack.c.bf16 %v1535_v50, %v917_v35  ;;  %v1089_v36 = vsub.f32 %v207_v30, %v1049_v0 }
 0x159   :  { %v1427_v62 = vpop.f32.mrf.mxu2  ;;  %v1090_v21 = vsub.f32 %v208_v54, %v1050_v55  ;;  %v8290_v23 = vpack.c.bf16 %v2247_v22, %v2247_v22  ;;  %v8292_v24 = vpack.c.bf16 %v2248_v45, %v2248_v45  ;;  %v495_v3 = vunpack.c.l.b16 %v8259_v43 }
 0x15a   :  { %11091 = vst [vmem:[#allocation31_spill] sm:$0xff] %v8276_v49  ;;  %v5014_v10 = vunpack.c.l.bf16 %v8282_v59  ;;  %v5015_v25 = vunpack.c.h.bf16 %v8282_v59  ;;  %v496_v58 = vunpack.c.l.b16 %v8261_v12  ;;  %v616_v47 = vunpack.c.l.b16 %v416_v31 }
 0x15b   :  { %v1536_v52 = vpop.f32.mrf.mxu3  ;;  %v812_v8 = vpop.f32.mrf.mxu0  ;;  %v1130_v0 = vpack.c.bf16 %v1090_v21, %v1090_v21  ;;  %v1670_v55 = vunpack.c.l.bf16 %v8286_v28  ;;  %v2327_v27 = vunpack.c.l.bf16 %v8290_v23  ;;  %v2328_v1 = vunpack.c.l.bf16 %v8292_v24 }
 0x15c   :  { %v921_v60 = vpop.f32.mrf.mxu1  ;;  %v1537_v5 = vadd.f32 %v1536_v52, %v1427_v62  ;;  %v615_v52 = vunpack.c.l.b16 %v415_v46  ;;  %v1209_v12 = vunpack.c.l.b16 %v8268_v4  ;;  %v1210_v61 = vunpack.c.l.b16 %v8271_v11 }
 0x15d   :  { %v516_v21 = vpack.c.b16 %v496_v58, %v495_v3  ;;  %v2367_v14 = vsub.f32 %v2247_v22, %v2327_v27  ;;  %v2368_v57 = vsub.f32 %v2248_v45, %v2328_v1  ;;  %v1591_v11 = vmul.f32 %v7314_v18, %v7314_v18  ;;  %v7315_v3 = vld [vmem:[#allocation6 + $0x18] sm:$0xff] }
 0x15e   :  { %v8294_v38 = vpack.c.bf16 %v1537_v5, %v919_v6  ;;  %v636_v31 = vpack.c.b16 %v616_v47, %v615_v52  ;;  %v1230_v33 = vpack.c.b16 %v1210_v61, %v1209_v12  ;;  %v1592_v58 = vmul.f32 %v7315_v3, %v7315_v3  ;;  %v7317_v27 = vld [vmem:[#allocation7 + $0x18] sm:$0xff] }
 0x15f   :  { %851 = vmatmul.bf16.gmra.mxu0 %v515_v56  ;;  %960 = vmatmul.bf16.gmra.mxu1 %v635_v48  ;;  %v1669_v56 = vunpack.c.l.bf16 %v8284_v29  ;;  %v1129_v48 = vpack.c.bf16 %v1089_v36, %v1089_v36  ;;  %v5142_v22 = vunpack.c.l.b16 %v8282_v59  ;;  %v5143_v45 = vunpack.c.h.b16 %v8282_v59 }
 0x160   :  { %1469 = vmatmul.bf16.gmra.mxu2 %v1229_v2  ;;  %1578 = vmatmul.bf16.gmra.mxu3 %v1349_v16  ;;  %v5054_v2 = vsub.f32 %v917_v35, %v5014_v10  ;;  %v5055_v16 = vsub.f32 %v1535_v50, %v5015_v25  ;;  %v5019_v43 = vunpack.c.l.bf16 %v8294_v38  ;;  %v5020_v36 = vunpack.c.h.bf16 %v8294_v38 }
 0x161   :  { %v1430_v30 = vpop.f32.mrf.mxu2  ;;  %v1709_v7 = vsub.f32 %v1589_v53, %v1669_v56  ;;  %v1329_v34 = vunpack.c.l.b16 %v1129_v48  ;;  %v1330_v35 = vunpack.c.l.b16 %v1130_v0  ;;  %v1710_v50 = vsub.f32 %v1590_v19, %v1670_v55  ;;  %v7316_v48 = vld [vmem:[#allocation7 + $0x10] sm:$0xff] }
 0x162   :  { %v8312_v10 = vpack.c.bf16 %v5055_v16, %v5054_v2  ;;  %v922_v25 = vadd.f32 %v921_v60, %v812_v8  ;;  %v5059_v39 = vsub.f32 %v919_v6, %v5019_v43  ;;  %v5060_v53 = vsub.f32 %v1537_v5, %v5020_v36 }
 0x163   :  { %v1539_v54 = vpop.f32.mrf.mxu3  ;;  %v8299_v37 = vpop.f32.mrf.mxu0  ;;  %v1749_v4 = vpack.c.bf16 %v1709_v7, %v1709_v7  ;;  %v2249_v19 = vmul.f32 %v7316_v48, %v7316_v48  ;;  %v1350_v8 = vpack.c.b16 %v1330_v35, %v1329_v34  ;;  %v1750_v60 = vpack.c.bf16 %v1710_v50, %v1710_v50 }
 0x164   :  { %v8301_v62 = vpop.f32.mrf.mxu1  ;;  %v8310_v46 = vadd.f32 %v1539_v54, %v1430_v30  ;;  %v1829_v18 = vunpack.c.l.b16 %v8284_v29  ;;  %v2407_v5 = vpack.c.bf16 %v2367_v14, %v2367_v14  ;;  %v2408_v6 = vpack.c.bf16 %v2368_v57, %v2368_v57 }
 0x165   :  { %v5246_v0 = vunpack.c.l.b16 %v8312_v10  ;;  %v1830_v55 = vunpack.c.l.b16 %v8286_v28  ;;  %v8322_v2 = vunpack.c.l.b16 %v1749_v4  ;;  %v8324_v16 = vpack.c.bf16 %v1591_v11, %v1591_v11 }
 0x166   :  { %v8315_v56 = vpack.c.bf16 %v8310_v46, %v922_v25  ;;  %v2250_v1 = vmul.f32 %v7317_v27, %v7317_v27  ;;  %v5093_v34 = vpack.c.bf16 %v5060_v53, %v5059_v39  ;;  %v8327_v59 = vpack.c.bf16 %v1592_v58, %v1592_v58 }
 0x167   :  { %v8329_v29 = vpack.c.bf16 %v2249_v19, %v2249_v19  ;;  %v8334_v28 = vunpack.c.l.b16 %v1750_v60  ;;  %v2487_v12 = vunpack.c.l.b16 %v8290_v23  ;;  %v2488_v39 = vunpack.c.l.b16 %v8292_v24 }
 0x168   :  { %v5024_v43 = vunpack.c.l.bf16 %v8315_v56  ;;  %v5025_v14 = vunpack.c.h.bf16 %v8315_v56  ;;  %v8338_v61 = vunpack.c.l.b16 %v2407_v5  ;;  %v8340_v7 = vunpack.c.l.b16 %v2408_v6 }
 0x169   :  { %v1432_v30 = vpop.f32.mrf.mxu2  ;;  %v5147_v36 = vunpack.c.l.b16 %v8294_v38  ;;  %v8346_v35 = vpack.c.bf16 %v2250_v1, %v2250_v1  ;;  %v1672_v24 = vunpack.c.l.bf16 %v8327_v59  ;;  %v2329_v53 = vunpack.c.l.bf16 %v8329_v29 }
 0x16a   :  { %v5064_v50 = vsub.f32 %v922_v25, %v5024_v43  ;;  %v1869_v60 = vpack.c.b16 %v1830_v55, %v1829_v18  ;;  %v5247_v25 = vunpack.c.h.b16 %v8312_v10  ;;  %v5252_v5 = vunpack.c.h.b16 %v5093_v34 }
 0x16b   :  { %v1541_v54 = vpop.f32.mrf.mxu3  ;;  %v817_v52 = vpop.f32.mrf.mxu0  ;;  %v2527_v27 = vpack.c.b16 %v2488_v39, %v2487_v12 }
 0x16c   :  { %v926_v47 = vpop.f32.mrf.mxu1  ;;  %v8332_v57 = vadd.f32 %v1541_v54, %v1432_v30  ;;  %v5251_v30 = vunpack.c.l.b16 %v5093_v34  ;;  %v5065_v54 = vsub.f32 %v8310_v46, %v5025_v14  ;;  %v2330_v46 = vunpack.c.l.bf16 %v8346_v35 }
 0x16d   :  { %v2647_v14 = vpack.c.b16 %v8340_v7, %v8338_v61  ;;  %v8375_v12 = vpack.c.b16 %v5252_v5, %v5247_v25 }
 0x16e   :  { %v8365_v18 = vpack.c.bf16 %v5065_v54, %v5064_v50 }
 0x16f   :  { %856 = vmatmul.bf16.gmra.mxu0 %v516_v21  ;;  %965 = vmatmul.bf16.gmra.mxu1 %v636_v31  ;;  %v924_v21 = vadd.f32 %v8301_v62, %v8299_v37  ;;  %v1671_v31 = vunpack.c.l.bf16 %v8324_v16  ;;  %v927_v37 = vadd.f32 %v926_v47, %v817_v52  ;;  %v1712_v52 = vsub.f32 %v1592_v58, %v1672_v24 }
 0x170   :  { %1474 = vmatmul.bf16.gmra.mxu2 %v1230_v33  ;;  %1583 = vmatmul.bf16.gmra.mxu3 %v1350_v8  ;;  %v5148_v33 = vunpack.c.h.b16 %v8294_v38  ;;  %v1989_v38 = vpack.c.b16 %v8334_v28, %v8322_v2  ;;  %v2369_v47 = vsub.f32 %v2249_v19, %v2329_v53  ;;  %v8368_v2 = vpack.c.b16 %v5251_v30, %v5246_v0 }
 0x171   :  { %v1435_v4 = vpop.f32.mrf.mxu2  ;;  %v8353_v3 = vpack.c.bf16 %v8332_v57, %v924_v21  ;;  %v1711_v43 = vsub.f32 %v1591_v11, %v1671_v31  ;;  %v2370_v19 = vsub.f32 %v2250_v1, %v2330_v46  ;;  %v1752_v0 = vpack.c.bf16 %v1712_v52, %v1712_v52 }
 0x172   :  { %11093 = vst [vmem:[#allocation33_spill] sm:$0xff] %v8368_v2  ;;  %v8370_v10 = vpack.c.b16 %v5148_v33, %v5143_v45  ;;  %v7318_v45 = vld [vmem:[#allocation6 + $0x20] sm:$0xff]  ;;  %v7319_v33 = vld [vmem:[#allocation6 + $0x28] sm:$0xff]  ;;  %v5256_v25 = vunpack.c.l.b16 %v8365_v18  ;;  %v5257_v52 = vunpack.c.h.b16 %v8365_v18 }
 0x173   :  { %v1544_v23 = vpop.f32.mrf.mxu3  ;;  %v819_v48 = vpop.f32.mrf.mxu0  ;;  %v5029_v55 = vunpack.c.l.bf16 %v8353_v3  ;;  %v5030_v34 = vunpack.c.h.bf16 %v8353_v3  ;;  %v1751_v58 = vpack.c.bf16 %v1711_v43, %v1711_v43  ;;  %v1593_v31 = vmul.f32 %v7318_v45, %v7318_v45 }
 0x174   :  { %v1545_v62 = vadd.f32 %v1544_v23, %v1435_v4  ;;  %v928_v8 = vpop.f32.mrf.mxu1  ;;  %v8363_v4 = vpack.c.b16 %v5147_v36, %v5142_v22  ;;  %v5152_v22 = vunpack.c.l.b16 %v8315_v56  ;;  %v2409_v36 = vpack.c.bf16 %v2369_v47, %v2369_v47 }
 0x175   :  { %v1594_v50 = vmul.f32 %v7319_v33, %v7319_v33  ;;  %v5069_v23 = vsub.f32 %v924_v21, %v5029_v55  ;;  %v929_v24 = vadd.f32 %v928_v8, %v819_v48  ;;  %v5070_v1 = vsub.f32 %v8332_v57, %v5030_v34  ;;  %v7320_v34 = vld [vmem:[#allocation7 + $0x20] sm:$0xff]  ;;  %v7321_v33 = vld [vmem:[#allocation7 + $0x28] sm:$0xff] }
 0x176   :  { %v8358_v6 = vpack.c.bf16 %v1545_v62, %v927_v37  ;;  %11092 = vst [vmem:[#allocation32_spill] sm:$0xff] %v8363_v4  ;;  %v1831_v47 = vunpack.c.l.b16 %v8324_v16  ;;  %v1832_v45 = vunpack.c.l.b16 %v8327_v59  ;;  %v8386_v21 = vunpack.c.l.b16 %v1751_v58 }
 0x177   :  { %v2410_v48 = vpack.c.bf16 %v2370_v19, %v2370_v19  ;;  %v8388_v8 = vpack.c.bf16 %v1593_v31, %v1593_v31  ;;  %v8390_v55 = vpack.c.bf16 %v1594_v50, %v1594_v50  ;;  %v2489_v16 = vunpack.c.l.b16 %v8329_v29 }
 0x178   :  { %v5034_v11 = vunpack.c.l.bf16 %v8358_v6  ;;  %v5035_v28 = vunpack.c.h.bf16 %v8358_v6  ;;  %v5099_v59 = vpack.c.bf16 %v5070_v1, %v5069_v23  ;;  %v8400_v19 = vpack.c.b16 %v1832_v45, %v1831_v47 }
 0x179   :  { %v1437_v61 = vpop.f32.mrf.mxu2  ;;  %v1674_v29 = vunpack.c.l.bf16 %v8390_v55  ;;  %v8408_v23 = vmul.f32 %v7321_v33, %v7321_v33 }
 0x17a   :  { %v5074_v5 = vsub.f32 %v927_v37, %v5034_v11  ;;  %v5075_v43 = vsub.f32 %v1545_v62, %v5035_v28  ;;  %v8394_v62 = vunpack.c.l.b16 %v1752_v0  ;;  %v8398_v11 = vmul.f32 %v7320_v34, %v7320_v34 }
 0x17b   :  { %v1546_v7 = vpop.f32.mrf.mxu3  ;;  %v822_v30 = vpop.f32.mrf.mxu0  ;;  %v1673_v0 = vunpack.c.l.bf16 %v8388_v8  ;;  %v5262_v34 = vunpack.c.h.b16 %v5099_v59 }
 0x17c   :  { %v1547_v53 = vadd.f32 %v1546_v7, %v1437_v61  ;;  %v931_v54 = vpop.f32.mrf.mxu1  ;;  %v8402_v61 = vunpack.c.l.b16 %v2409_v36  ;;  %v5158_v36 = vunpack.c.h.b16 %v8353_v3  ;;  %v8416_v47 = vpack.c.bf16 %v8398_v11, %v8398_v11 }
 0x17d   :  { %v932_v46 = vadd.f32 %v931_v54, %v822_v30 }
 0x17e   :  { %v8381_v39 = vpack.c.bf16 %v1547_v53, %v929_v24 }
 0x17f   :  { %2037 = vmatmul.bf16.vlgmr.msrb.gmra.mxu0 %v1869_v60  ;;  %2146 = vmatmul.bf16.vlgmr.msrb.gmra.mxu1 %v1989_v38  ;;  %v5102_v60 = vpack.c.bf16 %v5075_v43, %v5074_v5  ;;  %v2490_v38 = vunpack.c.l.b16 %v8346_v35  ;;  %v5261_v43 = vunpack.c.l.b16 %v5099_v59 }
 0x180   :  { %v5039_v57 = vunpack.c.l.bf16 %v8381_v39  ;;  %v5040_v37 = vunpack.c.h.bf16 %v8381_v39  ;;  %2695 = vmatmul.bf16.vlgmr.msrb.gmra.mxu2 %v2527_v27  ;;  %2804 = vmatmul.bf16.vlgmr.msrb.gmra.mxu3 %v2647_v14  ;;  %v8404_v14 = vunpack.c.l.b16 %v2410_v48 }
 0x181   :  { %v1440_v7 = vpop.f32.mrf.mxu2  ;;  %v5266_v1 = vunpack.c.l.b16 %v5102_v60  ;;  %v5267_v45 = vunpack.c.h.b16 %v5102_v60  ;;  %v1990_v60 = vpack.c.b16 %v8394_v62, %v8386_v21 }
 0x182   :  { %v5079_v28 = vsub.f32 %v929_v24, %v5039_v57  ;;  %v5080_v58 = vsub.f32 %v1547_v53, %v5040_v37  ;;  %v5157_v53 = vunpack.c.l.b16 %v8353_v3  ;;  %v2648_v59 = vpack.c.b16 %v8404_v14, %v8402_v61 }
 0x183   :  { %v1549_v27 = vpop.f32.mrf.mxu3  ;;  %v824_v54 = vpop.f32.mrf.mxu0 }
 0x184   :  { %v5105_v35 = vpack.c.bf16 %v5080_v58, %v5079_v28  ;;  %v1550_v30 = vadd.f32 %v1549_v27, %v1440_v7  ;;  %v933_v24 = vpop.f32.mrf.mxu1  ;;  %v1713_v28 = vsub.f32 %v1593_v31, %v1673_v0  ;;  %v1714_v58 = vsub.f32 %v1594_v50, %v1674_v29 }
 0x185   :  { %v8412_v5 = vadd.f32 %v933_v24, %v824_v54  ;;  %v8422_v7 = vpack.c.bf16 %v8408_v23, %v8408_v23  ;;  %v8434_v31 = vpack.c.b16 %v5157_v53, %v5152_v22  ;;  %v11096_v29 = vunpack.c.h.b16 %v8315_v56 }
 0x186   :  { %v5271_v48 = vunpack.c.l.b16 %v5105_v35  ;;  %v5272_v57 = vunpack.c.h.b16 %v5105_v35  ;;  %v8418_v37 = vpack.c.bf16 %v1550_v30, %v932_v46  ;;  %v2528_v35 = vpack.c.b16 %v2490_v38, %v2489_v16 }
 0x187   :  { %11095 = vst [vmem:[#allocation35_spill] sm:$0xff] %v8434_v31  ;;  %v8439_v24 = vpack.c.b16 %v5158_v36, %v11096_v29  ;;  %v8444_v16 = vpack.c.b16 %v5261_v43, %v5256_v25  ;;  %v1753_v38 = vpack.c.bf16 %v1713_v28, %v1713_v28  ;;  %v1754_v22 = vpack.c.bf16 %v1714_v58, %v1714_v58  ;;  %v7322_v25 = vld [vmem:[#allocation6 + $0x30] sm:$0xff] }
 0x188   :  { %v5699_v3 = vunpack.c.l.bf16 %v8418_v37  ;;  %v5700_v27 = vunpack.c.h.bf16 %v8418_v37  ;;  %v8426_v33 = vpack.c.b16 %v5271_v48, %v5266_v1  ;;  %v5292_v54 = vpack.c.b16 %v5272_v57, %v5267_v45  ;;  %v7323_v57 = vld [vmem:[#allocation6 + $0x38] sm:$0xff] }
 0x189   :  { %v2331_v1 = vunpack.c.l.bf16 %v8416_v47  ;;  %v1442_v21 = vpop.f32.mrf.mxu2  ;;  %11097 = vst [vmem:[#allocation36_spill] sm:$0xff] %v8444_v16  ;;  %v5287_v56 = vpack.c.b16 %v5262_v34, %v5257_v52  ;;  %v5162_v36 = vunpack.c.l.b16 %v8358_v6  ;;  %v5163_v48 = vunpack.c.h.b16 %v8358_v6  ;;  %v7324_v34 = vld [vmem:[#allocation7 + $0x30] sm:$0xff] }
 0x18a   :  { %11094 = vst [vmem:[#allocation34_spill] sm:$0xff] %v8426_v33  ;;  %v5739_v50 = vsub.f32 %v932_v46, %v5699_v3  ;;  %v5740_v0 = vsub.f32 %v1550_v30, %v5700_v27  ;;  %5316 = vmatpush.bf16.msrb.mxu0 %v8426_v33  ;;  %5345 = vmatpush.bf16.msrb.mxu1 %v5292_v54  ;;  %v2332_v46 = vunpack.c.l.bf16 %v8422_v7  ;;  %v8465_v27 = vunpack.c.l.b16 %v1753_v38 }
 0x18b   :  { %v1551_v62 = vpop.f32.mrf.mxu3  ;;  %v8455_v43 = vmul.f32 %v7322_v25, %v7322_v25  ;;  %v1596_v28 = vmul.f32 %v7323_v57, %v7323_v57  ;;  %v2371_v52 = vsub.f32 %v8398_v11, %v2331_v1  ;;  %v2253_v3 = vmul.f32 %v7324_v34, %v7324_v34 }
 0x18c   :  { %v8447_v61 = vpack.c.bf16 %v5740_v0, %v5739_v50  ;;  %v1552_v14 = vadd.f32 %v1551_v62, %v1442_v21  ;;  %v827_v30 = vpop.f32.mrf.mxu0  ;;  %v936_v53 = vpop.f32.mrf.mxu1  ;;  %v8467_v54 = vunpack.c.l.b16 %v1754_v22  ;;  %v2372_v50 = vsub.f32 %v8408_v23, %v2332_v46  ;;  %v7325_v62 = vld [vmem:[#allocation7 + $0x38] sm:$0xff] }
 0x18d   :  { %v8452_v45 = vadd.f32 %v936_v53, %v827_v30  ;;  %v5167_v11 = vunpack.c.l.b16 %v8381_v39  ;;  %v8479_v21 = vpack.c.bf16 %v1596_v28, %v1596_v28  ;;  %v2254_v23 = vmul.f32 %v7325_v62, %v7325_v62 }
 0x18e   :  { %v8458_v58 = vpack.c.bf16 %v1552_v14, %v8412_v5  ;;  %5317 = vmatpush.bf16.msrb.mxu0 %v8444_v16  ;;  %5346 = vmatpush.bf16.msrb.mxu1 %v5287_v56  ;;  %v2491_v30 = vunpack.c.l.b16 %v8416_v47  ;;  %v2492_v53 = vunpack.c.l.b16 %v8422_v7  ;;  %v2411_v56 = vpack.c.bf16 %v2371_v52, %v2371_v52 }
 0x18f   :  { %2042 = vmatmul.bf16.gmra.mxu0 %v8400_v19  ;;  %2151 = vmatmul.bf16.gmra.mxu1 %v1990_v60  ;;  %v5168_v19 = vunpack.c.h.b16 %v8381_v39  ;;  %v8477_v60 = vpack.c.bf16 %v8455_v43, %v8455_v43  ;;  %v2412_v25 = vpack.c.bf16 %v2372_v50, %v2372_v50  ;;  %v1676_v6 = vunpack.c.l.bf16 %v8479_v21 }
 0x190   :  { %v5704_v0 = vunpack.c.l.bf16 %v8458_v58  ;;  %v5705_v29 = vunpack.c.h.bf16 %v8458_v58  ;;  %2700 = vmatmul.bf16.gmra.mxu2 %v2528_v35  ;;  %2809 = vmatmul.bf16.gmra.mxu3 %v2648_v59  ;;  %v5832_v1 = vunpack.c.l.b16 %v8458_v58  ;;  %v8484_v35 = vpack.c.bf16 %v2253_v3, %v2253_v3 }
 0x191   :  { %v5827_v59 = vunpack.c.l.b16 %v8418_v37  ;;  %v1675_v62 = vunpack.c.l.bf16 %v8477_v60  ;;  %v8497_v18 = vpack.c.bf16 %v2254_v23, %v2254_v23  ;;  %v5188_v50 = vpack.c.b16 %v5168_v19, %v5163_v48 }
 0x192   :  { %v5744_v38 = vsub.f32 %v8412_v5, %v5704_v0  ;;  %v5745_v22 = vsub.f32 %v1552_v14, %v5705_v29  ;;  %5318 = vmatpush.bf16.msrb.mxu0 %v8368_v2  ;;  %5347 = vmatpush.bf16.msrb.mxu1 %v8375_v12  ;;  %v8489_v0 = vpack.c.b16 %v5167_v11, %v5162_v36  ;;  %v2333_v7 = vunpack.c.l.bf16 %v8484_v35 }
 0x193   :  { %v1445_v39 = vpop.f32.mrf.mxu2  ;;  %v1554_v46 = vpop.f32.mrf.mxu3  ;;  %v8491_v29 = vpack.c.b16 %v5832_v1, %v5827_v59  ;;  %v5931_v36 = vunpack.c.l.b16 %v8447_v61  ;;  %v2611_v11 = vunpack.c.l.b16 %v2411_v56  ;;  %v2612_v1 = vunpack.c.l.b16 %v2412_v25 }
 0x194   :  { %v5782_v57 = vpack.c.bf16 %v5745_v22, %v5744_v38  ;;  %v1555_v34 = vadd.f32 %v1554_v46, %v1445_v39  ;;  %v829_v5 = vpop.f32.mrf.mxu0  ;;  %v938_v14 = vpop.f32.mrf.mxu1  ;;  %11098 = vst [vmem:[#allocation37_spill] sm:$0xff] %v8489_v0  ;;  %v5833_v46 = vunpack.c.h.b16 %v8458_v58  ;;  %v2373_v56 = vsub.f32 %v2253_v3, %v2333_v7 }
 0x195   :  { %11099 = vst [vmem:[#allocation38_spill] sm:$0xff] %v8491_v29  ;;  %v8493_v12 = vadd.f32 %v938_v14, %v829_v5  ;;  %v1715_v5 = vsub.f32 %v8455_v43, %v1675_v62  ;;  %v2334_v14 = vunpack.c.l.bf16 %v8497_v18  ;;  %v5828_v25 = vunpack.c.h.b16 %v8418_v37 }
 0x196   :  { %v8500_v47 = vpack.c.bf16 %v1555_v34, %v8452_v45  ;;  %5319 = vmatpush.bf16.msrb.mxu0 %v8276_v49  ;;  %5348 = vmatpush.bf16.msrb.mxu1 %v8278_v40  ;;  %v5936_v52 = vunpack.c.l.b16 %v5782_v57  ;;  %v5937_v38 = vunpack.c.h.b16 %v5782_v57  ;;  %v1716_v40 = vsub.f32 %v1596_v28, %v1676_v6 }
 0x197   :  { %v5932_v49 = vunpack.c.h.b16 %v8447_v61  ;;  %v11100_v58 = vunpack.c.l.b16 %v8388_v8  ;;  %v11101_v43 = vunpack.c.l.b16 %v8390_v55  ;;  %v1991_v6 = vpack.c.b16 %v8467_v54, %v8465_v27  ;;  %v7326_v55 = vld [vmem:[#allocation6 + $0x40] sm:$0xff] }
 0x198   :  { %v5709_v22 = vunpack.c.l.bf16 %v8500_v47  ;;  %v5710_v59 = vunpack.c.h.bf16 %v8500_v47  ;;  %v8508_v39 = vpack.c.b16 %v5936_v52, %v5931_v36  ;;  %v2529_v61 = vpack.c.b16 %v2492_v53, %v2491_v30  ;;  %v7327_v30 = vld [vmem:[#allocation6 + $0x48] sm:$0xff] }
 0x199   :  { %v1871_v28 = vpack.c.b16 %v11101_v43, %v11100_v58  ;;  %v8523_v62 = vpack.c.b16 %v5937_v38, %v5932_v49  ;;  %v2649_v7 = vpack.c.b16 %v2612_v1, %v2611_v11  ;;  %v8527_v37 = vpack.c.b16 %v5833_v46, %v5828_v25  ;;  %v7328_v11 = vld [vmem:[#allocation7 + $0x40] sm:$0xff]  ;;  %v7329_v38 = vld [vmem:[#allocation7 + $0x48] sm:$0xff] }
 0x19a   :  { %v5749_v48 = vsub.f32 %v8452_v45, %v5709_v22  ;;  %v5750_v19 = vsub.f32 %v1555_v34, %v5710_v59  ;;  %5320 = vmatpush.bf16.msrb.mxu0 %v8489_v0  ;;  %5349 = vmatpush.bf16.msrb.mxu1 %v5188_v50  ;;  %v1755_v8 = vpack.c.bf16 %v1715_v5, %v1715_v5 }
 0x19b   :  { %v1447_v57 = vpop.f32.mrf.mxu2  ;;  %v1556_v36 = vpop.f32.mrf.mxu3  ;;  %11102 = vst [vmem:[#allocation39_spill] sm:$0xff] %v8523_v62  ;;  %v2374_v22 = vsub.f32 %v2254_v23, %v2334_v14  ;;  %v8531_v59 = vmul.f32 %v7326_v55, %v7326_v55  ;;  %v1756_v49 = vpack.c.bf16 %v1716_v40, %v1716_v40  ;;  %v2413_v54 = vpack.c.bf16 %v2373_v56, %v2373_v56 }
 0x19c   :  { %v8525_v45 = vpack.c.bf16 %v5750_v19, %v5749_v48  ;;  %v1557_v34 = vadd.f32 %v1556_v36, %v1447_v57  ;;  %v832_v52 = vpop.f32.mrf.mxu0  ;;  %v941_v3 = vpop.f32.mrf.mxu1  ;;  %11103 = vst [vmem:[#allocation40_spill] sm:$0xff] %v8527_v37  ;;  %v1598_v53 = vmul.f32 %v7327_v30, %v7327_v30  ;;  %v2255_v1 = vmul.f32 %v7328_v11, %v7328_v11 }
 0x19d   :  { %v8529_v50 = vadd.f32 %v941_v3, %v832_v52  ;;  %v8538_v23 = vmul.f32 %v7329_v38, %v7329_v38  ;;  %v1835_v14 = vunpack.c.l.b16 %v8477_v60  ;;  %v1836_v40 = vunpack.c.l.b16 %v8479_v21 }
 0x19e   :  { %v8534_v27 = vpack.c.bf16 %v1557_v34, %v8493_v12  ;;  %5321 = vmatpush.bf16.msrb.mxu0 %v8434_v31  ;;  %5350 = vmatpush.bf16.msrb.mxu1 %v8439_v24  ;;  %v8545_v48 = vunpack.c.l.b16 %v1755_v8  ;;  %v2414_v19 = vpack.c.bf16 %v2374_v22, %v2374_v22  ;;  %v8549_v56 = vpack.c.bf16 %v8531_v59, %v8531_v59 }
 0x19f   :  { %2047 = vmatmul.bf16.gmra.mxu0 %v1871_v28  ;;  %2156 = vmatmul.bf16.gmra.mxu1 %v1991_v6  ;;  %v1956_v36 = vunpack.c.l.b16 %v1756_v49  ;;  %v5837_v60 = vunpack.c.l.b16 %v8500_v47  ;;  %v2493_v21 = vunpack.c.l.b16 %v8484_v35  ;;  %v8556_v28 = vpack.c.bf16 %v1598_v53, %v1598_v53 }
 0x1a0   :  { %v5714_v46 = vunpack.c.l.bf16 %v8534_v27  ;;  %v5715_v5 = vunpack.c.h.bf16 %v8534_v27  ;;  %2705 = vmatmul.bf16.gmra.mxu2 %v2529_v61  ;;  %2814 = vmatmul.bf16.gmra.mxu3 %v2649_v7  ;;  %v5842_v24 = vunpack.c.l.b16 %v8534_v27  ;;  %v8558_v6 = vpack.c.bf16 %v2255_v1, %v2255_v1 }
 0x1a1   :  { %v8562_v61 = vpack.c.bf16 %v8538_v23, %v8538_v23  ;;  %v2613_v22 = vunpack.c.l.b16 %v2413_v54  ;;  %v2614_v35 = vunpack.c.l.b16 %v2414_v19  ;;  %v1677_v55 = vunpack.c.l.bf16 %v8549_v56 }
 0x1a2   :  { %v5754_v25 = vsub.f32 %v8493_v12, %v5714_v46  ;;  %v5755_v57 = vsub.f32 %v1557_v34, %v5715_v5  ;;  %5322 = vmatpush.bf16.msrb.mxu0 %v8363_v4  ;;  %5351 = vmatpush.bf16.msrb.mxu1 %v8370_v10  ;;  %v2494_v10 = vunpack.c.l.b16 %v8497_v18  ;;  %v8565_v7 = vpack.c.b16 %v5842_v24, %v5837_v60 }
 0x1a3   :  { %v1450_v58 = vpop.f32.mrf.mxu2  ;;  %v1559_v43 = vpop.f32.mrf.mxu3  ;;  %v5941_v30 = vunpack.c.l.b16 %v8525_v45  ;;  %v1678_v18 = vunpack.c.l.bf16 %v8556_v28  ;;  %v2335_v46 = vunpack.c.l.bf16 %v8558_v6  ;;  %v2336_v54 = vunpack.c.l.bf16 %v8562_v61 }
 0x1a4   :  { %v5788_v12 = vpack.c.bf16 %v5755_v57, %v5754_v25  ;;  %v1560_v34 = vadd.f32 %v1559_v43, %v1450_v58  ;;  %v834_v52 = vpop.f32.mrf.mxu0  ;;  %v943_v3 = vpop.f32.mrf.mxu1  ;;  %11104 = vst [vmem:[#allocation41_spill] sm:$0xff] %v8565_v7  ;;  %v5942_v5 = vunpack.c.h.b16 %v8525_v45  ;;  %v1872_v57 = vpack.c.b16 %v1836_v40, %v1835_v14 }
 0x1a5   :  { %v8567_v8 = vadd.f32 %v943_v3, %v834_v52  ;;  %v1992_v60 = vpack.c.b16 %v1956_v36, %v8545_v48  ;;  %v5838_v58 = vunpack.c.h.b16 %v8500_v47  ;;  %v1717_v52 = vsub.f32 %v8531_v59, %v1677_v55  ;;  %v7330_v36 = vld [vmem:[#allocation6 + $0x50] sm:$0xff] }
 0x1a6   :  { %v8571_v49 = vpack.c.bf16 %v1560_v34, %v8529_v50  ;;  %5323 = vmatpush.bf16.msrb.mxu0 %v8263_v17  ;;  %5352 = vmatpush.bf16.msrb.mxu1 %v8273_v9  ;;  %v5946_v11 = vunpack.c.l.b16 %v5788_v12  ;;  %v5947_v38 = vunpack.c.h.b16 %v5788_v12  ;;  %v5843_v9 = vunpack.c.h.b16 %v8534_v27 }
 0x1a7   :  { %v2530_v62 = vpack.c.b16 %v2494_v10, %v2493_v21  ;;  %v2650_v17 = vpack.c.b16 %v2614_v35, %v2613_v22  ;;  %v2376_v47 = vsub.f32 %v8538_v23, %v2336_v54  ;;  %v1599_v59 = vmul.f32 %v7330_v36, %v7330_v36  ;;  %v7333_v23 = vld [vmem:[#allocation7 + $0x58] sm:$0xff] }
 0x1a8   :  { %v5719_v24 = vunpack.c.l.bf16 %v8571_v49  ;;  %v5720_v19 = vunpack.c.h.bf16 %v8571_v49  ;;  %v8582_v25 = vpack.c.b16 %v5946_v11, %v5941_v30  ;;  %v8589_v3 = vpack.c.b16 %v5947_v38, %v5942_v5  ;;  %v7332_v38 = vld [vmem:[#allocation7 + $0x50] sm:$0xff] }
 0x1a9   :  { %v1718_v30 = vsub.f32 %v1598_v53, %v1678_v18  ;;  %v2375_v11 = vsub.f32 %v2255_v1, %v2335_v46  ;;  %v8594_v48 = vpack.c.b16 %v5843_v9, %v5838_v58  ;;  %v2257_v5 = vmul.f32 %v7332_v38, %v7332_v38 }
 0x1aa   :  { %v5759_v43 = vsub.f32 %v8529_v50, %v5719_v24  ;;  %v5760_v12 = vsub.f32 %v1560_v34, %v5720_v19  ;;  %11105 = vst [vmem:[#allocation42_spill] sm:$0xff] %v8589_v3  ;;  %v7331_v34 = vld [vmem:[#allocation6 + $0x58] sm:$0xff]  ;;  %v1757_v53 = vpack.c.bf16 %v1717_v52, %v1717_v52  ;;  %v2258_v22 = vmul.f32 %v7333_v23, %v7333_v23 }
 0x1ab   :  { %v1452_v45 = vpop.f32.mrf.mxu2  ;;  %v1561_v37 = vpop.f32.mrf.mxu3  ;;  %11106 = vst [vmem:[#allocation43_spill] sm:$0xff] %v8594_v48  ;;  %v1600_v55 = vmul.f32 %v7331_v34, %v7331_v34  ;;  %v1758_v1 = vpack.c.bf16 %v1718_v30, %v1718_v30  ;;  %v2415_v10 = vpack.c.bf16 %v2375_v11, %v2375_v11  ;;  %v1838_v46 = vunpack.c.l.b16 %v8556_v28 }
 0x1ac   :  { %v8591_v4 = vpack.c.bf16 %v5760_v12, %v5759_v43  ;;  %v1562_v27 = vadd.f32 %v1561_v37, %v1452_v45  ;;  %v837_v14 = vpop.f32.mrf.mxu0  ;;  %v946_v40 = vpop.f32.mrf.mxu1  ;;  %v1837_v37 = vunpack.c.l.b16 %v8549_v56  ;;  %v2416_v24 = vpack.c.bf16 %v2376_v47, %v2376_v47 }
 0x1ad   :  { %v947_v50 = vadd.f32 %v946_v40, %v837_v14  ;;  %v8604_v19 = vpack.c.bf16 %v1599_v59, %v1599_v59  ;;  %v8606_v9 = vpack.c.bf16 %v1600_v55, %v1600_v55  ;;  %v8608_v56 = vpack.c.bf16 %v2257_v5, %v2257_v5 }
 0x1ae   :  { %v8597_v21 = vpack.c.bf16 %v1562_v27, %v8567_v8  ;;  %v1957_v58 = vunpack.c.l.b16 %v1757_v53  ;;  %v5847_v43 = vunpack.c.l.b16 %v8571_v49  ;;  %v2495_v28 = vunpack.c.l.b16 %v8558_v6 }
 0x1af   :  { %2052 = vmatmul.bf16.gmra.mxu0 %v1872_v57  ;;  %2161 = vmatmul.bf16.gmra.mxu1 %v1992_v60  ;;  %v2496_v52 = vunpack.c.l.b16 %v8562_v61  ;;  %v8614_v45 = vpack.c.bf16 %v2258_v22, %v2258_v22  ;;  %v1873_v47 = vpack.c.b16 %v1838_v46, %v1837_v37  ;;  %v1680_v34 = vunpack.c.l.bf16 %v8606_v9 }
 0x1b0   :  { %v5724_v35 = vunpack.c.l.bf16 %v8597_v21  ;;  %v5725_v18 = vunpack.c.h.bf16 %v8597_v21  ;;  %2710 = vmatmul.bf16.gmra.mxu2 %v2530_v62  ;;  %2819 = vmatmul.bf16.gmra.mxu3 %v2650_v17  ;;  %v5852_v54 = vunpack.c.l.b16 %v8597_v21  ;;  %v1958_v17 = vunpack.c.l.b16 %v1758_v1 }
 0x1b1   :  { %v2337_v38 = vunpack.c.l.bf16 %v8608_v56  ;;  %v5951_v6 = vunpack.c.l.b16 %v8591_v4  ;;  %v2615_v23 = vunpack.c.l.b16 %v2415_v10  ;;  %v5952_v37 = vunpack.c.h.b16 %v8591_v4 }
 0x1b2   :  { %v5764_v57 = vsub.f32 %v8567_v8, %v5724_v35  ;;  %v5765_v60 = vsub.f32 %v1562_v27, %v5725_v18  ;;  %v8616_v36 = vpack.c.b16 %v5852_v54, %v5847_v43  ;;  %v1679_v27 = vunpack.c.l.bf16 %v8604_v19 }
 0x1b3   :  { %v1455_v12 = vpop.f32.mrf.mxu2  ;;  %v1564_v62 = vpop.f32.mrf.mxu3  ;;  %v2616_v35 = vunpack.c.l.b16 %v2416_v24  ;;  %v2338_v18 = vunpack.c.l.bf16 %v8614_v45  ;;  %v1993_v43 = vpack.c.b16 %v1958_v17, %v1957_v58  ;;  %v8632_v24 = vsub.f32 %v2257_v5, %v2337_v38  ;;  %v7335_v17 = vld [vmem:[#allocation6 + $0x68] sm:$0xff] }
 0x1b4   :  { %v5794_v30 = vpack.c.bf16 %v5765_v60, %v5764_v57  ;;  %v1565_v11 = vadd.f32 %v1564_v62, %v1455_v12  ;;  %v839_v14 = vpop.f32.mrf.mxu0  ;;  %v948_v40 = vpop.f32.mrf.mxu1  ;;  %v5853_v60 = vunpack.c.h.b16 %v8597_v21  ;;  %v1719_v12 = vsub.f32 %v1599_v59, %v1679_v27  ;;  %v7336_v27 = vld [vmem:[#allocation7 + $0x60] sm:$0xff] }
 0x1b5   :  { %v949_v8 = vadd.f32 %v948_v40, %v839_v14  ;;  %v1720_v62 = vsub.f32 %v1600_v55, %v1680_v34  ;;  %v5848_v14 = vunpack.c.h.b16 %v8571_v49  ;;  %v2531_v3 = vpack.c.b16 %v2496_v52, %v2495_v28  ;;  %v7337_v52 = vld [vmem:[#allocation7 + $0x68] sm:$0xff] }
 0x1b6   :  { %v8621_v53 = vpack.c.bf16 %v1565_v11, %v947_v50  ;;  %v5956_v61 = vunpack.c.l.b16 %v5794_v30  ;;  %v5957_v1 = vunpack.c.h.b16 %v5794_v30  ;;  %v2651_v31 = vpack.c.b16 %v2616_v35, %v2615_v23 }
 0x1b7   :  { %v2378_v0 = vsub.f32 %v2258_v22, %v2338_v18  ;;  %v1602_v49 = vmul.f32 %v7335_v17, %v7335_v17  ;;  %v2259_v34 = vmul.f32 %v7336_v27, %v7336_v27  ;;  %v2417_v22 = vpack.c.bf16 %v8632_v24, %v8632_v24 }
 0x1b8   :  { %v5729_v46 = vunpack.c.l.bf16 %v8621_v53  ;;  %v5730_v54 = vunpack.c.h.bf16 %v8621_v53  ;;  %v8628_v57 = vpack.c.b16 %v5956_v61, %v5951_v6  ;;  %v8634_v40 = vpack.c.b16 %v5957_v1, %v5952_v37  ;;  %v7334_v6 = vld [vmem:[#allocation6 + $0x60] sm:$0xff] }
 0x1b9   :  { %v8636_v61 = vmul.f32 %v7334_v6, %v7334_v6  ;;  %v1760_v1 = vpack.c.bf16 %v1720_v62, %v1720_v62  ;;  %v2418_v28 = vpack.c.bf16 %v2378_v0, %v2378_v0  ;;  %v2260_v23 = vmul.f32 %v7337_v52, %v7337_v52 }
 0x1ba   :  { %v5769_v30 = vsub.f32 %v947_v50, %v5729_v46  ;;  %v5770_v10 = vsub.f32 %v1565_v11, %v5730_v54  ;;  %11107 = vst [vmem:[#allocation44_spill] sm:$0xff] %v8634_v40  ;;  %v8638_v50 = vpack.c.b16 %v5853_v60, %v5848_v14  ;;  %v1759_v11 = vpack.c.bf16 %v1719_v12, %v1719_v12 }
 0x1bb   :  { %v1457_v4 = vpop.f32.mrf.mxu2  ;;  %v1566_v48 = vpop.f32.mrf.mxu3  ;;  %v8646_v37 = vpack.c.bf16 %v1602_v49, %v1602_v49  ;;  %v1839_v54 = vunpack.c.l.b16 %v8604_v19  ;;  %v1840_v60 = vunpack.c.l.b16 %v8606_v9  ;;  %v1960_v62 = vunpack.c.l.b16 %v1760_v1 }
 0x1bc   :  { %v5797_v21 = vpack.c.bf16 %v5770_v10, %v5769_v30  ;;  %v1567_v58 = vadd.f32 %v1566_v48, %v1457_v4  ;;  %v842_v59 = vpop.f32.mrf.mxu0  ;;  %v951_v55 = vpop.f32.mrf.mxu1  ;;  %11108 = vst [vmem:[#allocation45_spill] sm:$0xff] %v8638_v50  ;;  %v8644_v48 = vpack.c.bf16 %v8636_v61, %v8636_v61  ;;  %v5857_v14 = vunpack.c.l.b16 %v8621_v53 }
 0x1bd   :  { %v952_v5 = vadd.f32 %v951_v55, %v842_v59  ;;  %v8656_v4 = vpack.c.bf16 %v2260_v23, %v2260_v23  ;;  %v1874_v40 = vpack.c.b16 %v1840_v60, %v1839_v54  ;;  %v7339_v54 = vld [vmem:[#allocation6 + $0x78] sm:$0xff] }
 0x1be   :  { %v5696_v38 = vpack.c.bf16 %v1567_v58, %v949_v8  ;;  %v1681_v24 = vunpack.c.l.bf16 %v8644_v48  ;;  %v5961_v55 = vunpack.c.l.b16 %v5797_v21  ;;  %v5962_v17 = vunpack.c.h.b16 %v5797_v21 }
 0x1bf   :  { %2057 = vmatmul.bf16.gmra.mxu0 %v1873_v47  ;;  %2166 = vmatmul.bf16.gmra.mxu1 %v1993_v43  ;;  %v1959_v47 = vunpack.c.l.b16 %v1759_v11  ;;  %v8650_v43 = vpack.c.bf16 %v2259_v34, %v2259_v34  ;;  %v1604_v60 = vmul.f32 %v7339_v54, %v7339_v54 }
 0x1c0   :  { %v5734_v35 = vunpack.c.l.bf16 %v5696_v38  ;;  %v5735_v18 = vunpack.c.h.bf16 %v5696_v38  ;;  %2715 = vmatmul.bf16.gmra.mxu2 %v2531_v3  ;;  %2824 = vmatmul.bf16.gmra.mxu3 %v2651_v31  ;;  %v5862_v46 = vunpack.c.l.b16 %v5696_v38  ;;  %v2497_v3 = vunpack.c.l.b16 %v8608_v56 }
 0x1c1   :  { %v2498_v31 = vunpack.c.l.b16 %v8614_v45  ;;  %v2339_v27 = vunpack.c.l.bf16 %v8650_v43  ;;  %v5863_v52 = vunpack.c.h.b16 %v5696_v38 }
 0x1c2   :  { %v5774_v0 = vsub.f32 %v949_v8, %v5734_v35  ;;  %v5775_v12 = vsub.f32 %v1567_v58, %v5735_v18  ;;  %v1682_v8 = vunpack.c.l.bf16 %v8646_v37  ;;  %v8659_v58 = vpack.c.b16 %v5862_v46, %v5857_v14 }
 0x1c3   :  { %v1460_v30 = vpop.f32.mrf.mxu2  ;;  %v1569_v10 = vpop.f32.mrf.mxu3  ;;  %v2617_v35 = vunpack.c.l.b16 %v2417_v22  ;;  %v2618_v18 = vunpack.c.l.b16 %v2418_v28  ;;  %v2379_v38 = vsub.f32 %v2259_v34, %v2339_v27  ;;  %v2532_v2 = vpack.c.b16 %v2498_v31, %v2497_v3  ;;  %v7341_v3 = vld [vmem:[#allocation7 + $0x78] sm:$0xff] }
 0x1c4   :  { %v5800_v19 = vpack.c.bf16 %v5775_v12, %v5774_v0  ;;  %v1570_v9 = vadd.f32 %v1569_v10, %v1460_v30  ;;  %v844_v6 = vpop.f32.mrf.mxu0  ;;  %v953_v59 = vpop.f32.mrf.mxu1  ;;  %v2340_v0 = vunpack.c.l.bf16 %v8656_v4  ;;  %v5858_v12 = vunpack.c.h.b16 %v8621_v53 }
 0x1c5   :  { %v954_v11 = vadd.f32 %v953_v59, %v844_v6  ;;  %v1721_v10 = vsub.f32 %v8636_v61, %v1681_v24  ;;  %v1994_v53 = vpack.c.b16 %v1960_v62, %v1959_v47  ;;  %v7340_v47 = vld [vmem:[#allocation7 + $0x70] sm:$0xff] }
 0x1c6   :  { %v5966_v56 = vunpack.c.l.b16 %v5800_v19  ;;  %v5967_v1 = vunpack.c.h.b16 %v5800_v19  ;;  %v8662_v45 = vpack.c.bf16 %v1570_v9, %v952_v5  ;;  %v1722_v19 = vsub.f32 %v1602_v49, %v1682_v8  ;;  %v7338_v49 = vld [vmem:[#allocation6 + $0x70] sm:$0xff] }
 0x1c7   :  { %v8673_v22 = vpack.c.b16 %v5863_v52, %v5858_v12  ;;  %v1761_v61 = vpack.c.bf16 %v1721_v10, %v1721_v10  ;;  %v2261_v62 = vmul.f32 %v7340_v47, %v7340_v47  ;;  %v1841_v52 = vunpack.c.l.b16 %v8644_v48 }
 0x1c8   :  { %v6394_v30 = vunpack.c.l.bf16 %v8662_v45  ;;  %v6395_v46 = vunpack.c.h.bf16 %v8662_v45  ;;  %v8668_v14 = vpack.c.b16 %v5966_v56, %v5961_v55  ;;  %v8670_v21 = vpack.c.b16 %v5967_v1, %v5962_v17 }
 0x1c9   :  { %11110 = vst [vmem:[#allocation47_spill] sm:$0xff] %v8673_v22  ;;  %v2652_v17 = vpack.c.b16 %v2618_v18, %v2617_v35  ;;  %v2380_v1 = vsub.f32 %v2260_v23, %v2340_v0  ;;  %v1762_v34 = vpack.c.bf16 %v1722_v19, %v1722_v19  ;;  %v8684_v35 = vunpack.c.l.b16 %v1761_v61 }
 0x1ca   :  { %11109 = vst [vmem:[#allocation46_spill] sm:$0xff] %v8670_v21  ;;  %v6434_v6 = vsub.f32 %v952_v5, %v6394_v30  ;;  %v6435_v59 = vsub.f32 %v1570_v9, %v6395_v46  ;;  %v1603_v5 = vmul.f32 %v7338_v49, %v7338_v49  ;;  %v2419_v9 = vpack.c.bf16 %v2379_v38, %v2379_v38 }
 0x1cb   :  { %v1462_v28 = vpop.f32.mrf.mxu2  ;;  %v1571_v50 = vpop.f32.mrf.mxu3  ;;  %v2420_v8 = vpack.c.bf16 %v2380_v1, %v2380_v1  ;;  %v1962_v30 = vunpack.c.l.b16 %v1762_v34  ;;  %v6523_v46 = vunpack.c.h.b16 %v8662_v45 }
 0x1cc   :  { %v8675_v16 = vpack.c.bf16 %v6435_v59, %v6434_v6  ;;  %v1572_v33 = vadd.f32 %v1571_v50, %v1462_v28  ;;  %v847_v55 = vpop.f32.mrf.mxu0  ;;  %v956_v56 = vpop.f32.mrf.mxu1  ;;  %v2262_v50 = vmul.f32 %v7341_v3, %v7341_v3  ;;  %v8686_v18 = vpack.c.bf16 %v1603_v5, %v1603_v5 }
 0x1cd   :  { %v957_v21 = vadd.f32 %v956_v56, %v847_v55  ;;  %v8690_v6 = vpack.c.bf16 %v1604_v60, %v1604_v60  ;;  %v8692_v59 = vpack.c.bf16 %v2261_v62, %v2261_v62  ;;  %v2619_v56 = vunpack.c.l.b16 %v2419_v9 }
 0x1ce   :  { %v8677_v24 = vpack.c.bf16 %v1572_v33, %v954_v11  ;;  %v8694_v48 = vpack.c.bf16 %v2262_v50, %v2262_v50  ;;  %v1683_v1 = vunpack.c.l.bf16 %v8686_v18  ;;  %v6627_v61 = vunpack.c.h.b16 %v8675_v16 }
 0x1cf   :  { %2062 = vmatmul.bf16.gmra.mxu0 %v1874_v40  ;;  %2171 = vmatmul.bf16.gmra.mxu1 %v1994_v53  ;;  %v1842_v40 = vunpack.c.l.b16 %v8646_v37  ;;  %v1684_v54 = vunpack.c.l.bf16 %v8690_v6  ;;  %v2341_v47 = vunpack.c.l.bf16 %v8692_v59 }
 0x1d0   :  { %v6399_v31 = vunpack.c.l.bf16 %v8677_v24  ;;  %v6400_v23 = vunpack.c.h.bf16 %v8677_v24  ;;  %2720 = vmatmul.bf16.gmra.mxu2 %v2532_v2  ;;  %2829 = vmatmul.bf16.gmra.mxu3 %v2652_v17  ;;  %v6528_v27 = vunpack.c.h.b16 %v8677_v24  ;;  %v2499_v2 = vunpack.c.l.b16 %v8650_v43 }
 0x1d1   :  { %v2620_v17 = vunpack.c.l.b16 %v2420_v8  ;;  %v2342_v3 = vunpack.c.l.bf16 %v8694_v48  ;;  %v6527_v8 = vunpack.c.l.b16 %v8677_v24  ;;  %v1724_v22 = vsub.f32 %v1604_v60, %v1684_v54 }
 0x1d2   :  { %v6439_v0 = vsub.f32 %v954_v11, %v6399_v31  ;;  %v6440_v12 = vsub.f32 %v1572_v33, %v6400_v23  ;;  %v2500_v11 = vunpack.c.l.b16 %v8656_v4  ;;  %v8697_v33 = vpack.c.b16 %v6528_v27, %v6523_v46 }
 0x1d3   :  { %v1465_v10 = vpop.f32.mrf.mxu2  ;;  %v1574_v19 = vpop.f32.mrf.mxu3  ;;  %v6626_v4 = vunpack.c.l.b16 %v8675_v16  ;;  %v1875_v27 = vpack.c.b16 %v1842_v40, %v1841_v52  ;;  %v2381_v26 = vsub.f32 %v2261_v62, %v2341_v47  ;;  %v2382_v40 = vsub.f32 %v2262_v50, %v2342_v3 }
 0x1d4   :  { %v6477_v37 = vpack.c.bf16 %v6440_v12, %v6439_v0  ;;  %v1575_v38 = vadd.f32 %v1574_v19, %v1465_v10  ;;  %v849_v28 = vpop.f32.mrf.mxu0  ;;  %v958_v53 = vpop.f32.mrf.mxu1  ;;  %11111 = vst [vmem:[#allocation48_spill] sm:$0xff] %v8697_v33  ;;  %v1995_v0 = vpack.c.b16 %v1962_v30, %v8684_v35  ;;  %v6522_v12 = vunpack.c.l.b16 %v8662_v45 }
 0x1d5   :  { %v959_v55 = vadd.f32 %v958_v53, %v849_v28  ;;  %v1723_v19 = vsub.f32 %v1603_v5, %v1683_v1  ;;  %v2533_v53 = vpack.c.b16 %v2500_v11, %v2499_v2  ;;  %v2653_v33 = vpack.c.b16 %v2620_v17, %v2619_v56  ;;  %v7343_v5 = vld [vmem:[#allocation6 + $0x88] sm:$0xff]  ;;  %v7344_v1 = vld [vmem:[#allocation7 + $0x80] sm:$0xff] }
 0x1d6   :  { %v8700_v43 = vpack.c.bf16 %v1575_v38, %v957_v21  ;;  %v6632_v49 = vunpack.c.h.b16 %v6477_v37  ;;  %v6631_v34 = vunpack.c.l.b16 %v6477_v37  ;;  %v8718_v35 = vpack.c.b16 %v6527_v8, %v6522_v12  ;;  %v7345_v11 = vld [vmem:[#allocation7 + $0x88] sm:$0xff] }
 0x1d7   :  { %v1763_v2 = vpack.c.bf16 %v1723_v19, %v1723_v19  ;;  %v1764_v60 = vpack.c.bf16 %v1724_v22, %v1724_v22  ;;  %v2421_v62 = vpack.c.bf16 %v2381_v26, %v2381_v26  ;;  %v2264_v56 = vmul.f32 %v7345_v11, %v7345_v11 }
 0x1d8   :  { %v6404_v31 = vunpack.c.l.bf16 %v8700_v43  ;;  %v6405_v9 = vunpack.c.h.bf16 %v8700_v43  ;;  %v8709_v23 = vpack.c.b16 %v6632_v49, %v6627_v61  ;;  %v8714_v37 = vpack.c.b16 %v6631_v34, %v6626_v4  ;;  %11114 = vst [vmem:[#allocation51_spill] sm:$0xff] %v8718_v35 }
 0x1d9   :  { %v2263_v34 = vmul.f32 %v7344_v1, %v7344_v1  ;;  %v2422_v54 = vpack.c.bf16 %v2382_v40, %v2382_v40  ;;  %v1843_v3 = vunpack.c.l.b16 %v8686_v18  ;;  %v2501_v19 = vunpack.c.l.b16 %v8692_v59 }
 0x1da   :  { %11112 = vst [vmem:[#allocation49_spill] sm:$0xff] %v8709_v23  ;;  %v6444_v46 = vsub.f32 %v957_v21, %v6404_v31  ;;  %v6445_v10 = vsub.f32 %v1575_v38, %v6405_v9  ;;  %v7342_v21 = vld [vmem:[#allocation6 + $0x80] sm:$0xff]  ;;  %v1606_v38 = vmul.f32 %v7343_v5, %v7343_v5 }
 0x1db   :  { %11113 = vst [vmem:[#allocation50_spill] sm:$0xff] %v8714_v37  ;;  %v1467_v28 = vpop.f32.mrf.mxu2  ;;  %v1576_v16 = vpop.f32.mrf.mxu3  ;;  %v1605_v30 = vmul.f32 %v7342_v21, %v7342_v21  ;;  %v8730_v8 = vpack.c.bf16 %v2263_v34, %v2263_v34  ;;  %v2622_v11 = vunpack.c.l.b16 %v2422_v54 }
 0x1dc   :  { %v8716_v61 = vpack.c.bf16 %v6445_v10, %v6444_v46  ;;  %v1577_v49 = vadd.f32 %v1576_v16, %v1467_v28  ;;  %v852_v24 = vpop.f32.mrf.mxu0  ;;  %v961_v52 = vpop.f32.mrf.mxu1  ;;  %v8728_v9 = vpack.c.bf16 %v1606_v38, %v1606_v38  ;;  %v1964_v10 = vunpack.c.l.b16 %v1764_v60 }
 0x1dd   :  { %v962_v45 = vadd.f32 %v961_v52, %v852_v24  ;;  %v8726_v31 = vpack.c.bf16 %v1605_v30, %v1605_v30  ;;  %v8735_v28 = vpack.c.bf16 %v2264_v56, %v2264_v56  ;;  %v2502_v52 = vunpack.c.l.b16 %v8694_v48 }
 0x1de   :  { %v8720_v4 = vpack.c.bf16 %v1577_v49, %v959_v55  ;;  %v1686_v40 = vunpack.c.l.bf16 %v8728_v9  ;;  %v2343_v21 = vunpack.c.l.bf16 %v8730_v8  ;;  %v6637_v59 = vunpack.c.h.b16 %v8716_v61 }
 0x1df   :  { %2067 = vmatmul.bf16.gmra.mxu0 %v1875_v27  ;;  %2176 = vmatmul.bf16.gmra.mxu1 %v1995_v0  ;;  %v1844_v27 = vunpack.c.l.b16 %v8690_v6  ;;  %v6533_v0 = vunpack.c.h.b16 %v8700_v43  ;;  %v1685_v6 = vunpack.c.l.bf16 %v8726_v31  ;;  %v2621_v60 = vunpack.c.l.b16 %v2421_v62 }
 0x1e0   :  { %v6409_v50 = vunpack.c.l.bf16 %v8720_v4  ;;  %v6410_v17 = vunpack.c.h.bf16 %v8720_v4  ;;  %2725 = vmatmul.bf16.gmra.mxu2 %v2533_v53  ;;  %2834 = vmatmul.bf16.gmra.mxu3 %v2653_v33  ;;  %v6538_v47 = vunpack.c.h.b16 %v8720_v4  ;;  %v1963_v33 = vunpack.c.l.b16 %v1763_v2 }
 0x1e1   :  { %v6636_v48 = vunpack.c.l.b16 %v8716_v61  ;;  %v2383_v62 = vsub.f32 %v2263_v34, %v2343_v21  ;;  %v1876_v61 = vpack.c.b16 %v1844_v27, %v1843_v3  ;;  %v2654_v23 = vpack.c.b16 %v2622_v11, %v2621_v60  ;;  %v7346_v3 = vld [vmem:[#allocation6 + $0x90] sm:$0xff]  ;;  %v7349_v11 = vld [vmem:[#allocation7 + $0x98] sm:$0xff] }
 0x1e2   :  { %v6449_v26 = vsub.f32 %v959_v55, %v6409_v50  ;;  %v6450_v22 = vsub.f32 %v1577_v49, %v6410_v17  ;;  %v8738_v55 = vpack.c.b16 %v6538_v47, %v6533_v0  ;;  %v2344_v50 = vunpack.c.l.bf16 %v8735_v28 }
 0x1e3   :  { %v1470_v12 = vpop.f32.mrf.mxu2  ;;  %v1579_v46 = vpop.f32.mrf.mxu3  ;;  %v1725_v0 = vsub.f32 %v1605_v30, %v1685_v6  ;;  %v1996_v37 = vpack.c.b16 %v1964_v10, %v1963_v33  ;;  %v2423_v6 = vpack.c.bf16 %v2383_v62, %v2383_v62  ;;  %v1607_v27 = vmul.f32 %v7346_v3, %v7346_v3  ;;  %v7347_v33 = vld [vmem:[#allocation6 + $0x98] sm:$0xff] }
 0x1e4   :  { %v6483_v18 = vpack.c.bf16 %v6450_v22, %v6449_v26  ;;  %v1580_v16 = vadd.f32 %v1579_v46, %v1470_v12  ;;  %v854_v53 = vpop.f32.mrf.mxu0  ;;  %v963_v24 = vpop.f32.mrf.mxu1  ;;  %11115 = vst [vmem:[#allocation52_spill] sm:$0xff] %v8738_v55  ;;  %v6537_v22 = vunpack.c.l.b16 %v8720_v4  ;;  %v1726_v12 = vsub.f32 %v1606_v38, %v1686_v40 }
 0x1e5   :  { %v964_v49 = vadd.f32 %v963_v24, %v854_v53  ;;  %v6532_v46 = vunpack.c.l.b16 %v8700_v43  ;;  %v2534_v55 = vpack.c.b16 %v2502_v52, %v2501_v19  ;;  %v2384_v30 = vsub.f32 %v2264_v56, %v2344_v50  ;;  %v7348_v19 = vld [vmem:[#allocation7 + $0x90] sm:$0xff] }
 0x1e6   :  { %v8743_v5 = vpack.c.bf16 %v1580_v16, %v962_v45  ;;  %v6642_v1 = vunpack.c.h.b16 %v6483_v18  ;;  %v6641_v2 = vunpack.c.l.b16 %v6483_v18  ;;  %v1766_v34 = vpack.c.bf16 %v1726_v12, %v1726_v12 }
 0x1e7   :  { %v8758_v38 = vpack.c.b16 %v6537_v22, %v6532_v46  ;;  %v1608_v10 = vmul.f32 %v7347_v33, %v7347_v33  ;;  %v2265_v52 = vmul.f32 %v7348_v19, %v7348_v19  ;;  %v2424_v40 = vpack.c.bf16 %v2384_v30, %v2384_v30 }
 0x1e8   :  { %v6414_v17 = vunpack.c.l.bf16 %v8743_v5  ;;  %v6415_v47 = vunpack.c.h.bf16 %v8743_v5  ;;  %v8750_v26 = vpack.c.b16 %v6642_v1, %v6637_v59  ;;  %v8754_v54 = vpack.c.b16 %v6641_v2, %v6636_v48 }
 0x1e9   :  { %11118 = vst [vmem:[#allocation55_spill] sm:$0xff] %v8758_v38  ;;  %v1845_v2 = vunpack.c.l.b16 %v8726_v31  ;;  %v1846_v60 = vunpack.c.l.b16 %v8728_v9  ;;  %v2266_v50 = vmul.f32 %v7349_v11, %v7349_v11  ;;  %v6543_v22 = vunpack.c.h.b16 %v8743_v5 }
 0x1ea   :  { %11116 = vst [vmem:[#allocation53_spill] sm:$0xff] %v8750_v26  ;;  %v6454_v53 = vsub.f32 %v962_v45, %v6414_v17  ;;  %v6455_v18 = vsub.f32 %v1580_v16, %v6415_v47  ;;  %v1765_v45 = vpack.c.bf16 %v1725_v0, %v1725_v0  ;;  %v1966_v47 = vunpack.c.l.b16 %v1766_v34 }
 0x1eb   :  { %11117 = vst [vmem:[#allocation54_spill] sm:$0xff] %v8754_v54  ;;  %v1472_v24 = vpop.f32.mrf.mxu2  ;;  %v1581_v35 = vpop.f32.mrf.mxu3  ;;  %v8771_v46 = vpack.c.bf16 %v1608_v10, %v1608_v10 }
 0x1ec   :  { %v8756_v63 = vpack.c.bf16 %v6455_v18, %v6454_v53  ;;  %v1582_v59 = vadd.f32 %v1581_v35, %v1472_v24  ;;  %v857_v1 = vpop.f32.mrf.mxu0  ;;  %v966_v4 = vpop.f32.mrf.mxu1  ;;  %v8773_v53 = vpack.c.bf16 %v2265_v52, %v2265_v52 }
 0x1ed   :  { %v967_v43 = vadd.f32 %v966_v4, %v857_v1  ;;  %v2624_v1 = vunpack.c.l.b16 %v2424_v40  ;;  %v8778_v4 = vpack.c.bf16 %v2266_v50, %v2266_v50  ;;  %v1688_v33 = vunpack.c.l.bf16 %v8771_v46 }
 0x1ee   :  { %v8760_v16 = vpack.c.bf16 %v1582_v59, %v964_v49  ;;  %v6647_v30 = vunpack.c.h.b16 %v8756_v63  ;;  %v2345_v19 = vunpack.c.l.bf16 %v8773_v53 }
 0x1ef   :  { %2072 = vmatmul.bf16.gmra.mxu0 %v1876_v61  ;;  %2181 = vmatmul.bf16.gmra.mxu1 %v1996_v37  ;;  %v1965_v37 = vunpack.c.l.b16 %v1765_v45  ;;  %v1728_v54 = vsub.f32 %v1608_v10, %v1688_v33  ;;  %v7352_v33 = vld [vmem:[#allocation7 + $0xa0] sm:$0xff] }
 0x1f0   :  { %v6419_v35 = vunpack.c.l.bf16 %v8760_v16  ;;  %v6420_v56 = vunpack.c.h.bf16 %v8760_v16  ;;  %2730 = vmatmul.bf16.gmra.mxu2 %v2534_v55  ;;  %2839 = vmatmul.bf16.gmra.mxu3 %v2654_v23  ;;  %v6548_v21 = vunpack.c.h.b16 %v8760_v16  ;;  %v2503_v55 = vunpack.c.l.b16 %v8730_v8 }
 0x1f1   :  { %v8769_v23 = vpack.c.bf16 %v1607_v27, %v1607_v27  ;;  %v6547_v40 = vunpack.c.l.b16 %v8760_v16  ;;  %v1997_v11 = vpack.c.b16 %v1966_v47, %v1965_v37 }
 0x1f2   :  { %v6459_v48 = vsub.f32 %v964_v49, %v6419_v35  ;;  %v6460_v17 = vsub.f32 %v1582_v59, %v6420_v56  ;;  %v2504_v49 = vunpack.c.l.b16 %v8735_v28  ;;  %v8776_v24 = vpack.c.b16 %v6548_v21, %v6543_v22 }
 0x1f3   :  { %v1475_v0 = vpop.f32.mrf.mxu2  ;;  %v1584_v12 = vpop.f32.mrf.mxu3  ;;  %v2623_v59 = vunpack.c.l.b16 %v2423_v6  ;;  %v1687_v3 = vunpack.c.l.bf16 %v8769_v23  ;;  %v6646_v28 = vunpack.c.l.b16 %v8756_v63  ;;  %v1877_v21 = vpack.c.b16 %v1846_v60, %v1845_v2 }
 0x1f4   :  { %v6489_v31 = vpack.c.bf16 %v6460_v17, %v6459_v48  ;;  %v1585_v9 = vadd.f32 %v1584_v12, %v1475_v0  ;;  %v859_v18 = vpop.f32.mrf.mxu0  ;;  %v968_v62 = vpop.f32.mrf.mxu1  ;;  %11119 = vst [vmem:[#allocation56_spill] sm:$0xff] %v8776_v24  ;;  %v2346_v48 = vunpack.c.l.bf16 %v8778_v4  ;;  %v6542_v12 = vunpack.c.l.b16 %v8743_v5 }
 0x1f5   :  { %v969_v61 = vadd.f32 %v968_v62, %v859_v18  ;;  %v2535_v18 = vpack.c.b16 %v2504_v49, %v2503_v55  ;;  %v2655_v62 = vpack.c.b16 %v2624_v1, %v2623_v59  ;;  %v1727_v38 = vsub.f32 %v1607_v27, %v1687_v3  ;;  %v7350_v55 = vld [vmem:[#allocation6 + $0xa0] sm:$0xff]  ;;  %v7351_v3 = vld [vmem:[#allocation6 + $0xa8] sm:$0xff] }
 0x1f6   :  { %v8780_v8 = vpack.c.bf16 %v1585_v9, %v967_v43  ;;  %v6652_v45 = vunpack.c.h.b16 %v6489_v31  ;;  %v6651_v34 = vunpack.c.l.b16 %v6489_v31  ;;  %v2385_v60 = vsub.f32 %v2265_v52, %v2345_v19 }
 0x1f7   :  { %v8798_v37 = vpack.c.b16 %v6547_v40, %v6542_v12  ;;  %v2386_v47 = vsub.f32 %v2266_v50, %v2346_v48  ;;  %v1767_v5 = vpack.c.bf16 %v1727_v38, %v1727_v38  ;;  %v1609_v49 = vmul.f32 %v7350_v55, %v7350_v55 }
 0x1f8   :  { %v6424_v35 = vunpack.c.l.bf16 %v8780_v8  ;;  %v6425_v6 = vunpack.c.h.bf16 %v8780_v8  ;;  %v8789_v56 = vpack.c.b16 %v6652_v45, %v6647_v30  ;;  %v8793_v0 = vpack.c.b16 %v6651_v34, %v6646_v28  ;;  %v7353_v28 = vld [vmem:[#allocation7 + $0xa8] sm:$0xff] }
 0x1f9   :  { %11122 = vst [vmem:[#allocation59_spill] sm:$0xff] %v8798_v37  ;;  %v1768_v34 = vpack.c.bf16 %v1728_v54, %v1728_v54  ;;  %v2425_v59 = vpack.c.bf16 %v2385_v60, %v2385_v60  ;;  %v2426_v1 = vpack.c.bf16 %v2386_v47, %v2386_v47  ;;  %v1610_v50 = vmul.f32 %v7351_v3, %v7351_v3 }
 0x1fa   :  { %11120 = vst [vmem:[#allocation57_spill] sm:$0xff] %v8789_v56  ;;  %v6464_v17 = vsub.f32 %v967_v43, %v6424_v35  ;;  %v6465_v22 = vsub.f32 %v1585_v9, %v6425_v6  ;;  %v2267_v19 = vmul.f32 %v7352_v33, %v7352_v33  ;;  %v2268_v35 = vmul.f32 %v7353_v28, %v7353_v28 }
 0x1fb   :  { %11121 = vst [vmem:[#allocation58_spill] sm:$0xff] %v8793_v0  ;;  %v1477_v31 = vpop.f32.mrf.mxu2  ;;  %v1586_v63 = vpop.f32.mrf.mxu3  ;;  %v1847_v6 = vunpack.c.l.b16 %v8769_v23  ;;  %v6553_v40 = vunpack.c.h.b16 %v8780_v8  ;;  %v1848_v48 = vunpack.c.l.b16 %v8771_v46  ;;  %v8808_v12 = vpack.c.bf16 %v1609_v49, %v1609_v49 }
 0x1fc   :  { %v8796_v30 = vpack.c.bf16 %v6465_v22, %v6464_v17  ;;  %v1587_v45 = vadd.f32 %v1586_v63, %v1477_v31  ;;  %v2038_v16 = vpop.f32.mrf.mxu0  ;;  %v2147_v2 = vpop.f32.mrf.mxu1  ;;  %v1967_v17 = vunpack.c.l.b16 %v1767_v5  ;;  %v1968_v22 = vunpack.c.l.b16 %v1768_v34 }
 0x1fd   :  { %v2148_v43 = vadd.f32 %v2147_v2, %v2038_v16  ;;  %v2505_v16 = vunpack.c.l.b16 %v8773_v53  ;;  %v8813_v23 = vpack.c.bf16 %v1610_v50, %v1610_v50  ;;  %v8815_v2 = vpack.c.bf16 %v2267_v19, %v2267_v19 }
 0x1fe   :  { %v8800_v9 = vpack.c.bf16 %v1587_v45, %v969_v61  ;;  %v8817_v60 = vpack.c.bf16 %v2268_v35, %v2268_v35  ;;  %v2506_v34 = vunpack.c.l.b16 %v8778_v4  ;;  %v6656_v55 = vunpack.c.l.b16 %v8796_v30 }
 0x1ff   :  { %2077 = vmatmul.bf16.gmra.mxu0 %v1877_v21  ;;  %2186 = vmatmul.bf16.gmra.mxu1 %v1997_v11  ;;  %v1689_v53 = vunpack.c.l.bf16 %v8808_v12 }
 0x200   :  { %v6429_v27 = vunpack.c.l.bf16 %v8800_v9  ;;  %v6430_v10 = vunpack.c.h.bf16 %v8800_v9  ;;  %2735 = vmatmul.bf16.gmra.mxu2 %v2535_v18  ;;  %2844 = vmatmul.bf16.gmra.mxu3 %v2655_v62  ;;  %v6558_v52 = vunpack.c.h.b16 %v8800_v9  ;;  %v6557_v28 = vunpack.c.l.b16 %v8800_v9 }
 0x201   :  { %v2348_v4 = vunpack.c.l.bf16 %v8817_v60  ;;  %v2536_v37 = vpack.c.b16 %v2506_v34, %v2505_v16  ;;  %v1729_v9 = vsub.f32 %v1609_v49, %v1689_v53  ;;  %v7355_v16 = vld [vmem:[#allocation6 + $0xb8] sm:$0xff] }
 0x202   :  { %v6469_v38 = vsub.f32 %v969_v61, %v6429_v27  ;;  %v6470_v54 = vsub.f32 %v1587_v45, %v6430_v10  ;;  %v8811_v61 = vpack.c.b16 %v6558_v52, %v6553_v40  ;;  %v2625_v27 = vunpack.c.l.b16 %v2425_v59 }
 0x203   :  { %v2696_v21 = vpop.f32.mrf.mxu2  ;;  %v2805_v11 = vpop.f32.mrf.mxu3  ;;  %v2626_v10 = vunpack.c.l.b16 %v2426_v1  ;;  %v6657_v52 = vunpack.c.h.b16 %v8796_v30  ;;  %v6552_v40 = vunpack.c.l.b16 %v8780_v8  ;;  %v1612_v34 = vmul.f32 %v7355_v16, %v7355_v16 }
 0x204   :  { %v6495_v31 = vpack.c.bf16 %v6470_v54, %v6469_v38  ;;  %v2806_v63 = vadd.f32 %v2805_v11, %v2696_v21  ;;  %v2040_v18 = vpop.f32.mrf.mxu0  ;;  %v2149_v62 = vpop.f32.mrf.mxu1  ;;  %11123 = vst [vmem:[#allocation60_spill] sm:$0xff] %v8811_v61  ;;  %v1690_v38 = vunpack.c.l.bf16 %v8813_v23  ;;  %v2347_v54 = vunpack.c.l.bf16 %v8815_v2 }
 0x205   :  { %v2150_v45 = vadd.f32 %v2149_v62, %v2040_v18  ;;  %v1878_v18 = vpack.c.b16 %v1848_v48, %v1847_v6  ;;  %v1998_v62 = vpack.c.b16 %v1968_v22, %v1967_v17  ;;  %v2656_v56 = vpack.c.b16 %v2626_v10, %v2625_v27  ;;  %v7354_v48 = vld [vmem:[#allocation6 + $0xb0] sm:$0xff] }
 0x206   :  { %v6661_v46 = vunpack.c.l.b16 %v6495_v31  ;;  %v6662_v47 = vunpack.c.h.b16 %v6495_v31  ;;  %v8819_v5 = vpack.c.bf16 %v2806_v63, %v2148_v43  ;;  %v8840_v8 = vpack.c.b16 %v6557_v28, %v6552_v40  ;;  %v7356_v27 = vld [vmem:[#allocation7 + $0xb0] sm:$0xff] }
 0x207   :  { %v1769_v6 = vpack.c.bf16 %v1729_v9, %v1729_v9  ;;  %v1611_v17 = vmul.f32 %v7354_v48, %v7354_v48  ;;  %v2269_v10 = vmul.f32 %v7356_v27, %v7356_v27 }
 0x208   :  { %v3591_v3 = vunpack.c.l.bf16 %v8819_v5  ;;  %v3592_v33 = vunpack.c.h.bf16 %v8819_v5  ;;  %v8832_v21 = vpack.c.b16 %v6662_v47, %v6657_v52  ;;  %v8834_v11 = vpack.c.b16 %v6661_v46, %v6656_v55  ;;  %11126 = vst [vmem:[#allocation63_spill] sm:$0xff] %v8840_v8 }
 0x209   :  { %v2388_v46 = vsub.f32 %v2268_v35, %v2348_v4 }
 0x20a   :  { %v3631_v59 = vsub.f32 %v2148_v43, %v3591_v3  ;;  %v3632_v1 = vsub.f32 %v2806_v63, %v3592_v33  ;;  %11124 = vst [vmem:[#allocation61_spill] sm:$0xff] %v8832_v21  ;;  %v1730_v43 = vsub.f32 %v1610_v50, %v1690_v38  ;;  %v2387_v63 = vsub.f32 %v2267_v19, %v2347_v54  ;;  %v7357_v54 = vld [vmem:[#allocation7 + $0xb8] sm:$0xff] }
 0x20b   :  { %11125 = vst [vmem:[#allocation62_spill] sm:$0xff] %v8834_v11  ;;  %v2698_v30 = vpop.f32.mrf.mxu2  ;;  %v2807_v31 = vpop.f32.mrf.mxu3  ;;  %v2428_v52 = vpack.c.bf16 %v2388_v46, %v2388_v46  ;;  %v3719_v3 = vunpack.c.l.b16 %v8819_v5  ;;  %v1849_v38 = vunpack.c.l.b16 %v8808_v12  ;;  %v2270_v4 = vmul.f32 %v7357_v54, %v7357_v54 }
 0x20c   :  { %v3670_v0 = vpack.c.bf16 %v3632_v1, %v3631_v59  ;;  %v2808_v24 = vadd.f32 %v2807_v31, %v2698_v30  ;;  %v8836_v61 = vpop.f32.mrf.mxu0  ;;  %v8838_v26 = vpop.f32.mrf.mxu1  ;;  %v1770_v50 = vpack.c.bf16 %v1730_v43, %v1730_v43  ;;  %v2427_v19 = vpack.c.bf16 %v2387_v63, %v2387_v63 }
 0x20d   :  { %v1969_v30 = vunpack.c.l.b16 %v1769_v6  ;;  %v8852_v31 = vpack.c.bf16 %v1612_v34, %v1612_v34  ;;  %v8858_v12 = vpack.c.bf16 %v2269_v10, %v2269_v10  ;;  %v2628_v48 = vunpack.c.l.b16 %v2428_v52 }
 0x20e   :  { %v8842_v47 = vpack.c.bf16 %v2808_v24, %v2150_v45  ;;  %v3824_v43 = vunpack.c.h.b16 %v3670_v0  ;;  %v2627_v46 = vunpack.c.l.b16 %v2427_v19  ;;  %v8861_v6 = vpack.c.bf16 %v2270_v4, %v2270_v4 }
 0x20f   :  { %2082 = vmatmul.bf16.gmra.mxu0 %v1878_v18  ;;  %2191 = vmatmul.bf16.gmra.mxu1 %v1998_v62  ;;  %v2507_v18 = vunpack.c.l.b16 %v8815_v2  ;;  %v2508_v62 = vunpack.c.l.b16 %v8817_v60  ;;  %v2349_v27 = vunpack.c.l.bf16 %v8858_v12 }
 0x210   :  { %v3596_v49 = vunpack.c.l.bf16 %v8842_v47  ;;  %v3597_v22 = vunpack.c.h.bf16 %v8842_v47  ;;  %2740 = vmatmul.bf16.gmra.mxu2 %v2536_v37  ;;  %2849 = vmatmul.bf16.gmra.mxu3 %v2656_v56  ;;  %v3724_v55 = vunpack.c.l.b16 %v8842_v47  ;;  %v1850_v37 = vunpack.c.l.b16 %v8813_v23 }
 0x211   :  { %v8850_v56 = vpack.c.bf16 %v1611_v17, %v1611_v17  ;;  %v3823_v23 = vunpack.c.l.b16 %v3670_v0  ;;  %v3725_v2 = vunpack.c.h.b16 %v8842_v47  ;;  %v3720_v0 = vunpack.c.h.b16 %v8819_v5 }
 0x212   :  { %v3636_v35 = vsub.f32 %v2150_v45, %v3596_v49  ;;  %v3637_v53 = vsub.f32 %v2808_v24, %v3597_v22  ;;  %v8854_v24 = vpack.c.b16 %v3724_v55, %v3719_v3  ;;  %v1970_v45 = vunpack.c.l.b16 %v1770_v50 }
 0x213   :  { %v2701_v33 = vpop.f32.mrf.mxu2  ;;  %v2810_v28 = vpop.f32.mrf.mxu3  ;;  %v1691_v49 = vunpack.c.l.bf16 %v8850_v56  ;;  %v1692_v22 = vunpack.c.l.bf16 %v8852_v31  ;;  %v1879_v50 = vpack.c.b16 %v1850_v37, %v1849_v38  ;;  %v2537_v52 = vpack.c.b16 %v2508_v62, %v2507_v18  ;;  %v7359_v37 = vld [vmem:[#allocation6 + $0xc8] sm:$0xff]  ;;  %v7360_v18 = vld [vmem:[#allocation7 + $0xc0] sm:$0xff] }
 0x214   :  { %v3673_v40 = vpack.c.bf16 %v3637_v53, %v3636_v35  ;;  %v2045_v59 = vpop.f32.mrf.mxu0  ;;  %v2154_v1 = vpop.f32.mrf.mxu1  ;;  %v2811_v60 = vadd.f32 %v2810_v28, %v2701_v33  ;;  %v1999_v53 = vpack.c.b16 %v1970_v45, %v1969_v30  ;;  %v2657_v3 = vpack.c.b16 %v2628_v48, %v2627_v46  ;;  %v7358_v28 = vld [vmem:[#allocation6 + $0xc0] sm:$0xff]  ;;  %v7361_v46 = vld [vmem:[#allocation7 + $0xc8] sm:$0xff] }
 0x215   :  { %v2350_v54 = vunpack.c.l.bf16 %v8861_v6  ;;  %v1732_v47 = vsub.f32 %v1612_v34, %v1692_v22  ;;  %v8874_v33 = vpack.c.b16 %v3725_v2, %v3720_v0  ;;  %v1613_v38 = vmul.f32 %v7358_v28, %v7358_v28 }
 0x216   :  { %v3828_v9 = vunpack.c.l.b16 %v3673_v40  ;;  %v3829_v63 = vunpack.c.h.b16 %v3673_v40  ;;  %v2153_v40 = vadd.f32 %v8838_v26, %v8836_v61  ;;  %v1614_v5 = vmul.f32 %v7359_v37, %v7359_v37 }
 0x217   :  { %v2389_v30 = vsub.f32 %v2269_v10, %v2349_v27  ;;  %v2390_v45 = vsub.f32 %v2270_v4, %v2350_v54  ;;  %v2271_v62 = vmul.f32 %v7360_v18, %v7360_v18  ;;  %v2272_v26 = vmul.f32 %v7361_v46, %v7361_v46 }
 0x218   :  { %v8864_v16 = vpack.c.b16 %v3828_v9, %v3823_v23  ;;  %v8866_v55 = vpack.c.b16 %v3829_v63, %v3824_v43  ;;  %v1731_v43 = vsub.f32 %v1611_v17, %v1691_v49  ;;  %v8876_v63 = vpack.c.bf16 %v2811_v60, %v2153_v40 }
 0x219   :  { %v1772_v17 = vpack.c.bf16 %v1732_v47, %v1732_v47  ;;  %v8878_v48 = vpack.c.bf16 %v1613_v38, %v1613_v38  ;;  %v8880_v49 = vpack.c.bf16 %v1614_v5, %v1614_v5  ;;  %v2429_v2 = vpack.c.bf16 %v2389_v30, %v2389_v30 }
 0x21a   :  { %v1771_v61 = vpack.c.bf16 %v1731_v43, %v1731_v43  ;;  %v3601_v22 = vunpack.c.l.bf16 %v8876_v63  ;;  %v3602_v10 = vunpack.c.h.bf16 %v8876_v63  ;;  %v2430_v0 = vpack.c.bf16 %v2390_v45, %v2390_v45 }
 0x21b   :  { %v2703_v19 = vpop.f32.mrf.mxu2  ;;  %v2812_v35 = vpop.f32.mrf.mxu3  ;;  %v1852_v54 = vunpack.c.l.b16 %v8852_v31  ;;  %v1972_v47 = vunpack.c.l.b16 %v1772_v17  ;;  %v1694_v37 = vunpack.c.l.bf16 %v8880_v49  ;;  %v2510_v46 = vunpack.c.l.b16 %v8861_v6 }
 0x21c   :  { %v2048_v23 = vpop.f32.mrf.mxu0  ;;  %v2157_v9 = vpop.f32.mrf.mxu1  ;;  %v2813_v34 = vadd.f32 %v2812_v35, %v2703_v19  ;;  %v1851_v35 = vunpack.c.l.b16 %v8850_v56  ;;  %v1971_v43 = vunpack.c.l.b16 %v1771_v61  ;;  %v3641_v30 = vsub.f32 %v2153_v40, %v3601_v22 }
 0x21d   :  { %v3642_v45 = vsub.f32 %v2811_v60, %v3602_v10  ;;  %v2629_v8 = vunpack.c.l.b16 %v2429_v2  ;;  %v2630_v11 = vunpack.c.l.b16 %v2430_v0  ;;  %v2158_v61 = vadd.f32 %v2157_v9, %v2048_v23  ;;  %v7362_v0 = vld [vmem:[#allocation6 + $0xd0] sm:$0xff] }
 0x21e   :  { %v1880_v17 = vpack.c.b16 %v1852_v54, %v1851_v35  ;;  %v1734_v29 = vsub.f32 %v1614_v5, %v1694_v37  ;;  %v2000_v40 = vpack.c.b16 %v1972_v47, %v1971_v43  ;;  %v1615_v23 = vmul.f32 %v7362_v0, %v7362_v0  ;;  %v7363_v54 = vld [vmem:[#allocation6 + $0xd8] sm:$0xff] }
 0x21f   :  { %2087 = vmatmul.bf16.gmra.mxu0 %v1879_v50  ;;  %2196 = vmatmul.bf16.gmra.mxu1 %v1999_v53  ;;  %v2155_v50 = vadd.f32 %v2154_v1, %v2045_v59  ;;  %v8884_v53 = vpack.c.bf16 %v2271_v62, %v2271_v62  ;;  %v2509_v59 = vunpack.c.l.b16 %v8858_v12  ;;  %v1693_v1 = vunpack.c.l.bf16 %v8878_v48 }
 0x220   :  { %2745 = vmatmul.bf16.gmra.mxu2 %v2537_v52  ;;  %2854 = vmatmul.bf16.gmra.mxu3 %v2657_v3  ;;  %v8886_v52 = vpack.c.bf16 %v2272_v26, %v2272_v26  ;;  %v8904_v42 = vpack.c.bf16 %v3642_v45, %v3641_v30  ;;  %v2658_v2 = vpack.c.b16 %v2630_v11, %v2629_v8 }
 0x221   :  { %v8894_v28 = vpack.c.bf16 %v2813_v34, %v2155_v50  ;;  %v2351_v56 = vunpack.c.l.bf16 %v8884_v53  ;;  %v1733_v13 = vsub.f32 %v1613_v38, %v1693_v1  ;;  %v2538_v6 = vpack.c.b16 %v2510_v46, %v2509_v59 }
 0x222   :  { %v2352_v31 = vunpack.c.l.bf16 %v8886_v52  ;;  %v1616_v7 = vmul.f32 %v7363_v54, %v7363_v54  ;;  %v2273_v38 = vmul.f32 %v7364_v32, %v7364_v32  ;;  %v1774_v59 = vpack.c.bf16 %v1734_v29, %v1734_v29 }
 0x223   :  { %v2706_v4 = vpop.f32.mrf.mxu2  ;;  %v2815_v27 = vpop.f32.mrf.mxu3  ;;  %v3606_v21 = vunpack.c.l.bf16 %v8894_v28  ;;  %v3607_v12 = vunpack.c.h.bf16 %v8894_v28  ;;  %v1773_v47 = vpack.c.bf16 %v1733_v13, %v1733_v13  ;;  %v3833_v30 = vunpack.c.l.b16 %v8904_v42 }
 0x224   :  { %v8888_v3 = vpop.f32.mrf.mxu0  ;;  %v8890_v19 = vpop.f32.mrf.mxu1  ;;  %v2816_v18 = vadd.f32 %v2815_v27, %v2706_v4  ;;  %v2391_v4 = vsub.f32 %v2271_v62, %v2351_v56  ;;  %v2392_v27 = vsub.f32 %v2272_v26, %v2352_v31  ;;  %v7365_v62 = vld [vmem:[#allocation7 + $0xd8] sm:$0xff]  ;;  %v8913_v46 = vpack.c.bf16 %v1615_v23, %v1615_v23 }
 0x225   :  { %v3646_v37 = vsub.f32 %v2155_v50, %v3606_v21  ;;  %v3647_v43 = vsub.f32 %v2813_v34, %v3607_v12  ;;  %v2274_v26 = vmul.f32 %v7365_v62, %v7365_v62  ;;  %v3834_v56 = vunpack.c.h.b16 %v8904_v42 }
 0x226   :  { %v8906_v60 = vpack.c.bf16 %v2816_v18, %v2158_v61  ;;  %v2431_v45 = vpack.c.bf16 %v2391_v4, %v2391_v4  ;;  %v2432_v32 = vpack.c.bf16 %v2392_v27, %v2392_v27  ;;  %v1853_v13 = vunpack.c.l.b16 %v8878_v48 }
 0x227   :  { %v1854_v29 = vunpack.c.l.b16 %v8880_v49  ;;  %v8918_v21 = vpack.c.bf16 %v1616_v7, %v1616_v7  ;;  %v8920_v34 = vpack.c.bf16 %v2273_v38, %v2273_v38  ;;  %v3679_v50 = vpack.c.bf16 %v3647_v43, %v3646_v37 }
 0x228   :  { %v3611_v11 = vunpack.c.l.bf16 %v8906_v60  ;;  %v3612_v8 = vunpack.c.h.bf16 %v8906_v60  ;;  %v8922_v31 = vunpack.c.l.b16 %v1773_v47  ;;  %v2511_v12 = vunpack.c.l.b16 %v8884_v53 }
 0x229   :  { %v2512_v42 = vunpack.c.l.b16 %v8886_v52  ;;  %v8930_v27 = vunpack.c.l.b16 %v2431_v45  ;;  %v8932_v0 = vunpack.c.l.b16 %v2432_v32  ;;  %v1695_v54 = vunpack.c.l.bf16 %v8913_v46 }
 0x22a   :  { %v3652_v4 = vsub.f32 %v2816_v18, %v3612_v8  ;;  %v1696_v53 = vunpack.c.l.bf16 %v8918_v21  ;;  %v2353_v18 = vunpack.c.l.bf16 %v8920_v34  ;;  %v2160_v52 = vadd.f32 %v8890_v19, %v8888_v3 }
 0x22b   :  { %v2708_v22 = vpop.f32.mrf.mxu2  ;;  %v2817_v10 = vpop.f32.mrf.mxu3  ;;  %v1881_v62 = vpack.c.b16 %v1854_v29, %v1853_v13  ;;  %v2539_v32 = vpack.c.b16 %v2512_v42, %v2511_v12  ;;  %v2659_v3 = vpack.c.b16 %v8932_v0, %v8930_v27  ;;  %v7366_v0 = vld [vmem:[#allocation6 + $0xe0] sm:$0xff] }
 0x22c   :  { %v2053_v9 = vpop.f32.mrf.mxu0  ;;  %v2162_v35 = vpop.f32.mrf.mxu1  ;;  %v2818_v48 = vadd.f32 %v2817_v10, %v2708_v22  ;;  %v3839_v22 = vunpack.c.h.b16 %v3679_v50  ;;  %v1736_v19 = vsub.f32 %v1616_v7, %v1696_v53  ;;  %v7367_v10 = vld [vmem:[#allocation6 + $0xe8] sm:$0xff] }
 0x22d   :  { %v2163_v37 = vadd.f32 %v2162_v35, %v2053_v9  ;;  %v8963_v5 = vmul.f32 %v7367_v10, %v7367_v10 }
 0x22e   :  { %v8945_v35 = vpack.c.bf16 %v2818_v48, %v2160_v52 }
 0x22f   :  { %2092 = vmatmul.bf16.gmra.mxu0 %v1880_v17  ;;  %2201 = vmatmul.bf16.gmra.mxu1 %v2000_v40  ;;  %v8924_v17 = vunpack.c.l.b16 %v1774_v59  ;;  %v3651_v40 = vsub.f32 %v2158_v61, %v3611_v11  ;;  %v3838_v61 = vunpack.c.l.b16 %v3679_v50  ;;  %v2393_v50 = vsub.f32 %v2273_v38, %v2353_v18 }
 0x230   :  { %2750 = vmatmul.bf16.gmra.mxu2 %v2538_v6  ;;  %2859 = vmatmul.bf16.gmra.mxu3 %v2658_v2  ;;  %v8928_v6 = vpack.c.bf16 %v2274_v26, %v2274_v26  ;;  %v3616_v7 = vunpack.c.l.bf16 %v8945_v35  ;;  %v3617_v38 = vunpack.c.h.bf16 %v8945_v35 }
 0x231   :  { %v8940_v11 = vpack.c.bf16 %v3652_v4, %v3651_v40  ;;  %v2001_v45 = vpack.c.b16 %v8924_v17, %v8922_v31  ;;  %v8954_v29 = vpack.c.b16 %v3838_v61, %v3833_v30  ;;  %v1776_v61 = vpack.c.bf16 %v1736_v19, %v1736_v19 }
 0x232   :  { %v2354_v9 = vunpack.c.l.bf16 %v8928_v6  ;;  %v1855_v17 = vunpack.c.l.b16 %v8913_v46 }
 0x233   :  { %v2711_v2 = vpop.f32.mrf.mxu2  ;;  %v2820_v49 = vpop.f32.mrf.mxu3  ;;  %v8976_v46 = vunpack.c.l.b16 %v1776_v61 }
 0x234   :  { %v2821_v43 = vadd.f32 %v2820_v49, %v2711_v2  ;;  %v2055_v47 = vpop.f32.mrf.mxu0  ;;  %v2164_v59 = vpop.f32.mrf.mxu1  ;;  %v1735_v2 = vsub.f32 %v1615_v23, %v1695_v54  ;;  %v8956_v49 = vpack.c.b16 %v3839_v22, %v3834_v56  ;;  %v2394_v31 = vsub.f32 %v2274_v26, %v2354_v9 }
 0x235   :  { %v1617_v54 = vmul.f32 %v7366_v0, %v7366_v0  ;;  %v2165_v30 = vadd.f32 %v2164_v59, %v2055_v47  ;;  %v2433_v22 = vpack.c.bf16 %v2393_v50, %v2393_v50  ;;  %v3656_v0 = vsub.f32 %v2160_v52, %v3616_v7 }
 0x236   :  { %v8942_v8 = vpack.c.bf16 %v2821_v43, %v2163_v37  ;;  %v1775_v27 = vpack.c.bf16 %v1735_v2, %v1735_v2  ;;  %v1856_v2 = vunpack.c.l.b16 %v8918_v21  ;;  %v2434_v23 = vpack.c.bf16 %v2394_v31, %v2394_v31 }
 0x237   :  { %v3657_v47 = vsub.f32 %v2818_v48, %v3617_v38  ;;  %v3744_v59 = vunpack.c.l.b16 %v8945_v35  ;;  %v8970_v19 = vpack.c.bf16 %v1617_v54, %v1617_v54  ;;  %v2513_v52 = vunpack.c.l.b16 %v8920_v34  ;;  %v7369_v34 = vld [vmem:[#allocation7 + $0xe8] sm:$0xff] }
 0x238   :  { %v3621_v4 = vunpack.c.l.bf16 %v8942_v8  ;;  %v3622_v13 = vunpack.c.h.bf16 %v8942_v8  ;;  %v8974_v10 = vunpack.c.l.b16 %v1775_v27  ;;  %v8981_v48 = vpack.c.bf16 %v8963_v5, %v8963_v5 }
 0x239   :  { %v8986_v38 = vunpack.c.l.b16 %v2433_v22 }
 0x23a   :  { %v3661_v26 = vsub.f32 %v2163_v37, %v3621_v4  ;;  %v3662_v9 = vsub.f32 %v2821_v43, %v3622_v13  ;;  %v8983_v13 = vpack.c.b16 %v1856_v2, %v1855_v17 }
 0x23b   :  { %v2713_v12 = vpop.f32.mrf.mxu2  ;;  %v2822_v42 = vpop.f32.mrf.mxu3 }
 0x23c   :  { %v2823_v53 = vadd.f32 %v2822_v42, %v2713_v12  ;;  %v2058_v56 = vpop.f32.mrf.mxu0  ;;  %v2167_v18 = vpop.f32.mrf.mxu1  ;;  %v3688_v21 = vpack.c.bf16 %v3662_v9, %v3661_v26  ;;  %v1697_v12 = vunpack.c.l.bf16 %v8970_v19  ;;  %v2276_v42 = vmul.f32 %v7369_v34, %v7369_v34 }
 0x23d   :  { %v2168_v40 = vadd.f32 %v2167_v18, %v2058_v56  ;;  %v2634_v26 = vunpack.c.l.b16 %v2434_v23 }
 0x23e   :  { %v8965_v1 = vpack.c.bf16 %v2823_v53, %v2165_v30  ;;  %v3853_v17 = vunpack.c.l.b16 %v3688_v21  ;;  %v3854_v22 = vunpack.c.h.b16 %v3688_v21  ;;  %v11127_v21 = vunpack.c.l.b16 %v8906_v60 }
 0x23f   :  { %2097 = vmatmul.bf16.gmra.mxu0 %v1881_v62  ;;  %2206 = vmatmul.bf16.gmra.mxu1 %v2001_v45  ;;  %v7368_v62 = vld [vmem:[#allocation7 + $0xe0] sm:$0xff] }
 0x240   :  { %v3626_v37 = vunpack.c.l.bf16 %v8965_v1  ;;  %v3627_v43 = vunpack.c.h.bf16 %v8965_v1  ;;  %2755 = vmatmul.bf16.gmra.mxu2 %v2539_v32  ;;  %2864 = vmatmul.bf16.gmra.mxu3 %v2659_v3  ;;  %v2275_v45 = vmul.f32 %v7368_v62, %v7368_v62  ;;  %v2514_v32 = vunpack.c.l.b16 %v8928_v6 }
 0x241   :  { %v3685_v3 = vpack.c.bf16 %v3657_v47, %v3656_v0  ;;  %v1698_v6 = vunpack.c.l.bf16 %v8981_v48  ;;  %v1737_v62 = vsub.f32 %v1617_v54, %v1697_v12  ;;  %v3844_v12 = vunpack.c.h.b16 %v8940_v11 }
 0x242   :  { %v3666_v50 = vsub.f32 %v2165_v30, %v3626_v37  ;;  %v3667_v4 = vsub.f32 %v2823_v53, %v3627_v43  ;;  %v3745_v30 = vunpack.c.h.b16 %v8945_v35  ;;  %v8993_v9 = vpack.c.bf16 %v2275_v45, %v2275_v45 }
 0x243   :  { %v2716_v31 = vpop.f32.mrf.mxu2  ;;  %v2825_v7 = vpop.f32.mrf.mxu3  ;;  %v3848_v37 = vunpack.c.l.b16 %v3685_v3  ;;  %v3849_v43 = vunpack.c.h.b16 %v3685_v3  ;;  %v2540_v34 = vpack.c.b16 %v2514_v32, %v2513_v52 }
 0x244   :  { %v3691_v27 = vpack.c.bf16 %v3667_v4, %v3666_v50  ;;  %v2826_v56 = vadd.f32 %v2825_v7, %v2716_v31  ;;  %v2060_v18 = vpop.f32.mrf.mxu0  ;;  %v2169_v61 = vpop.f32.mrf.mxu1  ;;  %v8997_v50 = vpack.c.bf16 %v2276_v42, %v2276_v42  ;;  %v2002_v7 = vpack.c.b16 %v8976_v46, %v8974_v10 }
 0x245   :  { %v8990_v53 = vadd.f32 %v2169_v61, %v2060_v18  ;;  %v2355_v18 = vunpack.c.l.bf16 %v8993_v9  ;;  %v1738_v61 = vsub.f32 %v8963_v5, %v1698_v6  ;;  %v11128_v10 = vunpack.c.h.b16 %v8906_v60 }
 0x246   :  { %v3858_v2 = vunpack.c.l.b16 %v3691_v27  ;;  %v3859_v0 = vunpack.c.h.b16 %v3691_v27  ;;  %v8995_v47 = vpack.c.bf16 %v2826_v56, %v2168_v40  ;;  %v9005_v27 = vpack.c.b16 %v3744_v59, %v11127_v21 }
 0x247   :  { %v9013_v46 = vpack.c.b16 %v3745_v30, %v11128_v10  ;;  %v1777_v59 = vpack.c.bf16 %v1737_v62, %v1737_v62  ;;  %v2356_v52 = vunpack.c.l.bf16 %v8997_v50  ;;  %v3874_v5 = vpack.c.b16 %v3849_v43, %v3844_v12 }
 0x248   :  { %v4311_v23 = vunpack.c.l.bf16 %v8995_v47  ;;  %v4312_v35 = vunpack.c.h.bf16 %v8995_v47  ;;  %v3878_v4 = vpack.c.b16 %v3858_v2, %v3853_v17  ;;  %v3879_v31 = vpack.c.b16 %v3859_v0, %v3854_v22 }
 0x249   :  { %v2660_v2 = vpack.c.b16 %v2634_v26, %v8986_v38  ;;  %v3749_v38 = vunpack.c.l.b16 %v8942_v8  ;;  %v3750_v60 = vunpack.c.h.b16 %v8942_v8  ;;  %v2395_v26 = vsub.f32 %v2275_v45, %v2355_v18  ;;  %v7370_v18 = vld [vmem:[#allocation6 + $0xf0] sm:$0xff] }
 0x24a   :  { %v4351_v3 = vsub.f32 %v2168_v40, %v4311_v23  ;;  %v4352_v54 = vsub.f32 %v2826_v56, %v4312_v35  ;;  %3983 = vmatpush.bf16.msrb.mxu2 %v3878_v4  ;;  %4012 = vmatpush.bf16.msrb.mxu3 %v3879_v31  ;;  %v11129_v23 = vunpack.c.l.b16 %v8940_v11  ;;  %v3754_v62 = vunpack.c.l.b16 %v8965_v1 }
 0x24b   :  { %v2718_v17 = vpop.f32.mrf.mxu2  ;;  %v2827_v22 = vpop.f32.mrf.mxu3  ;;  %v3755_v4 = vunpack.c.h.b16 %v8965_v1  ;;  %v1778_v31 = vpack.c.bf16 %v1738_v61, %v1738_v61  ;;  %v1857_v11 = vunpack.c.l.b16 %v8970_v19  ;;  %v9032_v43 = vunpack.c.l.b16 %v1777_v59  ;;  %v7371_v1 = vld [vmem:[#allocation6 + $0xf8] sm:$0xff] }
 0x24c   :  { %v9016_v32 = vpack.c.bf16 %v4352_v54, %v4351_v3  ;;  %v2828_v40 = vadd.f32 %v2827_v22, %v2718_v17  ;;  %v2063_v56 = vpop.f32.mrf.mxu0  ;;  %v2172_v0 = vpop.f32.mrf.mxu1  ;;  %v3873_v35 = vpack.c.b16 %v3848_v37, %v11129_v23  ;;  %v1858_v37 = vunpack.c.l.b16 %v8981_v48  ;;  %v7373_v17 = vld [vmem:[#allocation7 + $0xf8] sm:$0xff] }
 0x24d   :  { %v9020_v6 = vadd.f32 %v2172_v0, %v2063_v56  ;;  %v2396_v8 = vsub.f32 %v2276_v42, %v2356_v52  ;;  %v9036_v3 = vmul.f32 %v7370_v18, %v7370_v18  ;;  %v9038_v54 = vmul.f32 %v7371_v1, %v7371_v1 }
 0x24e   :  { %v9025_v30 = vpack.c.bf16 %v2828_v40, %v8990_v53  ;;  %3984 = vmatpush.bf16.msrb.mxu2 %v3873_v35  ;;  %4013 = vmatpush.bf16.msrb.mxu3 %v3874_v5  ;;  %v4439_v48 = vunpack.c.l.b16 %v8995_v47  ;;  %v2278_v22 = vmul.f32 %v7373_v17, %v7373_v17  ;;  %v3774_v59 = vpack.c.b16 %v3754_v62, %v3749_v38 }
 0x24f   :  { %2102 = vmatmul.bf16.gmra.mxu0 %v8983_v13  ;;  %2211 = vmatmul.bf16.gmra.mxu1 %v2002_v7  ;;  %v2435_v13 = vpack.c.bf16 %v2395_v26, %v2395_v26  ;;  %v7372_v7 = vld [vmem:[#allocation7 + $0xf0] sm:$0xff]  ;;  %v3775_v52 = vpack.c.b16 %v3755_v4, %v3750_v60  ;;  %v2436_v56 = vpack.c.bf16 %v2396_v8, %v2396_v8  ;;  %v2515_v38 = vunpack.c.l.b16 %v8993_v9 }
 0x250   :  { %v4316_v45 = vunpack.c.l.bf16 %v9025_v30  ;;  %v4317_v21 = vunpack.c.h.bf16 %v9025_v30  ;;  %2760 = vmatmul.bf16.gmra.mxu2 %v2540_v34  ;;  %2869 = vmatmul.bf16.gmra.mxu3 %v2660_v2  ;;  %v9040_v19 = vmul.f32 %v7372_v7, %v7372_v7  ;;  %v4444_v42 = vunpack.c.l.b16 %v9025_v30 }
 0x251   :  { %v9047_v34 = vunpack.c.l.b16 %v1778_v31  ;;  %v1883_v26 = vpack.c.b16 %v1858_v37, %v1857_v11  ;;  %v2516_v4 = vunpack.c.l.b16 %v8997_v50  ;;  %v2635_v31 = vunpack.c.l.b16 %v2435_v13 }
 0x252   :  { %v4356_v12 = vsub.f32 %v8990_v53, %v4316_v45  ;;  %v4357_v61 = vsub.f32 %v2828_v40, %v4317_v21  ;;  %3985 = vmatpush.bf16.msrb.mxu2 %v8954_v29  ;;  %4014 = vmatpush.bf16.msrb.mxu3 %v8956_v49  ;;  %v9049_v0 = vpack.c.b16 %v4444_v42, %v4439_v48  ;;  %v2636_v45 = vunpack.c.l.b16 %v2436_v56 }
 0x253   :  { %v2721_v2 = vpop.f32.mrf.mxu2  ;;  %v2830_v10 = vpop.f32.mrf.mxu3  ;;  %v9053_v29 = vpack.c.bf16 %v9036_v3, %v9036_v3  ;;  %v9057_v49 = vpack.c.bf16 %v9038_v54, %v9038_v54  ;;  %v9064_v60 = vpack.c.bf16 %v9040_v19, %v9040_v19  ;;  %v9072_v8 = vpack.c.bf16 %v2278_v22, %v2278_v22 }
 0x254   :  { %v4393_v23 = vpack.c.bf16 %v4357_v61, %v4356_v12  ;;  %v2831_v35 = vadd.f32 %v2830_v10, %v2721_v2  ;;  %v2065_v5 = vpop.f32.mrf.mxu0  ;;  %v2174_v53 = vpop.f32.mrf.mxu1  ;;  %v4543_v11 = vunpack.c.l.b16 %v9016_v32  ;;  %v4445_v37 = vunpack.c.h.b16 %v9025_v30 }
 0x255   :  { %v9059_v40 = vadd.f32 %v2174_v53, %v2065_v5  ;;  %v1699_v1 = vunpack.c.l.bf16 %v9053_v29  ;;  %v2357_v50 = vunpack.c.l.bf16 %v9064_v60  ;;  %v4440_v7 = vunpack.c.h.b16 %v8995_v47 }
 0x256   :  { %v9067_v62 = vpack.c.bf16 %v2831_v35, %v9020_v6  ;;  %3986 = vmatpush.bf16.msrb.mxu2 %v8864_v16  ;;  %4015 = vmatpush.bf16.msrb.mxu3 %v8866_v55  ;;  %v4548_v9 = vunpack.c.l.b16 %v4393_v23  ;;  %v1700_v16 = vunpack.c.l.bf16 %v9057_v49  ;;  %v2003_v55 = vpack.c.b16 %v9047_v34, %v9032_v43 }
 0x257   :  { %v2358_v42 = vunpack.c.l.bf16 %v9072_v8  ;;  %v4549_v12 = vunpack.c.h.b16 %v4393_v23  ;;  %v2541_v2 = vpack.c.b16 %v2516_v4, %v2515_v38  ;;  %v2661_v10 = vpack.c.b16 %v2636_v45, %v2635_v31 }
 0x258   :  { %v4321_v21 = vunpack.c.l.bf16 %v9067_v62  ;;  %v4322_v18 = vunpack.c.h.bf16 %v9067_v62  ;;  %v9083_v13 = vpack.c.b16 %v4548_v9, %v4543_v11  ;;  %v4544_v43 = vunpack.c.h.b16 %v9016_v32 }
 0x259   :  { %v9089_v34 = vpack.c.b16 %v4445_v37, %v4440_v7  ;;  %v11131_v23 = vunpack.c.l.b16 %v8876_v63  ;;  %v11133_v32 = vunpack.c.h.b16 %v8876_v63  ;;  %v11134_v4 = vunpack.c.h.b16 %v8894_v28  ;;  %v7374_v37 = vld [vmem:[#allocation6 + $0x100] sm:$0xff] }
 0x25a   :  { %v4361_v48 = vsub.f32 %v9020_v6, %v4321_v21  ;;  %v4362_v30 = vsub.f32 %v2831_v35, %v4322_v18  ;;  %3987 = vmatpush.bf16.msrb.mxu2 %v3774_v59  ;;  %4016 = vmatpush.bf16.msrb.mxu3 %v3775_v52  ;;  %v1739_v6 = vsub.f32 %v9036_v3, %v1699_v1  ;;  %v11132_v35 = vunpack.c.l.b16 %v8894_v28  ;;  %v7375_v21 = vld [vmem:[#allocation6 + $0x108] sm:$0xff] }
 0x25b   :  { %v2723_v61 = vpop.f32.mrf.mxu2  ;;  %v2832_v17 = vpop.f32.mrf.mxu3  ;;  %11130 = vst [vmem:[#allocation64_spill] sm:$0xff] %v9089_v34  ;;  %v1740_v59 = vsub.f32 %v9038_v54, %v1700_v16  ;;  %v3765_v31 = vpack.c.b16 %v11134_v4, %v11133_v32  ;;  %v9105_v45 = vpack.c.b16 %v4549_v12, %v4544_v43  ;;  %v2397_v3 = vsub.f32 %v9040_v19, %v2357_v50 }
 0x25c   :  { %v9091_v56 = vpack.c.bf16 %v4362_v30, %v4361_v48  ;;  %v2833_v5 = vadd.f32 %v2832_v17, %v2723_v61  ;;  %v2068_v47 = vpop.f32.mrf.mxu0  ;;  %v2177_v53 = vpop.f32.mrf.mxu1  ;;  %v3764_v38 = vpack.c.b16 %v11132_v35, %v11131_v23  ;;  %v2398_v54 = vsub.f32 %v2278_v22, %v2358_v42 }
 0x25d   :  { %v9095_v52 = vadd.f32 %v2177_v53, %v2068_v47  ;;  %11135 = vst [vmem:[#allocation65_spill] sm:$0xff] %v9105_v45  ;;  %v1859_v9 = vunpack.c.l.b16 %v9053_v29  ;;  %v1860_v63 = vunpack.c.l.b16 %v9057_v49  ;;  %v1621_v28 = vmul.f32 %v7374_v37, %v7374_v37 }
 0x25e   :  { %v4295_v11 = vpack.c.bf16 %v2833_v5, %v9059_v40  ;;  %3988 = vmatpush.bf16.msrb.mxu2 %v9005_v27  ;;  %4017 = vmatpush.bf16.msrb.mxu3 %v9013_v46  ;;  %v1622_v18 = vmul.f32 %v7375_v21, %v7375_v21  ;;  %v1779_v27 = vpack.c.bf16 %v1739_v6, %v1739_v6  ;;  %v7376_v46 = vld [vmem:[#allocation7 + $0x100] sm:$0xff]  ;;  %v4449_v19 = vunpack.c.l.b16 %v9067_v62 }
 0x25f   :  { %2107 = vmatmul.bf16.gmra.mxu0 %v1883_v26  ;;  %2216 = vmatmul.bf16.gmra.mxu1 %v2003_v55  ;;  %v1780_v7 = vpack.c.bf16 %v1740_v59, %v1740_v59  ;;  %v9113_v48 = vmul.f32 %v7376_v46, %v7376_v46  ;;  %v7377_v55 = vld [vmem:[#allocation7 + $0x108] sm:$0xff]  ;;  %v4450_v30 = vunpack.c.h.b16 %v9067_v62  ;;  %v2437_v61 = vpack.c.bf16 %v2397_v3, %v2397_v3 }
 0x260   :  { %v4326_v1 = vunpack.c.l.bf16 %v4295_v11  ;;  %v4327_v16 = vunpack.c.h.bf16 %v4295_v11  ;;  %2765 = vmatmul.bf16.gmra.mxu2 %v2541_v2  ;;  %2874 = vmatmul.bf16.gmra.mxu3 %v2661_v10  ;;  %v4454_v22 = vunpack.c.l.b16 %v4295_v11  ;;  %v4455_v26 = vunpack.c.h.b16 %v4295_v11 }
 0x261   :  { %v2280_v50 = vmul.f32 %v7377_v55, %v7377_v55  ;;  %v9118_v17 = vpack.c.bf16 %v1621_v28, %v1621_v28  ;;  %v9120_v2 = vpack.c.bf16 %v1622_v18, %v1622_v18  ;;  %v1979_v23 = vunpack.c.l.b16 %v1779_v27 }
 0x262   :  { %v4366_v29 = vsub.f32 %v9059_v40, %v4326_v1  ;;  %v4367_v49 = vsub.f32 %v2833_v5, %v4327_v16  ;;  %3989 = vmatpush.bf16.msrb.mxu2 %v3764_v38  ;;  %4018 = vmatpush.bf16.msrb.mxu3 %v3765_v31  ;;  %v9122_v10 = vpack.c.b16 %v4454_v22, %v4449_v19  ;;  %v1980_v35 = vunpack.c.l.b16 %v1780_v7 }
 0x263   :  { %v2726_v42 = vpop.f32.mrf.mxu2  ;;  %v2835_v12 = vpop.f32.mrf.mxu3  ;;  %v2438_v5 = vpack.c.bf16 %v2398_v54, %v2398_v54  ;;  %v9124_v6 = vpack.c.b16 %v4455_v26, %v4450_v30  ;;  %v9128_v62 = vpack.c.bf16 %v9113_v48, %v9113_v48  ;;  %v2517_v32 = vunpack.c.l.b16 %v9064_v60 }
 0x264   :  { %v4399_v43 = vpack.c.bf16 %v4367_v49, %v4366_v29  ;;  %v2836_v47 = vadd.f32 %v2835_v12, %v2726_v42  ;;  %v2070_v53 = vpop.f32.mrf.mxu0  ;;  %v2179_v40 = vpop.f32.mrf.mxu1  ;;  %v9136_v4 = vpack.c.bf16 %v2280_v50, %v2280_v50  ;;  %v1884_v31 = vpack.c.b16 %v1860_v63, %v1859_v9 }
 0x265   :  { %11136 = vst [vmem:[#allocation66_spill] sm:$0xff] %v9124_v6  ;;  %v2180_v59 = vadd.f32 %v2179_v40, %v2070_v53  ;;  %v2518_v11 = vunpack.c.l.b16 %v9072_v8  ;;  %v1701_v3 = vunpack.c.l.bf16 %v9118_v17  ;;  %v1702_v54 = vunpack.c.l.bf16 %v9120_v2 }
 0x266   :  { %v9131_v38 = vpack.c.bf16 %v2836_v47, %v9095_v52  ;;  %3990 = vmatpush.bf16.msrb.mxu2 %v8854_v24  ;;  %4019 = vmatpush.bf16.msrb.mxu3 %v8874_v33  ;;  %v2637_v1 = vunpack.c.l.b16 %v2437_v61  ;;  %v2638_v16 = vunpack.c.l.b16 %v2438_v5  ;;  %v2004_v24 = vpack.c.b16 %v1980_v35, %v1979_v23  ;;  %v7379_v35 = vld [vmem:[#allocation6 + $0x118] sm:$0xff] }
 0x267   :  { %v2359_v33 = vunpack.c.l.bf16 %v9128_v62  ;;  %v4553_v60 = vunpack.c.l.b16 %v9091_v56  ;;  %v4558_v27 = vunpack.c.l.b16 %v4399_v43  ;;  %v2360_v8 = vunpack.c.l.bf16 %v9136_v4 }
 0x268   :  { %v4331_v37 = vunpack.c.l.bf16 %v9131_v38  ;;  %v4332_v21 = vunpack.c.h.bf16 %v9131_v38  ;;  %v4559_v7 = vunpack.c.h.b16 %v4399_v43  ;;  %v1741_v22 = vsub.f32 %v1621_v28, %v1701_v3  ;;  %v7378_v28 = vld [vmem:[#allocation6 + $0x110] sm:$0xff] }
 0x269   :  { %v1742_v26 = vsub.f32 %v1622_v18, %v1702_v54  ;;  %v9147_v29 = vpack.c.b16 %v4558_v27, %v4553_v60  ;;  %v4554_v49 = vunpack.c.h.b16 %v9091_v56  ;;  %v2542_v61 = vpack.c.b16 %v2518_v11, %v2517_v32 }
 0x26a   :  { %v4371_v9 = vsub.f32 %v9095_v52, %v4331_v37  ;;  %v4372_v63 = vsub.f32 %v2836_v47, %v4332_v21  ;;  %v2662_v53 = vpack.c.b16 %v2638_v16, %v2637_v1  ;;  %v2399_v43 = vsub.f32 %v9113_v48, %v2359_v33  ;;  %v7380_v21 = vld [vmem:[#allocation7 + $0x110] sm:$0xff]  ;;  %v7381_v48 = vld [vmem:[#allocation7 + $0x118] sm:$0xff] }
 0x26b   :  { %v2728_v46 = vpop.f32.mrf.mxu2  ;;  %v2837_v19 = vpop.f32.mrf.mxu3  ;;  %v9152_v47 = vpack.c.b16 %v4559_v7, %v4554_v49  ;;  %v2400_v5 = vsub.f32 %v2280_v50, %v2360_v8  ;;  %v1623_v18 = vmul.f32 %v7378_v28, %v7378_v28  ;;  %v1781_v23 = vpack.c.bf16 %v1741_v22, %v1741_v22 }
 0x26c   :  { %v9150_v55 = vpack.c.bf16 %v4372_v63, %v4371_v9  ;;  %v2838_v30 = vadd.f32 %v2837_v19, %v2728_v46  ;;  %v2073_v42 = vpop.f32.mrf.mxu0  ;;  %v2182_v12 = vpop.f32.mrf.mxu1  ;;  %v1782_v56 = vpack.c.bf16 %v1742_v26, %v1742_v26  ;;  %v1624_v3 = vmul.f32 %v7379_v35, %v7379_v35 }
 0x26d   :  { %v2183_v52 = vadd.f32 %v2182_v12, %v2073_v42  ;;  %11137 = vst [vmem:[#allocation67_spill] sm:$0xff] %v9152_v47  ;;  %v4459_v32 = vunpack.c.l.b16 %v9131_v38  ;;  %v4460_v11 = vunpack.c.h.b16 %v9131_v38  ;;  %v2281_v1 = vmul.f32 %v7380_v21, %v7380_v21 }
 0x26e   :  { %v4301_v40 = vpack.c.bf16 %v2838_v30, %v2180_v59  ;;  %v2282_v50 = vmul.f32 %v7381_v48, %v7381_v48  ;;  %v2439_v60 = vpack.c.bf16 %v2399_v43, %v2399_v43  ;;  %v9157_v27 = vpack.c.bf16 %v1623_v18, %v1623_v18 }
 0x26f   :  { %2112 = vmatmul.bf16.gmra.mxu0 %v1884_v31  ;;  %2221 = vmatmul.bf16.gmra.mxu1 %v2004_v24  ;;  %v2440_v8 = vpack.c.bf16 %v2400_v5, %v2400_v5  ;;  %v9159_v7 = vpack.c.bf16 %v1624_v3, %v1624_v3  ;;  %v1861_v42 = vunpack.c.l.b16 %v9118_v17  ;;  %v1981_v12 = vunpack.c.l.b16 %v1781_v23 }
 0x270   :  { %v4336_v54 = vunpack.c.l.bf16 %v4301_v40  ;;  %v4337_v37 = vunpack.c.h.bf16 %v4301_v40  ;;  %2770 = vmatmul.bf16.gmra.mxu2 %v2542_v61  ;;  %2879 = vmatmul.bf16.gmra.mxu3 %v2662_v53  ;;  %v4464_v16 = vunpack.c.l.b16 %v4301_v40  ;;  %v4465_v33 = vunpack.c.h.b16 %v4301_v40 }
 0x271   :  { %v9167_v61 = vpack.c.bf16 %v2281_v1, %v2281_v1  ;;  %v9169_v53 = vpack.c.bf16 %v2282_v50, %v2282_v50  ;;  %v1982_v43 = vunpack.c.l.b16 %v1782_v56  ;;  %v2519_v5 = vunpack.c.l.b16 %v9128_v62 }
 0x272   :  { %v4376_v31 = vsub.f32 %v2180_v59, %v4336_v54  ;;  %v4377_v24 = vsub.f32 %v2838_v30, %v4337_v37  ;;  %v9161_v46 = vpack.c.b16 %v4464_v16, %v4459_v32  ;;  %v9163_v19 = vpack.c.b16 %v4465_v33, %v4460_v11 }
 0x273   :  { %v2731_v9 = vpop.f32.mrf.mxu2  ;;  %v2840_v63 = vpop.f32.mrf.mxu3  ;;  %v1862_v59 = vunpack.c.l.b16 %v9120_v2  ;;  %v1703_v28 = vunpack.c.l.bf16 %v9157_v27  ;;  %v2520_v35 = vunpack.c.l.b16 %v9136_v4  ;;  %v1704_v54 = vunpack.c.l.bf16 %v9159_v7 }
 0x274   :  { %11138 = vst [vmem:[#allocation68_spill] sm:$0xff] %v9163_v19  ;;  %v4405_v38 = vpack.c.bf16 %v4377_v24, %v4376_v31  ;;  %v2841_v22 = vadd.f32 %v2840_v63, %v2731_v9  ;;  %v2075_v26 = vpop.f32.mrf.mxu0  ;;  %v2184_v49 = vpop.f32.mrf.mxu1  ;;  %v4563_v17 = vunpack.c.l.b16 %v9150_v55  ;;  %v2639_v32 = vunpack.c.l.b16 %v2439_v60 }
 0x275   :  { %v2185_v30 = vadd.f32 %v2184_v49, %v2075_v26  ;;  %v2640_v11 = vunpack.c.l.b16 %v2440_v8  ;;  %v2361_v21 = vunpack.c.l.bf16 %v9167_v61  ;;  %v2362_v56 = vunpack.c.l.bf16 %v9169_v53 }
 0x276   :  { %v9171_v40 = vpack.c.bf16 %v2841_v22, %v2183_v52  ;;  %v4568_v2 = vunpack.c.l.b16 %v4405_v38  ;;  %v1743_v4 = vsub.f32 %v1623_v18, %v1703_v28  ;;  %v4569_v33 = vunpack.c.h.b16 %v4405_v38 }
 0x277   :  { %v1885_v9 = vpack.c.b16 %v1862_v59, %v1861_v42  ;;  %v2005_v63 = vpack.c.b16 %v1982_v43, %v1981_v12  ;;  %v1744_v26 = vsub.f32 %v1624_v3, %v1704_v54  ;;  %v4564_v49 = vunpack.c.h.b16 %v9150_v55  ;;  %v7382_v12 = vld [vmem:[#allocation6 + $0x120] sm:$0xff] }
 0x278   :  { %v4341_v23 = vunpack.c.l.bf16 %v9171_v40  ;;  %v4342_v37 = vunpack.c.h.bf16 %v9171_v40  ;;  %v9182_v62 = vpack.c.b16 %v4568_v2, %v4563_v17  ;;  %v2543_v19 = vpack.c.b16 %v2520_v35, %v2519_v5  ;;  %v7383_v5 = vld [vmem:[#allocation6 + $0x128] sm:$0xff] }
 0x279   :  { %v2663_v45 = vpack.c.b16 %v2640_v11, %v2639_v32  ;;  %v2401_v2 = vsub.f32 %v2281_v1, %v2361_v21  ;;  %v1863_v38 = vunpack.c.l.b16 %v9157_v27  ;;  %v1864_v42 = vunpack.c.l.b16 %v9159_v7  ;;  %v7384_v7 = vld [vmem:[#allocation7 + $0x120] sm:$0xff]  ;;  %v7385_v21 = vld [vmem:[#allocation7 + $0x128] sm:$0xff] }
 0x27a   :  { %v4381_v48 = vsub.f32 %v2183_v52, %v4341_v23  ;;  %v4382_v16 = vsub.f32 %v2841_v22, %v4342_v37  ;;  %v2402_v52 = vsub.f32 %v2282_v50, %v2362_v56  ;;  %v9187_v22 = vpack.c.b16 %v4569_v33, %v4564_v49 }
 0x27b   :  { %v2733_v31 = vpop.f32.mrf.mxu2  ;;  %v2842_v24 = vpop.f32.mrf.mxu3  ;;  %v1783_v3 = vpack.c.bf16 %v1743_v4, %v1743_v4  ;;  %v1784_v55 = vpack.c.bf16 %v1744_v26, %v1744_v26  ;;  %v1625_v43 = vmul.f32 %v7382_v12, %v7382_v12  ;;  %v1626_v28 = vmul.f32 %v7383_v5, %v7383_v5 }
 0x27c   :  { %v9185_v34 = vpack.c.bf16 %v4382_v16, %v4381_v48  ;;  %v2843_v60 = vadd.f32 %v2842_v24, %v2733_v31  ;;  %v2078_v8 = vpop.f32.mrf.mxu0  ;;  %v2187_v6 = vpop.f32.mrf.mxu1  ;;  %v4469_v50 = vunpack.c.l.b16 %v9171_v40  ;;  %v2522_v27 = vunpack.c.l.b16 %v9169_v53 }
 0x27d   :  { %v2188_v17 = vadd.f32 %v2187_v6, %v2078_v8  ;;  %v2283_v54 = vmul.f32 %v7384_v7, %v7384_v7  ;;  %v4470_v23 = vunpack.c.h.b16 %v9171_v40  ;;  %v2284_v56 = vmul.f32 %v7385_v21, %v7385_v21 }
 0x27e   :  { %v4307_v18 = vpack.c.bf16 %v2843_v60, %v2185_v30  ;;  %v9199_v33 = vpack.c.bf16 %v1626_v28, %v1626_v28  ;;  %v4573_v26 = vunpack.c.l.b16 %v9185_v34 }
 0x27f   :  { %2117 = vmatmul.bf16.gmra.mxu0 %v1885_v9  ;;  %2226 = vmatmul.bf16.gmra.mxu1 %v2005_v63  ;;  %v1983_v63 = vunpack.c.l.b16 %v1783_v3  ;;  %v9204_v8 = vpack.c.bf16 %v2283_v54, %v2283_v54  ;;  %v9206_v5 = vpack.c.bf16 %v2284_v56, %v2284_v56 }
 0x280   :  { %v4346_v6 = vunpack.c.l.bf16 %v4307_v18  ;;  %v4347_v1 = vunpack.c.h.bf16 %v4307_v18  ;;  %2775 = vmatmul.bf16.gmra.mxu2 %v2543_v19  ;;  %2884 = vmatmul.bf16.gmra.mxu3 %v2663_v45  ;;  %v4474_v35 = vunpack.c.l.b16 %v4307_v18  ;;  %v4475_v37 = vunpack.c.h.b16 %v4307_v18 }
 0x281   :  { %v2441_v19 = vpack.c.bf16 %v2401_v2, %v2401_v2  ;;  %v9197_v45 = vpack.c.bf16 %v1625_v43, %v1625_v43  ;;  %v2364_v21 = vunpack.c.l.bf16 %v9206_v5 }
 0x282   :  { %v4386_v32 = vsub.f32 %v2185_v30, %v4346_v6  ;;  %v4387_v11 = vsub.f32 %v2843_v60, %v4347_v1  ;;  %v9195_v48 = vpack.c.b16 %v4474_v35, %v4469_v50  ;;  %v9201_v31 = vpack.c.b16 %v4475_v37, %v4470_v23 }
 0x283   :  { %v2736_v16 = vpop.f32.mrf.mxu2  ;;  %v2845_v4 = vpop.f32.mrf.mxu3  ;;  %v2442_v30 = vpack.c.bf16 %v2402_v52, %v2402_v52  ;;  %v1984_v60 = vunpack.c.l.b16 %v1784_v55  ;;  %v4574_v6 = vunpack.c.h.b16 %v9185_v34  ;;  %v2641_v1 = vunpack.c.l.b16 %v2441_v19 }
 0x284   :  { %11139 = vst [vmem:[#allocation69_spill] sm:$0xff] %v9201_v31  ;;  %v4411_v53 = vpack.c.bf16 %v4387_v11, %v4386_v32  ;;  %v2846_v24 = vadd.f32 %v2845_v4, %v2736_v16  ;;  %v2080_v9 = vpop.f32.mrf.mxu0  ;;  %v2189_v40 = vpop.f32.mrf.mxu1  ;;  %v1705_v50 = vunpack.c.l.bf16 %v9197_v45  ;;  %v1706_v35 = vunpack.c.l.bf16 %v9199_v33 }
 0x285   :  { %v2190_v49 = vadd.f32 %v2189_v40, %v2080_v9  ;;  %v2642_v7 = vunpack.c.l.b16 %v2442_v30  ;;  %v2363_v55 = vunpack.c.l.bf16 %v9204_v8  ;;  %v1886_v4 = vpack.c.b16 %v1864_v42, %v1863_v38 }
 0x286   :  { %v4578_v18 = vunpack.c.l.b16 %v4411_v53  ;;  %v4579_v2 = vunpack.c.h.b16 %v4411_v53  ;;  %v4981_v12 = vpack.c.bf16 %v2846_v24, %v2188_v17  ;;  %v2006_v19 = vpack.c.b16 %v1984_v60, %v1983_v63 }
 0x287   :  { %v1745_v53 = vsub.f32 %v1625_v43, %v1705_v50  ;;  %v1746_v9 = vsub.f32 %v1626_v28, %v1706_v35  ;;  %v1865_v38 = vunpack.c.l.b16 %v9197_v45  ;;  %v7386_v50 = vld [vmem:[#allocation6 + $0x130] sm:$0xff] }
 0x288   :  { %v5006_v3 = vunpack.c.l.bf16 %v4981_v12  ;;  %v5007_v52 = vunpack.c.h.bf16 %v4981_v12  ;;  %v9211_v23 = vpack.c.b16 %v4578_v18, %v4573_v26  ;;  %v9214_v37 = vpack.c.b16 %v4579_v2, %v4574_v6 }
 0x289   :  { %v11140_v18 = vunpack.c.l.b16 %v9167_v61  ;;  %v2664_v2 = vpack.c.b16 %v2642_v7, %v2641_v1  ;;  %v1785_v42 = vpack.c.bf16 %v1745_v53, %v1745_v53  ;;  %v1786_v43 = vpack.c.bf16 %v1746_v9, %v1746_v9  ;;  %v7387_v1 = vld [vmem:[#allocation6 + $0x138] sm:$0xff] }
 0x28a   :  { %v5046_v32 = vsub.f32 %v2188_v17, %v5006_v3  ;;  %v5047_v11 = vsub.f32 %v2846_v24, %v5007_v52  ;;  %v2403_v17 = vsub.f32 %v2283_v54, %v2363_v55  ;;  %v2404_v3 = vsub.f32 %v2284_v56, %v2364_v21 }
 0x28b   :  { %v2738_v16 = vpop.f32.mrf.mxu2  ;;  %v2847_v34 = vpop.f32.mrf.mxu3  ;;  %v2544_v31 = vpack.c.b16 %v2522_v27, %v11140_v18  ;;  %v5134_v28 = vunpack.c.l.b16 %v4981_v12  ;;  %v1627_v35 = vmul.f32 %v7386_v50, %v7386_v50  ;;  %v1628_v52 = vmul.f32 %v7387_v1, %v7387_v1 }
 0x28c   :  { %v9217_v40 = vpack.c.bf16 %v5047_v11, %v5046_v32  ;;  %v2848_v59 = vadd.f32 %v2847_v34, %v2738_v16  ;;  %v2083_v30 = vpop.f32.mrf.mxu0  ;;  %v2192_v26 = vpop.f32.mrf.mxu1  ;;  %v2443_v27 = vpack.c.bf16 %v2403_v17, %v2403_v17  ;;  %v5135_v54 = vunpack.c.h.b16 %v4981_v12  ;;  %v7388_v32 = vld [vmem:[#allocation7 + $0x130] sm:$0xff] }
 0x28d   :  { %v2193_v6 = vadd.f32 %v2192_v26, %v2083_v30  ;;  %v2285_v11 = vmul.f32 %v7388_v32, %v7388_v32  ;;  %v1866_v34 = vunpack.c.l.b16 %v9199_v33  ;;  %v1986_v17 = vunpack.c.l.b16 %v1786_v43 }
 0x28e   :  { %v4984_v24 = vpack.c.bf16 %v2848_v59, %v2190_v49  ;;  %v2524_v33 = vunpack.c.l.b16 %v9206_v5  ;;  %v5239_v5 = vunpack.c.h.b16 %v9217_v40 }
 0x28f   :  { %2122 = vmatmul.bf16.gmra.mxu0 %v1886_v4  ;;  %2231 = vmatmul.bf16.gmra.mxu1 %v2006_v19  ;;  %v7389_v4 = vld [vmem:[#allocation7 + $0x138] sm:$0xff] }
 0x290   :  { %v5011_v63 = vunpack.c.l.bf16 %v4984_v24  ;;  %v5012_v60 = vunpack.c.h.bf16 %v4984_v24  ;;  %2780 = vmatmul.bf16.gmra.mxu2 %v2544_v31  ;;  %2889 = vmatmul.bf16.gmra.mxu3 %v2664_v2  ;;  %v5139_v61 = vunpack.c.l.b16 %v4984_v24  ;;  %v5140_v7 = vunpack.c.h.b16 %v4984_v24 }
 0x291   :  { %v2444_v31 = vpack.c.bf16 %v2404_v3, %v2404_v3  ;;  %v2286_v19 = vmul.f32 %v7389_v4, %v7389_v4  ;;  %v1985_v2 = vunpack.c.l.b16 %v1785_v42  ;;  %v9230_v24 = vpack.c.bf16 %v1628_v52, %v1628_v52 }
 0x292   :  { %v5051_v56 = vsub.f32 %v2190_v49, %v5011_v63  ;;  %v5052_v55 = vsub.f32 %v2848_v59, %v5012_v60  ;;  %v9222_v45 = vpack.c.b16 %v5139_v61, %v5134_v28  ;;  %v9225_v53 = vpack.c.b16 %v5140_v7, %v5135_v54 }
 0x293   :  { %v2741_v21 = vpop.f32.mrf.mxu2  ;;  %v2850_v16 = vpop.f32.mrf.mxu3  ;;  %v2523_v49 = vunpack.c.l.b16 %v9204_v8  ;;  %v9228_v59 = vpack.c.bf16 %v1627_v35, %v1627_v35  ;;  %v2643_v3 = vunpack.c.l.b16 %v2443_v27  ;;  %v9235_v63 = vpack.c.bf16 %v2285_v11, %v2285_v11 }
 0x294   :  { %11141 = vst [vmem:[#allocation70_spill] sm:$0xff] %v9222_v45  ;;  %v5088_v9 = vpack.c.bf16 %v5052_v55, %v5051_v56  ;;  %v2851_v30 = vadd.f32 %v2850_v16, %v2741_v21  ;;  %v2085_v26 = vpop.f32.mrf.mxu0  ;;  %v2194_v12 = vpop.f32.mrf.mxu1  ;;  %v2644_v60 = vunpack.c.l.b16 %v2444_v31  ;;  %v9237_v50 = vpack.c.bf16 %v2286_v19, %v2286_v19 }
 0x295   :  { %11142 = vst [vmem:[#allocation71_spill] sm:$0xff] %v9225_v53  ;;  %v2195_v18 = vadd.f32 %v2194_v12, %v2085_v26  ;;  %v5238_v61 = vunpack.c.l.b16 %v9217_v40  ;;  %v1707_v43 = vunpack.c.l.bf16 %v9228_v59  ;;  %v1887_v54 = vpack.c.b16 %v1866_v34, %v1865_v38 }
 0x296   :  { %v9232_v28 = vpack.c.bf16 %v2851_v30, %v2193_v6  ;;  %v5243_v8 = vunpack.c.l.b16 %v5088_v9  ;;  %v1708_v7 = vunpack.c.l.bf16 %v9230_v24  ;;  %v2365_v32 = vunpack.c.l.bf16 %v9235_v63 }
 0x297   :  { %v5244_v21 = vunpack.c.h.b16 %v5088_v9  ;;  %v2007_v4 = vpack.c.b16 %v1986_v17, %v1985_v2  ;;  %v2545_v26 = vpack.c.b16 %v2524_v33, %v2523_v49  ;;  %v2665_v12 = vpack.c.b16 %v2644_v60, %v2643_v3  ;;  %v7391_v9 = vld [vmem:[#allocation7] sm:$0xff]  ;;  %v7392_v2 = vld [vmem:[#allocation6 + $0x8] sm:$0xff] }
 0x298   :  { %v5016_v1 = vunpack.c.l.bf16 %v9232_v28  ;;  %v5017_v42 = vunpack.c.h.bf16 %v9232_v28  ;;  %v9244_v56 = vpack.c.b16 %v5243_v8, %v5238_v61  ;;  %v2366_v53 = vunpack.c.l.bf16 %v9237_v50  ;;  %v7393_v49 = vld [vmem:[#allocation7 + $0x8] sm:$0xff] }
 0x299   :  { %v1747_v61 = vsub.f32 %v1627_v35, %v1707_v43  ;;  %v9249_v8 = vpack.c.b16 %v5244_v21, %v5239_v5  ;;  %v9253_v17 = vmul.f32 %v7393_v49, %v7392_v2 }
 0x29a   :  { %11143 = vst [vmem:[#allocation72_spill] sm:$0xff] %v9244_v56  ;;  %v5056_v27 = vsub.f32 %v2193_v6, %v5016_v1  ;;  %v5057_v55 = vsub.f32 %v2851_v30, %v5017_v42  ;;  %v1748_v30 = vsub.f32 %v1628_v52, %v1708_v7  ;;  %v2405_v1 = vsub.f32 %v2285_v11, %v2365_v32  ;;  %v7390_v42 = vld [vmem:[#allocation6] sm:$0xff] }
 0x29b   :  { %v2743_v16 = vpop.f32.mrf.mxu2  ;;  %v2852_v31 = vpop.f32.mrf.mxu3  ;;  %11144 = vst [vmem:[#allocation73_spill] sm:$0xff] %v9249_v8  ;;  %v9251_v56 = vmul.f32 %v7391_v9, %v7390_v42  ;;  %v1787_v35 = vpack.c.bf16 %v1747_v61, %v1747_v61  ;;  %v2406_v60 = vsub.f32 %v2286_v19, %v2366_v53  ;;  %v5145_v11 = vunpack.c.h.b16 %v9232_v28  ;;  %v9604_v8 = vld [vmem:[#allocation9] sm:$0xff] }
 0x29c   :  { %v5091_v45 = vpack.c.bf16 %v5057_v55, %v5056_v27  ;;  %v2853_v38 = vadd.f32 %v2852_v31, %v2743_v16  ;;  %v2088_v34 = vpop.f32.mrf.mxu0  ;;  %v2197_v47 = vpop.f32.mrf.mxu1  ;;  %v1788_v27 = vpack.c.bf16 %v1748_v30, %v1748_v30  ;;  %v2445_v55 = vpack.c.bf16 %v2405_v1, %v2405_v1 }
 0x29d   :  { %v2198_v40 = vadd.f32 %v2197_v47, %v2088_v34  ;;  %v5144_v47 = vunpack.c.l.b16 %v9232_v28  ;;  %v9263_v32 = vpack.c.bf16 %v9253_v17, %v9253_v17  ;;  %v1868_v34 = vunpack.c.l.b16 %v9230_v24 }
 0x29e   :  { %v4990_v6 = vpack.c.bf16 %v2853_v38, %v2195_v18  ;;  %v2525_v61 = vunpack.c.l.b16 %v9235_v63  ;;  %v1987_v1 = vunpack.c.l.b16 %v1787_v35  ;;  %v1988_v42 = vunpack.c.l.b16 %v1788_v27 }
 0x29f   :  { %2127 = vmatmul.bf16.gmra.mxu0 %v1887_v54  ;;  %2236 = vmatmul.bf16.gmra.mxu1 %v2007_v4  ;;  %v9259_v54 = vpack.c.bf16 %v9251_v56, %v9251_v56  ;;  %v2645_v9 = vunpack.c.l.b16 %v2445_v55  ;;  %v5248_v2 = vunpack.c.l.b16 %v5091_v45 }
 0x2a0   :  { %v5021_v33 = vunpack.c.l.bf16 %v4990_v6  ;;  %v5022_v3 = vunpack.c.h.bf16 %v4990_v6  ;;  %2785 = vmatmul.bf16.gmra.mxu2 %v2545_v26  ;;  %2894 = vmatmul.bf16.gmra.mxu3 %v2665_v12  ;;  %v5149_v52 = vunpack.c.l.b16 %v4990_v6  ;;  %v5150_v43 = vunpack.c.h.b16 %v4990_v6 }
 0x2a1   :  { %v1867_v26 = vunpack.c.l.b16 %v9228_v59  ;;  %v2446_v12 = vpack.c.bf16 %v2406_v60, %v2406_v60  ;;  %v2526_v6 = vunpack.c.l.b16 %v9237_v50  ;;  %v2985_v59 = vunpack.c.l.bf16 %v9259_v54 }
 0x2a2   :  { %v5061_v7 = vsub.f32 %v2195_v18, %v5021_v33  ;;  %v5062_v5 = vsub.f32 %v2853_v38, %v5022_v3  ;;  %v9265_v53 = vpack.c.b16 %v5149_v52, %v5144_v47  ;;  %v9267_v16 = vpack.c.b16 %v5150_v43, %v5145_v11 }
 0x2a3   :  { %v2746_v21 = vpop.f32.mrf.mxu2  ;;  %v2855_v19 = vpop.f32.mrf.mxu3  ;;  %v5249_v33 = vunpack.c.h.b16 %v5091_v45  ;;  %v2646_v11 = vunpack.c.l.b16 %v2446_v12  ;;  %v2986_v50 = vunpack.c.l.bf16 %v9263_v32  ;;  %v2008_v27 = vpack.c.b16 %v1988_v42, %v1987_v1 }
 0x2a4   :  { %11145 = vst [vmem:[#allocation74_spill] sm:$0xff] %v9267_v16  ;;  %v5094_v28 = vpack.c.bf16 %v5062_v5, %v5061_v7  ;;  %v2856_v31 = vadd.f32 %v2855_v19, %v2746_v21  ;;  %v2090_v18 = vpop.f32.mrf.mxu0  ;;  %v2199_v4 = vpop.f32.mrf.mxu1  ;;  %v1888_v5 = vpack.c.b16 %v1868_v34, %v1867_v26  ;;  %v2546_v55 = vpack.c.b16 %v2526_v6, %v2525_v61 }
 0x2a5   :  { %v2200_v38 = vadd.f32 %v2199_v4, %v2090_v18  ;;  %v2666_v18 = vpack.c.b16 %v2646_v11, %v2645_v9  ;;  %v3025_v4 = vsub.f32 %v9251_v56, %v2985_v59  ;;  %v7397_v59 = vld [vmem:[#allocation7 + $0x18] sm:$0xff] }
 0x2a6   :  { %v4993_v30 = vpack.c.bf16 %v2856_v31, %v2198_v40  ;;  %v5253_v49 = vunpack.c.l.b16 %v5094_v28  ;;  %v5254_v3 = vunpack.c.h.b16 %v5094_v28 }
 0x2a7   :  { %v3065_v26 = vpack.c.bf16 %v3025_v4, %v3025_v4 }
 0x2a8   :  { %v5026_v47 = vunpack.c.l.bf16 %v4993_v30  ;;  %v5027_v52 = vunpack.c.h.bf16 %v4993_v30  ;;  %v9274_v60 = vpack.c.b16 %v5253_v49, %v5248_v2  ;;  %v9276_v24 = vpack.c.b16 %v5254_v3, %v5249_v33 }
 0x2a9   :  { %v3026_v49 = vsub.f32 %v9253_v17, %v2986_v50  ;;  %v5154_v34 = vunpack.c.l.b16 %v4993_v30  ;;  %v5155_v6 = vunpack.c.h.b16 %v4993_v30  ;;  %v7396_v17 = vld [vmem:[#allocation6 + $0x18] sm:$0xff] }
 0x2aa   :  { %v5066_v63 = vsub.f32 %v2198_v40, %v5026_v47  ;;  %v5067_v43 = vsub.f32 %v2856_v31, %v5027_v52  ;;  %v7394_v47 = vld [vmem:[#allocation6 + $0x10] sm:$0xff] }
 0x2ab   :  { %v2748_v35 = vpop.f32.mrf.mxu2  ;;  %v2857_v7 = vpop.f32.mrf.mxu3  ;;  %v3066_v9 = vpack.c.bf16 %v3026_v49, %v3026_v49  ;;  %v7395_v52 = vld [vmem:[#allocation7 + $0x10] sm:$0xff] }
 0x2ac   :  { %v5097_v45 = vpack.c.bf16 %v5067_v43, %v5066_v63  ;;  %v2858_v21 = vadd.f32 %v2857_v7, %v2748_v35  ;;  %v2093_v19 = vpop.f32.mrf.mxu0  ;;  %v2202_v28 = vpop.f32.mrf.mxu1  ;;  %v2907_v11 = vmul.f32 %v7395_v52, %v7394_v47  ;;  %v2908_v63 = vmul.f32 %v7397_v59, %v7396_v17  ;;  %v9297_v59 = vld [vmem:[#allocation9] sm:$0xff] }
 0x2ad   :  { %v2203_v12 = vadd.f32 %v2202_v28, %v2093_v19 }
 0x2ae   :  { %v4996_v2 = vpack.c.bf16 %v2858_v21, %v2200_v38  ;;  %v5258_v28 = vunpack.c.l.b16 %v5097_v45  ;;  %v9287_v49 = vpack.c.bf16 %v2907_v11, %v2907_v11 }
 0x2af   :  { %2132 = vmatmul.bf16.gmra.mxu0 %v1888_v5  ;;  %2241 = vmatmul.bf16.gmra.mxu1 %v2008_v27 }
 0x2b0   :  { %v5031_v40 = vunpack.c.l.bf16 %v4996_v2  ;;  %v5032_v31 = vunpack.c.h.bf16 %v4996_v2  ;;  %2790 = vmatmul.bf16.gmra.mxu2 %v2546_v55  ;;  %2899 = vmatmul.bf16.gmra.mxu3 %v2666_v18  ;;  %v5159_v61 = vunpack.c.l.b16 %v4996_v2  ;;  %v5160_v1 = vunpack.c.h.b16 %v4996_v2 }
 0x2b1   :  { %v3146_v55 = vunpack.c.l.b16 %v9263_v32  ;;  %v3266_v2 = vunpack.c.l.b16 %v3066_v9 }
 0x2b2   :  { %v5071_v42 = vsub.f32 %v2200_v38, %v5031_v40  ;;  %v5072_v33 = vsub.f32 %v2858_v21, %v5032_v31  ;;  %v9281_v43 = vpack.c.b16 %v5159_v61, %v5154_v34  ;;  %v9283_v50 = vpack.c.b16 %v5160_v1, %v5155_v6 }
 0x2b3   :  { %v2751_v3 = vpop.f32.mrf.mxu2  ;;  %v2860_v56 = vpop.f32.mrf.mxu3  ;;  %v3145_v38 = vunpack.c.l.b16 %v9259_v54  ;;  %v3265_v21 = vunpack.c.l.b16 %v3065_v26  ;;  %v9289_v40 = vpack.c.bf16 %v2908_v63, %v2908_v63  ;;  %v5259_v31 = vunpack.c.h.b16 %v5097_v45 }
 0x2b4   :  { %11146 = vst [vmem:[#allocation75_spill] sm:$0xff] %v9283_v50  ;;  %v5100_v35 = vpack.c.bf16 %v5072_v33, %v5071_v42  ;;  %v2861_v7 = vadd.f32 %v2860_v56, %v2751_v3  ;;  %v2095_v5 = vpop.f32.mrf.mxu0  ;;  %v2204_v30 = vpop.f32.mrf.mxu1  ;;  %v2987_v56 = vunpack.c.l.bf16 %v9287_v49 }
 0x2b5   :  { %v2205_v27 = vadd.f32 %v2204_v30, %v2095_v5  ;;  %v3185_v33 = vpack.c.b16 %v3146_v55, %v3145_v38  ;;  %v3305_v3 = vpack.c.b16 %v3266_v2, %v3265_v21  ;;  %v2988_v9 = vunpack.c.l.bf16 %v9289_v40  ;;  %v7398_v21 = vld [vmem:[#allocation6 + $0x20] sm:$0xff] }
 0x2b6   :  { %v4999_v19 = vpack.c.bf16 %v2861_v7, %v2203_v12  ;;  %v5263_v18 = vunpack.c.l.b16 %v5100_v35  ;;  %v5264_v4 = vunpack.c.h.b16 %v5100_v35 }
 0x2b8   :  { %v5036_v34 = vunpack.c.l.bf16 %v4999_v19  ;;  %v5037_v61 = vunpack.c.h.bf16 %v4999_v19  ;;  %v9291_v6 = vpack.c.b16 %v5263_v18, %v5258_v28  ;;  %v9293_v1 = vpack.c.b16 %v5264_v4, %v5259_v31  ;;  %v7399_v18 = vld [vmem:[#allocation7 + $0x20] sm:$0xff] }
 0x2b9   :  { %v5164_v38 = vunpack.c.l.b16 %v4999_v19  ;;  %v2909_v4 = vmul.f32 %v7399_v18, %v7398_v21  ;;  %v5165_v2 = vunpack.c.h.b16 %v4999_v19 }
 0x2ba   :  { %v5076_v54 = vsub.f32 %v2203_v12, %v5036_v34  ;;  %v5077_v42 = vsub.f32 %v2861_v7, %v5037_v61  ;;  %v3027_v12 = vsub.f32 %v2907_v11, %v2987_v56  ;;  %v3028_v7 = vsub.f32 %v2908_v63, %v2988_v9  ;;  %v7400_v63 = vld [vmem:[#allocation6 + $0x28] sm:$0xff] }
 0x2bb   :  { %v2753_v32 = vpop.f32.mrf.mxu2  ;;  %v2862_v26 = vpop.f32.mrf.mxu3  ;;  %v7401_v61 = vld [vmem:[#allocation7 + $0x28] sm:$0xff] }
 0x2bc   :  { %v5103_v47 = vpack.c.bf16 %v5077_v42, %v5076_v54  ;;  %v2863_v52 = vadd.f32 %v2862_v26, %v2753_v32  ;;  %v2098_v17 = vpop.f32.mrf.mxu0  ;;  %v2207_v45 = vpop.f32.mrf.mxu1  ;;  %v2910_v54 = vmul.f32 %v7401_v61, %v7400_v63  ;;  %v3067_v26 = vpack.c.bf16 %v3027_v12, %v3027_v12 }
 0x2bd   :  { %v2208_v35 = vadd.f32 %v2207_v45, %v2098_v17  ;;  %v9309_v45 = vpack.c.bf16 %v2909_v4, %v2909_v4 }
 0x2be   :  { %v5002_v5 = vpack.c.bf16 %v2863_v52, %v2205_v27  ;;  %v5268_v17 = vunpack.c.l.b16 %v5103_v47  ;;  %v9311_v12 = vpack.c.bf16 %v2910_v54, %v2910_v54 }
 0x2bf   :  { %3353 = vmatmul.bf16.vlgmr.msra.gmra.mxu0 %v3185_v33  ;;  %3462 = vmatmul.bf16.vlgmr.msra.gmra.mxu1 %v3305_v3  ;;  %v3068_v33 = vpack.c.bf16 %v3028_v7, %v3028_v7  ;;  %v3147_v7 = vunpack.c.l.b16 %v9287_v49 }
 0x2c0   :  { %v5041_v30 = vunpack.c.l.bf16 %v5002_v5  ;;  %v5042_v28 = vunpack.c.h.bf16 %v5002_v5  ;;  %3962 = vmatmul.bf16.vlgmr.msra.gmra.mxu3 %v9297_v59  ;;  %6011 = vmatpush.bf16.msra.mxu1 %v8668_v14  ;;  %v5169_v55 = vunpack.c.l.b16 %v5002_v5  ;;  %v5170_v31 = vunpack.c.h.b16 %v5002_v5 }
 0x2c1   :  { %4621 = vmatpush.bf16.msra.mxu3 %v8252_v20  ;;  %3933 = vmatmul.bf16.vlgmr.msra.gmra.mxu2 %v9297_v59  ;;  %v2990_v49 = vunpack.c.l.bf16 %v9311_v12 }
 0x2c2   :  { %v5081_v34 = vsub.f32 %v2205_v27, %v5041_v30  ;;  %v5082_v11 = vsub.f32 %v2863_v52, %v5042_v28  ;;  %v9303_v42 = vpack.c.b16 %v5169_v55, %v5164_v38  ;;  %v9305_v3 = vpack.c.b16 %v5170_v31, %v5165_v2 }
 0x2c3   :  { %v2756_v32 = vpop.f32.mrf.mxu2  ;;  %v2865_v14 = vpop.f32.mrf.mxu3  ;;  %v5269_v27 = vunpack.c.h.b16 %v5103_v47  ;;  %v3148_v38 = vunpack.c.l.b16 %v9289_v40  ;;  %v3267_v55 = vunpack.c.l.b16 %v3067_v26 }
 0x2c4   :  { %11147 = vst [vmem:[#allocation76_spill] sm:$0xff] %v9305_v3  ;;  %v5106_v20 = vpack.c.bf16 %v5082_v11, %v5081_v34  ;;  %v2866_v56 = vadd.f32 %v2865_v14, %v2756_v32  ;;  %6012 = vmatpush.bf16.msra.mxu1 %v8628_v57  ;;  %v2100_v9 = vpop.f32.mrf.mxu0  ;;  %v2209_v19 = vpop.f32.mrf.mxu1  ;;  %v3268_v57 = vunpack.c.l.b16 %v3068_v33  ;;  %v2989_v34 = vunpack.c.l.bf16 %v9309_v45  ;;  %v9324_v33 = vld [vmem:[#allocation9 + $0x8] sm:$0xff] }
 0x2c5   :  { %4622 = vmatpush.bf16.msra.mxu3 %v8215_v44  ;;  %v2210_v52 = vadd.f32 %v2209_v19, %v2100_v9  ;;  %v3186_v63 = vpack.c.b16 %v3148_v38, %v3147_v7  ;;  %v7402_v9 = vld [vmem:[#allocation6 + $0x30] sm:$0xff] }
 0x2c6   :  { %v5273_v5 = vunpack.c.l.b16 %v5106_v20  ;;  %v5274_v30 = vunpack.c.h.b16 %v5106_v20  ;;  %v5676_v28 = vpack.c.bf16 %v2866_v56, %v2208_v35  ;;  %v3306_v61 = vpack.c.b16 %v3268_v57, %v3267_v55  ;;  %v7403_v19 = vld [vmem:[#allocation7 + $0x30] sm:$0xff] }
 0x2c7   :  { %v3029_v20 = vsub.f32 %v2909_v4, %v2989_v34 }
 0x2c8   :  { %v5701_v21 = vunpack.c.l.bf16 %v5676_v28  ;;  %v5702_v18 = vunpack.c.h.bf16 %v5676_v28  ;;  %6013 = vmatpush.bf16.msra.mxu1 %v8582_v25  ;;  %v9316_v47 = vpack.c.b16 %v5273_v5, %v5268_v17  ;;  %v9318_v44 = vpack.c.b16 %v5274_v30, %v5269_v27  ;;  %v7404_v27 = vld [vmem:[#allocation6 + $0x38] sm:$0xff] }
 0x2c9   :  { %4623 = vmatpush.bf16.msra.mxu3 %v8180_v15  ;;  %v2911_v17 = vmul.f32 %v7403_v19, %v7402_v9  ;;  %v7405_v5 = vld [vmem:[#allocation7 + $0x38] sm:$0xff] }
 0x2ca   :  { %v5741_v2 = vsub.f32 %v2208_v35, %v5701_v21  ;;  %v5742_v31 = vsub.f32 %v2866_v56, %v5702_v18  ;;  %v3030_v56 = vsub.f32 %v2910_v54, %v2990_v49  ;;  %v2912_v30 = vmul.f32 %v7405_v5, %v7404_v27 }
 0x2cb   :  { %v2758_v11 = vpop.f32.mrf.mxu2  ;;  %v2867_v40 = vpop.f32.mrf.mxu3  ;;  %v5829_v54 = vunpack.c.l.b16 %v5676_v28  ;;  %v3069_v21 = vpack.c.bf16 %v3029_v20, %v3029_v20  ;;  %v9331_v34 = vpack.c.bf16 %v2911_v17, %v2911_v17 }
 0x2cc   :  { %v5780_v32 = vpack.c.bf16 %v5742_v31, %v5741_v2  ;;  %v2868_v14 = vadd.f32 %v2867_v40, %v2758_v11  ;;  %6014 = vmatpush.bf16.msra.mxu1 %v8508_v39  ;;  %v2103_v25 = vpop.f32.mrf.mxu0  ;;  %v2212_v26 = vpop.f32.mrf.mxu1  ;;  %v3070_v18 = vpack.c.bf16 %v3030_v56, %v3030_v56  ;;  %v9333_v49 = vpack.c.bf16 %v2912_v30, %v2912_v30 }
 0x2cd   :  { %4624 = vmatpush.bf16.msra.mxu3 %v8116_v41  ;;  %v2213_v15 = vadd.f32 %v2212_v26, %v2103_v25  ;;  %v5830_v41 = vunpack.c.h.b16 %v5676_v28  ;;  %v3150_v25 = vunpack.c.l.b16 %v9311_v12  ;;  %v3269_v19 = vunpack.c.l.b16 %v3069_v21  ;;  %v11154_v12 = vld [vmem:[#allocation22_spill] sm:$0xff] }
 0x2ce   :  { %v5679_v35 = vpack.c.bf16 %v2868_v14, %v2210_v52  ;;  %v5934_v26 = vunpack.c.h.b16 %v5780_v32  ;;  %v5933_v56 = vunpack.c.l.b16 %v5780_v32  ;;  %v3270_v27 = vunpack.c.l.b16 %v3070_v18 }
 0x2cf   :  { %3358 = vmatmul.bf16.gmra.mxu0 %v3186_v63  ;;  %3467 = vmatmul.bf16.gmra.mxu1 %v3306_v61  ;;  %v2991_v5 = vunpack.c.l.bf16 %v9331_v34 }
 0x2d0   :  { %v5706_v7 = vunpack.c.l.bf16 %v5679_v35  ;;  %v5707_v39 = vunpack.c.h.bf16 %v5679_v35  ;;  %3967 = vmatmul.bf16.gmra.mxu3 %v9324_v33  ;;  %6015 = vmatpush.bf16.msra.mxu1 %v8659_v58  ;;  %v5835_v4 = vunpack.c.h.b16 %v5679_v35  ;;  %v5834_v38 = vunpack.c.l.b16 %v5679_v35 }
 0x2d1   :  { %4625 = vmatpush.bf16.msra.mxu3 %v8232_v51  ;;  %3938 = vmatmul.bf16.gmra.mxu2 %v9324_v33  ;;  %v3307_v21 = vpack.c.b16 %v3270_v27, %v3269_v19 }
 0x2d2   :  { %v5746_v55 = vsub.f32 %v2210_v52, %v5706_v7  ;;  %v5747_v57 = vsub.f32 %v2868_v14, %v5707_v39  ;;  %v9335_v11 = vpack.c.b16 %v5835_v4, %v5830_v41  ;;  %v9337_v58 = vpack.c.b16 %v5834_v38, %v5829_v54  ;;  %v11150_v52 = vld [vmem:[#allocation25_spill] sm:$0xff] }
 0x2d3   :  { %v2761_v2 = vpop.f32.mrf.mxu2  ;;  %v2870_v31 = vpop.f32.mrf.mxu3  ;;  %v3149_v14 = vunpack.c.l.b16 %v9309_v45  ;;  %v11151_v41 = vld [vmem:[#allocation41_spill] sm:$0xff] }
 0x2d4   :  { %11148 = vst [vmem:[#allocation77_spill] sm:$0xff] %v9335_v11  ;;  %v5783_v51 = vpack.c.bf16 %v5747_v57, %v5746_v55  ;;  %v2871_v40 = vadd.f32 %v2870_v31, %v2761_v2  ;;  %6016 = vmatpush.bf16.msra.mxu1 %v8616_v36  ;;  %v2105_v28 = vpop.f32.mrf.mxu0  ;;  %v2214_v63 = vpop.f32.mrf.mxu1  ;;  %v2992_v36 = vunpack.c.l.bf16 %v9333_v49  ;;  %v11155_v31 = vld [vmem:[#allocation38_spill] sm:$0xff] }
 0x2d5   :  { %11149 = vst [vmem:[#allocation78_spill] sm:$0xff] %v9337_v58  ;;  %4626 = vmatpush.bf16.msra.mxu3 %v11150_v52  ;;  %v2215_v61 = vadd.f32 %v2214_v63, %v2105_v28  ;;  %v3187_v57 = vpack.c.b16 %v3150_v25, %v3149_v14  ;;  %v9352_v63 = vld [vmem:[#allocation9 + $0x10] sm:$0xff]  ;;  %v3031_v52 = vsub.f32 %v2911_v17, %v2991_v5  ;;  %v7406_v5 = vld [vmem:[#allocation6 + $0x40] sm:$0xff]  ;;  %v9373_v58 = vld [vmem:[#allocation9 + $0x18] sm:$0xff] }
 0x2d6   :  { %v5682_v35 = vpack.c.bf16 %v2871_v40, %v2213_v15  ;;  %v5939_v20 = vunpack.c.h.b16 %v5783_v51  ;;  %v5938_v9 = vunpack.c.l.b16 %v5783_v51 }
 0x2d7   :  { %v3071_v14 = vpack.c.bf16 %v3031_v52, %v3031_v52 }
 0x2d8   :  { %v5711_v7 = vunpack.c.l.bf16 %v5682_v35  ;;  %v5712_v39 = vunpack.c.h.bf16 %v5682_v35  ;;  %6017 = vmatpush.bf16.msra.mxu1 %v11151_v41  ;;  %v9346_v4 = vpack.c.b16 %v5939_v20, %v5934_v26  ;;  %v9348_v45 = vpack.c.b16 %v5938_v9, %v5933_v56  ;;  %v11156_v20 = vld [vmem:[#allocation19_spill] sm:$0xff] }
 0x2d9   :  { %4627 = vmatpush.bf16.msra.mxu3 %v11154_v12  ;;  %v3032_v26 = vsub.f32 %v2912_v30, %v2992_v36  ;;  %v5840_v19 = vunpack.c.h.b16 %v5682_v35  ;;  %v7407_v36 = vld [vmem:[#allocation7 + $0x40] sm:$0xff]  ;;  %v7408_v12 = vld [vmem:[#allocation6 + $0x48] sm:$0xff] }
 0x2da   :  { %11152 = vst [vmem:[#allocation25_spill] sm:$0xff] %v9346_v4  ;;  %v5751_v54 = vsub.f32 %v2213_v15, %v5711_v7  ;;  %v5752_v38 = vsub.f32 %v2871_v40, %v5712_v39  ;;  %v5839_v7 = vunpack.c.l.b16 %v5682_v35  ;;  %v2913_v41 = vmul.f32 %v7407_v36, %v7406_v5 }
 0x2db   :  { %11153 = vst [vmem:[#allocation41_spill] sm:$0xff] %v9348_v45  ;;  %v2763_v32 = vpop.f32.mrf.mxu2  ;;  %v2872_v55 = vpop.f32.mrf.mxu3  ;;  %v3072_v25 = vpack.c.bf16 %v3032_v26, %v3032_v26  ;;  %v3271_v26 = vunpack.c.l.b16 %v3071_v14 }
 0x2dc   :  { %v5786_v18 = vpack.c.bf16 %v5752_v38, %v5751_v54  ;;  %v2873_v2 = vadd.f32 %v2872_v55, %v2763_v32  ;;  %6018 = vmatpush.bf16.msra.mxu1 %v11155_v31  ;;  %v2108_v51 = vpop.f32.mrf.mxu0  ;;  %v2217_v28 = vpop.f32.mrf.mxu1  ;;  %v7409_v54 = vld [vmem:[#allocation7 + $0x48] sm:$0xff] }
 0x2dd   :  { %4628 = vmatpush.bf16.msra.mxu3 %v11156_v20  ;;  %v2218_v56 = vadd.f32 %v2217_v28, %v2108_v51  ;;  %v2914_v38 = vmul.f32 %v7409_v54, %v7408_v12 }
 0x2de   :  { %v5685_v9 = vpack.c.bf16 %v2873_v2, %v2215_v61 }
 0x2df   :  { %3363 = vmatmul.bf16.gmra.mxu0 %v3187_v57  ;;  %3472 = vmatmul.bf16.gmra.mxu1 %v3307_v21 }
 0x2e0   :  { %v5716_v15 = vunpack.c.l.bf16 %v5685_v9  ;;  %v5717_v40 = vunpack.c.h.bf16 %v5685_v9  ;;  %3972 = vmatmul.bf16.gmra.mxu3 %v9352_v63  ;;  %v5845_v27 = vunpack.c.h.b16 %v5685_v9  ;;  %v5844_v39 = vunpack.c.l.b16 %v5685_v9 }
 0x2e1   :  { %3943 = vmatmul.bf16.gmra.mxu2 %v9352_v63  ;;  %v3272_v9 = vunpack.c.l.b16 %v3072_v25 }
 0x2e2   :  { %v5756_v17 = vsub.f32 %v2215_v61, %v5716_v15  ;;  %v5757_v30 = vsub.f32 %v2873_v2, %v5717_v40  ;;  %v9357_v57 = vpack.c.b16 %v5845_v27, %v5840_v19  ;;  %v9359_v21 = vpack.c.b16 %v5844_v39, %v5839_v7 }
 0x2e3   :  { %v2766_v32 = vpop.f32.mrf.mxu2  ;;  %v2875_v55 = vpop.f32.mrf.mxu3  ;;  %v3151_v61 = vunpack.c.l.b16 %v9331_v34  ;;  %v3152_v2 = vunpack.c.l.b16 %v9333_v49  ;;  %v9363_v15 = vpack.c.bf16 %v2913_v41, %v2913_v41  ;;  %v9365_v40 = vpack.c.bf16 %v2914_v38, %v2914_v38 }
 0x2e4   :  { %11157 = vst [vmem:[#allocation22_spill] sm:$0xff] %v9357_v57  ;;  %v5789_v31 = vpack.c.bf16 %v5757_v30, %v5756_v17  ;;  %v2876_v51 = vadd.f32 %v2875_v55, %v2766_v32  ;;  %v2110_v28 = vpop.f32.mrf.mxu0  ;;  %v2219_v52 = vpop.f32.mrf.mxu1  ;;  %v5944_v19 = vunpack.c.h.b16 %v5786_v18  ;;  %v5943_v7 = vunpack.c.l.b16 %v5786_v18 }
 0x2e5   :  { %11158 = vst [vmem:[#allocation38_spill] sm:$0xff] %v9359_v21  ;;  %v2220_v35 = vadd.f32 %v2219_v52, %v2110_v28  ;;  %v2993_v49 = vunpack.c.l.bf16 %v9363_v15  ;;  %v3188_v54 = vpack.c.b16 %v3152_v2, %v3151_v61  ;;  %v3308_v32 = vpack.c.b16 %v3272_v9, %v3271_v26  ;;  %v7410_v2 = vld [vmem:[#allocation6 + $0x50] sm:$0xff] }
 0x2e6   :  { %v5688_v20 = vpack.c.bf16 %v2876_v51, %v2218_v56  ;;  %v5949_v27 = vunpack.c.h.b16 %v5789_v31  ;;  %v5948_v39 = vunpack.c.l.b16 %v5789_v31  ;;  %v2994_v55 = vunpack.c.l.bf16 %v9365_v40  ;;  %v7411_v26 = vld [vmem:[#allocation7 + $0x50] sm:$0xff] }
 0x2e7   :  { %v2915_v9 = vmul.f32 %v7411_v26, %v7410_v2 }
 0x2e8   :  { %v5721_v17 = vunpack.c.l.bf16 %v5688_v20  ;;  %v5722_v30 = vunpack.c.h.bf16 %v5688_v20  ;;  %v9367_v5 = vpack.c.b16 %v5949_v27, %v5944_v19  ;;  %v9369_v36 = vpack.c.b16 %v5948_v39, %v5943_v7 }
 0x2e9   :  { %v3033_v7 = vsub.f32 %v2913_v41, %v2993_v49  ;;  %v5850_v61 = vunpack.c.h.b16 %v5688_v20 }
 0x2ea   :  { %11159 = vst [vmem:[#allocation19_spill] sm:$0xff] %v9367_v5  ;;  %v5761_v34 = vsub.f32 %v2218_v56, %v5721_v17  ;;  %v5762_v12 = vsub.f32 %v2876_v51, %v5722_v30  ;;  %v3034_v56 = vsub.f32 %v2914_v38, %v2994_v55  ;;  %v5849_v30 = vunpack.c.l.b16 %v5688_v20  ;;  %v7412_v38 = vld [vmem:[#allocation6 + $0x58] sm:$0xff] }
 0x2eb   :  { %11160 = vst [vmem:[#allocation79_spill] sm:$0xff] %v9369_v36  ;;  %v2768_v14 = vpop.f32.mrf.mxu2  ;;  %v2877_v25 = vpop.f32.mrf.mxu3  ;;  %v3153_v20 = vunpack.c.l.b16 %v9363_v15 }
 0x2ec   :  { %v5792_v28 = vpack.c.bf16 %v5762_v12, %v5761_v34  ;;  %v2878_v52 = vadd.f32 %v2877_v25, %v2768_v14  ;;  %v2113_v18 = vpop.f32.mrf.mxu0  ;;  %v2222_v31 = vpop.f32.mrf.mxu1  ;;  %v3073_v25 = vpack.c.bf16 %v3033_v7, %v3033_v7 }
 0x2ed   :  { %v2223_v19 = vadd.f32 %v2222_v31, %v2113_v18 }
 0x2ee   :  { %v5691_v27 = vpack.c.bf16 %v2878_v52, %v2220_v35 }
 0x2ef   :  { %3368 = vmatmul.bf16.gmra.mxu0 %v3188_v54  ;;  %3477 = vmatmul.bf16.gmra.mxu1 %v3308_v32  ;;  %v3074_v54 = vpack.c.bf16 %v3034_v56, %v3034_v56  ;;  %v7413_v32 = vld [vmem:[#allocation7 + $0x58] sm:$0xff]  ;;  %v5953_v56 = vunpack.c.l.b16 %v5792_v28 }
 0x2f0   :  { %v5726_v51 = vunpack.c.l.bf16 %v5691_v27  ;;  %v5727_v39 = vunpack.c.h.bf16 %v5691_v27  ;;  %3977 = vmatmul.bf16.gmra.mxu3 %v9373_v58  ;;  %v5855_v17 = vunpack.c.h.b16 %v5691_v27  ;;  %v5854_v34 = vunpack.c.l.b16 %v5691_v27 }
 0x2f1   :  { %3948 = vmatmul.bf16.gmra.mxu2 %v9373_v58  ;;  %v2916_v55 = vmul.f32 %v7413_v32, %v7412_v38 }
 0x2f2   :  { %v5766_v12 = vsub.f32 %v2220_v35, %v5726_v51  ;;  %v5767_v14 = vsub.f32 %v2878_v52, %v5727_v39  ;;  %v9377_v18 = vpack.c.b16 %v5855_v17, %v5850_v61  ;;  %v9379_v31 = vpack.c.b16 %v5854_v34, %v5849_v30 }
 0x2f3   :  { %v2771_v41 = vpop.f32.mrf.mxu2  ;;  %v2880_v49 = vpop.f32.mrf.mxu3  ;;  %v9382_v35 = vpack.c.bf16 %v2915_v9, %v2915_v9  ;;  %v5954_v52 = vunpack.c.h.b16 %v5792_v28  ;;  %v3154_v39 = vunpack.c.l.b16 %v9365_v40  ;;  %v3273_v61 = vunpack.c.l.b16 %v3073_v25 }
 0x2f4   :  { %11161 = vst [vmem:[#allocation80_spill] sm:$0xff] %v9377_v18  ;;  %v5795_v11 = vpack.c.bf16 %v5767_v14, %v5766_v12  ;;  %v2881_v2 = vadd.f32 %v2880_v49, %v2771_v41  ;;  %v2115_v26 = vpop.f32.mrf.mxu0  ;;  %v2224_v21 = vpop.f32.mrf.mxu1  ;;  %v3274_v17 = vunpack.c.l.b16 %v3074_v54  ;;  %v9385_v30 = vpack.c.bf16 %v2916_v55, %v2916_v55 }
 0x2f5   :  { %11162 = vst [vmem:[#allocation81_spill] sm:$0xff] %v9379_v31  ;;  %v2225_v57 = vadd.f32 %v2224_v21, %v2115_v26  ;;  %v2995_v49 = vunpack.c.l.bf16 %v9382_v35  ;;  %v3189_v28 = vpack.c.b16 %v3154_v39, %v3153_v20 }
 0x2f6   :  { %v5694_v27 = vpack.c.bf16 %v2881_v2, %v2223_v19  ;;  %v5959_v7 = vunpack.c.h.b16 %v5795_v11  ;;  %v5958_v51 = vunpack.c.l.b16 %v5795_v11  ;;  %v3309_v11 = vpack.c.b16 %v3274_v17, %v3273_v61 }
 0x2f7   :  { %v2996_v40 = vunpack.c.l.bf16 %v9385_v30 }
 0x2f8   :  { %v5731_v34 = vunpack.c.l.bf16 %v5694_v27  ;;  %v5732_v12 = vunpack.c.h.bf16 %v5694_v27  ;;  %v9387_v14 = vpack.c.b16 %v5959_v7, %v5954_v52  ;;  %v9389_v21 = vpack.c.b16 %v5958_v51, %v5953_v56 }
 0x2f9   :  { %v3035_v52 = vsub.f32 %v2915_v9, %v2995_v49  ;;  %v3036_v7 = vsub.f32 %v2916_v55, %v2996_v40  ;;  %v5860_v56 = vunpack.c.h.b16 %v5694_v27  ;;  %v5859_v20 = vunpack.c.l.b16 %v5694_v27 }
 0x2fa   :  { %11163 = vst [vmem:[#allocation82_spill] sm:$0xff] %v9387_v14  ;;  %v5771_v15 = vsub.f32 %v2223_v19, %v5731_v34  ;;  %v5772_v41 = vsub.f32 %v2881_v2, %v5732_v12 }
 0x2fb   :  { %11164 = vst [vmem:[#allocation83_spill] sm:$0xff] %v9389_v21  ;;  %v2773_v38 = vpop.f32.mrf.mxu2  ;;  %v2882_v32 = vpop.f32.mrf.mxu3  ;;  %v3076_v55 = vpack.c.bf16 %v3036_v7, %v3036_v7 }
 0x2fc   :  { %v5798_v25 = vpack.c.bf16 %v5772_v41, %v5771_v15  ;;  %v2883_v54 = vadd.f32 %v2882_v32, %v2773_v38  ;;  %v2118_v26 = vpop.f32.mrf.mxu0  ;;  %v2227_v31 = vpop.f32.mrf.mxu1  ;;  %v7414_v15 = vld [vmem:[#allocation6 + $0x60] sm:$0xff]  ;;  %v7416_v38 = vld [vmem:[#allocation6 + $0x68] sm:$0xff] }
 0x2fd   :  { %v2228_v18 = vadd.f32 %v2227_v31, %v2118_v26  ;;  %v3075_v31 = vpack.c.bf16 %v3035_v52, %v3035_v52  ;;  %v7415_v41 = vld [vmem:[#allocation7 + $0x60] sm:$0xff]  ;;  %v7417_v32 = vld [vmem:[#allocation7 + $0x68] sm:$0xff]  ;;  %v3155_v26 = vunpack.c.l.b16 %v9382_v35  ;;  %v3156_v52 = vunpack.c.l.b16 %v9385_v30 }
 0x2fe   :  { %v5697_v45 = vpack.c.bf16 %v2883_v54, %v2225_v57  ;;  %v2917_v49 = vmul.f32 %v7415_v41, %v7414_v15  ;;  %v5964_v7 = vunpack.c.h.b16 %v5798_v25  ;;  %v3276_v15 = vunpack.c.l.b16 %v3076_v55 }
 0x2ff   :  { %3373 = vmatmul.bf16.gmra.mxu0 %v3189_v28  ;;  %3482 = vmatmul.bf16.gmra.mxu1 %v3309_v11  ;;  %v2918_v28 = vmul.f32 %v7417_v32, %v7416_v38  ;;  %v3190_v41 = vpack.c.b16 %v3156_v52, %v3155_v26 }
 0x300   :  { %v5736_v19 = vunpack.c.l.bf16 %v5697_v45  ;;  %v5737_v2 = vunpack.c.h.bf16 %v5697_v45  ;;  %4020 = vmatmul.bf16.vlgmr.msrb.gmra.mxu3 %v9297_v59  ;;  %v5865_v51 = vunpack.c.h.b16 %v5697_v45  ;;  %v5864_v39 = vunpack.c.l.b16 %v5697_v45 }
 0x301   :  { %4679 = vmatpush.bf16.msrb.mxu3 %v9211_v23  ;;  %3991 = vmatmul.bf16.vlgmr.msrb.gmra.mxu2 %v9297_v59 }
 0x302   :  { %v5776_v61 = vsub.f32 %v2225_v57, %v5736_v19  ;;  %v5777_v17 = vsub.f32 %v2883_v54, %v5737_v2  ;;  %v9396_v34 = vpack.c.b16 %v5865_v51, %v5860_v56  ;;  %v9398_v11 = vpack.c.b16 %v5864_v39, %v5859_v20 }
 0x303   :  { %v2776_v9 = vpop.f32.mrf.mxu2  ;;  %v2885_v12 = vpop.f32.mrf.mxu3  ;;  %v5963_v57 = vunpack.c.l.b16 %v5798_v25  ;;  %v3275_v51 = vunpack.c.l.b16 %v3075_v31  ;;  %v9403_v20 = vpack.c.bf16 %v2917_v49, %v2917_v49  ;;  %v9405_v39 = vpack.c.bf16 %v2918_v28, %v2918_v28 }
 0x304   :  { %11165 = vst [vmem:[#allocation84_spill] sm:$0xff] %v9396_v34  ;;  %v5801_v23 = vpack.c.bf16 %v5777_v17, %v5776_v61  ;;  %v2886_v40 = vadd.f32 %v2885_v12, %v2776_v9  ;;  %v2120_v27 = vpop.f32.mrf.mxu0  ;;  %v2229_v45 = vpop.f32.mrf.mxu1 }
 0x305   :  { %11166 = vst [vmem:[#allocation85_spill] sm:$0xff] %v9398_v11  ;;  %4680 = vmatpush.bf16.msrb.mxu3 %v9182_v62  ;;  %v2230_v54 = vadd.f32 %v2229_v45, %v2120_v27  ;;  %v3310_v38 = vpack.c.b16 %v3276_v15, %v3275_v51  ;;  %v2997_v31 = vunpack.c.l.bf16 %v9403_v20  ;;  %v2998_v55 = vunpack.c.l.bf16 %v9405_v39  ;;  %v7419_v51 = vld [vmem:[#allocation7 + $0x70] sm:$0xff] }
 0x306   :  { %v5968_v19 = vunpack.c.l.b16 %v5801_v23  ;;  %v5969_v2 = vunpack.c.h.b16 %v5801_v23  ;;  %v6371_v56 = vpack.c.bf16 %v2886_v40, %v2228_v18 }
 0x308   :  { %v6396_v61 = vunpack.c.l.bf16 %v6371_v56  ;;  %v6397_v17 = vunpack.c.h.bf16 %v6371_v56  ;;  %v9407_v9 = vpack.c.b16 %v5969_v2, %v5964_v7  ;;  %v9409_v62 = vpack.c.b16 %v5968_v19, %v5963_v57  ;;  %v7418_v2 = vld [vmem:[#allocation6 + $0x70] sm:$0xff] }
 0x309   :  { %4681 = vmatpush.bf16.msrb.mxu3 %v9147_v29  ;;  %v3037_v29 = vsub.f32 %v2917_v49, %v2997_v31  ;;  %v6524_v26 = vunpack.c.l.b16 %v6371_v56  ;;  %v6525_v52 = vunpack.c.h.b16 %v6371_v56  ;;  %v2919_v15 = vmul.f32 %v7419_v51, %v7418_v2 }
 0x30a   :  { %11167 = vst [vmem:[#allocation86_spill] sm:$0xff] %v9407_v9  ;;  %v6436_v35 = vsub.f32 %v2228_v18, %v6396_v61  ;;  %v6437_v30 = vsub.f32 %v2886_v40, %v6397_v17  ;;  %v3038_v18 = vsub.f32 %v2918_v28, %v2998_v55  ;;  %v7420_v61 = vld [vmem:[#allocation6 + $0x78] sm:$0xff]  ;;  %v3157_v51 = vunpack.c.l.b16 %v9403_v20 }
 0x30b   :  { %11168 = vst [vmem:[#allocation87_spill] sm:$0xff] %v9409_v62  ;;  %v2778_v25 = vpop.f32.mrf.mxu2  ;;  %v2887_v12 = vpop.f32.mrf.mxu3  ;;  %v7421_v17 = vld [vmem:[#allocation7 + $0x78] sm:$0xff] }
 0x30c   :  { %v6475_v32 = vpack.c.bf16 %v6437_v30, %v6436_v35  ;;  %v2888_v23 = vadd.f32 %v2887_v12, %v2778_v25  ;;  %v2123_v27 = vpop.f32.mrf.mxu0  ;;  %v2232_v45 = vpop.f32.mrf.mxu1 }
 0x30d   :  { %4682 = vmatpush.bf16.msrb.mxu3 %v9083_v13  ;;  %v2233_v57 = vadd.f32 %v2232_v45, %v2123_v27  ;;  %v2920_v13 = vmul.f32 %v7421_v17, %v7420_v61 }
 0x30e   :  { %v6374_v7 = vpack.c.bf16 %v2888_v23, %v2230_v54  ;;  %v6629_v61 = vunpack.c.h.b16 %v6475_v32 }
 0x30f   :  { %3378 = vmatmul.bf16.gmra.mxu0 %v3190_v41  ;;  %3487 = vmatmul.bf16.gmra.mxu1 %v3310_v38  ;;  %v3077_v41 = vpack.c.bf16 %v3037_v29, %v3037_v29  ;;  %v3078_v38 = vpack.c.bf16 %v3038_v18, %v3038_v18  ;;  %v6628_v29 = vunpack.c.l.b16 %v6475_v32 }
 0x310   :  { %v6401_v40 = vunpack.c.l.bf16 %v6374_v7  ;;  %v6402_v19 = vunpack.c.h.bf16 %v6374_v7  ;;  %4025 = vmatmul.bf16.gmra.mxu3 %v9324_v33  ;;  %v6529_v35 = vunpack.c.l.b16 %v6374_v7  ;;  %v6530_v30 = vunpack.c.h.b16 %v6374_v7 }
 0x311   :  { %4683 = vmatpush.bf16.msrb.mxu3 %v9195_v48  ;;  %3996 = vmatmul.bf16.gmra.mxu2 %v9324_v33  ;;  %v9424_v7 = vpack.c.bf16 %v2919_v15, %v2919_v15 }
 0x312   :  { %v6441_v49 = vsub.f32 %v2230_v54, %v6401_v40  ;;  %v6442_v28 = vsub.f32 %v2888_v23, %v6402_v19  ;;  %v9418_v31 = vpack.c.b16 %v6529_v35, %v6524_v26  ;;  %v9420_v56 = vpack.c.b16 %v6530_v30, %v6525_v52 }
 0x313   :  { %v2781_v25 = vpop.f32.mrf.mxu2  ;;  %v2890_v12 = vpop.f32.mrf.mxu3  ;;  %v9426_v54 = vpack.c.bf16 %v2920_v13, %v2920_v13  ;;  %v3158_v19 = vunpack.c.l.b16 %v9405_v39  ;;  %v3277_v26 = vunpack.c.l.b16 %v3077_v41  ;;  %v3278_v52 = vunpack.c.l.b16 %v3078_v38 }
 0x314   :  { %11169 = vst [vmem:[#allocation88_spill] sm:$0xff] %v9418_v31  ;;  %v6478_v48 = vpack.c.bf16 %v6442_v28, %v6441_v49  ;;  %v2891_v55 = vadd.f32 %v2890_v12, %v2781_v25  ;;  %v2125_v27 = vpop.f32.mrf.mxu0  ;;  %v2234_v45 = vpop.f32.mrf.mxu1  ;;  %v2999_v28 = vunpack.c.l.bf16 %v9424_v7 }
 0x315   :  { %11170 = vst [vmem:[#allocation89_spill] sm:$0xff] %v9420_v56  ;;  %4684 = vmatpush.bf16.msrb.mxu3 %v9161_v46  ;;  %v2235_v2 = vadd.f32 %v2234_v45, %v2125_v27  ;;  %v3000_v25 = vunpack.c.l.bf16 %v9426_v54  ;;  %v3191_v39 = vpack.c.b16 %v3158_v19, %v3157_v51  ;;  %v3311_v41 = vpack.c.b16 %v3278_v52, %v3277_v26  ;;  %v7424_v56 = vld [vmem:[#allocation6 + $0x88] sm:$0xff] }
 0x316   :  { %v6377_v23 = vpack.c.bf16 %v2891_v55, %v2233_v57  ;;  %v6633_v18 = vunpack.c.l.b16 %v6478_v48  ;;  %v6634_v40 = vunpack.c.h.b16 %v6478_v48  ;;  %v7425_v51 = vld [vmem:[#allocation7 + $0x88] sm:$0xff] }
 0x317   :  { %v2922_v19 = vmul.f32 %v7425_v51, %v7424_v56 }
 0x318   :  { %v6406_v17 = vunpack.c.l.bf16 %v6377_v23  ;;  %v6407_v35 = vunpack.c.h.bf16 %v6377_v23  ;;  %v9429_v30 = vpack.c.b16 %v6633_v18, %v6628_v29  ;;  %v9432_v46 = vpack.c.b16 %v6634_v40, %v6629_v61  ;;  %v7422_v61 = vld [vmem:[#allocation6 + $0x80] sm:$0xff] }
 0x319   :  { %4685 = vmatpush.bf16.msrb.mxu3 %v9122_v10  ;;  %v3039_v18 = vsub.f32 %v2919_v15, %v2999_v28  ;;  %v3040_v40 = vsub.f32 %v2920_v13, %v3000_v25  ;;  %v6534_v26 = vunpack.c.l.b16 %v6377_v23  ;;  %v6535_v52 = vunpack.c.h.b16 %v6377_v23 }
 0x31a   :  { %11171 = vst [vmem:[#allocation90_spill] sm:$0xff] %v9429_v30  ;;  %v6446_v20 = vsub.f32 %v2233_v57, %v6406_v17  ;;  %v6447_v49 = vsub.f32 %v2891_v55, %v6407_v35  ;;  %v7423_v17 = vld [vmem:[#allocation7 + $0x80] sm:$0xff] }
 0x31b   :  { %11172 = vst [vmem:[#allocation91_spill] sm:$0xff] %v9432_v46  ;;  %v2783_v12 = vpop.f32.mrf.mxu2  ;;  %v2892_v48 = vpop.f32.mrf.mxu3  ;;  %v2921_v35 = vmul.f32 %v7423_v17, %v7422_v61  ;;  %v3080_v28 = vpack.c.bf16 %v3040_v40, %v3040_v40  ;;  %v9445_v17 = vpack.c.bf16 %v2922_v19, %v2922_v19 }
 0x31c   :  { %v6481_v38 = vpack.c.bf16 %v6447_v49, %v6446_v20  ;;  %v2893_v32 = vadd.f32 %v2892_v48, %v2783_v12  ;;  %v2128_v27 = vpop.f32.mrf.mxu0  ;;  %v2237_v45 = vpop.f32.mrf.mxu1  ;;  %v3079_v49 = vpack.c.bf16 %v3039_v18, %v3039_v18 }
 0x31d   :  { %4686 = vmatpush.bf16.msrb.mxu3 %v9049_v0  ;;  %v2238_v29 = vadd.f32 %v2237_v45, %v2128_v27  ;;  %v9443_v61 = vpack.c.bf16 %v2921_v35, %v2921_v35  ;;  %v3280_v40 = vunpack.c.l.b16 %v3080_v28 }
 0x31e   :  { %v6380_v10 = vpack.c.bf16 %v2893_v32, %v2235_v2  ;;  %v3279_v18 = vunpack.c.l.b16 %v3079_v49  ;;  %v6639_v51 = vunpack.c.h.b16 %v6481_v38 }
 0x31f   :  { %3383 = vmatmul.bf16.gmra.mxu0 %v3191_v39  ;;  %3492 = vmatmul.bf16.gmra.mxu1 %v3311_v41 }
 0x320   :  { %v6411_v57 = vunpack.c.l.bf16 %v6380_v10  ;;  %v6412_v55 = vunpack.c.h.bf16 %v6380_v10  ;;  %4030 = vmatmul.bf16.gmra.mxu3 %v9352_v63  ;;  %v6539_v0 = vunpack.c.l.b16 %v6380_v10  ;;  %v6540_v20 = vunpack.c.h.b16 %v6380_v10 }
 0x321   :  { %4001 = vmatmul.bf16.gmra.mxu2 %v9352_v63  ;;  %v3160_v10 = vunpack.c.l.b16 %v9426_v54  ;;  %v3312_v28 = vpack.c.b16 %v3280_v40, %v3279_v18 }
 0x322   :  { %v6451_v15 = vsub.f32 %v2235_v2, %v6411_v57  ;;  %v6452_v13 = vsub.f32 %v2893_v32, %v6412_v55  ;;  %v9439_v48 = vpack.c.b16 %v6539_v0, %v6534_v26  ;;  %v9441_v39 = vpack.c.b16 %v6540_v20, %v6535_v52 }
 0x323   :  { %v2786_v25 = vpop.f32.mrf.mxu2  ;;  %v2895_v12 = vpop.f32.mrf.mxu3  ;;  %v3159_v2 = vunpack.c.l.b16 %v9424_v7  ;;  %v6638_v57 = vunpack.c.l.b16 %v6481_v38  ;;  %v3001_v20 = vunpack.c.l.bf16 %v9443_v61 }
 0x324   :  { %11173 = vst [vmem:[#allocation92_spill] sm:$0xff] %v9439_v48  ;;  %v6484_v41 = vpack.c.bf16 %v6452_v13, %v6451_v15  ;;  %v2896_v56 = vadd.f32 %v2895_v12, %v2786_v25  ;;  %v2130_v27 = vpop.f32.mrf.mxu0  ;;  %v2239_v45 = vpop.f32.mrf.mxu1  ;;  %v3002_v15 = vunpack.c.l.bf16 %v9445_v17 }
 0x325   :  { %11174 = vst [vmem:[#allocation93_spill] sm:$0xff] %v9441_v39  ;;  %v2240_v23 = vadd.f32 %v2239_v45, %v2130_v27  ;;  %v3192_v49 = vpack.c.b16 %v3160_v10, %v3159_v2  ;;  %v3041_v46 = vsub.f32 %v2921_v35, %v3001_v20  ;;  %v7426_v35 = vld [vmem:[#allocation6 + $0x90] sm:$0xff]  ;;  %v7429_v20 = vld [vmem:[#allocation7 + $0x98] sm:$0xff] }
 0x326   :  { %v6383_v32 = vpack.c.bf16 %v2896_v56, %v2238_v29  ;;  %v6643_v55 = vunpack.c.l.b16 %v6484_v41  ;;  %v6644_v26 = vunpack.c.h.b16 %v6484_v41  ;;  %v3042_v31 = vsub.f32 %v2922_v19, %v3002_v15  ;;  %v7427_v19 = vld [vmem:[#allocation7 + $0x90] sm:$0xff] }
 0x328   :  { %v6416_v0 = vunpack.c.l.bf16 %v6383_v32  ;;  %v6417_v52 = vunpack.c.h.bf16 %v6383_v32  ;;  %v9451_v13 = vpack.c.b16 %v6643_v55, %v6638_v57  ;;  %v9453_v25 = vpack.c.b16 %v6644_v26, %v6639_v51 }
 0x329   :  { %v3081_v51 = vpack.c.bf16 %v3041_v46, %v3041_v46  ;;  %v3082_v26 = vpack.c.bf16 %v3042_v31, %v3042_v31  ;;  %v6545_v2 = vunpack.c.h.b16 %v6383_v32 }
 0x32a   :  { %11175 = vst [vmem:[#allocation94_spill] sm:$0xff] %v9451_v13  ;;  %v6456_v7 = vsub.f32 %v2238_v29, %v6416_v0  ;;  %v6457_v12 = vsub.f32 %v2896_v56, %v6417_v52  ;;  %v6544_v29 = vunpack.c.l.b16 %v6383_v32  ;;  %v2923_v0 = vmul.f32 %v7427_v19, %v7426_v35  ;;  %v7428_v52 = vld [vmem:[#allocation6 + $0x98] sm:$0xff] }
 0x32b   :  { %11176 = vst [vmem:[#allocation95_spill] sm:$0xff] %v9453_v25  ;;  %v2788_v27 = vpop.f32.mrf.mxu2  ;;  %v2897_v54 = vpop.f32.mrf.mxu3  ;;  %v2924_v15 = vmul.f32 %v7429_v20, %v7428_v52 }
 0x32c   :  { %v6487_v45 = vpack.c.bf16 %v6457_v12, %v6456_v7  ;;  %v2898_v39 = vadd.f32 %v2897_v54, %v2788_v27  ;;  %v2133_v38 = vpop.f32.mrf.mxu0  ;;  %v2242_v41 = vpop.f32.mrf.mxu1 }
 0x32d   :  { %v2243_v48 = vadd.f32 %v2242_v41, %v2133_v38  ;;  %v3282_v41 = vunpack.c.l.b16 %v3082_v26 }
 0x32e   :  { %v6386_v30 = vpack.c.bf16 %v2898_v39, %v2240_v23 }
 0x32f   :  { %3388 = vmatmul.bf16.gmra.mxu0 %v3192_v49  ;;  %3497 = vmatmul.bf16.gmra.mxu1 %v3312_v28 }
 0x330   :  { %v6421_v57 = vunpack.c.l.bf16 %v6386_v30  ;;  %v6422_v55 = vunpack.c.h.bf16 %v6386_v30  ;;  %4035 = vmatmul.bf16.gmra.mxu3 %v9373_v58  ;;  %v6549_v56 = vunpack.c.l.b16 %v6386_v30  ;;  %v6550_v10 = vunpack.c.h.b16 %v6386_v30 }
 0x331   :  { %4006 = vmatmul.bf16.gmra.mxu2 %v9373_v58  ;;  %v3161_v30 = vunpack.c.l.b16 %v9443_v61 }
 0x332   :  { %v6461_v18 = vsub.f32 %v2240_v23, %v6421_v57  ;;  %v6462_v40 = vsub.f32 %v2898_v39, %v6422_v55  ;;  %v9457_v46 = vpack.c.b16 %v6549_v56, %v6544_v29  ;;  %v9459_v31 = vpack.c.b16 %v6550_v10, %v6545_v2 }
 0x333   :  { %v2791_v7 = vpop.f32.mrf.mxu2  ;;  %v2900_v12 = vpop.f32.mrf.mxu3  ;;  %v3162_v39 = vunpack.c.l.b16 %v9445_v17  ;;  %v3281_v23 = vunpack.c.l.b16 %v3081_v51  ;;  %v9463_v57 = vpack.c.bf16 %v2923_v0, %v2923_v0  ;;  %v9465_v55 = vpack.c.bf16 %v2924_v15, %v2924_v15 }
 0x334   :  { %11177 = vst [vmem:[#allocation96_spill] sm:$0xff] %v9457_v46  ;;  %v6490_v27 = vpack.c.bf16 %v6462_v40, %v6461_v18  ;;  %v2901_v54 = vadd.f32 %v2900_v12, %v2791_v7  ;;  %v2135_v49 = vpop.f32.mrf.mxu0  ;;  %v2244_v28 = vpop.f32.mrf.mxu1  ;;  %v6648_v29 = vunpack.c.l.b16 %v6487_v45  ;;  %v6649_v2 = vunpack.c.h.b16 %v6487_v45 }
 0x335   :  { %11178 = vst [vmem:[#allocation97_spill] sm:$0xff] %v9459_v31  ;;  %v2245_v32 = vadd.f32 %v2244_v28, %v2135_v49  ;;  %v3193_v20 = vpack.c.b16 %v3162_v39, %v3161_v30  ;;  %v3313_v26 = vpack.c.b16 %v3282_v41, %v3281_v23  ;;  %v3003_v7 = vunpack.c.l.bf16 %v9463_v57 }
 0x336   :  { %v6389_v38 = vpack.c.bf16 %v2901_v54, %v2243_v48  ;;  %v6653_v56 = vunpack.c.l.b16 %v6490_v27  ;;  %v6654_v10 = vunpack.c.h.b16 %v6490_v27  ;;  %v3004_v12 = vunpack.c.l.bf16 %v9465_v55 }
 0x338   :  { %v6426_v18 = vunpack.c.l.bf16 %v6389_v38  ;;  %v6427_v40 = vunpack.c.h.bf16 %v6389_v38  ;;  %v9467_v35 = vpack.c.b16 %v6653_v56, %v6648_v29  ;;  %v9469_v19 = vpack.c.b16 %v6654_v10, %v6649_v2 }
 0x339   :  { %v3043_v56 = vsub.f32 %v2923_v0, %v3003_v7  ;;  %v6554_v30 = vunpack.c.l.b16 %v6389_v38  ;;  %v6555_v23 = vunpack.c.h.b16 %v6389_v38  ;;  %v7433_v0 = vld [vmem:[#allocation7 + $0xa8] sm:$0xff] }
 0x33a   :  { %11179 = vst [vmem:[#allocation98_spill] sm:$0xff] %v9467_v35  ;;  %v6466_v61 = vsub.f32 %v2243_v48, %v6426_v18  ;;  %v6467_v52 = vsub.f32 %v2901_v54, %v6427_v40  ;;  %v3044_v48 = vsub.f32 %v2924_v15, %v3004_v12  ;;  %v7430_v40 = vld [vmem:[#allocation6 + $0xa0] sm:$0xff]  ;;  %v7440_v35 = vld [vmem:[#allocation6 + $0xc8] sm:$0xff] }
 0x33b   :  { %11180 = vst [vmem:[#allocation99_spill] sm:$0xff] %v9469_v19  ;;  %v2793_v17 = vpop.f32.mrf.mxu2  ;;  %v2902_v51 = vpop.f32.mrf.mxu3 }
 0x33c   :  { %v6493_v49 = vpack.c.bf16 %v6467_v52, %v6466_v61  ;;  %v2903_v28 = vadd.f32 %v2902_v51, %v2793_v17  ;;  %v3354_v45 = vpop.f32.mrf.mxu0  ;;  %v3463_v27 = vpop.f32.mrf.mxu1  ;;  %v7431_v61 = vld [vmem:[#allocation7 + $0xa0] sm:$0xff]  ;;  %v3083_v51 = vpack.c.bf16 %v3043_v56, %v3043_v56 }
 0x33d   :  { %v9473_v31 = vadd.f32 %v3463_v27, %v3354_v45  ;;  %v2925_v52 = vmul.f32 %v7431_v61, %v7430_v40 }
 0x33e   :  { %v6392_v29 = vpack.c.bf16 %v2903_v28, %v2245_v32 }
 0x33f   :  { %3393 = vmatmul.bf16.gmra.mxu0 %v3193_v20  ;;  %3502 = vmatmul.bf16.gmra.mxu1 %v3313_v26  ;;  %v3084_v20 = vpack.c.bf16 %v3044_v48, %v3044_v48  ;;  %v7432_v26 = vld [vmem:[#allocation6 + $0xa8] sm:$0xff]  ;;  %v2965_v56 = vpack.c.bf16 %v2925_v52, %v2925_v52  ;;  %v3164_v48 = vunpack.c.l.b16 %v9465_v55 }
 0x340   :  { %v6431_v54 = vunpack.c.l.bf16 %v6392_v29  ;;  %v6432_v2 = vunpack.c.h.bf16 %v6392_v29  ;;  %4629 = vmatmul.bf16.vlgmr.msra.gmra.mxu3 %v9297_v59  ;;  %v6559_v39 = vunpack.c.l.b16 %v6392_v29  ;;  %v6560_v41 = vunpack.c.h.b16 %v6392_v29 }
 0x341   :  { %v2926_v15 = vmul.f32 %v7433_v0, %v7432_v26  ;;  %v6659_v29 = vunpack.c.h.b16 %v6493_v49 }
 0x342   :  { %v6471_v10 = vsub.f32 %v2245_v32, %v6431_v54  ;;  %v6472_v18 = vsub.f32 %v2903_v28, %v6432_v2  ;;  %v9476_v17 = vpack.c.b16 %v6559_v39, %v6554_v30  ;;  %v9478_v12 = vpack.c.b16 %v6560_v41, %v6555_v23 }
 0x343   :  { %v3963_v7 = vpop.f32.mrf.mxu3  ;;  %v6658_v32 = vunpack.c.l.b16 %v6493_v49  ;;  %v3163_v28 = vunpack.c.l.b16 %v9463_v57  ;;  %v3283_v30 = vunpack.c.l.b16 %v3083_v51  ;;  %v3284_v39 = vunpack.c.l.b16 %v3084_v20 }
 0x344   :  { %11181 = vst [vmem:[#allocation100_spill] sm:$0xff] %v9476_v17  ;;  %v6496_v59 = vpack.c.bf16 %v6472_v18, %v6471_v10  ;;  %v9480_v45 = vpop.f32.mrf.mxu0  ;;  %v9482_v38 = vpop.f32.mrf.mxu1  ;;  %v2966_v40 = vpack.c.bf16 %v2926_v15, %v2926_v15  ;;  %v3005_v10 = vunpack.c.l.bf16 %v2965_v56  ;;  %v7439_v17 = vld [vmem:[#allocation7 + $0xc0] sm:$0xff] }
 0x345   :  { %11182 = vst [vmem:[#allocation101_spill] sm:$0xff] %v9478_v12  ;;  %v3934_v27 = vpop.f32.mrf.mxu2  ;;  %v3194_v18 = vpack.c.b16 %v3164_v48, %v3163_v28  ;;  %v3314_v61 = vpack.c.b16 %v3284_v39, %v3283_v30  ;;  %v7435_v28 = vld [vmem:[#allocation7 + $0xb0] sm:$0xff]  ;;  %v7437_v48 = vld [vmem:[#allocation7 + $0xb8] sm:$0xff] }
 0x346   :  { %v6663_v54 = vunpack.c.l.b16 %v6496_v59  ;;  %v6664_v2 = vunpack.c.h.b16 %v6496_v59  ;;  %v3006_v26 = vunpack.c.l.bf16 %v2966_v40  ;;  %v3045_v55 = vsub.f32 %v2925_v52, %v3005_v10 }
 0x347   :  { %v3165_v52 = vunpack.c.l.b16 %v2965_v56  ;;  %v3166_v10 = vunpack.c.l.b16 %v2966_v40 }
 0x348   :  { %v9486_v23 = vpack.c.b16 %v6663_v54, %v6658_v32  ;;  %v9488_v41 = vpack.c.b16 %v6664_v2, %v6659_v29  ;;  %v3046_v51 = vsub.f32 %v2926_v15, %v3006_v26  ;;  %v3085_v20 = vpack.c.bf16 %v3045_v55, %v3045_v55  ;;  %v7434_v29 = vld [vmem:[#allocation6 + $0xb0] sm:$0xff]  ;;  %v7436_v2 = vld [vmem:[#allocation6 + $0xb8] sm:$0xff] }
 0x349   :  { %v2927_v54 = vmul.f32 %v7435_v28, %v7434_v29  ;;  %v2928_v30 = vmul.f32 %v7437_v48, %v7436_v2  ;;  %v9503_v26 = vmul.f32 %v3963_v7, %v3934_v27  ;;  %v9505_v55 = vmul.f32 %v3963_v7, %v3963_v7 }
 0x34a   :  { %11183 = vst [vmem:[#allocation102_spill] sm:$0xff] %v9486_v23  ;;  %v3086_v32 = vpack.c.bf16 %v3046_v51, %v3046_v51  ;;  %v9507_v51 = vmul.f32 %v3934_v27, %v3934_v27  ;;  %v3195_v28 = vpack.c.b16 %v3166_v10, %v3165_v52  ;;  %v7438_v27 = vld [vmem:[#allocation6 + $0xc0] sm:$0xff]  ;;  %v7441_v52 = vld [vmem:[#allocation7 + $0xc8] sm:$0xff] }
 0x34b   :  { %11184 = vst [vmem:[#allocation103_spill] sm:$0xff] %v9488_v41  ;;  %v9490_v0 = vpop.f32.mrf.mxu3  ;;  %v2929_v13 = vmul.f32 %v7439_v17, %v7438_v27  ;;  %v2930_v10 = vmul.f32 %v7441_v52, %v7440_v35 }
 0x34c   :  { %11185 = vst [vmem:[#allocation104_spill] sm:$0xff] %v9490_v0  ;;  %v9492_v57 = vpop.f32.mrf.mxu0  ;;  %v9494_v49 = vpop.f32.mrf.mxu1  ;;  %v3286_v15 = vunpack.c.l.b16 %v3086_v32  ;;  %v9511_v29 = vadd.f32 %v9505_v55, %v9507_v51 }
 0x34d   :  { %v9496_v59 = vpop.f32.mrf.mxu2  ;;  %11187 = vst [vmem:[#allocation106_spill] sm:$0xff] %v9503_v26  ;;  %v9520_v36 = vpack.c.bf16 %v2929_v13, %v2929_v13  ;;  %v3469_v14 = vadd.f32 %v9494_v49, %v9492_v57 }
 0x34e   :  { %11186 = vst [vmem:[#allocation105_spill] sm:$0xff] %v9496_v59 }
 0x34f   :  { %3398 = vmatmul.bf16.gmra.mxu0 %v3194_v18  ;;  %3507 = vmatmul.bf16.gmra.mxu1 %v3314_v61  ;;  %v3285_v18 = vunpack.c.l.b16 %v3085_v20  ;;  %v2967_v61 = vpack.c.bf16 %v2927_v54, %v2927_v54 }
 0x350   :  { %4634 = vmatmul.bf16.gmra.mxu3 %v9324_v33  ;;  %v2968_v33 = vpack.c.bf16 %v2928_v30, %v2928_v30 }
 0x351   :  { %v3315_v2 = vpack.c.b16 %v3286_v15, %v3285_v18  ;;  %v3007_v48 = vunpack.c.l.bf16 %v2967_v61 }
 0x352   :  { %v3008_v41 = vunpack.c.l.bf16 %v2968_v33 }
 0x353   :  { %v3968_v39 = vpop.f32.mrf.mxu3  ;;  %v3047_v7 = vsub.f32 %v2927_v54, %v3007_v48  ;;  %v3168_v54 = vunpack.c.l.b16 %v2968_v33 }
 0x354   :  { %v9499_v12 = vpop.f32.mrf.mxu0  ;;  %v9501_v25 = vpop.f32.mrf.mxu1  ;;  %v3048_v46 = vsub.f32 %v2928_v30, %v3008_v41  ;;  %v3167_v41 = vunpack.c.l.b16 %v2967_v61 }
 0x355   :  { %v3939_v19 = vpop.f32.mrf.mxu2  ;;  %v3087_v18 = vpack.c.bf16 %v3047_v7, %v3047_v7 }
 0x356   :  { %v3088_v15 = vpack.c.bf16 %v3048_v46, %v3048_v46  ;;  %v9526_v17 = vmul.f32 %v3968_v39, %v3939_v19  ;;  %v9528_v35 = vmul.f32 %v3939_v19, %v3939_v19  ;;  %v3009_v46 = vunpack.c.l.bf16 %v9520_v36 }
 0x357   :  { %v3196_v27 = vpack.c.b16 %v3168_v54, %v3167_v41  ;;  %v3471_v41 = vadd.f32 %v9501_v25, %v9499_v12  ;;  %v3466_v25 = vadd.f32 %v9482_v38, %v9480_v45 }
 0x358   :  { %v3288_v30 = vunpack.c.l.b16 %v3088_v15  ;;  %11190 = vst [vmem:[#allocation109_spill] sm:$0xff] %v9526_v17  ;;  %v3049_v19 = vsub.f32 %v2929_v13, %v3009_v46  ;;  %v7442_v13 = vld [vmem:[#allocation6 + $0xd0] sm:$0xff]  ;;  %v7445_v46 = vld [vmem:[#allocation7 + $0xd8] sm:$0xff] }
 0x359   :  { %v9558_v12 = vpack.c.bf16 %v3471_v41, %v3471_v41  ;;  %v9575_v62 = vpack.c.bf16 %v3466_v25, %v3466_v25 }
 0x35b   :  { %v9513_v56 = vpop.f32.mrf.mxu3 }
 0x35c   :  { %11188 = vst [vmem:[#allocation107_spill] sm:$0xff] %v9513_v56  ;;  %v3364_v40 = vpop.f32.mrf.mxu0  ;;  %v3473_v20 = vpop.f32.mrf.mxu1 }
 0x35d   :  { %v9515_v32 = vpop.f32.mrf.mxu2  ;;  %v3474_v15 = vadd.f32 %v3473_v20, %v3364_v40  ;;  %v7443_v20 = vld [vmem:[#allocation7 + $0xd0] sm:$0xff] }
 0x35e   :  { %11189 = vst [vmem:[#allocation108_spill] sm:$0xff] %v9515_v32 }
 0x35f   :  { %3403 = vmatmul.bf16.gmra.mxu0 %v3195_v28  ;;  %3512 = vmatmul.bf16.gmra.mxu1 %v3315_v2  ;;  %v9522_v28 = vpack.c.bf16 %v2930_v10, %v2930_v10  ;;  %v9524_v2 = vmul.f32 %v3968_v39, %v3968_v39  ;;  %v9547_v54 = vpack.c.bf16 %v3474_v15, %v3474_v15 }
 0x360   :  { %4639 = vmatmul.bf16.gmra.mxu3 %v9352_v63  ;;  %v3287_v63 = vunpack.c.l.b16 %v3087_v18 }
 0x361   :  { %v3010_v48 = vunpack.c.l.bf16 %v9522_v28  ;;  %v9534_v7 = vadd.f32 %v9524_v2, %v9528_v35 }
 0x362   :  { %v3316_v52 = vpack.c.b16 %v3288_v30, %v3287_v63  ;;  %v7444_v30 = vld [vmem:[#allocation6 + $0xd8] sm:$0xff] }
 0x363   :  { %v9518_v23 = vpop.f32.mrf.mxu3  ;;  %v3050_v17 = vsub.f32 %v2930_v10, %v3010_v48  ;;  %v2931_v10 = vmul.f32 %v7443_v20, %v7442_v13  ;;  %v2932_v48 = vmul.f32 %v7445_v46, %v7444_v30  ;;  %v3170_v13 = vunpack.c.l.b16 %v9522_v28 }
 0x364   :  { %v3366_v11 = vpop.f32.mrf.mxu0  ;;  %v3475_v34 = vpop.f32.mrf.mxu1 }
 0x365   :  { %v3944_v4 = vpop.f32.mrf.mxu2  ;;  %v3476_v5 = vadd.f32 %v3475_v34, %v3366_v11  ;;  %v3089_v11 = vpack.c.bf16 %v3049_v19, %v3049_v19  ;;  %v3090_v40 = vpack.c.bf16 %v3050_v17, %v3050_v17  ;;  %v3613_v17 = vunpack.c.l.bf16 %v9547_v54 }
 0x366   :  { %v9566_v45 = vpack.c.bf16 %v2931_v10, %v2931_v10 }
 0x367   :  { %v9549_v34 = vpack.c.bf16 %v3476_v5, %v3476_v5  ;;  %v3289_v20 = vunpack.c.l.b16 %v3089_v11  ;;  %v3290_v30 = vunpack.c.l.b16 %v3090_v40  ;;  %v3608_v11 = vunpack.c.l.bf16 %v9558_v12 }
 0x368   :  { %v3011_v56 = vunpack.c.l.bf16 %v9566_v45 }
 0x369   :  { %v3317_v32 = vpack.c.b16 %v3290_v30, %v3289_v20 }
 0x36a   :  { %v3051_v20 = vsub.f32 %v2931_v10, %v3011_v56 }
 0x36b   :  { %v9536_v61 = vpop.f32.mrf.mxu3 }
 0x36c   :  { %11191 = vst [vmem:[#allocation110_spill] sm:$0xff] %v9536_v61  ;;  %v3369_v33 = vpop.f32.mrf.mxu0  ;;  %v3478_v18 = vpop.f32.mrf.mxu1  ;;  %v9573_v61 = vmul.f32 %v9518_v23, %v3944_v4 }
 0x36d   :  { %v3479_v39 = vadd.f32 %v3478_v18, %v3369_v33  ;;  %v9538_v21 = vpop.f32.mrf.mxu2  ;;  %v3169_v18 = vunpack.c.l.b16 %v9520_v36  ;;  %v9579_v36 = vmul.f32 %v9518_v23, %v9518_v23 }
 0x36e   :  { %11192 = vst [vmem:[#allocation111_spill] sm:$0xff] %v9538_v21  ;;  %v9570_v21 = vpack.c.bf16 %v2932_v48, %v2932_v48 }
 0x36f   :  { %v9540_v26 = vpack.c.bf16 %v3479_v39, %v3479_v39  ;;  %3408 = vmatmul.bf16.gmra.mxu0 %v3196_v27  ;;  %3517 = vmatmul.bf16.gmra.mxu1 %v3316_v52  ;;  %v3618_v52 = vunpack.c.l.bf16 %v9549_v34  ;;  %11193 = vst [vmem:[#allocation112_spill] sm:$0xff] %v9573_v61 }
 0x370   :  { %4644 = vmatmul.bf16.gmra.mxu3 %v9373_v58  ;;  %v9556_v58 = vpack.c.bf16 %v3469_v14, %v3469_v14 }
 0x371   :  { %v3623_v63 = vunpack.c.l.bf16 %v9540_v26 }
 0x372   :  { %v3603_v28 = vunpack.c.l.bf16 %v9556_v58 }
 0x373   :  { %v9552_v57 = vpop.f32.mrf.mxu3  ;;  %v3663_v38 = vsub.f32 %v3479_v39, %v3623_v63  ;;  %v3658_v39 = vsub.f32 %v3476_v5, %v3618_v52  ;;  %v3653_v63 = vsub.f32 %v3474_v15, %v3613_v17  ;;  %v9596_v5 = vpack.c.bf16 %v9473_v31, %v9473_v31 }
 0x374   :  { %v3371_v49 = vpop.f32.mrf.mxu0  ;;  %v3480_v27 = vpop.f32.mrf.mxu1  ;;  %v3598_v15 = vunpack.c.l.bf16 %v9575_v62 }
 0x375   :  { %v3481_v33 = vadd.f32 %v3480_v27, %v3371_v49  ;;  %v9563_v19 = vpop.f32.mrf.mxu2  ;;  %v9581_v49 = vmul.f32 %v3944_v4, %v3944_v4  ;;  %v3197_v27 = vpack.c.b16 %v3170_v13, %v3169_v18  ;;  %v3689_v9 = vpack.c.bf16 %v3663_v38, %v3663_v38 }
 0x376   :  { %v3012_v4 = vunpack.c.l.bf16 %v9570_v21  ;;  %v3648_v18 = vsub.f32 %v3471_v41, %v3608_v11  ;;  %v3686_v13 = vpack.c.bf16 %v3658_v39, %v3658_v39  ;;  %v3683_v30 = vpack.c.bf16 %v3653_v63, %v3653_v63 }
 0x377   :  { %v9568_v46 = vpack.c.bf16 %v3481_v33, %v3481_v33  ;;  %v9589_v61 = vadd.f32 %v9579_v36, %v9581_v49  ;;  %v3593_v59 = vunpack.c.l.bf16 %v9596_v5  ;;  %v3638_v41 = vsub.f32 %v3466_v25, %v3598_v15 }
 0x378   :  { %v3052_v3 = vsub.f32 %v2932_v48, %v3012_v4  ;;  %v3680_v11 = vpack.c.bf16 %v3648_v18, %v3648_v18  ;;  %v3850_v39 = vunpack.c.l.b16 %v3686_v13  ;;  %v7450_v48 = vld [vmem:[#allocation7 + $0xe8] sm:$0xff] }
 0x379   :  { %v3628_v40 = vunpack.c.l.bf16 %v9568_v46  ;;  %v3674_v15 = vpack.c.bf16 %v3638_v41, %v3638_v41 }
 0x37a   :  { %v3092_v56 = vpack.c.bf16 %v3052_v3, %v3052_v3 }
 0x37b   :  { %v3668_v23 = vsub.f32 %v3481_v33, %v3628_v40  ;;  %v9592_v16 = vpop.f32.mrf.mxu3  ;;  %v3643_v33 = vsub.f32 %v3469_v14, %v3603_v28  ;;  %v3855_v40 = vunpack.c.l.b16 %v3689_v9  ;;  %v3845_v14 = vunpack.c.l.b16 %v3683_v30  ;;  %v7447_v9 = vld [vmem:[#allocation6 + $0xe0] sm:$0xff] }
 0x37c   :  { %11194 = vst [vmem:[#allocation113_spill] sm:$0xff] %v9592_v16  ;;  %v3374_v17 = vpop.f32.mrf.mxu0  ;;  %v3483_v52 = vpop.f32.mrf.mxu1 }
 0x37d   :  { %v3692_v50 = vpack.c.bf16 %v3668_v23, %v3668_v23  ;;  %v9599_v0 = vadd.f32 %v3483_v52, %v3374_v17  ;;  %v9601_v38 = vpop.f32.mrf.mxu2  ;;  %v3677_v17 = vpack.c.bf16 %v3643_v33, %v3643_v33  ;;  %v3091_v52 = vpack.c.bf16 %v3051_v20, %v3051_v20 }
 0x37e   :  { %11195 = vst [vmem:[#allocation114_spill] sm:$0xff] %v9601_v38  ;;  %v3875_v18 = vpack.c.b16 %v3850_v39, %v3845_v14  ;;  %v3171_v33 = vunpack.c.l.b16 %v9566_v45  ;;  %v3172_v20 = vunpack.c.l.b16 %v9570_v21  ;;  %v9630_v21 = vmul.f32 %v9563_v19, %v9563_v19 }
 0x37f   :  { %v3860_v16 = vunpack.c.l.b16 %v3692_v50  ;;  %3413 = vmatmul.bf16.gmra.mxu0 %v3197_v27  ;;  %3522 = vmatmul.bf16.gmra.mxu1 %v3317_v32  ;;  %v7448_v50 = vld [vmem:[#allocation7 + $0xe0] sm:$0xff]  ;;  %v7449_v32 = vld [vmem:[#allocation6 + $0xe8] sm:$0xff]  ;;  %v3633_v27 = vsub.f32 %v9473_v31, %v3593_v59  ;;  %v3835_v3 = vunpack.c.l.b16 %v3677_v17  ;;  %v3291_v30 = vunpack.c.l.b16 %v3091_v52 }
 0x380   :  { %4687 = vmatmul.bf16.vlgmr.msrb.gmra.mxu3 %v9604_v8  ;;  %v2933_v10 = vmul.f32 %v7448_v50, %v7447_v9  ;;  %v2934_v28 = vmul.f32 %v7450_v48, %v7449_v32  ;;  %v9622_v59 = vmul.f32 %v9552_v57, %v9563_v19  ;;  %v3830_v17 = vunpack.c.l.b16 %v3674_v15 }
 0x381   :  { %v3880_v23 = vpack.c.b16 %v3860_v16, %v3855_v40  ;;  %v3840_v16 = vunpack.c.l.b16 %v3680_v11  ;;  %v3292_v40 = vunpack.c.l.b16 %v3092_v56  ;;  %v3671_v41 = vpack.c.bf16 %v3633_v27, %v3633_v27 }
 0x382   :  { %v9618_v31 = vpack.c.bf16 %v2934_v28, %v2934_v28  ;;  %11196 = vst [vmem:[#allocation115_spill] sm:$0xff] %v9622_v59  ;;  %v9626_v11 = vmul.f32 %v9552_v57, %v9552_v57  ;;  %v3198_v56 = vpack.c.b16 %v3172_v20, %v3171_v33  ;;  %v9646_v15 = vstv %s9612_s3 }
 0x383   :  { %4041 = vmatpush.bf16.msra.mxu2 %v3880_v23  ;;  %v4021_v63 = vpop.f32.mrf.mxu3  ;;  %v9616_v23 = vpack.c.bf16 %v2933_v10, %v2933_v10  ;;  %v3870_v39 = vpack.c.b16 %v3840_v16, %v3835_v3  ;;  %v3318_v9 = vpack.c.b16 %v3292_v40, %v3291_v30  ;;  %v3825_v19 = vunpack.c.l.b16 %v3671_v41 }
 0x384   :  { %v9608_v4 = vpop.f32.mrf.mxu0  ;;  %v9610_v25 = vpop.f32.mrf.mxu1  ;;  %v9634_v52 = vadd.f32 %v9626_v11, %v9630_v21  ;;  %v3014_v57 = vunpack.c.l.bf16 %v9618_v31  ;;  %v9652_v30 = vstv %s7093_s5  ;;  %v3751_v40 = vunpack.c.l.b16 %v9540_v26  ;;  %v7454_v26 = vld [vmem:[#allocation6 + $0xf8] sm:$0xff] }
 0x385   :  { %v3992_v13 = vpop.f32.mrf.mxu2  ;;  %v3013_v50 = vunpack.c.l.bf16 %v9616_v23 }
 0x386   :  { %v4160_v45 = vadd.f32 %v4021_v63, %v3992_v13  ;;  %v3865_v13 = vpack.c.b16 %v3830_v17, %v3825_v19  ;;  %v3054_v20 = vsub.f32 %v2934_v28, %v3014_v57  ;;  %v7452_v17 = vld [vmem:[#allocation6 + $0xf0] sm:$0xff]  ;;  %v3741_v57 = vunpack.c.l.b16 %v9547_v54 }
 0x387   :  { %4042 = vmatpush.bf16.msra.mxu2 %v3875_v18  ;;  %v3756_v18 = vunpack.c.l.b16 %v9568_v46  ;;  %v3053_v33 = vsub.f32 %v2933_v10, %v3013_v50  ;;  %v3746_v46 = vunpack.c.l.b16 %v9549_v34  ;;  %v3731_v54 = vunpack.c.l.b16 %v9556_v58 }
 0x388   :  { %v4168_v14 = vmul.f32 49.0, %v4160_v45  ;;  %v9657_v45 = vld [vmem:[#allocation9 + $0x8] sm:$0xff]  ;;  %v3094_v28 = vpack.c.bf16 %v3054_v20, %v3054_v20  ;;  %v3174_v20 = vunpack.c.l.b16 %v9618_v31 }
 0x389   :  { %v3093_v10 = vpack.c.bf16 %v3053_v33, %v3053_v33  ;;  %v3173_v33 = vunpack.c.l.b16 %v9616_v23  ;;  %v3721_v23 = vunpack.c.l.b16 %v9596_v5  ;;  %v9683_v5 = vld [vmem:[#allocation9 + $0x10] sm:$0xff] }
 0x38a   :  { %v4176_v27 = vsub.f32 %v4168_v14, %v9507_v51  ;;  %v4119_v51 = vadd.f32 %v9511_v29, %v9646_v15  ;;  %v7453_v14 = vld [vmem:[#allocation7 + $0xf0] sm:$0xff] }
 0x38b   :  { %4043 = vmatpush.bf16.msra.mxu2 %v3870_v39  ;;  %v9638_v32 = vpop.f32.mrf.mxu3 }
 0x38c   :  { %v9640_v48 = vpop.f32.mrf.mxu0  ;;  %v9642_v63 = vpop.f32.mrf.mxu1  ;;  %v4184_v3 = vsub.f32 %v4176_v27, %v9505_v55  ;;  %v3776_v55 = vpack.c.b16 %v3756_v18, %v3751_v40  ;;  %v3293_v40 = vunpack.c.l.b16 %v3093_v10 }
 0x38d   :  { %v9648_v16 = vpop.f32.mrf.mxu2 }
 0x38e   :  { %v4192_v41 = vmul.f32 1.0208334, %v4184_v3  ;;  %v3771_v3 = vpack.c.b16 %v3746_v46, %v3741_v57 }
 0x38f   :  { %3418 = vmatmul.bf16.gmra.mxu0 %v3198_v56  ;;  %3527 = vmatmul.bf16.gmra.mxu1 %v3318_v9  ;;  %v2935_v56 = vmul.f32 %v7453_v14, %v7452_v17  ;;  %v7455_v9 = vld [vmem:[#allocation7 + $0xf8] sm:$0xff] }
 0x390   :  { %4044 = vmatpush.bf16.msra.mxu2 %v3865_v13  ;;  %4692 = vmatmul.bf16.gmra.mxu3 %v9657_v45  ;;  %v4200_v39 = vadd.f32 %v4192_v41, %v9652_v30  ;;  %v2936_v50 = vmul.f32 %v7455_v9, %v7454_v26  ;;  %v3736_v13 = vunpack.c.l.b16 %v9558_v12  ;;  %v3294_v41 = vunpack.c.l.b16 %v3094_v28 }
 0x391   :  { %v2975_v17 = vpack.c.bf16 %v2935_v56, %v2935_v56  ;;  %v3726_v26 = vunpack.c.l.b16 %v9575_v62  ;;  %v3199_v9 = vpack.c.b16 %v3174_v20, %v3173_v33  ;;  %v11200_v20 = vld [vmem:[#allocation29_spill] sm:$0xff] }
 0x392   :  { %v9667_v34 = vmul.f32 %v4200_v39, %v4119_v51  ;;  %v2976_v14 = vpack.c.bf16 %v2936_v50, %v2936_v50  ;;  %v3766_v51 = vpack.c.b16 %v3736_v13, %v3731_v54  ;;  %v3319_v59 = vpack.c.b16 %v3294_v41, %v3293_v40  ;;  %v7457_v40 = vld [vmem:[#allocation6 + $0x100] sm:$0xff]  ;;  %v7459_v54 = vld [vmem:[#allocation6 + $0x108] sm:$0xff] }
 0x393   :  { %v4026_v29 = vpop.f32.mrf.mxu3  ;;  %v3015_v12 = vunpack.c.l.bf16 %v2975_v17  ;;  %v7458_v41 = vld [vmem:[#allocation7 + $0x100] sm:$0xff] }
 0x394   :  { %4045 = vmatpush.bf16.msra.mxu2 %v3776_v55  ;;  %v9663_v19 = vpop.f32.mrf.mxu0  ;;  %v9665_v27 = vpop.f32.mrf.mxu1  ;;  %11197 = vst [vmem:[#allocation116_spill] sm:$0xff] %v9667_v34  ;;  %v3016_v46 = vunpack.c.l.bf16 %v2976_v14 }
 0x395   :  { %v3997_v18 = vpop.f32.mrf.mxu2 }
 0x396   :  { %v4162_v55 = vadd.f32 %v4026_v29, %v3997_v18  ;;  %v3761_v29 = vpack.c.b16 %v3726_v26, %v3721_v23  ;;  %v3055_v18 = vsub.f32 %v2935_v56, %v3015_v12  ;;  %v3056_v13 = vsub.f32 %v2936_v50, %v3016_v46 }
 0x397   :  { %v3175_v46 = vunpack.c.l.b16 %v2975_v17 }
 0x398   :  { %4046 = vmatpush.bf16.msra.mxu2 %v3771_v3  ;;  %v4170_v39 = vmul.f32 49.0, %v4162_v55  ;;  %v4121_v3 = vadd.f32 %v9534_v7, %v9646_v15  ;;  %v3095_v50 = vpack.c.bf16 %v3055_v18, %v3055_v18  ;;  %v3096_v7 = vpack.c.bf16 %v3056_v13, %v3056_v13  ;;  %v11203_v18 = vld [vmem:[#allocation24_spill] sm:$0xff] }
 0x39a   :  { %v4178_v28 = vsub.f32 %v4170_v39, %v9528_v35 }
 0x39b   :  { %v9674_v57 = vpop.f32.mrf.mxu3 }
 0x39c   :  { %11198 = vst [vmem:[#allocation117_spill] sm:$0xff] %v9674_v57  ;;  %4047 = vmatpush.bf16.msra.mxu2 %v3766_v51  ;;  %v3384_v31 = vpop.f32.mrf.mxu0  ;;  %v3493_v10 = vpop.f32.mrf.mxu1  ;;  %v4186_v62 = vsub.f32 %v4178_v28, %v9524_v2  ;;  %v2937_v2 = vmul.f32 %v7458_v41, %v7457_v40 }
 0x39d   :  { %v9678_v58 = vpop.f32.mrf.mxu2  ;;  %v3494_v40 = vadd.f32 %v3493_v10, %v3384_v31  ;;  %v3491_v31 = vadd.f32 %v9665_v27, %v9663_v19  ;;  %v9720_v27 = vld [vmem:[#allocation9 + $0x18] sm:$0xff] }
 0x39e   :  { %11199 = vst [vmem:[#allocation118_spill] sm:$0xff] %v9678_v58  ;;  %v4194_v33 = vmul.f32 1.0208334, %v4186_v62  ;;  %v9692_v23 = vpack.c.bf16 %v2937_v2, %v2937_v2  ;;  %v3295_v62 = vunpack.c.l.b16 %v3095_v50 }
 0x39f   :  { %3423 = vmatmul.bf16.gmra.mxu0 %v3199_v9  ;;  %3532 = vmatmul.bf16.gmra.mxu1 %v3319_v59  ;;  %v7460_v59 = vld [vmem:[#allocation7 + $0x108] sm:$0xff]  ;;  %v9706_v10 = vpack.c.bf16 %v3494_v40, %v3494_v40 }
 0x3a0   :  { %4048 = vmatpush.bf16.msra.mxu2 %v3761_v29  ;;  %4697 = vmatmul.bf16.gmra.mxu3 %v9683_v5  ;;  %v4202_v35 = vadd.f32 %v4194_v33, %v9652_v30  ;;  %v2938_v56 = vmul.f32 %v7460_v59, %v7459_v54  ;;  %v11202_v9 = vld [vmem:[#allocation27_spill] sm:$0xff]  ;;  %v3176_v29 = vunpack.c.l.b16 %v2976_v14  ;;  %v3296_v33 = vunpack.c.l.b16 %v3096_v7 }
 0x3a1   :  { %v3017_v41 = vunpack.c.l.bf16 %v9692_v23  ;;  %v3489_v14 = vadd.f32 %v9642_v63, %v9640_v48  ;;  %v4123_v63 = vadd.f32 %v9589_v61, %v9646_v15  ;;  %v7462_v61 = vld [vmem:[#allocation6 + $0x110] sm:$0xff] }
 0x3a2   :  { %v9689_v39 = vmul.f32 %v4202_v35, %v4121_v3  ;;  %v9694_v28 = vpack.c.bf16 %v2938_v56, %v2938_v56  ;;  %v3200_v54 = vpack.c.b16 %v3176_v29, %v3175_v46  ;;  %v3320_v59 = vpack.c.b16 %v3296_v33, %v3295_v62 }
 0x3a3   :  { %4049 = vmatmul.bf16.vlgmr.msra.gmra.mxu2 %v9604_v8  ;;  %v4031_v55 = vpop.f32.mrf.mxu3  ;;  %v3057_v46 = vsub.f32 %v2937_v2, %v3017_v41  ;;  %v9716_v48 = vpack.c.bf16 %v3489_v14, %v3489_v14  ;;  %v9723_v33 = vpack.c.bf16 %v3491_v31, %v3491_v31 }
 0x3a4   :  { %4650 = vmatpush.bf16.msrb.mxu2 %v11200_v20  ;;  %v3386_v26 = vpop.f32.mrf.mxu0  ;;  %v3495_v51 = vpop.f32.mrf.mxu1  ;;  %11201 = vst [vmem:[#allocation29_spill] sm:$0xff] %v9689_v39  ;;  %v3018_v3 = vunpack.c.l.bf16 %v9694_v28 }
 0x3a5   :  { %v4002_v12 = vpop.f32.mrf.mxu2  ;;  %v3496_v35 = vadd.f32 %v3495_v51, %v3386_v26 }
 0x3a6   :  { %v4164_v20 = vadd.f32 %v4031_v55, %v4002_v12  ;;  %v11205_v12 = vld [vmem:[#allocation21_spill] sm:$0xff]  ;;  %v3058_v29 = vsub.f32 %v2938_v56, %v3018_v3  ;;  %v11207_v56 = vld [vmem:[#allocation28_spill] sm:$0xff] }
 0x3a7   :  { %v7463_v3 = vld [vmem:[#allocation7 + $0x110] sm:$0xff] }
 0x3a8   :  { %4651 = vmatpush.bf16.msrb.mxu2 %v11202_v9  ;;  %v4172_v13 = vmul.f32 49.0, %v4164_v20 }
 0x3aa   :  { %v4180_v9 = vsub.f32 %v4172_v13, %v9581_v49  ;;  %v9712_v49 = vpack.c.bf16 %v3496_v35, %v3496_v35  ;;  %v3098_v13 = vpack.c.bf16 %v3058_v29, %v3058_v29  ;;  %v4328_v29 = vunpack.c.l.bf16 %v9723_v33 }
 0x3ab   :  { %v9699_v17 = vpop.f32.mrf.mxu3 }
 0x3ac   :  { %4652 = vmatpush.bf16.msrb.mxu2 %v11203_v18  ;;  %11204 = vst [vmem:[#allocation27_spill] sm:$0xff] %v9699_v17  ;;  %v3389_v50 = vpop.f32.mrf.mxu0  ;;  %v3498_v7 = vpop.f32.mrf.mxu1  ;;  %v4188_v51 = vsub.f32 %v4180_v9, %v9579_v36  ;;  %v4333_v36 = vunpack.c.l.bf16 %v9706_v10  ;;  %v3097_v18 = vpack.c.bf16 %v3057_v46, %v3057_v46  ;;  %v4338_v41 = vunpack.c.l.bf16 %v9712_v49 }
 0x3ad   :  { %v3499_v55 = vadd.f32 %v3498_v7, %v3389_v50  ;;  %v9709_v26 = vpop.f32.mrf.mxu2  ;;  %v4323_v9 = vunpack.c.l.bf16 %v9716_v48  ;;  %v3298_v39 = vunpack.c.l.b16 %v3098_v13 }
 0x3ae   :  { %11206 = vst [vmem:[#allocation24_spill] sm:$0xff] %v9709_v26  ;;  %v4196_v19 = vmul.f32 1.0208334, %v4188_v51  ;;  %v7464_v51 = vld [vmem:[#allocation6 + $0x118] sm:$0xff]  ;;  %v11209_v26 = vld [vmem:[#allocation26_spill] sm:$0xff] }
 0x3af   :  { %v9714_v62 = vpack.c.bf16 %v3499_v55, %v3499_v55  ;;  %3428 = vmatmul.bf16.gmra.mxu0 %v3200_v54  ;;  %3537 = vmatmul.bf16.gmra.mxu1 %v3320_v59  ;;  %v2939_v54 = vmul.f32 %v7463_v3, %v7462_v61  ;;  %v3486_v59 = vadd.f32 %v9610_v25, %v9608_v4  ;;  %v3177_v61 = vunpack.c.l.b16 %v9692_v23 }
 0x3b0   :  { %4653 = vmatpush.bf16.msrb.mxu2 %v11205_v12  ;;  %4702 = vmatmul.bf16.gmra.mxu3 %v9720_v27  ;;  %v4204_v20 = vadd.f32 %v4196_v19, %v9652_v30  ;;  %v7465_v19 = vld [vmem:[#allocation7 + $0x118] sm:$0xff]  ;;  %v3178_v4 = vunpack.c.l.b16 %v9694_v28  ;;  %v3297_v3 = vunpack.c.l.b16 %v3097_v18  ;;  %v4363_v23 = vsub.f32 %v3489_v14, %v4323_v9 }
 0x3b1   :  { %v4343_v2 = vunpack.c.l.bf16 %v9714_v62  ;;  %v2940_v46 = vmul.f32 %v7465_v19, %v7464_v51  ;;  %v4368_v18 = vsub.f32 %v3491_v31, %v4328_v29  ;;  %v11211_v29 = vld [vmem:[#allocation20_spill] sm:$0xff] }
 0x3b2   :  { %v9734_v12 = vmul.f32 %v4204_v20, %v4123_v63  ;;  %v4378_v63 = vsub.f32 %v3496_v35, %v4338_v41  ;;  %v3201_v41 = vpack.c.b16 %v3178_v4, %v3177_v61 }
 0x3b3   :  { %4054 = vmatmul.bf16.gmra.mxu2 %v9657_v45  ;;  %v4383_v38 = vsub.f32 %v3499_v55, %v4343_v2  ;;  %v4036_v25 = vpop.f32.mrf.mxu3  ;;  %v9748_v55 = vpack.c.bf16 %v3486_v59, %v3486_v59  ;;  %v11210_v2 = vld [vmem:[#allocation23_spill] sm:$0xff] }
 0x3b4   :  { %4654 = vmatpush.bf16.msrb.mxu2 %v11207_v56  ;;  %v3391_v50 = vpop.f32.mrf.mxu0  ;;  %v3500_v7 = vpop.f32.mrf.mxu1  ;;  %11208 = vst [vmem:[#allocation21_spill] sm:$0xff] %v9734_v12  ;;  %v4373_v56 = vsub.f32 %v3494_v40, %v4333_v36  ;;  %v9742_v12 = vpack.c.bf16 %v2939_v54, %v2939_v54  ;;  %v9746_v40 = vpack.c.bf16 %v9599_v0, %v9599_v0 }
 0x3b5   :  { %v3501_v17 = vadd.f32 %v3500_v7, %v3391_v50  ;;  %v4007_v34 = vpop.f32.mrf.mxu2  ;;  %v4409_v28 = vpack.c.bf16 %v4383_v38, %v4383_v38  ;;  %v3321_v50 = vpack.c.b16 %v3298_v39, %v3297_v3  ;;  %v4318_v9 = vunpack.c.l.bf16 %v9748_v55 }
 0x3b6   :  { %v4166_v51 = vadd.f32 %v4036_v25, %v4007_v34  ;;  %v4403_v13 = vpack.c.bf16 %v4373_v56, %v4373_v56  ;;  %v4406_v34 = vpack.c.bf16 %v4378_v63, %v4378_v63  ;;  %v3019_v25 = vunpack.c.l.bf16 %v9742_v12 }
 0x3b7   :  { %v9740_v20 = vpack.c.bf16 %v3501_v17, %v3501_v17  ;;  %v4313_v57 = vunpack.c.l.bf16 %v9746_v40  ;;  %v4397_v39 = vpack.c.bf16 %v4363_v23, %v4363_v23  ;;  %v4125_v63 = vadd.f32 %v9634_v52, %v9646_v15 }
 0x3b8   :  { %4655 = vmatpush.bf16.msrb.mxu2 %v11209_v26  ;;  %v9750_v26 = vpack.c.bf16 %v2940_v46, %v2940_v46  ;;  %v4174_v35 = vmul.f32 49.0, %v4166_v51  ;;  %v4565_v56 = vunpack.c.l.b16 %v4403_v13  ;;  %v4570_v61 = vunpack.c.l.b16 %v4406_v34 }
 0x3b9   :  { %v4348_v36 = vunpack.c.l.bf16 %v9740_v20  ;;  %v3059_v3 = vsub.f32 %v2939_v54, %v3019_v25 }
 0x3ba   :  { %v4182_v19 = vsub.f32 %v4174_v35, %v9630_v21  ;;  %v3020_v38 = vunpack.c.l.bf16 %v9750_v26  ;;  %v4358_v35 = vsub.f32 %v3486_v59, %v4318_v9  ;;  %v4595_v13 = vpack.c.b16 %v4570_v61, %v4565_v56 }
 0x3bb   :  { %v4388_v7 = vsub.f32 %v3501_v17, %v4348_v36  ;;  %v4400_v17 = vpack.c.bf16 %v4368_v18, %v4368_v18  ;;  %v4353_v36 = vsub.f32 %v9599_v0, %v4313_v57  ;;  %v3099_v54 = vpack.c.bf16 %v3059_v3, %v3059_v3  ;;  %v7466_v0 = vld [vmem:[#allocation6 + $0x120] sm:$0xff] }
 0x3bc   :  { %4656 = vmatpush.bf16.msrb.mxu2 %v11210_v2  ;;  %v3394_v58 = vpop.f32.mrf.mxu0  ;;  %v3503_v14 = vpop.f32.mrf.mxu1  ;;  %v4575_v2 = vunpack.c.l.b16 %v4409_v28  ;;  %v4190_v21 = vsub.f32 %v4182_v19, %v9626_v11  ;;  %v4555_v11 = vunpack.c.l.b16 %v4397_v39  ;;  %v7467_v57 = vld [vmem:[#allocation7 + $0x120] sm:$0xff]  ;;  %v4394_v25 = vpack.c.bf16 %v4358_v35, %v4358_v35 }
 0x3bd   :  { %v4412_v51 = vpack.c.bf16 %v4388_v7, %v4388_v7  ;;  %v9759_v31 = vadd.f32 %v3503_v14, %v3394_v58  ;;  %v3060_v58 = vsub.f32 %v2940_v46, %v3020_v38  ;;  %v4560_v18 = vunpack.c.l.b16 %v4400_v17  ;;  %v11212_v14 = vld [vmem:[#allocation67_spill] sm:$0xff] }
 0x3be   :  { %v4198_v28 = vmul.f32 1.0208334, %v4190_v21  ;;  %v2941_v59 = vmul.f32 %v7467_v57, %v7466_v0  ;;  %v4391_v19 = vpack.c.bf16 %v4353_v36, %v4353_v36  ;;  %v3179_v9 = vunpack.c.l.b16 %v9742_v12  ;;  %v11215_v0 = vld [vmem:[#allocation68_spill] sm:$0xff] }
 0x3bf   :  { %v4580_v4 = vunpack.c.l.b16 %v4412_v51  ;;  %3433 = vmatmul.bf16.gmra.mxu0 %v3201_v41  ;;  %3542 = vmatmul.bf16.gmra.mxu1 %v3321_v50  ;;  %v7468_v50 = vld [vmem:[#allocation6 + $0x128] sm:$0xff]  ;;  %v3100_v7 = vpack.c.bf16 %v3060_v58, %v3060_v58  ;;  %v4590_v38 = vpack.c.b16 %v4560_v18, %v4555_v11  ;;  %v9779_v51 = vpop.f32.mrf.mxu3  ;;  %v3299_v17 = vunpack.c.l.b16 %v3099_v54 }
 0x3c0   :  { %4657 = vmatpush.bf16.msrb.mxu2 %v11211_v29  ;;  %v2981_v29 = vpack.c.bf16 %v2941_v59, %v2941_v59  ;;  %v4545_v56 = vunpack.c.l.b16 %v4391_v19  ;;  %v4550_v61 = vunpack.c.l.b16 %v4394_v25  ;;  %v4471_v3 = vunpack.c.l.b16 %v9714_v62  ;;  %v7470_v25 = vld [vmem:[#allocation6 + $0x130] sm:$0xff] }
 0x3c1   :  { %v4600_v23 = vpack.c.b16 %v4580_v4, %v4575_v2  ;;  %v3180_v2 = vunpack.c.l.b16 %v9750_v26  ;;  %v3300_v21 = vunpack.c.l.b16 %v3100_v7  ;;  %v11213_v4 = vld [vmem:[#allocation65_spill] sm:$0xff]  ;;  %v4461_v11 = vunpack.c.l.b16 %v9706_v10 }
 0x3c2   :  { %v3021_v36 = vunpack.c.l.bf16 %v2981_v29  ;;  %v4466_v18 = vunpack.c.l.b16 %v9712_v49  ;;  %v4451_v7 = vunpack.c.l.b16 %v9716_v48  ;;  %v4456_v19 = vunpack.c.l.b16 %v9723_v33 }
 0x3c3   :  { %4059 = vmatmul.bf16.gmra.mxu2 %v9683_v5  ;;  %4737 = vmatpush.bf16.msra.mxu3 %v4600_v23  ;;  %v3322_v26 = vpack.c.b16 %v3300_v21, %v3299_v17  ;;  %v4585_v23 = vpack.c.b16 %v4550_v61, %v4545_v56  ;;  %v3181_v17 = vunpack.c.l.b16 %v2981_v29  ;;  %v4441_v61 = vunpack.c.l.b16 %v9746_v40  ;;  %v11218_v40 = vld [vmem:[#allocation34_spill] sm:$0xff] }
 0x3c4   :  { %4708 = vmatpush.bf16.msra.mxu2 %v9214_v37  ;;  %v4206_v37 = vadd.f32 %v4198_v28, %v9652_v30  ;;  %v9770_v41 = vpop.f32.mrf.mxu0  ;;  %v9772_v52 = vpop.f32.mrf.mxu1  ;;  %v3202_v28 = vpack.c.b16 %v3180_v2, %v3179_v9  ;;  %v4491_v57 = vpack.c.b16 %v4466_v18, %v4461_v11  ;;  %v11216_v2 = vld [vmem:[#allocation66_spill] sm:$0xff]  ;;  %v4446_v48 = vunpack.c.l.b16 %v9748_v55 }
 0x3c5   :  { %v4486_v33 = vpack.c.b16 %v4456_v19, %v4451_v7  ;;  %v11220_v19 = vld [vmem:[#allocation33_spill] sm:$0xff] }
 0x3c6   :  { %v9774_v46 = vmul.f32 %v4206_v37, %v4125_v63  ;;  %v4476_v63 = vunpack.c.l.b16 %v9740_v20  ;;  %v11214_v37 = vld [vmem:[#allocation69_spill] sm:$0xff]  ;;  %v4481_v29 = vpack.c.b16 %v4446_v48, %v4441_v61 }
 0x3c7   :  { %4738 = vmatpush.bf16.msra.mxu3 %v4595_v13  ;;  %v9791_v20 = vpop.f32.mrf.mxu3  ;;  %v3061_v13 = vsub.f32 %v2941_v59, %v3021_v36 }
 0x3c8   :  { %4709 = vmatpush.bf16.msra.mxu2 %v9187_v22  ;;  %v7469_v22 = vld [vmem:[#allocation7 + $0x128] sm:$0xff]  ;;  %v4496_v62 = vpack.c.b16 %v4476_v63, %v4471_v3 }
 0x3c9   :  { %v2942_v34 = vmul.f32 %v7469_v22, %v7468_v50  ;;  %v3101_v10 = vpack.c.bf16 %v3061_v13, %v3061_v13 }
 0x3cb   :  { %v2982_v39 = vpack.c.bf16 %v2942_v34, %v2942_v34  ;;  %4739 = vmatpush.bf16.msra.mxu3 %v4590_v38  ;;  %v7473_v38 = vld [vmem:[#allocation7 + $0x138] sm:$0xff] }
 0x3cc   :  { %4710 = vmatpush.bf16.msra.mxu2 %v11212_v14  ;;  %v9784_v58 = vpop.f32.mrf.mxu0  ;;  %v9786_v12 = vpop.f32.mrf.mxu1  ;;  %v7471_v14 = vld [vmem:[#allocation7 + $0x130] sm:$0xff] }
 0x3cd   :  { %v3022_v35 = vunpack.c.l.bf16 %v2982_v39  ;;  %v2943_v59 = vmul.f32 %v7471_v14, %v7470_v25  ;;  %v3182_v21 = vunpack.c.l.b16 %v2982_v39 }
 0x3cf   :  { %4740 = vmatpush.bf16.msra.mxu3 %v4585_v23  ;;  %3438 = vmatmul.bf16.gmra.mxu0 %v3202_v28  ;;  %v3062_v54 = vsub.f32 %v2942_v34, %v3022_v35  ;;  %v7472_v34 = vld [vmem:[#allocation6 + $0x138] sm:$0xff]  ;;  %v9802_v56 = vpop.f32.mrf.mxu3  ;;  %v2983_v63 = vpack.c.bf16 %v2943_v59, %v2943_v59  ;;  %v3203_v36 = vpack.c.b16 %v3182_v21, %v3181_v17  ;;  %v11221_v17 = vld [vmem:[#allocation31_spill] sm:$0xff] }
 0x3d0   :  { %4711 = vmatpush.bf16.msra.mxu2 %v11213_v4  ;;  %3547 = vmatmul.bf16.gmra.mxu1 %v3322_v26  ;;  %v2944_v9 = vmul.f32 %v7473_v38, %v7472_v34  ;;  %v3301_v4 = vunpack.c.l.b16 %v3101_v10  ;;  %v11217_v26 = vld [vmem:[#allocation64_spill] sm:$0xff] }
 0x3d1   :  { %v3102_v49 = vpack.c.bf16 %v3062_v54, %v3062_v54  ;;  %v3023_v39 = vunpack.c.l.bf16 %v2983_v63 }
 0x3d2   :  { %v2984_v28 = vpack.c.bf16 %v2944_v9, %v2944_v9 }
 0x3d3   :  { %4064 = vmatmul.bf16.gmra.mxu2 %v9720_v27  ;;  %4741 = vmatpush.bf16.msra.mxu3 %v4496_v62  ;;  %v3302_v3 = vunpack.c.l.b16 %v3102_v49  ;;  %v3063_v55 = vsub.f32 %v2943_v59, %v3023_v39  ;;  %v3183_v49 = vunpack.c.l.b16 %v2983_v63  ;;  %v11223_v63 = vld [vmem:[#allocation37_spill] sm:$0xff] }
 0x3d4   :  { %4712 = vmatpush.bf16.msra.mxu2 %v11214_v37  ;;  %v9795_v50 = vpop.f32.mrf.mxu0  ;;  %v9797_v22 = vpop.f32.mrf.mxu1  ;;  %v3024_v11 = vunpack.c.l.bf16 %v2984_v28  ;;  %v3184_v7 = vunpack.c.l.b16 %v2984_v28 }
 0x3d5   :  { %v3323_v37 = vpack.c.b16 %v3302_v3, %v3301_v4  ;;  %v3511_v4 = vadd.f32 %v9797_v22, %v9795_v50 }
 0x3d6   :  { %v3064_v62 = vsub.f32 %v2944_v9, %v3024_v11  ;;  %v3204_v9 = vpack.c.b16 %v3184_v7, %v3183_v49 }
 0x3d7   :  { %4742 = vmatpush.bf16.msra.mxu3 %v4491_v57  ;;  %v9808_v18 = vpop.f32.mrf.mxu3  ;;  %v3103_v57 = vpack.c.bf16 %v3063_v55, %v3063_v55  ;;  %v9840_v50 = vpack.c.bf16 %v3511_v4, %v3511_v4 }
 0x3d8   :  { %4713 = vmatpush.bf16.msra.mxu2 %v11215_v0  ;;  %v11219_v0 = vld [vmem:[#allocation36_spill] sm:$0xff]  ;;  %v3104_v10 = vpack.c.bf16 %v3064_v62, %v3064_v62 }
 0x3d9   :  { %v3303_v14 = vunpack.c.l.b16 %v3103_v57 }
 0x3da   :  { %v3304_v59 = vunpack.c.l.b16 %v3104_v10 }
 0x3db   :  { %4743 = vmatpush.bf16.msra.mxu3 %v4486_v33 }
 0x3dc   :  { %4714 = vmatpush.bf16.msra.mxu2 %v11216_v2  ;;  %v3404_v35 = vpop.f32.mrf.mxu0  ;;  %v3513_v23 = vpop.f32.mrf.mxu1  ;;  %v3324_v61 = vpack.c.b16 %v3304_v59, %v3303_v14 }
 0x3dd   :  { %v3514_v34 = vadd.f32 %v3513_v23, %v3404_v35 }
 0x3df   :  { %4744 = vmatpush.bf16.msra.mxu3 %v4481_v29  ;;  %3443 = vmatmul.bf16.gmra.mxu0 %v3203_v36  ;;  %v9816_v25 = vpop.f32.mrf.mxu3  ;;  %v9824_v3 = vpack.c.bf16 %v3514_v34, %v3514_v34 }
 0x3e0   :  { %4715 = vmatpush.bf16.msra.mxu2 %v11217_v26  ;;  %3552 = vmatmul.bf16.gmra.mxu1 %v3323_v37  ;;  %v11224_v37 = vld [vmem:[#allocation35_spill] sm:$0xff] }
 0x3e1   :  { %v5028_v22 = vunpack.c.l.bf16 %v9824_v3 }
 0x3e2   :  { %4745 = vmatmul.bf16.vlgmr.msra.gmra.mxu3 %v9604_v8 }
 0x3e3   :  { %7194 = vmatpush.bf16.msrb.mxu3 %v11218_v40  ;;  %4658 = vmatmul.bf16.vlgmr.msrb.gmra.mxu2 %v9604_v8  ;;  %v5023_v40 = vunpack.c.l.bf16 %v9840_v50  ;;  %v5068_v55 = vsub.f32 %v3514_v34, %v5028_v22 }
 0x3e4   :  { %5374 = vmatpush.bf16.msrb.mxu2 %v9316_v47  ;;  %v3406_v13 = vpop.f32.mrf.mxu0  ;;  %v3515_v54 = vpop.f32.mrf.mxu1 }
 0x3e5   :  { %v3516_v38 = vadd.f32 %v3515_v54, %v3406_v13  ;;  %v5098_v14 = vpack.c.bf16 %v5068_v55, %v5068_v55  ;;  %v11228_v55 = vld [vmem:[#allocation73_spill] sm:$0xff] }
 0x3e7   :  { %7195 = vmatpush.bf16.msrb.mxu3 %v11219_v0  ;;  %v9826_v48 = vpack.c.bf16 %v3516_v38, %v3516_v38  ;;  %v9832_v28 = vpop.f32.mrf.mxu3 }
 0x3e8   :  { %5375 = vmatpush.bf16.msrb.mxu2 %v9291_v6  ;;  %v3509_v6 = vadd.f32 %v9786_v12, %v9784_v58  ;;  %v3506_v58 = vadd.f32 %v9772_v52, %v9770_v41  ;;  %v9849_v52 = vpack.c.bf16 %v9759_v31, %v9759_v31 }
 0x3e9   :  { %v5033_v36 = vunpack.c.l.bf16 %v9826_v48 }
 0x3ea   :  { %v9837_v12 = vpack.c.bf16 %v3509_v6, %v3509_v6  ;;  %v9851_v39 = vpack.c.bf16 %v3506_v58, %v3506_v58  ;;  %v5008_v10 = vunpack.c.l.bf16 %v9849_v52 }
 0x3eb   :  { %7196 = vmatpush.bf16.msrb.mxu3 %v11220_v19  ;;  %v5073_v62 = vsub.f32 %v3516_v38, %v5033_v36  ;;  %v5063_v19 = vsub.f32 %v3511_v4, %v5023_v40  ;;  %v4161_v40 = vadd.f32 %v9638_v32, %v9648_v16  ;;  %v5156_v32 = vunpack.c.l.b16 %v9824_v3 }
 0x3ec   :  { %5376 = vmatpush.bf16.msrb.mxu2 %v9274_v60  ;;  %v3409_v47 = vpop.f32.mrf.mxu0  ;;  %v3518_v2 = vpop.f32.mrf.mxu1  ;;  %v11222_v60 = vld [vmem:[#allocation72_spill] sm:$0xff]  ;;  %v5018_v11 = vunpack.c.l.bf16 %v9837_v12  ;;  %v5013_v49 = vunpack.c.l.bf16 %v9851_v39  ;;  %v5161_v16 = vunpack.c.l.b16 %v9826_v48  ;;  %v5151_v3 = vunpack.c.l.b16 %v9840_v50 }
 0x3ed   :  { %v3519_v21 = vadd.f32 %v3518_v2, %v3409_v47  ;;  %v5101_v59 = vpack.c.bf16 %v5073_v62, %v5073_v62  ;;  %v5095_v4 = vpack.c.bf16 %v5063_v19, %v5063_v19  ;;  %v5141_v50 = vunpack.c.l.b16 %v9851_v39  ;;  %v9925_v39 = vpop.f32.mrf.mxu2 }
 0x3ee   :  { %v5058_v7 = vsub.f32 %v3509_v6, %v5018_v11  ;;  %v5186_v48 = vpack.c.b16 %v5161_v16, %v5156_v32  ;;  %v11242_v32 = vld [vmem:[#allocation87_spill] sm:$0xff]  ;;  %v11243_v16 = vld [vmem:[#allocation46_spill] sm:$0xff] }
 0x3ef   :  { %7197 = vmatpush.bf16.msrb.mxu3 %v11221_v17  ;;  %v9828_v33 = vpack.c.bf16 %v3519_v21, %v3519_v21  ;;  %3448 = vmatmul.bf16.gmra.mxu0 %v3204_v9  ;;  %v9859_v54 = vpop.f32.mrf.mxu3  ;;  %v11226_v9 = vld [vmem:[#allocation30_spill] sm:$0xff] }
 0x3f0   :  { %5377 = vmatpush.bf16.msrb.mxu2 %v11222_v60  ;;  %3557 = vmatmul.bf16.gmra.mxu1 %v3324_v61  ;;  %v5053_v61 = vsub.f32 %v3506_v58, %v5013_v49  ;;  %v5092_v6 = vpack.c.bf16 %v5058_v7, %v5058_v7  ;;  %v5260_v60 = vunpack.c.l.b16 %v5098_v14  ;;  %v4169_v49 = vmul.f32 49.0, %v4161_v40  ;;  %v11230_v14 = vld [vmem:[#allocation76_spill] sm:$0xff] }
 0x3f1   :  { %v5038_v26 = vunpack.c.l.bf16 %v9828_v33  ;;  %v5166_v62 = vunpack.c.l.b16 %v9828_v33 }
 0x3f2   :  { %4750 = vmatmul.bf16.gmra.mxu3 %v9657_v45  ;;  %v5250_v58 = vunpack.c.l.b16 %v5092_v6 }
 0x3f3   :  { %7198 = vmatpush.bf16.msrb.mxu3 %v11223_v63  ;;  %4663 = vmatmul.bf16.gmra.mxu2 %v9657_v45  ;;  %v5078_v29 = vsub.f32 %v3519_v21, %v5038_v26  ;;  %v5048_v21 = vsub.f32 %v9759_v31, %v5008_v10  ;;  %v5265_v63 = vunpack.c.l.b16 %v5101_v59  ;;  %v5089_v31 = vpack.c.bf16 %v5053_v61, %v5053_v61  ;;  %v11229_v10 = vld [vmem:[#allocation105_spill] sm:$0xff] }
 0x3f4   :  { %5378 = vmatpush.bf16.msrb.mxu2 %v9303_v42  ;;  %v3411_v35 = vpop.f32.mrf.mxu0  ;;  %v3520_v23 = vpop.f32.mrf.mxu1  ;;  %v11225_v42 = vld [vmem:[#allocation32_spill] sm:$0xff] }
 0x3f5   :  { %v3521_v41 = vadd.f32 %v3520_v23, %v3411_v35  ;;  %v5104_v0 = vpack.c.bf16 %v5078_v29, %v5078_v29  ;;  %v5255_v35 = vunpack.c.l.b16 %v5095_v4  ;;  %v5290_v23 = vpack.c.b16 %v5265_v63, %v5260_v60  ;;  %v11234_v63 = vld [vmem:[#allocation118_spill] sm:$0xff] }
 0x3f7   :  { %7199 = vmatpush.bf16.msrb.mxu3 %v11224_v37  ;;  %v9855_v13 = vpack.c.bf16 %v3521_v41, %v3521_v41  ;;  %v5270_v47 = vunpack.c.l.b16 %v5104_v0  ;;  %v9873_v36 = vpop.f32.mrf.mxu3  ;;  %v5285_v11 = vpack.c.b16 %v5255_v35, %v5250_v58 }
 0x3f8   :  { %5379 = vmatpush.bf16.msrb.mxu2 %v9281_v43 }
 0x3f9   :  { %v5043_v57 = vunpack.c.l.bf16 %v9855_v13 }
 0x3fb   :  { %7200 = vmatpush.bf16.msrb.mxu3 %v11225_v42  ;;  %v5083_v34 = vsub.f32 %v3521_v41, %v5043_v57  ;;  %v5245_v41 = vunpack.c.l.b16 %v5089_v31  ;;  %v5171_v42 = vunpack.c.l.b16 %v9855_v13  ;;  %v11231_v13 = vld [vmem:[#allocation104_spill] sm:$0xff] }
 0x3fc   :  { %5380 = vmatpush.bf16.msrb.mxu2 %v9265_v53  ;;  %v3414_v38 = vpop.f32.mrf.mxu0  ;;  %v3523_v43 = vpop.f32.mrf.mxu1  ;;  %v11227_v53 = vld [vmem:[#allocation70_spill] sm:$0xff]  ;;  %v4087_v59 = vmul.f32 %v11231_v13, %v11231_v13 }
 0x3fd   :  { %v5107_v2 = vpack.c.bf16 %v5083_v34, %v5083_v34  ;;  %v9866_v17 = vadd.f32 %v3523_v43, %v3414_v38  ;;  %v5191_v33 = vpack.c.b16 %v5171_v42, %v5166_v62  ;;  %v11232_v38 = vld [vmem:[#allocation75_spill] sm:$0xff]  ;;  %v5146_v43 = vunpack.c.l.b16 %v9837_v12  ;;  %v11240_v62 = vld [vmem:[#allocation86_spill] sm:$0xff] }
 0x3fe   :  { %v5136_v12 = vunpack.c.l.b16 %v9849_v52  ;;  %v11241_v42 = vld [vmem:[#allocation107_spill] sm:$0xff] }
 0x3ff   :  { %7201 = vmatpush.bf16.msrb.mxu3 %v11226_v9  ;;  %v5275_v26 = vunpack.c.l.b16 %v5107_v2  ;;  %5324 = vmatmul.bf16.vlgmr.msrb.gmra.mxu0 %v9604_v8  ;;  %v9888_v57 = vpop.f32.mrf.mxu3  ;;  %v5181_v6 = vpack.c.b16 %v5151_v3, %v5146_v43  ;;  %v11247_v3 = vld [vmem:[#allocation109_spill] sm:$0xff] }
 0x400   :  { %5381 = vmatpush.bf16.msrb.mxu2 %v11227_v53  ;;  %5353 = vmatmul.bf16.vlgmr.msrb.gmra.mxu1 %v9604_v8 }
 0x401   :  { %v5295_v22 = vpack.c.b16 %v5275_v26, %v5270_v47  ;;  %v11235_v26 = vld [vmem:[#allocation117_spill] sm:$0xff] }
 0x402   :  { %4755 = vmatmul.bf16.gmra.mxu3 %v9683_v5  ;;  %v4163_v53 = vadd.f32 %v11235_v26, %v11234_v63  ;;  %v11251_v63 = vld [vmem:[#allocation44_spill] sm:$0xff]  ;;  %v11252_v26 = vld [vmem:[#allocation19_spill] sm:$0xff] }
 0x403   :  { %5403 = vmatpush.bf16.msra.mxu3 %v9318_v44  ;;  %v5086_v44 = vpack.c.bf16 %v5048_v21, %v5048_v21  ;;  %4668 = vmatmul.bf16.gmra.mxu2 %v9683_v5  ;;  %v11233_v21 = vld [vmem:[#allocation74_spill] sm:$0xff] }
 0x404   :  { %5432 = vmatpush.bf16.msra.mxu0 %v5295_v22  ;;  %v9878_v37 = vpop.f32.mrf.mxu0  ;;  %v9880_v29 = vpop.f32.mrf.mxu1  ;;  %v11236_v22 = vld [vmem:[#allocation71_spill] sm:$0xff]  ;;  %v4171_v52 = vmul.f32 49.0, %v4163_v53 }
 0x407   :  { %5404 = vmatpush.bf16.msra.mxu3 %v9293_v1  ;;  %v5240_v1 = vunpack.c.l.b16 %v5086_v44  ;;  %v9913_v61 = vpop.f32.mrf.mxu3 }
 0x408   :  { %5433 = vmatpush.bf16.msra.mxu0 %v5290_v23  ;;  %v11237_v23 = vld [vmem:[#allocation108_spill] sm:$0xff] }
 0x409   :  { %v5280_v0 = vpack.c.b16 %v5245_v41, %v5240_v1  ;;  %v4081_v1 = vmul.f32 %v11237_v23, %v11237_v23  ;;  %v11238_v41 = vld [vmem:[#allocation116_spill] sm:$0xff] }
 0x40a   :  { %7230 = vrcp.f32 %v11238_v41 }
 0x40b   :  { %5405 = vmatpush.bf16.msra.mxu3 %v9276_v24  ;;  %v4079_v24 = vmul.f32 %v11229_v10, %v11229_v10 }
 0x40c   :  { %5434 = vmatpush.bf16.msra.mxu0 %v5285_v11  ;;  %v9892_v7 = vpop.f32.mrf.mxu0  ;;  %v9894_v19 = vpop.f32.mrf.mxu1  ;;  %v5176_v11 = vpack.c.b16 %v5141_v50, %v5136_v12  ;;  %v11250_v12 = vld [vmem:[#allocation83_spill] sm:$0xff] }
 0x40d   :  { %v4177_v34 = vsub.f32 %v4169_v49, %v4079_v24  ;;  %v4112_v4 = vadd.f32 %v4087_v59, %v4079_v24  ;;  %v4179_v24 = vsub.f32 %v4171_v52, %v4081_v1  ;;  %v9935_v49 = vmul.f32 %v11231_v13, %v11229_v10  ;;  %v11246_v13 = vld [vmem:[#allocation106_spill] sm:$0xff] }
 0x40e   :  { %v4094_v43 = vmul.f32 2.0, %v11246_v13 }
 0x40f   :  { %5406 = vmatpush.bf16.msra.mxu3 %v11228_v55  ;;  %5329 = vmatmul.bf16.gmra.mxu0 %v9657_v45  ;;  %v4185_v9 = vsub.f32 %v4177_v34, %v4087_v59  ;;  %v4120_v44 = vadd.f32 %v4112_v4, %v9646_v15  ;;  %v9927_v40 = vpop.f32.mrf.mxu3  ;;  %v11244_v34 = vld [vmem:[#allocation82_spill] sm:$0xff] }
 0x410   :  { %5435 = vmatpush.bf16.msra.mxu0 %v5280_v0  ;;  %5358 = vmatmul.bf16.gmra.mxu1 %v9657_v45  ;;  %11239 = vst [vmem:[#allocation28_spill] sm:$0xff] %v9927_v40  ;;  %v4089_v0 = vmul.f32 %v11241_v42, %v11241_v42 }
 0x411   :  { %v4193_v60 = vmul.f32 1.0208334, %v4185_v9 }
 0x412   :  { %4760 = vmatmul.bf16.gmra.mxu3 %v9720_v27  ;;  %v4187_v10 = vsub.f32 %v4179_v24, %v4089_v0  ;;  %v4114_v50 = vadd.f32 %v4089_v0, %v4081_v1  ;;  %v11254_v0 = vld [vmem:[#allocation110_spill] sm:$0xff] }
 0x413   :  { %5407 = vmatpush.bf16.msra.mxu3 %v11230_v14  ;;  %4673 = vmatmul.bf16.gmra.mxu2 %v9720_v27  ;;  %v4201_v31 = vadd.f32 %v4193_v60, %v9652_v30  ;;  %v7231_v14 = vpop.eup %7230  ;;  %v4091_v24 = vmul.f32 %v11254_v0, %v11254_v0 }
 0x414   :  { %5436 = vmatpush.bf16.msra.mxu0 %v5191_v33  ;;  %v9908_v47 = vpop.f32.mrf.mxu0  ;;  %v9910_v2 = vpop.f32.mrf.mxu1  ;;  %v4195_v53 = vmul.f32 1.0208334, %v4187_v10 }
 0x415   :  { %v4209_v55 = vmul.f32 %v4201_v31, %v4120_v44 }
 0x417   :  { %5408 = vmatpush.bf16.msra.mxu3 %v11232_v38  ;;  %7232 = vrcp.f32 %v4209_v55  ;;  %v11245_v38 = vld [vmem:[#allocation29_spill] sm:$0xff]  ;;  %v9954_v44 = vpop.f32.mrf.mxu3 }
 0x418   :  { %5437 = vmatpush.bf16.msra.mxu0 %v5186_v48  ;;  %7234 = vrcp.f32 %v11245_v38  ;;  %v4096_v48 = vmul.f32 2.0, %v11247_v3  ;;  %11253 = vst [vmem:[#allocation26_spill] sm:$0xff] %v9954_v44 }
 0x41b   :  { %5409 = vmatpush.bf16.msra.mxu3 %v11233_v21  ;;  %v11248_v21 = vld [vmem:[#allocation24_spill] sm:$0xff] }
 0x41c   :  { %5438 = vmatpush.bf16.msra.mxu0 %v5181_v6  ;;  %v3424_v58 = vpop.f32.mrf.mxu0  ;;  %v3533_v35 = vpop.f32.mrf.mxu1  ;;  %v11249_v6 = vld [vmem:[#allocation27_spill] sm:$0xff] }
 0x41d   :  { %v4165_v4 = vadd.f32 %v11249_v6, %v11248_v21  ;;  %v9956_v31 = vpop.eup %7232  ;;  %v11258_v6 = vld [vmem:[#allocation25_spill] sm:$0xff] }
 0x41f   :  { %5410 = vmatpush.bf16.msra.mxu3 %v11236_v22 }
 0x420   :  { %5439 = vmatpush.bf16.msra.mxu0 %v5176_v11  ;;  %5363 = vmatmul.bf16.gmra.mxu1 %v9683_v5  ;;  %v9963_v11 = vadd.f32 %v9646_v15, %v4096_v48  ;;  %v11257_v48 = vld [vmem:[#allocation42_spill] sm:$0xff] }
 0x422   :  { %5334 = vmatmul.bf16.vlgmr.msrb.gmra.mxu3 %v9683_v5  ;;  %v4095_v5 = vmul.f32 2.0, %v9935_v49 }
 0x423   :  { %5440 = vmatmul.bf16.vlgmr.msra.gmra.mxu0 %v9604_v8  ;;  %4716 = vmatmul.bf16.vlgmr.msra.gmra.mxu2 %v9604_v8  ;;  %v4224_v8 = vmul.f32 %v7231_v14, %v11238_v41  ;;  %v4103_v41 = vadd.f32 %v9646_v15, %v4094_v43  ;;  %v4122_v43 = vadd.f32 %v4114_v50, %v9646_v15 }
 0x424   :  { %6098 = vmatpush.bf16.msrb.mxu0 %v11240_v62  ;;  %6069 = vmatpush.bf16.msrb.mxu3 %v11242_v32  ;;  %v3426_v33 = vpop.f32.mrf.mxu0  ;;  %v3535_v59 = vpop.f32.mrf.mxu1  ;;  %v9960_v52 = vadd.f32 %v9646_v15, %v4095_v5  ;;  %v11255_v32 = vld [vmem:[#allocation111_spill] sm:$0xff]  ;;  %v9973_v5 = vadd.f32 %v3533_v35, %v3424_v58  ;;  %v9986_v35 = vadd.f32 %v9894_v19, %v9892_v7 }
 0x425   :  { %6040 = vmatpush.bf16.msra.mxu2 %v11243_v16  ;;  %v4232_v1 = vsub.f32 2.0, %v4224_v8  ;;  %v9965_v62 = vpop.eup %7234  ;;  %v4083_v16 = vmul.f32 %v11255_v32, %v11255_v32  ;;  %v11260_v19 = vld [vmem:[#allocation39_spill] sm:$0xff] }
 0x426   :  { %v4050_v9 = vpop.f32.mrf.mxu2  ;;  %v4226_v58 = vmul.f32 %v9965_v62, %v11245_v38 }
 0x427   :  { %v4127_v60 = vmul.f32 49.0, %v4050_v9  ;;  %v9975_v9 = vadd.f32 %v3535_v59, %v3426_v33  ;;  %v4240_v33 = vmul.f32 %v7231_v14, %v4232_v1  ;;  %v11261_v14 = vld [vmem:[#allocation84_spill] sm:$0xff] }
 0x428   :  { %6099 = vmatpush.bf16.msrb.mxu0 %v11244_v34  ;;  %6070 = vmatpush.bf16.msrb.mxu3 %v11250_v12  ;;  %v4173_v34 = vmul.f32 49.0, %v4165_v4  ;;  %v4203_v12 = vadd.f32 %v4195_v53, %v9652_v30  ;;  %v11259_v53 = vld [vmem:[#allocation41_spill] sm:$0xff] }
 0x429   :  { %6041 = vmatpush.bf16.msra.mxu2 %v11251_v63  ;;  %v4135_v22 = vsub.f32 %v4127_v60, %v11246_v13  ;;  %v11256_v13 = vld [vmem:[#allocation79_spill] sm:$0xff]  ;;  %v4116_v60 = vadd.f32 %v4091_v24, %v4083_v16  ;;  %v10001_v7 = vpack.c.bf16 %v9975_v9, %v9975_v9 }
 0x42a   :  { %v4181_v50 = vsub.f32 %v4173_v34, %v4083_v16  ;;  %v10005_v38 = vmul.f32 %v4203_v12, %v4122_v43  ;;  %v10016_v34 = vadd.f32 %v9880_v29, %v9878_v37  ;;  %v10020_v43 = vpack.c.bf16 %v9986_v35, %v9986_v35  ;;  %v11263_v37 = vld [vmem:[#allocation85_spill] sm:$0xff]  ;;  %v10033_v29 = vpop.f32.mrf.mxu3 }
 0x42b   :  { %v4143_v10 = vmul.f32 2.0416667, %v4135_v22  ;;  %11264 = vst [vmem:[#allocation23_spill] sm:$0xff] %v10033_v29  ;;  %v5728_v12 = vunpack.c.l.bf16 %v10001_v7  ;;  %v250_v29 = vld [vmem:[#allocation12 + $0x8] sm:$0xff] }
 0x42c   :  { %6100 = vmatpush.bf16.msrb.mxu0 %v11252_v26  ;;  %6071 = vmatpush.bf16.msrb.mxu3 %v11256_v13  ;;  %v3429_v8 = vpop.f32.mrf.mxu0  ;;  %v3538_v21 = vpop.f32.mrf.mxu1  ;;  %v4225_v26 = vmul.f32 %v9956_v31, %v4209_v55  ;;  %v9997_v55 = vpack.c.bf16 %v9973_v5, %v9973_v5  ;;  %7236 = vrcp.f32 %v10005_v38 }
 0x42d   :  { %6042 = vmatpush.bf16.msra.mxu2 %v11257_v48  ;;  %v4152_v4 = vadd.f32 %v9652_v30, %v4143_v10  ;;  %v3539_v63 = vadd.f32 %v3538_v21, %v3429_v8  ;;  %v9993_v10 = vadd.f32 %v9910_v2, %v9908_v47  ;;  %v10012_v2 = vmul.f32 %v11241_v42, %v11237_v23  ;;  %v11262_v8 = vld [vmem:[#allocation114_spill] sm:$0xff] }
 0x42e   :  { %v4052_v59 = vpop.f32.mrf.mxu2  ;;  %v4233_v16 = vsub.f32 2.0, %v4225_v26  ;;  %v10029_v23 = vmul.f32 %v11262_v8, %v11262_v8  ;;  %v4234_v42 = vsub.f32 2.0, %v4226_v58 }
 0x42f   :  { %v4248_v22 = vmul.f32 %v4152_v4, %v4103_v41  ;;  %v9988_v13 = vpack.c.bf16 %v3539_v63, %v3539_v63  ;;  %v4128_v48 = vmul.f32 49.0, %v4052_v59  ;;  %v11265_v4 = vld [vmem:[#allocation47_spill] sm:$0xff] }
 0x430   :  { %6101 = vmatpush.bf16.msrb.mxu0 %v11258_v6  ;;  %6072 = vmatpush.bf16.msrb.mxu3 %v11259_v53  ;;  %v4189_v6 = vsub.f32 %v4181_v50, %v4091_v24  ;;  %v10047_v50 = vpack.c.bf16 %v9866_v17, %v9866_v17  ;;  %v4241_v53 = vmul.f32 %v9956_v31, %v4233_v16  ;;  %v11268_v31 = vld [vmem:[#allocation45_spill] sm:$0xff]  ;;  %v11269_v16 = vld [vmem:[#allocation22_spill] sm:$0xff] }
 0x431   :  { %6043 = vmatpush.bf16.msra.mxu2 %v11260_v19  ;;  %v4256_v41 = vmul.f32 %v4248_v22, %v4240_v33  ;;  %v5733_v1 = vunpack.c.l.bf16 %v9988_v13  ;;  %v4136_v47 = vsub.f32 %v4128_v48, %v9935_v49  ;;  %5368 = vmatmul.bf16.gmra.mxu1 %v9720_v27  ;;  %v10025_v49 = vadd.f32 %v4116_v60, %v9646_v15  ;;  %v11266_v33 = vld [vmem:[#allocation80_spill] sm:$0xff] }
 0x432   :  { %5339 = vmatmul.bf16.gmra.mxu3 %v9720_v27  ;;  %v10037_v27 = vpack.c.bf16 %v9993_v10, %v9993_v10  ;;  %v5723_v60 = vunpack.c.l.bf16 %v9997_v55  ;;  %v10051_v22 = vpack.c.bf16 %v10016_v34, %v10016_v34  ;;  %v5713_v48 = vunpack.c.l.bf16 %v10020_v43 }
 0x433   :  { %5445 = vmatmul.bf16.gmra.mxu0 %v9657_v45  ;;  %v4144_v21 = vmul.f32 2.0416667, %v4136_v47  ;;  %4721 = vmatmul.bf16.gmra.mxu2 %v9657_v45  ;;  %v5773_v45 = vsub.f32 %v3539_v63, %v5733_v1  ;;  %v4242_v1 = vmul.f32 %v9965_v62, %v4234_v42  ;;  %v4167_v42 = vadd.f32 %v9779_v51, %v9925_v39  ;;  %v11272_v39 = vld [vmem:[#allocation43_spill] sm:$0xff] }
 0x434   :  { %6102 = vmatpush.bf16.msrb.mxu0 %v11261_v14  ;;  %6073 = vmatpush.bf16.msrb.mxu3 %v11263_v37  ;;  %v3431_v26 = vpop.f32.mrf.mxu0  ;;  %v3540_v58 = vpop.f32.mrf.mxu1  ;;  %v4197_v37 = vmul.f32 1.0208334, %v4189_v6  ;;  %v5703_v6 = vunpack.c.l.bf16 %v10047_v50 }
 0x435   :  { %6044 = vmatpush.bf16.msra.mxu2 %v11265_v4  ;;  %v4153_v59 = vadd.f32 %v9652_v30, %v4144_v21  ;;  %v3541_v24 = vadd.f32 %v3540_v58, %v3431_v26  ;;  %v11267_v21 = vld [vmem:[#allocation81_spill] sm:$0xff]  ;;  %v5718_v4 = vunpack.c.l.bf16 %v10037_v27  ;;  %v5763_v26 = vsub.f32 %v9973_v5, %v5723_v60  ;;  %v10072_v60 = vpop.eup %7236 }
 0x436   :  { %v4055_v19 = vpop.f32.mrf.mxu2  ;;  %v5768_v58 = vsub.f32 %v9975_v9, %v5728_v12  ;;  %v5708_v5 = vunpack.c.l.bf16 %v10051_v22  ;;  %v5753_v9 = vsub.f32 %v9986_v35, %v5713_v48 }
 0x437   :  { %v4249_v14 = vmul.f32 %v4153_v59, %v9960_v52  ;;  %v10056_v47 = vpack.c.bf16 %v3541_v24, %v3541_v24  ;;  %v4129_v63 = vmul.f32 49.0, %v4055_v19  ;;  %v5799_v52 = vpack.c.bf16 %v5773_v45, %v5773_v45 }
 0x438   :  { %6103 = vmatpush.bf16.msrb.mxu0 %v11266_v33  ;;  %6074 = vmatpush.bf16.msrb.mxu3 %v11267_v21  ;;  %v249_v33 = vld [vmem:[#allocation12] sm:$0xff]  ;;  %v5796_v51 = vpack.c.bf16 %v5768_v58, %v5768_v58  ;;  %v5743_v58 = vsub.f32 %v9866_v17, %v5703_v6 }
 0x439   :  { %6045 = vmatpush.bf16.msra.mxu2 %v11268_v31  ;;  %v4257_v59 = vmul.f32 %v4249_v14, %v4241_v53  ;;  %v5738_v19 = vunpack.c.l.bf16 %v10056_v47  ;;  %v4137_v62 = vsub.f32 %v4129_v63, %v11247_v3  ;;  %v4264_v12 = vmul.f32 %v4256_v41, %v249_v33  ;;  %v11270_v53 = vld [vmem:[#allocation38_spill] sm:$0xff]  ;;  %v11271_v14 = vld [vmem:[#allocation21_spill] sm:$0xff]  ;;  %v10083_v33 = vpop.f32.mrf.mxu3 }
 0x43a   :  { %7238 = vrcp.f32 %v11271_v14  ;;  %v5758_v3 = vsub.f32 %v9993_v10, %v5718_v4  ;;  %v5793_v63 = vpack.c.bf16 %v5763_v26, %v5763_v26  ;;  %v5965_v48 = vunpack.c.l.b16 %v5799_v52  ;;  %v11277_v6 = vld [vmem:[#allocation98_spill] sm:$0xff] }
 0x43b   :  { %v4265_v21 = vmul.f32 %v4257_v59, %v250_v29  ;;  %v5778_v31 = vsub.f32 %v3541_v24, %v5738_v19  ;;  %v4145_v45 = vmul.f32 2.0416667, %v4137_v62  ;;  %v11274_v24 = vld [vmem:[#allocation102_spill] sm:$0xff]  ;;  %v4227_v10 = vmul.f32 %v10072_v60, %v10005_v38 }
 0x43c   :  { %6104 = vmatpush.bf16.msrb.mxu0 %v11269_v16  ;;  %6075 = vmatpush.bf16.msrb.mxu3 %v11270_v53  ;;  %v11273_v16 = vld [vmem:[#allocation77_spill] sm:$0xff]  ;;  %v3434_v44 = vpop.f32.mrf.mxu0  ;;  %v3543_v35 = vpop.f32.mrf.mxu1  ;;  %v4205_v4 = vadd.f32 %v4197_v37, %v9652_v30  ;;  %v4175_v26 = vmul.f32 49.0, %v4167_v42  ;;  %v5748_v52 = vsub.f32 %v10016_v34, %v5708_v5  ;;  %v5955_v53 = vunpack.c.l.b16 %v5793_v63  ;;  %v10096_v34 = vld [vmem:[#allocation9] sm:$0xff] }
 0x43d   :  { %6046 = vmatpush.bf16.msra.mxu2 %v11272_v39  ;;  %v10079_v40 = vadd.f32 %v4265_v21, %v4264_v12  ;;  %v5802_v41 = vpack.c.bf16 %v5778_v31, %v5778_v31  ;;  %v4154_v29 = vadd.f32 %v9652_v30, %v4145_v45  ;;  %v11275_v21 = vld [vmem:[#allocation78_spill] sm:$0xff]  ;;  %v5787_v31 = vpack.c.bf16 %v5753_v9, %v5753_v9  ;;  %v11278_v5 = vld [vmem:[#allocation113_spill] sm:$0xff] }
 0x43e   :  { %v4057_v59 = vpop.f32.mrf.mxu2  ;;  %v5790_v45 = vpack.c.bf16 %v5758_v3, %v5758_v3  ;;  %v5960_v39 = vunpack.c.l.b16 %v5796_v51  ;;  %v4097_v38 = vmul.f32 2.0, %v10012_v2  ;;  %v4093_v9 = vmul.f32 %v11278_v5, %v11278_v5 }
 0x43f   :  { %v5970_v19 = vunpack.c.l.b16 %v5802_v41  ;;  %v4250_v62 = vmul.f32 %v4154_v29, %v9963_v11  ;;  %v4130_v12 = vmul.f32 49.0, %v4057_v59  ;;  %v10104_v3 = vmul.f32 %v4205_v4, %v10025_v49  ;;  %v11279_v41 = vld [vmem:[#allocation61_spill] sm:$0xff] }
 0x440   :  { %6105 = vmatpush.bf16.msrb.mxu0 %v11273_v16  ;;  %6076 = vmatpush.bf16.msrb.mxu3 %v11275_v21  ;;  %v11276_v16 = vld [vmem:[#allocation40_spill] sm:$0xff]  ;;  %v10099_v11 = vpop.eup %7238  ;;  %v4183_v63 = vsub.f32 %v4175_v26, %v10029_v23  ;;  %v5781_v51 = vpack.c.bf16 %v5743_v58, %v5743_v58  ;;  %v10113_v29 = vadd.f32 %v3543_v35, %v3434_v44  ;;  %v5945_v49 = vunpack.c.l.b16 %v5787_v31  ;;  %v11280_v58 = vld [vmem:[#allocation94_spill] sm:$0xff] }
 0x441   :  { %6047 = vmatpush.bf16.msra.mxu2 %v11276_v16  ;;  %v5990_v37 = vpack.c.b16 %v5970_v19, %v5965_v48  ;;  %v4258_v42 = vmul.f32 %v4250_v62, %v4242_v1  ;;  %v4138_v17 = vsub.f32 %v4130_v12, %v10012_v2  ;;  %6019 = vmatmul.bf16.vlgmr.msra.gmra.mxu1 %v10096_v34  ;;  %v10108_v1 = vld [vmem:[#allocation9 + $0x10] sm:$0xff]  ;;  %v4235_v2 = vsub.f32 2.0, %v4227_v10 }
 0x442   :  { %5411 = vmatmul.bf16.vlgmr.msra.gmra.mxu3 %v10096_v34  ;;  %v5950_v4 = vunpack.c.l.b16 %v5790_v45  ;;  %v5985_v26 = vpack.c.b16 %v5960_v39, %v5955_v53  ;;  %v4106_v62 = vadd.f32 %v9646_v15, %v4097_v38  ;;  %v4228_v12 = vmul.f32 %v10099_v11, %v11271_v14  ;;  %v11281_v45 = vld [vmem:[#allocation57_spill] sm:$0xff]  ;;  %v10127_v53 = vpop.f32.mrf.mxu3  ;;  %v251_v38 = vld [vmem:[#allocation12 + $0x10] sm:$0xff] }
 0x443   :  { %5450 = vmatmul.bf16.gmra.mxu0 %v10108_v1  ;;  %v4146_v48 = vmul.f32 2.0416667, %v4138_v17  ;;  %4726 = vmatmul.bf16.gmra.mxu2 %v10108_v1  ;;  %7240 = vrcp.f32 %v10104_v3  ;;  %v4191_v44 = vsub.f32 %v4183_v63, %v4093_v9  ;;  %v5935_v39 = vunpack.c.l.b16 %v5781_v51  ;;  %v11284_v51 = vld [vmem:[#allocation53_spill] sm:$0xff] }
 0x444   :  { %6764 = vmatpush.bf16.msra.mxu0 %v11274_v24  ;;  %6735 = vmatpush.bf16.msra.mxu3 %v11279_v41  ;;  %v5784_v24 = vpack.c.bf16 %v5748_v52, %v5748_v52  ;;  %v10115_v59 = vpop.f32.mrf.mxu0  ;;  %v10117_v19 = vpop.f32.mrf.mxu1  ;;  %v4243_v52 = vmul.f32 %v10072_v60, %v4235_v2  ;;  %v5980_v17 = vpack.c.b16 %v5950_v4, %v5945_v49  ;;  %v11283_v41 = vld [vmem:[#allocation90_spill] sm:$0xff]  ;;  %v4236_v2 = vsub.f32 2.0, %v4228_v12  ;;  %v11285_v12 = vld [vmem:[#allocation100_spill] sm:$0xff] }
 0x445   :  { %6127 = vmatpush.bf16.msrb.mxu1 %v5990_v37  ;;  %v4155_v10 = vadd.f32 %v9652_v30, %v4146_v48  ;;  %v252_v37 = vld [vmem:[#allocation12 + $0x18] sm:$0xff]  ;;  %v4118_v60 = vadd.f32 %v4093_v9, %v10029_v23  ;;  %v5866_v49 = vunpack.c.l.b16 %v10056_v47  ;;  %v4075_v23 = vmul.f32 %v11254_v0, %v11255_v32 }
 0x446   :  { %v4060_v35 = vpop.f32.mrf.mxu2  ;;  %v5940_v16 = vunpack.c.l.b16 %v5784_v24  ;;  %7242 = vrcp.f32 %v9774_v46 }
 0x447   :  { %v4251_v21 = vmul.f32 %v4155_v10, %v4106_v62  ;;  %v4131_v31 = vmul.f32 49.0, %v4060_v35  ;;  %v4199_v62 = vmul.f32 1.0208334, %v4191_v44  ;;  %v4266_v10 = vmul.f32 %v4258_v42, %v251_v38  ;;  %v11286_v38 = vld [vmem:[#allocation49_spill] sm:$0xff] }
 0x448   :  { %6765 = vmatpush.bf16.msra.mxu0 %v11277_v6  ;;  %6736 = vmatpush.bf16.msra.mxu3 %v11281_v45  ;;  %v11282_v6 = vld [vmem:[#allocation112_spill] sm:$0xff]  ;;  %v5975_v4 = vpack.c.b16 %v5940_v16, %v5935_v39 }
 0x449   :  { %6128 = vmatpush.bf16.msrb.mxu1 %v5985_v26  ;;  %v4098_v14 = vmul.f32 2.0, %v11282_v6  ;;  %v4259_v48 = vmul.f32 %v4251_v21, %v4243_v52  ;;  %v4139_v63 = vsub.f32 %v4131_v31, %v11282_v6  ;;  %v7241_v24 = vpop.eup %7240  ;;  %v5861_v26 = vunpack.c.l.b16 %v9988_v13 }
 0x44a   :  { %v4126_v13 = vadd.f32 %v4118_v60, %v9646_v15  ;;  %v4207_v47 = vadd.f32 %v4199_v62, %v9652_v30  ;;  %v4244_v31 = vmul.f32 %v10099_v11, %v4236_v2  ;;  %v4229_v39 = vmul.f32 %v7241_v24, %v10104_v3  ;;  %v11287_v11 = vld [vmem:[#allocation96_spill] sm:$0xff]  ;;  %v10159_v3 = vld [vmem:[#allocation9 + $0x8] sm:$0xff]  ;;  %v10162_v60 = vld [vmem:[#allocation9 + $0x18] sm:$0xff] }
 0x44b   :  { %v4147_v35 = vmul.f32 2.0416667, %v4139_v63  ;;  %v4107_v21 = vadd.f32 %v9646_v15, %v4098_v14  ;;  %v5886_v6 = vpack.c.b16 %v5866_v49, %v5861_v26  ;;  %v4099_v14 = vmul.f32 2.0, %v4075_v23  ;;  %v11288_v2 = vld [vmem:[#allocation60_spill] sm:$0xff] }
 0x44c   :  { %6766 = vmatpush.bf16.msra.mxu0 %v11280_v58  ;;  %v4267_v58 = vmul.f32 %v4259_v48, %v252_v37  ;;  %6737 = vmatpush.bf16.msra.mxu3 %v11284_v51  ;;  %v10136_v52 = vpop.f32.mrf.mxu0  ;;  %v5851_v37 = vunpack.c.l.b16 %v9997_v55  ;;  %v4237_v55 = vsub.f32 2.0, %v4229_v39  ;;  %v7243_v62 = vpop.eup %7242 }
 0x44d   :  { %6129 = vmatpush.bf16.msrb.mxu1 %v5980_v17  ;;  %v4156_v42 = vadd.f32 %v9652_v30, %v4147_v35  ;;  %v10143_v44 = vpop.f32.mrf.mxu1  ;;  %v5856_v17 = vunpack.c.l.b16 %v10001_v7  ;;  %v4108_v26 = vadd.f32 %v9646_v15, %v4099_v14 }
 0x44e   :  { %v4273_v9 = vadd.f32 %v4267_v58, %v4266_v10  ;;  %v4062_v45 = vpop.f32.mrf.mxu2  ;;  %v5841_v10 = vunpack.c.l.b16 %v10020_v43  ;;  %v5846_v58 = vunpack.c.l.b16 %v10037_v27  ;;  %v11290_v27 = vld [vmem:[#allocation56_spill] sm:$0xff] }
 0x44f   :  { %v4252_v32 = vmul.f32 %v4156_v42, %v4107_v21  ;;  %v4132_v16 = vmul.f32 49.0, %v4062_v45  ;;  %v5881_v35 = vpack.c.b16 %v5856_v17, %v5851_v37  ;;  %v4245_v42 = vmul.f32 %v7241_v24, %v4237_v55  ;;  %v11291_v45 = vld [vmem:[#allocation115_spill] sm:$0xff] }
 0x450   :  { %6767 = vmatpush.bf16.msra.mxu0 %v11283_v41  ;;  %v10151_v0 = vadd.f32 %v4273_v9, %v10079_v40  ;;  %6738 = vmatpush.bf16.msra.mxu3 %v11286_v38  ;;  %v10157_v41 = vpop.f32.mrf.mxu3  ;;  %v4215_v40 = vmul.f32 %v4207_v47, %v4126_v13  ;;  %v4230_v9 = vmul.f32 %v7243_v62, %v9774_v46  ;;  %v253_v13 = vld [vmem:[#allocation12 + $0x20] sm:$0xff]  ;;  %v254_v47 = vld [vmem:[#allocation12 + $0x28] sm:$0xff]  ;;  %v4100_v39 = vmul.f32 2.0, %v11291_v45  ;;  %v11292_v38 = vld [vmem:[#allocation88_spill] sm:$0xff] }
 0x451   :  { %6130 = vmatpush.bf16.msrb.mxu1 %v5975_v4  ;;  %v4260_v48 = vmul.f32 %v4252_v32, %v4244_v31  ;;  %v4140_v63 = vsub.f32 %v4132_v16, %v4075_v23  ;;  %v11289_v4 = vld [vmem:[#allocation92_spill] sm:$0xff]  ;;  %v5876_v31 = vpack.c.b16 %v5846_v58, %v5841_v10  ;;  %v5831_v37 = vunpack.c.l.b16 %v10047_v50 }
 0x452   :  { %6024 = vmatmul.bf16.gmra.mxu1 %v10159_v3  ;;  %5416 = vmatmul.bf16.gmra.mxu3 %v10159_v3  ;;  %7244 = vrcp.f32 %v4215_v40  ;;  %v5836_v46 = vunpack.c.l.b16 %v10051_v22  ;;  %v4238_v24 = vsub.f32 2.0, %v4230_v9  ;;  %v4077_v10 = vmul.f32 %v11278_v5, %v11262_v8  ;;  %v11294_v9 = vld [vmem:[#allocation48_spill] sm:$0xff] }
 0x453   :  { %5455 = vmatmul.bf16.gmra.mxu0 %v10162_v60  ;;  %v4148_v7 = vmul.f32 2.0416667, %v4140_v63  ;;  %4731 = vmatmul.bf16.gmra.mxu2 %v10162_v60  ;;  %v4268_v17 = vmul.f32 %v4260_v48, %v253_v13  ;;  %v11293_v63 = vld [vmem:[#allocation52_spill] sm:$0xff] }
 0x454   :  { %6768 = vmatpush.bf16.msra.mxu0 %v11285_v12  ;;  %6739 = vmatpush.bf16.msra.mxu3 %v11288_v2  ;;  %v10170_v51 = vpop.f32.mrf.mxu0  ;;  %v4109_v2 = vadd.f32 %v9646_v15, %v4100_v39  ;;  %v5871_v48 = vpack.c.b16 %v5836_v46, %v5831_v37 }
 0x455   :  { %6131 = vmatpush.bf16.msrb.mxu1 %v5886_v6  ;;  %v4157_v49 = vadd.f32 %v9652_v30, %v4148_v7  ;;  %v10175_v21 = vpop.f32.mrf.mxu1 }
 0x456   :  { %v4065_v23 = vpop.f32.mrf.mxu2 }
 0x457   :  { %v4253_v43 = vmul.f32 %v4157_v49, %v4108_v26  ;;  %v4133_v12 = vmul.f32 49.0, %v4065_v23  ;;  %v4246_v49 = vmul.f32 %v7243_v62, %v4238_v24  ;;  %v255_v24 = vld [vmem:[#allocation12 + $0x30] sm:$0xff] }
 0x458   :  { %6769 = vmatpush.bf16.msra.mxu0 %v11287_v11  ;;  %6740 = vmatpush.bf16.msra.mxu3 %v11290_v27  ;;  %v10185_v11 = vpop.f32.mrf.mxu3  ;;  %v7245_v55 = vpop.eup %7244  ;;  %v11295_v27 = vld [vmem:[#allocation103_spill] sm:$0xff] }
 0x459   :  { %6132 = vmatpush.bf16.msrb.mxu1 %v5881_v35  ;;  %v4261_v32 = vmul.f32 %v4253_v43, %v4245_v42  ;;  %v4141_v16 = vsub.f32 %v4133_v12, %v11291_v45  ;;  %v4231_v26 = vmul.f32 %v7245_v55, %v4215_v40  ;;  %v4101_v42 = vmul.f32 2.0, %v4077_v10  ;;  %v11296_v40 = vld [vmem:[#allocation62_spill] sm:$0xff] }
 0x45b   :  { %v4269_v6 = vmul.f32 %v4261_v32, %v254_v47  ;;  %v4149_v14 = vmul.f32 2.0416667, %v4141_v16  ;;  %v4239_v8 = vsub.f32 2.0, %v4231_v26  ;;  %v4110_v13 = vadd.f32 %v9646_v15, %v4101_v42  ;;  %v11301_v42 = vld [vmem:[#allocation91_spill] sm:$0xff] }
 0x45c   :  { %6770 = vmatpush.bf16.msra.mxu0 %v11289_v4  ;;  %6741 = vmatpush.bf16.msra.mxu3 %v11293_v63  ;;  %v3444_v7 = vpop.f32.mrf.mxu0 }
 0x45d   :  { %6133 = vmatpush.bf16.msrb.mxu1 %v5876_v31  ;;  %v4274_v58 = vadd.f32 %v4269_v6, %v4268_v17  ;;  %v4158_v50 = vadd.f32 %v9652_v30, %v4149_v14  ;;  %v3553_v22 = vpop.f32.mrf.mxu1  ;;  %v11297_v31 = vld [vmem:[#allocation99_spill] sm:$0xff]  ;;  %v256_v17 = vld [vmem:[#allocation12 + $0x38] sm:$0xff]  ;;  %v11298_v6 = vld [vmem:[#allocation58_spill] sm:$0xff] }
 0x45e   :  { %v4067_v35 = vpop.f32.mrf.mxu2  ;;  %v3554_v26 = vadd.f32 %v3553_v22, %v3444_v7  ;;  %v3549_v22 = vadd.f32 %v10143_v44, %v10136_v52  ;;  %v3546_v44 = vadd.f32 %v10117_v19, %v10115_v59 }
 0x45f   :  { %v4254_v4 = vmul.f32 %v4158_v50, %v4109_v2  ;;  %v4134_v23 = vmul.f32 49.0, %v4067_v35 }
 0x460   :  { %6771 = vmatpush.bf16.msra.mxu0 %v11292_v38  ;;  %6742 = vmatpush.bf16.msra.mxu3 %v11294_v9  ;;  %v4247_v38 = vmul.f32 %v7245_v55, %v4239_v8  ;;  %v11300_v55 = vld [vmem:[#allocation54_spill] sm:$0xff] }
 0x461   :  { %6134 = vmatpush.bf16.msrb.mxu1 %v5871_v48  ;;  %v4262_v43 = vmul.f32 %v4254_v4, %v4246_v49  ;;  %v4142_v12 = vsub.f32 %v4134_v23, %v4077_v10  ;;  %v11299_v10 = vld [vmem:[#allocation95_spill] sm:$0xff] }
 0x462   :  { %5421 = vmatmul.bf16.gmra.mxu3 %v10108_v1  ;;  %6029 = vmatmul.bf16.gmra.mxu1 %v10108_v1 }
 0x463   :  { %6106 = vmatmul.bf16.vlgmr.msrb.gmra.mxu0 %v10096_v34  ;;  %v4150_v5 = vmul.f32 2.0416667, %v4142_v12  ;;  %5382 = vmatmul.bf16.vlgmr.msrb.gmra.mxu2 %v10096_v34  ;;  %v4270_v50 = vmul.f32 %v4262_v43, %v255_v24 }
 0x464   :  { %6793 = vmatpush.bf16.msrb.mxu0 %v11295_v27  ;;  %6706 = vmatpush.bf16.msrb.mxu2 %v11296_v40  ;;  %v3446_v62 = vpop.f32.mrf.mxu0 }
 0x465   :  { %7202 = vmatpush.bf16.msra.mxu1 %v11295_v27  ;;  %v4159_v47 = vadd.f32 %v9652_v30, %v4150_v5  ;;  %v4746_v45 = vpop.f32.mrf.mxu3  ;;  %v3555_v39 = vpop.f32.mrf.mxu1 }
 0x466   :  { %v10202_v32 = vpop.f32.mrf.mxu2  ;;  %v4822_v16 = vmul.f32 49.0, %v4746_v45  ;;  %v3556_v27 = vadd.f32 %v3555_v39, %v3446_v62  ;;  %v3551_v62 = vadd.f32 %v10175_v21, %v10170_v51  ;;  %v10242_v21 = vpack.c.bf16 %v3549_v22, %v3549_v22 }
 0x467   :  { %v4255_v37 = vmul.f32 %v4159_v47, %v4110_v13  ;;  %v4766_v46 = vmul.f32 %v10202_v32, %v9791_v20  ;;  %v11302_v47 = vld [vmem:[#allocation50_spill] sm:$0xff] }
 0x468   :  { %6794 = vmatpush.bf16.msrb.mxu0 %v11297_v31  ;;  %6707 = vmatpush.bf16.msrb.mxu2 %v11298_v6 }
 0x469   :  { %7203 = vmatpush.bf16.msra.mxu1 %v11297_v31  ;;  %v4263_v14 = vmul.f32 %v4255_v37, %v4247_v38  ;;  %v4790_v63 = vmul.f32 2.0, %v4766_v46  ;;  %v4830_v2 = vsub.f32 %v4822_v16, %v4766_v46  ;;  %v10226_v31 = vpack.c.bf16 %v3554_v26, %v3554_v26  ;;  %v11303_v16 = vld [vmem:[#allocation101_spill] sm:$0xff]  ;;  %v11305_v46 = vld [vmem:[#allocation63_spill] sm:$0xff] }
 0x46a   :  { %v10229_v38 = vpack.c.bf16 %v3556_v27, %v3556_v27 }
 0x46b   :  { %v4271_v35 = vmul.f32 %v4263_v14, %v256_v17  ;;  %v4838_v48 = vmul.f32 2.0416667, %v4830_v2  ;;  %v4798_v23 = vadd.f32 %v4790_v63, %v9646_v15  ;;  %v6418_v24 = vunpack.c.l.bf16 %v10226_v31  ;;  %v11306_v14 = vld [vmem:[#allocation97_spill] sm:$0xff] }
 0x46c   :  { %6795 = vmatpush.bf16.msrb.mxu0 %v11299_v10  ;;  %6708 = vmatpush.bf16.msrb.mxu2 %v11300_v55  ;;  %v3449_v49 = vpop.f32.mrf.mxu0  ;;  %v6423_v2 = vunpack.c.l.bf16 %v10229_v38 }
 0x46d   :  { %7204 = vmatpush.bf16.msra.mxu1 %v11299_v10  ;;  %v4275_v4 = vadd.f32 %v4271_v35, %v4270_v50  ;;  %v4846_v9 = vadd.f32 %v4838_v48, %v9652_v30  ;;  %v4748_v12 = vpop.f32.mrf.mxu3  ;;  %v3558_v5 = vpop.f32.mrf.mxu1  ;;  %v10256_v10 = vpack.c.bf16 %v10113_v29, %v10113_v29 }
 0x46e   :  { %v10214_v8 = vpop.f32.mrf.mxu2  ;;  %v4823_v43 = vmul.f32 49.0, %v4748_v12  ;;  %v3559_v45 = vadd.f32 %v3558_v5, %v3449_v49  ;;  %v6458_v5 = vsub.f32 %v3554_v26, %v6418_v24  ;;  %v11309_v26 = vld [vmem:[#allocation55_spill] sm:$0xff] }
 0x46f   :  { %v4277_v40 = vadd.f32 %v4275_v4, %v4274_v58  ;;  %v10216_v13 = vmul.f32 %v4846_v9, %v4798_v23  ;;  %v4767_v7 = vmul.f32 %v10214_v8, %v9802_v56  ;;  %v10265_v9 = vpack.c.bf16 %v3546_v44, %v3546_v44 }
 0x470   :  { %6796 = vmatpush.bf16.msrb.mxu0 %v11301_v42  ;;  %6709 = vmatpush.bf16.msrb.mxu2 %v11302_v47  ;;  %v10235_v52 = vpack.c.bf16 %v3559_v45, %v3559_v45  ;;  %v11308_v47 = vld [vmem:[#allocation93_spill] sm:$0xff]  ;;  %v6488_v24 = vpack.c.bf16 %v6458_v5, %v6458_v5 }
 0x471   :  { %7205 = vmatpush.bf16.msra.mxu1 %v11301_v42  ;;  %v4791_v39 = vmul.f32 2.0, %v4767_v7  ;;  %v4831_v58 = vsub.f32 %v4823_v43, %v4767_v7  ;;  %v10232_v37 = vadd.f32 %v4277_v40, %v10151_v0  ;;  %v10245_v0 = vpack.c.bf16 %v3551_v62, %v3551_v62  ;;  %v11307_v43 = vld [vmem:[#allocation59_spill] sm:$0xff] }
 0x472   :  { %5426 = vmatmul.bf16.gmra.mxu3 %v10162_v60  ;;  %v6428_v6 = vunpack.c.l.bf16 %v10235_v52  ;;  %6034 = vmatmul.bf16.gmra.mxu1 %v10162_v60  ;;  %v6408_v42 = vunpack.c.l.bf16 %v10242_v21 }
 0x473   :  { %11304 = vst [vmem:[#allocation20_spill] sm:$0xff] %v10232_v37  ;;  %6111 = vmatmul.bf16.gmra.mxu0 %v10159_v3  ;;  %v4839_v51 = vmul.f32 2.0416667, %v4831_v58  ;;  %5387 = vmatmul.bf16.gmra.mxu2 %v10159_v3  ;;  %v4799_v59 = vadd.f32 %v4791_v39, %v9646_v15  ;;  %v6413_v12 = vunpack.c.l.bf16 %v10245_v0  ;;  %v6463_v39 = vsub.f32 %v3556_v27, %v6423_v2 }
 0x474   :  { %6797 = vmatpush.bf16.msrb.mxu0 %v11303_v16  ;;  %6710 = vmatpush.bf16.msrb.mxu2 %v11305_v46  ;;  %v3451_v17 = vpop.f32.mrf.mxu0  ;;  %v6468_v4 = vsub.f32 %v3559_v45, %v6428_v6  ;;  %v6448_v6 = vsub.f32 %v3549_v22, %v6408_v42 }
 0x475   :  { %7206 = vmatpush.bf16.msra.mxu1 %v11303_v16  ;;  %v4847_v19 = vadd.f32 %v4839_v51, %v9652_v30  ;;  %v4751_v63 = vpop.f32.mrf.mxu3  ;;  %v3560_v48 = vpop.f32.mrf.mxu1  ;;  %v6398_v16 = vunpack.c.l.bf16 %v10256_v10 }
 0x476   :  { %v10258_v50 = vpop.f32.mrf.mxu2  ;;  %v4824_v35 = vmul.f32 49.0, %v4751_v63  ;;  %v3561_v23 = vadd.f32 %v3560_v48, %v3451_v17  ;;  %v6494_v51 = vpack.c.bf16 %v6468_v4, %v6468_v4  ;;  %v6403_v17 = vunpack.c.l.bf16 %v10265_v9  ;;  %v11310_v63 = vld [vmem:[#allocation89_spill] sm:$0xff] }
 0x477   :  { %v10260_v55 = vmul.f32 %v4847_v19, %v4799_v59  ;;  %v4768_v49 = vmul.f32 %v10258_v50, %v9808_v18  ;;  %v6453_v59 = vsub.f32 %v3551_v62, %v6413_v12 }
 0x478   :  { %6798 = vmatpush.bf16.msrb.mxu0 %v11306_v14  ;;  %6711 = vmatpush.bf16.msrb.mxu2 %v11307_v43  ;;  %v10271_v58 = vpack.c.bf16 %v3561_v23, %v3561_v23  ;;  %v6660_v12 = vunpack.c.l.b16 %v6494_v51  ;;  %v6443_v5 = vsub.f32 %v3546_v44, %v6403_v17 }
 0x479   :  { %7207 = vmatpush.bf16.msra.mxu1 %v11306_v14  ;;  %v4792_v40 = vmul.f32 2.0, %v4768_v49  ;;  %v4832_v7 = vsub.f32 %v4824_v35, %v4768_v49  ;;  %v6491_v35 = vpack.c.bf16 %v6463_v39, %v6463_v39  ;;  %v6438_v49 = vsub.f32 %v10113_v29, %v6398_v16  ;;  %v11311_v39 = vld [vmem:[#allocation51_spill] sm:$0xff] }
 0x47a   :  { %v6433_v46 = vunpack.c.l.bf16 %v10271_v58  ;;  %v6479_v44 = vpack.c.bf16 %v6443_v5, %v6443_v5 }
 0x47b   :  { %v4840_v45 = vmul.f32 2.0416667, %v4832_v7  ;;  %v4800_v27 = vadd.f32 %v4792_v40, %v9646_v15  ;;  %v6482_v40 = vpack.c.bf16 %v6448_v6, %v6448_v6  ;;  %v6485_v7 = vpack.c.bf16 %v6453_v59, %v6453_v59 }
 0x47c   :  { %6799 = vmatpush.bf16.msrb.mxu0 %v11308_v47  ;;  %6712 = vmatpush.bf16.msrb.mxu2 %v11309_v26  ;;  %v10278_v19 = vpop.f32.mrf.mxu0  ;;  %v6473_v48 = vsub.f32 %v3561_v23, %v6433_v46  ;;  %v6655_v16 = vunpack.c.l.b16 %v6491_v35  ;;  %v6476_v51 = vpack.c.bf16 %v6438_v49, %v6438_v49 }
 0x47d   :  { %7208 = vmatpush.bf16.msra.mxu1 %v11308_v47  ;;  %v4848_v14 = vadd.f32 %v4840_v45, %v9652_v30  ;;  %v4753_v2 = vpop.f32.mrf.mxu3  ;;  %v6650_v47 = vunpack.c.l.b16 %v6488_v24  ;;  %v6640_v17 = vunpack.c.l.b16 %v6482_v40  ;;  %v6645_v59 = vunpack.c.l.b16 %v6485_v7 }
 0x47e   :  { %v10284_v4 = vpop.f32.mrf.mxu2  ;;  %v4825_v22 = vmul.f32 49.0, %v4753_v2  ;;  %v6497_v43 = vpack.c.bf16 %v6473_v48, %v6473_v48  ;;  %v6556_v7 = vunpack.c.l.b16 %v10235_v52 }
 0x47f   :  { %v10286_v62 = vmul.f32 %v4848_v14, %v4800_v27  ;;  %v4769_v42 = vmul.f32 %v10284_v4, %v9816_v25  ;;  %v10312_v5 = vpack.c.b16 %v6645_v59, %v6640_v17  ;;  %v6546_v17 = vunpack.c.l.b16 %v10226_v31  ;;  %v5354_v59 = vpop.f32.mrf.mxu1 }
 0x480   :  { %6800 = vmatpush.bf16.msrb.mxu0 %v11310_v63  ;;  %6713 = vmatpush.bf16.msrb.mxu2 %v11311_v39  ;;  %v6665_v45 = vunpack.c.l.b16 %v6497_v43  ;;  %v6541_v31 = vunpack.c.l.b16 %v10245_v0 }
 0x481   :  { %7209 = vmatpush.bf16.msra.mxu1 %v11310_v63  ;;  %v4793_v23 = vmul.f32 2.0, %v4769_v42  ;;  %v4833_v29 = vsub.f32 %v4825_v22, %v4769_v42  ;;  %v10303_v63 = vpack.c.b16 %v6655_v16, %v6650_v47  ;;  %v6630_v22 = vunpack.c.l.b16 %v6476_v51 }
 0x482   :  { %6077 = vmatmul.bf16.vlgmr.msrb.gmra.mxu3 %v10096_v34  ;;  %v10295_v26 = vpack.c.b16 %v6665_v45, %v6660_v12  ;;  %6135 = vmatmul.bf16.vlgmr.msrb.gmra.mxu1 %v10096_v34  ;;  %v6635_v42 = vunpack.c.l.b16 %v6479_v44 }
 0x483   :  { %6116 = vmatmul.bf16.gmra.mxu0 %v10108_v1  ;;  %v4841_v46 = vmul.f32 2.0416667, %v4833_v29  ;;  %5392 = vmatmul.bf16.gmra.mxu2 %v10108_v1  ;;  %v4801_v24 = vadd.f32 %v4793_v23, %v9646_v15  ;;  %v6561_v29 = vunpack.c.l.b16 %v10271_v58 }
 0x484   :  { %v10297_v6 = vpop.f32.mrf.mxu0  ;;  %7210 = vmatpush.bf16.msrb.mxu3 %v10295_v26  ;;  %v10321_v45 = vpack.c.b16 %v6635_v42, %v6630_v22 }
 0x485   :  { %v4849_v27 = vadd.f32 %v4841_v46, %v9652_v30  ;;  %v4756_v14 = vpop.f32.mrf.mxu3 }
 0x486   :  { %v10305_v2 = vpop.f32.mrf.mxu2  ;;  %v4826_v35 = vmul.f32 49.0, %v4756_v14  ;;  %v10332_v14 = vpack.c.b16 %v6561_v29, %v6556_v7 }
 0x487   :  { %v10307_v48 = vmul.f32 %v4849_v27, %v4801_v24  ;;  %v4770_v49 = vmul.f32 %v10305_v2, %v9832_v28  ;;  %v6551_v24 = vunpack.c.l.b16 %v10229_v38  ;;  %v5356_v0 = vpop.f32.mrf.mxu1 }
 0x488   :  { %7211 = vmatpush.bf16.msrb.mxu3 %v10303_v63 }
 0x489   :  { %v4794_v12 = vmul.f32 2.0, %v4770_v49  ;;  %v4834_v43 = vsub.f32 %v4826_v35, %v4770_v49  ;;  %v6536_v49 = vunpack.c.l.b16 %v10242_v21 }
 0x48b   :  { %v4842_v40 = vmul.f32 2.0416667, %v4834_v43  ;;  %v4802_v47 = vadd.f32 %v4794_v12, %v9646_v15  ;;  %v10345_v43 = vpack.c.b16 %v6551_v24, %v6546_v17  ;;  %v10354_v29 = vpack.c.b16 %v6541_v31, %v6536_v49 }
 0x48c   :  { %v10318_v16 = vpop.f32.mrf.mxu0  ;;  %7212 = vmatpush.bf16.msrb.mxu3 %v10312_v5 }
 0x48d   :  { %v4850_v39 = vadd.f32 %v4842_v40, %v9652_v30  ;;  %v4758_v23 = vpop.f32.mrf.mxu3 }
 0x48e   :  { %v10323_v46 = vpop.f32.mrf.mxu2  ;;  %v4827_v51 = vmul.f32 49.0, %v4758_v23 }
 0x48f   :  { %v10325_v44 = vmul.f32 %v4850_v39, %v4802_v47  ;;  %v4771_v52 = vmul.f32 %v10323_v46, %v9859_v54 }
 0x490   :  { %7213 = vmatpush.bf16.msrb.mxu3 %v10321_v45 }
 0x491   :  { %v4795_v58 = vmul.f32 2.0, %v4771_v52  ;;  %v4835_v27 = vsub.f32 %v4827_v51, %v4771_v52  ;;  %v6526_v51 = vunpack.c.l.b16 %v10256_v10  ;;  %v6531_v52 = vunpack.c.l.b16 %v10265_v9  ;;  %v5359_v9 = vpop.f32.mrf.mxu1 }
 0x492   :  { %6082 = vmatmul.bf16.gmra.mxu3 %v10159_v3  ;;  %6140 = vmatmul.bf16.gmra.mxu1 %v10159_v3 }
 0x493   :  { %6121 = vmatmul.bf16.gmra.mxu0 %v10162_v60  ;;  %v4843_v35 = vmul.f32 2.0416667, %v4835_v27  ;;  %5397 = vmatmul.bf16.gmra.mxu2 %v10162_v60  ;;  %v4803_v38 = vadd.f32 %v4795_v58, %v9646_v15  ;;  %v10367_v10 = vpack.c.b16 %v6531_v52, %v6526_v51  ;;  %v10379_v51 = vmul.f32 %v5354_v59, %v5354_v59 }
 0x494   :  { %v10342_v12 = vpop.f32.mrf.mxu0  ;;  %7214 = vmatpush.bf16.msrb.mxu3 %v10332_v14 }
 0x495   :  { %v4851_v22 = vadd.f32 %v4843_v35, %v9652_v30  ;;  %v4761_v42 = vpop.f32.mrf.mxu3  ;;  %11313 = vst [vmem:[#allocation65_spill] sm:$0xff] %v10379_v51 }
 0x496   :  { %v10347_v40 = vpop.f32.mrf.mxu2  ;;  %v4828_v7 = vmul.f32 49.0, %v4761_v42 }
 0x497   :  { %v10349_v47 = vmul.f32 %v4851_v22, %v4803_v38  ;;  %v4772_v21 = vmul.f32 %v10347_v40, %v9873_v36 }
 0x498   :  { %7215 = vmatpush.bf16.msrb.mxu3 %v10345_v43 }
 0x499   :  { %v4796_v39 = vmul.f32 2.0, %v4772_v21  ;;  %v4836_v23 = vsub.f32 %v4828_v7, %v4772_v21  ;;  %v10372_v21 = vmul.f32 %v10278_v19, %v10278_v19 }
 0x49b   :  { %v4844_v17 = vmul.f32 2.0416667, %v4836_v23  ;;  %v4804_v24 = vadd.f32 %v4796_v39, %v9646_v15  ;;  %v5461_v23 = vmul.f32 %v5354_v59, %v10278_v19  ;;  %v10394_v59 = vpop.f32.mrf.mxu1 }
 0x49c   :  { %7216 = vmatpush.bf16.msrb.mxu3 %v10354_v29 }
 0x49d   :  { %v4852_v58 = vadd.f32 %v4844_v17, %v9652_v30  ;;  %v4763_v27 = vpop.f32.mrf.mxu3 }
 0x49e   :  { %v10361_v35 = vpop.f32.mrf.mxu2  ;;  %v4829_v38 = vmul.f32 49.0, %v4763_v27  ;;  %v10388_v27 = vadd.f32 %v10379_v51, %v10372_v21 }
 0x49f   :  { %v10363_v22 = vmul.f32 %v4852_v58, %v4804_v24  ;;  %v4773_v49 = vmul.f32 %v10361_v35, %v9888_v57 }
 0x4a0   :  { %v5441_v31 = vpop.f32.mrf.mxu0  ;;  %7217 = vmatpush.bf16.msrb.mxu3 %v10367_v10  ;;  %11314 = vst [vmem:[#allocation69_spill] sm:$0xff] %v10388_v27 }
 0x4a1   :  { %11312 = vst [vmem:[#allocation67_spill] sm:$0xff] %v10363_v22  ;;  %v4797_v42 = vmul.f32 2.0, %v4773_v49  ;;  %v4837_v7 = vsub.f32 %v4829_v38, %v4773_v49  ;;  %v4774_v49 = vmul.f32 %v9791_v20, %v9791_v20 }
 0x4a2   :  { %6087 = vmatmul.bf16.gmra.mxu3 %v10108_v1  ;;  %6145 = vmatmul.bf16.gmra.mxu1 %v10108_v1 }
 0x4a3   :  { %6772 = vmatmul.bf16.vlgmr.msra.gmra.mxu0 %v10096_v34  ;;  %v4845_v39 = vmul.f32 2.0416667, %v4837_v7  ;;  %6048 = vmatmul.bf16.vlgmr.msra.gmra.mxu2 %v10096_v34  ;;  %v4805_v52 = vadd.f32 %v4797_v42, %v9646_v15  ;;  %v4782_v42 = vmul.f32 %v10202_v32, %v10202_v32 }
 0x4a4   :  { %6822 = vmatpush.bf16.msra.mxu2 %v10295_v26 }
 0x4a5   :  { %v4853_v17 = vadd.f32 %v4845_v39, %v9652_v30  ;;  %v10384_v24 = vpop.f32.mrf.mxu3  ;;  %v10402_v39 = vmul.f32 %v10297_v6, %v10297_v6  ;;  %v4806_v37 = vadd.f32 %v4782_v42, %v4774_v49 }
 0x4a6   :  { %v4717_v58 = vpop.f32.mrf.mxu2 }
 0x4a7   :  { %v10390_v38 = vmul.f32 %v4853_v17, %v4805_v52  ;;  %v4854_v26 = vadd.f32 %v4717_v58, %v9913_v61  ;;  %v5485_v61 = vmul.f32 2.0, %v5461_v23  ;;  %v5517_v17 = vmul.f32 49.0, %v5441_v31 }
 0x4a8   :  { %v5443_v19 = vpop.f32.mrf.mxu0  ;;  %6823 = vmatpush.bf16.msra.mxu2 %v10303_v63  ;;  %v5462_v63 = vmul.f32 %v5356_v0, %v10297_v6  ;;  %v10406_v58 = vmul.f32 %v5356_v0, %v5356_v0  ;;  %v4775_v31 = vmul.f32 %v9802_v56, %v9802_v56 }
 0x4a9   :  { %11315 = vst [vmem:[#allocation68_spill] sm:$0xff] %v10390_v38  ;;  %v4862_v7 = vmul.f32 49.0, %v4854_v26  ;;  %v5525_v32 = vsub.f32 %v5517_v17, %v5461_v23  ;;  %v5493_v6 = vadd.f32 %v5485_v61, %v9646_v15  ;;  %v4814_v23 = vadd.f32 %v4806_v37, %v9646_v15 }
 0x4aa   :  { %v10412_v26 = vadd.f32 %v10406_v58, %v10402_v39  ;;  %v5486_v37 = vmul.f32 2.0, %v5462_v63 }
 0x4ab   :  { %v4870_v52 = vsub.f32 %v4862_v7, %v4774_v49  ;;  %v11316_v7 = vld [vmem:[#allocation28_spill] sm:$0xff]  ;;  %v5533_v0 = vmul.f32 2.0416667, %v5525_v32  ;;  %v10419_v49 = vpop.f32.mrf.mxu1 }
 0x4ac   :  { %6824 = vmatpush.bf16.msra.mxu2 %v10312_v5 }
 0x4ad   :  { %v4878_v38 = vsub.f32 %v4870_v52, %v4782_v42  ;;  %v10408_v20 = vpop.f32.mrf.mxu3  ;;  %v4783_v42 = vmul.f32 %v10214_v8, %v10214_v8  ;;  %v5541_v56 = vadd.f32 %v5533_v0, %v9652_v30  ;;  %v5518_v8 = vmul.f32 49.0, %v5443_v19 }
 0x4ae   :  { %v4719_v22 = vpop.f32.mrf.mxu2 }
 0x4af   :  { %v4886_v27 = vmul.f32 1.0208334, %v4878_v38  ;;  %v4855_v51 = vadd.f32 %v4719_v22, %v11316_v7  ;;  %v10427_v22 = vmul.f32 %v10318_v16, %v10318_v16  ;;  %v10433_v17 = vmul.f32 %v5541_v56, %v5493_v6 }
 0x4b0   :  { %v5446_v5 = vpop.f32.mrf.mxu0  ;;  %6825 = vmatpush.bf16.msra.mxu2 %v10321_v45  ;;  %v4807_v32 = vadd.f32 %v4783_v42, %v4775_v31  ;;  %v5494_v56 = vadd.f32 %v5486_v37, %v9646_v15  ;;  %v10460_v37 = vmul.f32 %v10342_v12, %v10342_v12 }
 0x4b1   :  { %v4894_v38 = vadd.f32 %v4886_v27, %v9652_v30  ;;  %v4863_v52 = vmul.f32 49.0, %v4855_v51  ;;  %11317 = vst [vmem:[#allocation66_spill] sm:$0xff] %v10433_v17  ;;  %v5463_v51 = vmul.f32 %v5359_v9, %v10318_v16  ;;  %v10437_v27 = vmul.f32 %v5359_v9, %v5359_v9  ;;  %v11320_v16 = vld [vmem:[#allocation26_spill] sm:$0xff] }
 0x4b2   :  { %6092 = vmatmul.bf16.gmra.mxu3 %v10162_v60  ;;  %6150 = vmatmul.bf16.gmra.mxu1 %v10162_v60 }
 0x4b3   :  { %6777 = vmatmul.bf16.gmra.mxu0 %v10159_v3  ;;  %v4902_v45 = vmul.f32 %v4894_v38, %v4814_v23  ;;  %v4871_v61 = vsub.f32 %v4863_v52, %v4775_v31  ;;  %6053 = vmatmul.bf16.gmra.mxu2 %v10159_v3  ;;  %11318 = vst [vmem:[#allocation64_spill] sm:$0xff] %v10437_v27 }
 0x4b4   :  { %6826 = vmatpush.bf16.msra.mxu2 %v10332_v14  ;;  %v5526_v38 = vsub.f32 %v5518_v8, %v5462_v63  ;;  %v10444_v6 = vadd.f32 %v10437_v27, %v10427_v22  ;;  %v4784_v14 = vmul.f32 %v10258_v50, %v10258_v50  ;;  %v4776_v63 = vmul.f32 %v9808_v18, %v9808_v18 }
 0x4b5   :  { %7246 = vrcp.f32 %v4902_v45  ;;  %v4879_v7 = vsub.f32 %v4871_v61, %v4783_v42  ;;  %v10440_v0 = vpop.f32.mrf.mxu3  ;;  %v10451_v42 = vpop.f32.mrf.mxu1  ;;  %v4815_v61 = vadd.f32 %v4807_v32, %v9646_v15  ;;  %v5487_v18 = vmul.f32 2.0, %v5463_v51 }
 0x4b6   :  { %v4722_v23 = vpop.f32.mrf.mxu2  ;;  %11319 = vst [vmem:[#allocation34_spill] sm:$0xff] %v10444_v6  ;;  %v5534_v31 = vmul.f32 2.0416667, %v5526_v38  ;;  %v5519_v32 = vmul.f32 49.0, %v5446_v5 }
 0x4b7   :  { %v4887_v19 = vmul.f32 1.0208334, %v4879_v7  ;;  %v4856_v9 = vadd.f32 %v4722_v23, %v11320_v16  ;;  %v4808_v23 = vadd.f32 %v4784_v14, %v4776_v63 }
 0x4b8   :  { %v5448_v52 = vpop.f32.mrf.mxu0  ;;  %6827 = vmatpush.bf16.msra.mxu2 %v10345_v43  ;;  %v5542_v50 = vadd.f32 %v5534_v31, %v9652_v30  ;;  %v10469_v31 = vmul.f32 %v10394_v59, %v10394_v59 }
 0x4b9   :  { %v4895_v8 = vadd.f32 %v4887_v19, %v9652_v30  ;;  %v4864_v17 = vmul.f32 49.0, %v4856_v9  ;;  %v5464_v9 = vmul.f32 %v10394_v59, %v10342_v12  ;;  %v5495_v59 = vadd.f32 %v5487_v18, %v9646_v15 }
 0x4ba   :  { %v10462_v6 = vmul.f32 %v5542_v50, %v5494_v56  ;;  %v4785_v56 = vmul.f32 %v10284_v4, %v10284_v4  ;;  %v4816_v4 = vadd.f32 %v4808_v23, %v9646_v15  ;;  %v10495_v23 = vmul.f32 %v10384_v24, %v10384_v24 }
 0x4bb   :  { %v7247_v7 = vpop.eup %7246  ;;  %v4903_v43 = vmul.f32 %v4895_v8, %v4815_v61  ;;  %v4872_v38 = vsub.f32 %v4864_v17, %v4776_v63  ;;  %v11321_v63 = vld [vmem:[#allocation23_spill] sm:$0xff] }
 0x4bc   :  { %v4918_v16 = vmul.f32 %v7247_v7, %v4902_v45  ;;  %6828 = vmatpush.bf16.msra.mxu2 %v10354_v29  ;;  %v5527_v45 = vsub.f32 %v5519_v32, %v5463_v51  ;;  %v4777_v51 = vmul.f32 %v9816_v25, %v9816_v25 }
 0x4bd   :  { %7248 = vrcp.f32 %v4903_v43  ;;  %v4880_v19 = vsub.f32 %v4872_v38, %v4784_v14  ;;  %v10471_v27 = vpop.f32.mrf.mxu3  ;;  %v10478_v14 = vadd.f32 %v10469_v31, %v10460_v37  ;;  %v10482_v38 = vpop.f32.mrf.mxu1 }
 0x4be   :  { %v4926_v61 = vsub.f32 2.0, %v4918_v16  ;;  %v4724_v17 = vpop.f32.mrf.mxu2  ;;  %v5535_v50 = vmul.f32 2.0416667, %v5527_v45 }
 0x4bf   :  { %v4888_v29 = vmul.f32 1.0208334, %v4880_v19  ;;  %v4857_v5 = vadd.f32 %v4724_v17, %v11321_v63  ;;  %v5520_v63 = vmul.f32 49.0, %v5448_v52 }
 0x4c0   :  { %v5451_v12 = vpop.f32.mrf.mxu0  ;;  %v4934_v8 = vmul.f32 %v7247_v7, %v4926_v61  ;;  %6829 = vmatpush.bf16.msra.mxu2 %v10367_v10  ;;  %v5543_v17 = vadd.f32 %v5535_v50, %v9652_v30  ;;  %v4809_v7 = vadd.f32 %v4785_v56, %v4777_v51  ;;  %v4778_v50 = vmul.f32 %v9832_v28, %v9832_v28 }
 0x4c1   :  { %v4896_v16 = vadd.f32 %v4888_v29, %v9652_v30  ;;  %v4865_v32 = vmul.f32 49.0, %v4857_v5 }
 0x4c2   :  { %v4950_v19 = vmul.f32 %v10216_v13, %v4934_v8  ;;  %6743 = vmatmul.bf16.vlgmr.msra.gmra.mxu3 %v10096_v34  ;;  %v10497_v45 = vmul.f32 %v5543_v17, %v5495_v59  ;;  %v5488_v13 = vmul.f32 2.0, %v5464_v9  ;;  %6806 = vmatmul.bf16.vlgmr.msra.gmra.mxu1 %v10159_v3  ;;  %v5465_v34 = vmul.f32 %v10419_v49, %v10384_v24 }
 0x4c3   :  { %6782 = vmatmul.bf16.gmra.mxu0 %v10108_v1  ;;  %v7249_v10 = vpop.eup %7248  ;;  %v4904_v18 = vmul.f32 %v4896_v16, %v4816_v4  ;;  %v4873_v61 = vsub.f32 %v4865_v32, %v4777_v51  ;;  %6058 = vmatmul.bf16.gmra.mxu2 %v10108_v1  ;;  %v4786_v1 = vmul.f32 %v10305_v2, %v10305_v2 }
 0x4c4   :  { %v4919_v25 = vmul.f32 %v7249_v10, %v4903_v43  ;;  %11322 = vst [vmem:[#allocation36_spill] sm:$0xff] %v10497_v45  ;;  %v10508_v59 = vmul.f32 %v10419_v49, %v10419_v49  ;;  %v10515_v24 = vmul.f32 %v9859_v54, %v9859_v54  ;;  %v4817_v2 = vadd.f32 %v4809_v7, %v9646_v15 }
 0x4c5   :  { %7250 = vrcp.f32 %v4904_v18  ;;  %v4881_v29 = vsub.f32 %v4873_v61, %v4785_v56  ;;  %v10502_v5 = vpop.f32.mrf.mxu3  ;;  %v5528_v56 = vsub.f32 %v5520_v63, %v5464_v9  ;;  %v10522_v49 = vpop.f32.mrf.mxu1  ;;  %v5496_v17 = vadd.f32 %v5488_v13, %v9646_v15 }
 0x4c6   :  { %v4927_v43 = vsub.f32 2.0, %v4919_v25  ;;  %v4727_v8 = vpop.f32.mrf.mxu2  ;;  %v10520_v32 = vadd.f32 %v10508_v59, %v10495_v23  ;;  %v4810_v61 = vadd.f32 %v4786_v1, %v4778_v50  ;;  %v4787_v54 = vmul.f32 %v10323_v46, %v10323_v46  ;;  %v10528_v25 = vld [vmem:[#allocation12] sm:$0xff] }
 0x4c7   :  { %v4889_v51 = vmul.f32 1.0208334, %v4881_v29  ;;  %v4858_v52 = vadd.f32 %v4727_v8, %v10083_v33  ;;  %v5536_v9 = vmul.f32 2.0416667, %v5528_v56  ;;  %v10534_v8 = vmul.f32 %v10408_v20, %v10408_v20 }
 0x4c8   :  { %v5453_v4 = vpop.f32.mrf.mxu0  ;;  %v4935_v16 = vmul.f32 %v7249_v10, %v4927_v43  ;;  %11323 = vst [vmem:[#allocation33_spill] sm:$0xff] %v10520_v32  ;;  %v4958_v10 = vmul.f32 %v10528_v25, %v4950_v19  ;;  %v5489_v56 = vmul.f32 2.0, %v5465_v34  ;;  %v5521_v45 = vmul.f32 49.0, %v5451_v12 }
 0x4c9   :  { %v4897_v28 = vadd.f32 %v4889_v51, %v9652_v30  ;;  %v4866_v33 = vmul.f32 49.0, %v4858_v52  ;;  %v5544_v13 = vadd.f32 %v5536_v9, %v9652_v30  ;;  %v10537_v51 = vld [vmem:[#allocation12 + $0x8] sm:$0xff] }
 0x4ca   :  { %v4951_v7 = vmul.f32 %v10260_v55, %v4935_v16  ;;  %v5466_v55 = vmul.f32 %v10451_v42, %v10408_v20  ;;  %v5497_v20 = vadd.f32 %v5489_v56, %v9646_v15 }
 0x4cb   :  { %v7251_v29 = vpop.eup %7250  ;;  %v4905_v63 = vmul.f32 %v4897_v28, %v4817_v2  ;;  %v4874_v43 = vsub.f32 %v4866_v33, %v4778_v50  ;;  %v10540_v32 = vmul.f32 %v5544_v13, %v5496_v17  ;;  %v5529_v28 = vsub.f32 %v5521_v45, %v5465_v34 }
 0x4cc   :  { %v4959_v52 = vmul.f32 %v10537_v51, %v4951_v7  ;;  %v4920_v46 = vmul.f32 %v7251_v29, %v4904_v18  ;;  %v10548_v33 = vmul.f32 %v10451_v42, %v10451_v42  ;;  %v5522_v17 = vmul.f32 49.0, %v5453_v4 }
 0x4cd   :  { %7252 = vrcp.f32 %v4905_v63  ;;  %v4882_v19 = vsub.f32 %v4874_v43, %v4786_v1  ;;  %v10544_v50 = vpop.f32.mrf.mxu3  ;;  %v5490_v1 = vmul.f32 2.0, %v5466_v55  ;;  %v5537_v13 = vmul.f32 2.0416667, %v5529_v28  ;;  %v10558_v45 = vpop.f32.mrf.mxu1 }
 0x4ce   :  { %v4928_v2 = vsub.f32 2.0, %v4920_v46  ;;  %v4729_v16 = vpop.f32.mrf.mxu2  ;;  %v10550_v9 = vadd.f32 %v4959_v52, %v4958_v10  ;;  %v10556_v46 = vadd.f32 %v10548_v33, %v10534_v8  ;;  %11324 = vst [vmem:[#allocation31_spill] sm:$0xff] %v10558_v45  ;;  %v4818_v42 = vadd.f32 %v4810_v61, %v9646_v15 }
 0x4cf   :  { %v4890_v18 = vmul.f32 1.0208334, %v4882_v19  ;;  %v4859_v12 = vadd.f32 %v4729_v16, %v10127_v53  ;;  %v5530_v52 = vsub.f32 %v5522_v17, %v5466_v55  ;;  %v4811_v53 = vadd.f32 %v4787_v54, %v10515_v24 }
 0x4d0   :  { %v5456_v7 = vpop.f32.mrf.mxu0  ;;  %v4936_v43 = vmul.f32 %v7251_v29, %v4928_v2  ;;  %v5545_v29 = vadd.f32 %v5537_v13, %v9652_v30  ;;  %v5498_v61 = vadd.f32 %v5490_v1, %v9646_v15  ;;  %v4788_v55 = vmul.f32 %v10347_v40, %v10347_v40 }
 0x4d1   :  { %v4898_v34 = vadd.f32 %v4890_v18, %v9652_v30  ;;  %v4867_v10 = vmul.f32 49.0, %v4859_v12  ;;  %v5538_v16 = vmul.f32 2.0416667, %v5530_v52  ;;  %v5467_v12 = vmul.f32 %v10482_v38, %v10440_v0 }
 0x4d2   :  { %v4952_v4 = vmul.f32 %v10286_v62, %v4936_v43  ;;  %6748 = vmatmul.bf16.gmra.mxu3 %v10159_v3  ;;  %v10574_v62 = vmul.f32 %v10440_v0, %v10440_v0  ;;  %v10576_v18 = vmul.f32 %v5545_v29, %v5497_v20  ;;  %v10578_v3 = vld [vmem:[#allocation9 + $0x10] sm:$0xff]  ;;  %v10588_v17 = vmul.f32 %v10482_v38, %v10482_v38 }
 0x4d3   :  { %6787 = vmatmul.bf16.gmra.mxu0 %v10162_v60  ;;  %v7253_v56 = vpop.eup %7252  ;;  %v4906_v19 = vmul.f32 %v4898_v34, %v4818_v42  ;;  %v4875_v2 = vsub.f32 %v4867_v10, %v10515_v24  ;;  %6063 = vmatmul.bf16.gmra.mxu2 %v10162_v60  ;;  %v5546_v60 = vadd.f32 %v5538_v16, %v9652_v30 }
 0x4d4   :  { %v4921_v28 = vmul.f32 %v7253_v56, %v4905_v63  ;;  %6811 = vmatmul.bf16.gmra.mxu1 %v10578_v3  ;;  %v4780_v43 = vmul.f32 %v9873_v36, %v9873_v36  ;;  %v10597_v0 = vadd.f32 %v10588_v17, %v10574_v62  ;;  %v4819_v52 = vadd.f32 %v4811_v53, %v9646_v15 }
 0x4d5   :  { %7254 = vrcp.f32 %v4906_v19  ;;  %v4883_v24 = vsub.f32 %v4875_v2, %v4787_v54  ;;  %v10584_v1 = vpop.f32.mrf.mxu3  ;;  %v10593_v54 = vmul.f32 %v5546_v60, %v5498_v61  ;;  %v10599_v10 = vpop.f32.mrf.mxu1  ;;  %v4781_v36 = vmul.f32 %v9888_v57, %v9888_v57 }
 0x4d6   :  { %v4929_v40 = vsub.f32 2.0, %v4921_v28  ;;  %v4732_v63 = vpop.f32.mrf.mxu2  ;;  %11326 = vst [vmem:[#allocation37_spill] sm:$0xff] %v10599_v10  ;;  %v4812_v38 = vadd.f32 %v4788_v55, %v4780_v43  ;;  %v10611_v60 = vmul.f32 %v10471_v27, %v10471_v27  ;;  %v5491_v53 = vmul.f32 2.0, %v5467_v12 }
 0x4d7   :  { %v4891_v20 = vmul.f32 1.0208334, %v4883_v24  ;;  %v4860_v13 = vadd.f32 %v4732_v63, %v10157_v41  ;;  %11325 = vst [vmem:[#allocation72_spill] sm:$0xff] %v10593_v54  ;;  %v10605_v41 = vld [vmem:[#allocation12 + $0x10] sm:$0xff]  ;;  %v5523_v57 = vmul.f32 49.0, %v5456_v7 }
 0x4d8   :  { %v5458_v42 = vpop.f32.mrf.mxu0  ;;  %v4937_v34 = vmul.f32 %v7253_v56, %v4929_v40  ;;  %v4960_v61 = vmul.f32 %v10605_v41, %v4952_v4  ;;  %v10613_v40 = vld [vmem:[#allocation12 + $0x18] sm:$0xff]  ;;  %v4820_v4 = vadd.f32 %v4812_v38, %v9646_v15 }
 0x4d9   :  { %v4899_v29 = vadd.f32 %v4891_v20, %v9652_v30  ;;  %v4868_v2 = vmul.f32 49.0, %v4860_v13  ;;  %v5468_v13 = vmul.f32 %v10522_v49, %v10471_v27  ;;  %v5524_v38 = vmul.f32 49.0, %v5458_v42 }
 0x4da   :  { %v4953_v56 = vmul.f32 %v10307_v48, %v4937_v34 }
 0x4db   :  { %v7255_v16 = vpop.eup %7254  ;;  %v4907_v28 = vmul.f32 %v4899_v29, %v4819_v52  ;;  %v4876_v24 = vsub.f32 %v4868_v2, %v4780_v43  ;;  %v10621_v43 = vmul.f32 %v10522_v49, %v10522_v49  ;;  %v5531_v2 = vsub.f32 %v5523_v57, %v5467_v12 }
 0x4dc   :  { %v4961_v63 = vmul.f32 %v10613_v40, %v4953_v56  ;;  %v4922_v20 = vmul.f32 %v7255_v16, %v4906_v19  ;;  %v5492_v54 = vmul.f32 2.0, %v5468_v13  ;;  %v5499_v49 = vadd.f32 %v5491_v53, %v9646_v15 }
 0x4dd   :  { %7256 = vrcp.f32 %v4907_v28  ;;  %v4884_v48 = vsub.f32 %v4876_v24, %v4788_v55  ;;  %v10623_v34 = vpop.f32.mrf.mxu3  ;;  %v10628_v27 = vadd.f32 %v10621_v43, %v10611_v60  ;;  %v5539_v10 = vmul.f32 2.0416667, %v5531_v2  ;;  %v10633_v45 = vpop.f32.mrf.mxu1 }
 0x4de   :  { %v4930_v52 = vsub.f32 2.0, %v4922_v20  ;;  %v4734_v29 = vpop.f32.mrf.mxu2  ;;  %v4967_v56 = vadd.f32 %v4961_v63, %v4960_v61  ;;  %v4789_v61 = vmul.f32 %v10361_v35, %v10361_v35  ;;  %v5532_v20 = vsub.f32 %v5524_v38, %v5468_v13 }
 0x4df   :  { %v4892_v19 = vmul.f32 1.0208334, %v4884_v48  ;;  %v4861_v7 = vadd.f32 %v4734_v29, %v10185_v11  ;;  %v5547_v57 = vadd.f32 %v5539_v10, %v9652_v30  ;;  %v5500_v35 = vadd.f32 %v5492_v54, %v9646_v15 }
 0x4e0   :  { %v10630_v55 = vpop.f32.mrf.mxu0  ;;  %v4938_v24 = vmul.f32 %v7255_v16, %v4930_v52  ;;  %v10636_v12 = vadd.f32 %v4967_v56, %v10550_v9  ;;  %v10643_v16 = vld [vmem:[#allocation9] sm:$0xff]  ;;  %v5540_v52 = vmul.f32 2.0416667, %v5532_v20  ;;  %v4813_v10 = vadd.f32 %v4789_v61, %v4781_v36 }
 0x4e1   :  { %v4900_v11 = vadd.f32 %v4892_v19, %v9652_v30  ;;  %v4869_v63 = vmul.f32 49.0, %v4861_v7  ;;  %v10649_v13 = vmul.f32 %v5547_v57, %v5499_v49 }
 0x4e2   :  { %v4954_v42 = vmul.f32 %v10325_v44, %v4938_v24  ;;  %6753 = vmatmul.bf16.gmra.mxu3 %v10578_v3  ;;  %v10651_v44 = vld [vmem:[#allocation9 + $0x18] sm:$0xff]  ;;  %v5548_v56 = vadd.f32 %v5540_v52, %v9652_v30 }
 0x4e3   :  { %6801 = vmatmul.bf16.vlgmr.msrb.gmra.mxu0 %v10643_v16  ;;  %v7257_v53 = vpop.eup %7256  ;;  %v4908_v9 = vmul.f32 %v4900_v11, %v4820_v4  ;;  %v4877_v48 = vsub.f32 %v4869_v63, %v4781_v36  ;;  %6714 = vmatmul.bf16.vlgmr.msrb.gmra.mxu2 %v10643_v16  ;;  %v4821_v36 = vadd.f32 %v4813_v10, %v9646_v15  ;;  %v11328_v10 = vld [vmem:[#allocation65_spill] sm:$0xff] }
 0x4e4   :  { %v4923_v29 = vmul.f32 %v7257_v53, %v4907_v28  ;;  %6816 = vmatmul.bf16.gmra.mxu1 %v10651_v44  ;;  %v10658_v24 = vmul.f32 %v5548_v56, %v5500_v35  ;;  %v10671_v35 = vld [vmem:[#allocation12 + $0x28] sm:$0xff] }
 0x4e5   :  { %7258 = vrcp.f32 %v4908_v9  ;;  %v4885_v2 = vsub.f32 %v4877_v48, %v4789_v61  ;;  %v10655_v19 = vpop.f32.mrf.mxu3  ;;  %v10662_v11 = vpop.f32.mrf.mxu1 }
 0x4e6   :  { %v4931_v4 = vsub.f32 2.0, %v4923_v29  ;;  %v5383_v7 = vpop.f32.mrf.mxu2  ;;  %11327 = vst [vmem:[#allocation35_spill] sm:$0xff] %v10662_v11  ;;  %v10668_v29 = vld [vmem:[#allocation12 + $0x20] sm:$0xff] }
 0x4e7   :  { %v4893_v38 = vmul.f32 1.0208334, %v4885_v2  ;;  %v5549_v54 = vadd.f32 %v10502_v5, %v5383_v7  ;;  %v4962_v5 = vmul.f32 %v10668_v29, %v4954_v42 }
 0x4e8   :  { %v10660_v28 = vpop.f32.mrf.mxu0  ;;  %v4939_v49 = vmul.f32 %v7257_v53, %v4931_v4 }
 0x4e9   :  { %v4901_v61 = vadd.f32 %v4893_v38, %v9652_v30  ;;  %v5557_v63 = vmul.f32 49.0, %v5549_v54 }
 0x4ea   :  { %v4955_v20 = vmul.f32 %v10349_v47, %v4939_v49 }
 0x4eb   :  { %v7259_v57 = vpop.eup %7258  ;;  %v4909_v48 = vmul.f32 %v4901_v61, %v4821_v36  ;;  %v5565_v52 = vsub.f32 %v5557_v63, %v10372_v21  ;;  %v11330_v61 = vld [vmem:[#allocation69_spill] sm:$0xff] }
 0x4ec   :  { %v4963_v53 = vmul.f32 %v10671_v35, %v4955_v20  ;;  %v4924_v2 = vmul.f32 %v7259_v57, %v4908_v9  ;;  %v5509_v63 = vadd.f32 %v11330_v61, %v9646_v15 }
 0x4ed   :  { %7260 = vrcp.f32 %v4909_v48  ;;  %v5573_v56 = vsub.f32 %v5565_v52, %v11328_v10  ;;  %v10675_v4 = vpop.f32.mrf.mxu3  ;;  %v10680_v42 = vpop.f32.mrf.mxu1  ;;  %v11331_v52 = vld [vmem:[#allocation67_spill] sm:$0xff] }
 0x4ee   :  { %v4932_v7 = vsub.f32 2.0, %v4924_v2  ;;  %v5385_v47 = vpop.f32.mrf.mxu2  ;;  %v4968_v38 = vadd.f32 %v4963_v53, %v4962_v5  ;;  %11329 = vst [vmem:[#allocation32_spill] sm:$0xff] %v10680_v42 }
 0x4ef   :  { %v5581_v54 = vmul.f32 1.0208334, %v5573_v56  ;;  %v5550_v21 = vadd.f32 %v10544_v50, %v5385_v47  ;;  %v10688_v50 = vld [vmem:[#allocation9 + $0x8] sm:$0xff] }
 0x4f0   :  { %v10678_v49 = vpop.f32.mrf.mxu0  ;;  %v4940_v36 = vmul.f32 %v7259_v57, %v4932_v7 }
 0x4f1   :  { %v5589_v9 = vadd.f32 %v5581_v54, %v9652_v30  ;;  %v5558_v20 = vmul.f32 49.0, %v5550_v21 }
 0x4f2   :  { %v4956_v10 = vmul.f32 %v11331_v52, %v4940_v36  ;;  %6758 = vmatmul.bf16.gmra.mxu3 %v10651_v44  ;;  %v11333_v52 = vld [vmem:[#allocation68_spill] sm:$0xff] }
 0x4f3   :  { %v7261_v2 = vpop.eup %7260  ;;  %v5597_v5 = vmul.f32 %v5589_v9, %v5509_v63  ;;  %v5566_v53 = vsub.f32 %v5558_v20, %v10402_v39  ;;  %6719 = vmatmul.bf16.gmra.mxu2 %v10688_v50  ;;  %v5510_v39 = vadd.f32 %v10412_v26, %v9646_v15 }
 0x4f4   :  { %v4925_v57 = vmul.f32 %v7261_v2, %v4909_v48 }
 0x4f5   :  { %7262 = vrcp.f32 %v5597_v5  ;;  %v5574_v56 = vsub.f32 %v5566_v53, %v10406_v58  ;;  %v10692_v7 = vpop.f32.mrf.mxu3  ;;  %v10700_v48 = vpop.f32.mrf.mxu1 }
 0x4f6   :  { %v4933_v47 = vsub.f32 2.0, %v4925_v57  ;;  %v5388_v54 = vpop.f32.mrf.mxu2  ;;  %11332 = vst [vmem:[#allocation30_spill] sm:$0xff] %v10700_v48 }
 0x4f7   :  { %v5582_v21 = vmul.f32 1.0208334, %v5574_v56  ;;  %v5551_v36 = vadd.f32 %v10584_v1, %v5388_v54  ;;  %v10704_v56 = vld [vmem:[#allocation12 + $0x30] sm:$0xff]  ;;  %v10707_v54 = vld [vmem:[#allocation12 + $0x38] sm:$0xff] }
 0x4f8   :  { %v10695_v61 = vpop.f32.mrf.mxu0  ;;  %v4941_v63 = vmul.f32 %v7261_v2, %v4933_v47  ;;  %11334 = vst [vmem:[#allocation70_spill] sm:$0xff] %v10704_v56  ;;  %v4964_v1 = vmul.f32 %v10704_v56, %v4956_v10  ;;  %v11336_v47 = vld [vmem:[#allocation64_spill] sm:$0xff]  ;;  %v11337_v56 = vld [vmem:[#allocation34_spill] sm:$0xff] }
 0x4f9   :  { %v5590_v9 = vadd.f32 %v5582_v21, %v9652_v30  ;;  %v5559_v20 = vmul.f32 49.0, %v5551_v36  ;;  %11335 = vst [vmem:[#allocation73_spill] sm:$0xff] %v10707_v54  ;;  %v5511_v11 = vadd.f32 %v11337_v56, %v9646_v15 }
 0x4fa   :  { %v4957_v58 = vmul.f32 %v11333_v52, %v4941_v63 }
 0x4fb   :  { %v7263_v53 = vpop.eup %7262  ;;  %v5598_v42 = vmul.f32 %v5590_v9, %v5510_v39  ;;  %v5567_v57 = vsub.f32 %v5559_v20, %v10427_v22 }
 0x4fc   :  { %v4965_v2 = vmul.f32 %v10707_v54, %v4957_v58  ;;  %v5613_v26 = vmul.f32 %v7263_v53, %v5597_v5  ;;  %v11338_v54 = vld [vmem:[#allocation66_spill] sm:$0xff] }
 0x4fd   :  { %7264 = vrcp.f32 %v5598_v42  ;;  %v5575_v21 = vsub.f32 %v5567_v57, %v11336_v47  ;;  %v10711_v36 = vpop.f32.mrf.mxu3 }
 0x4fe   :  { %v5621_v48 = vsub.f32 2.0, %v5613_v26  ;;  %v5390_v63 = vpop.f32.mrf.mxu2  ;;  %v4969_v52 = vadd.f32 %v4965_v2, %v4964_v1 }
 0x4ff   :  { %v5583_v39 = vmul.f32 1.0208334, %v5575_v21  ;;  %v5552_v22 = vadd.f32 %v10623_v34, %v5390_v63 }
 0x500   :  { %v10714_v9 = vpop.f32.mrf.mxu0  ;;  %v5629_v20 = vmul.f32 %v7263_v53, %v5621_v48  ;;  %v4971_v10 = vadd.f32 %v4969_v52, %v4968_v38  ;;  %v10724_v48 = vpop.f32.mrf.mxu1  ;;  %v11339_v53 = vld [vmem:[#allocation20_spill] sm:$0xff] }
 0x501   :  { %v5591_v5 = vadd.f32 %v5583_v39, %v9652_v30  ;;  %v5560_v58 = vmul.f32 49.0, %v5552_v22 }
 0x502   :  { %v5645_v57 = vmul.f32 %v11338_v54, %v5629_v20  ;;  %6845 = vmatmul.bf16.vlgmr.msrb.gmra.mxu3 %v10651_v44  ;;  %v4972_v26 = vadd.f32 %v4971_v10, %v10636_v12 }
 0x503   :  { %v7265_v1 = vpop.eup %7264  ;;  %v5599_v2 = vmul.f32 %v5591_v5, %v5511_v11  ;;  %v5568_v34 = vsub.f32 %v5560_v58, %v10460_v37  ;;  %6724 = vmatmul.bf16.gmra.mxu2 %v10578_v3 }
 0x504   :  { %v5614_v38 = vmul.f32 %v7265_v1, %v5598_v42  ;;  %v10727_v56 = vadd.f32 %v4972_v26, %v11339_v53  ;;  %v5512_v42 = vadd.f32 %v10478_v14, %v9646_v15 }
 0x505   :  { %7266 = vrcp.f32 %v5599_v2  ;;  %v5576_v47 = vsub.f32 %v5568_v34, %v10469_v31  ;;  %v6078_v54 = vpop.f32.mrf.mxu3 }
 0x506   :  { %v5622_v21 = vsub.f32 2.0, %v5614_v38  ;;  %v5393_v63 = vpop.f32.mrf.mxu2  ;;  %v10731_v12 = vadd.f32 %v10630_v55, %v6078_v54  ;;  %v5653_v55 = vmul.f32 %v10528_v25, %v5645_v57 }
 0x507   :  { %v5584_v11 = vmul.f32 1.0208334, %v5576_v47  ;;  %v5553_v37 = vadd.f32 %v10655_v19, %v5393_v63 }
 0x508   :  { %v10734_v52 = vpop.f32.mrf.mxu0  ;;  %v5630_v39 = vmul.f32 %v7265_v1, %v5622_v21  ;;  %v10744_v34 = vpop.f32.mrf.mxu1 }
 0x509   :  { %v5592_v22 = vadd.f32 %v5584_v11, %v9652_v30  ;;  %v5561_v20 = vmul.f32 49.0, %v5553_v37  ;;  %v11341_v37 = vld [vmem:[#allocation36_spill] sm:$0xff] }
 0x50a   :  { %v5646_v31 = vmul.f32 %v10462_v6, %v5630_v39 }
 0x50b   :  { %v7267_v10 = vpop.eup %7266  ;;  %v5600_v5 = vmul.f32 %v5592_v22, %v5512_v42  ;;  %v5569_v58 = vsub.f32 %v5561_v20, %v10495_v23 }
 0x50c   :  { %v5615_v26 = vmul.f32 %v7267_v10, %v5599_v2  ;;  %v5654_v19 = vmul.f32 %v10537_v51, %v5646_v31  ;;  %v11340_v2 = vld [vmem:[#allocation33_spill] sm:$0xff] }
 0x50d   :  { %7268 = vrcp.f32 %v5600_v5  ;;  %v5577_v1 = vsub.f32 %v5569_v58, %v10508_v59  ;;  %v6080_v14 = vpop.f32.mrf.mxu3  ;;  %v5513_v63 = vadd.f32 %v11340_v2, %v9646_v15 }
 0x50e   :  { %v5623_v38 = vsub.f32 2.0, %v5615_v26  ;;  %v5395_v53 = vpop.f32.mrf.mxu2  ;;  %v10747_v47 = vadd.f32 %v10660_v28, %v6080_v14  ;;  %v5661_v6 = vadd.f32 %v5654_v19, %v5653_v55 }
 0x50f   :  { %v5585_v54 = vmul.f32 1.0208334, %v5577_v1  ;;  %v5554_v23 = vadd.f32 %v10675_v4, %v5395_v53 }
 0x510   :  { %v10750_v21 = vpop.f32.mrf.mxu0  ;;  %v5631_v57 = vmul.f32 %v7267_v10, %v5623_v38  ;;  %v6136_v14 = vpop.f32.mrf.mxu1 }
 0x511   :  { %v5593_v59 = vadd.f32 %v5585_v54, %v9652_v30  ;;  %v5562_v11 = vmul.f32 49.0, %v5554_v23 }
 0x512   :  { %v5647_v39 = vmul.f32 %v11341_v37, %v5631_v57 }
 0x513   :  { %v7269_v42 = vpop.eup %7268  ;;  %v5601_v22 = vmul.f32 %v5593_v59, %v5513_v63  ;;  %v5570_v28 = vsub.f32 %v5562_v11, %v10534_v8  ;;  %6729 = vmatmul.bf16.gmra.mxu2 %v10651_v44  ;;  %v5514_v8 = vadd.f32 %v10556_v46, %v9646_v15 }
 0x514   :  { %v5616_v20 = vmul.f32 %v7269_v42, %v5600_v5  ;;  %v5655_v23 = vmul.f32 %v10605_v41, %v5647_v39 }
 0x515   :  { %7270 = vrcp.f32 %v5601_v22  ;;  %v5578_v4 = vsub.f32 %v5570_v28, %v10548_v33  ;;  %v6083_v31 = vpop.f32.mrf.mxu3 }
 0x516   :  { %v5624_v10 = vsub.f32 2.0, %v5616_v20  ;;  %v5398_v58 = vpop.f32.mrf.mxu2  ;;  %v10760_v55 = vadd.f32 %v10678_v49, %v6083_v31 }
 0x517   :  { %v5586_v26 = vmul.f32 1.0208334, %v5578_v4  ;;  %v5555_v19 = vadd.f32 %v10692_v7, %v5398_v58 }
 0x518   :  { %v10763_v1 = vpop.f32.mrf.mxu0  ;;  %v5632_v38 = vmul.f32 %v7269_v42, %v5624_v10  ;;  %v6138_v4 = vpop.f32.mrf.mxu1  ;;  %v11342_v10 = vld [vmem:[#allocation31_spill] sm:$0xff] }
 0x519   :  { %v5594_v44 = vadd.f32 %v5586_v26, %v9652_v30  ;;  %v5563_v5 = vmul.f32 49.0, %v5555_v19  ;;  %v6164_v58 = vmul.f32 %v11342_v10, %v11342_v10  ;;  %v6252_v19 = vmul.f32 49.0, %v10731_v12 }
 0x51a   :  { %v5648_v33 = vmul.f32 %v10540_v32, %v5632_v38 }
 0x51b   :  { %v7271_v53 = vpop.eup %7270  ;;  %v5602_v54 = vmul.f32 %v5594_v44, %v5514_v8  ;;  %v5571_v49 = vsub.f32 %v5563_v5, %v10574_v62  ;;  %v6212_v5 = vmul.f32 49.0, %v6136_v14  ;;  %v11343_v14 = vld [vmem:[#allocation37_spill] sm:$0xff] }
 0x51c   :  { %v5617_v57 = vmul.f32 %v7271_v53, %v5601_v22  ;;  %v5656_v7 = vmul.f32 %v10613_v40, %v5648_v33  ;;  %v5515_v22 = vadd.f32 %v10597_v0, %v9646_v15 }
 0x51d   :  { %7272 = vrcp.f32 %v5602_v54  ;;  %v5579_v2 = vsub.f32 %v5571_v49, %v10588_v17  ;;  %v6085_v63 = vpop.f32.mrf.mxu3 }
 0x51e   :  { %v5625_v59 = vsub.f32 2.0, %v5617_v57  ;;  %v5400_v46 = vpop.f32.mrf.mxu2  ;;  %v10774_v11 = vadd.f32 %v10695_v61, %v6085_v63  ;;  %v5662_v37 = vadd.f32 %v5656_v7, %v5655_v23 }
 0x51f   :  { %v5587_v32 = vmul.f32 1.0208334, %v5579_v2  ;;  %v5556_v42 = vadd.f32 %v10711_v36, %v5400_v46  ;;  %v11344_v2 = vld [vmem:[#allocation72_spill] sm:$0xff] }
 0x520   :  { %v10777_v28 = vpop.f32.mrf.mxu0  ;;  %v5633_v62 = vmul.f32 %v7271_v53, %v5625_v59  ;;  %v10779_v39 = vadd.f32 %v5662_v37, %v5661_v6  ;;  %v6260_v53 = vsub.f32 %v6252_v19, %v6164_v58 }
 0x521   :  { %v5595_v17 = vadd.f32 %v5587_v32, %v9652_v30  ;;  %v5564_v20 = vmul.f32 49.0, %v5556_v42  ;;  %v6253_v42 = vmul.f32 49.0, %v10747_v47 }
 0x522   :  { %v5649_v31 = vmul.f32 %v10576_v18, %v5633_v62  ;;  %v6213_v62 = vmul.f32 49.0, %v6138_v4 }
 0x523   :  { %v7273_v61 = vpop.eup %7272  ;;  %v5603_v26 = vmul.f32 %v5595_v17, %v5515_v22  ;;  %v5572_v36 = vsub.f32 %v5564_v20, %v10611_v60  ;;  %6830 = vmatmul.bf16.vlgmr.msra.gmra.mxu2 %v10643_v16  ;;  %v5516_v16 = vadd.f32 %v10628_v27, %v9646_v15  ;;  %v6141_v22 = vpop.f32.mrf.mxu1 }
 0x524   :  { %v5618_v6 = vmul.f32 %v7273_v61, %v5602_v54  ;;  %v5657_v27 = vmul.f32 %v10668_v29, %v5649_v31 }
 0x525   :  { %7274 = vrcp.f32 %v5603_v26  ;;  %v5580_v0 = vsub.f32 %v5572_v36, %v10621_v43  ;;  %v6088_v38 = vpop.f32.mrf.mxu3 }
 0x526   :  { %v5626_v8 = vsub.f32 2.0, %v5618_v6  ;;  %v6049_v44 = vpop.f32.mrf.mxu2  ;;  %v10792_v18 = vadd.f32 %v10714_v9, %v6088_v38  ;;  %v6165_v9 = vmul.f32 %v11343_v14, %v11343_v14 }
 0x527   :  { %v5588_v33 = vmul.f32 1.0208334, %v5580_v0  ;;  %v6156_v49 = vmul.f32 %v6049_v44, %v11342_v10  ;;  %v6172_v60 = vmul.f32 %v6049_v44, %v6049_v44 }
 0x528   :  { %v10795_v23 = vpop.f32.mrf.mxu0  ;;  %v5634_v12 = vmul.f32 %v7273_v61, %v5626_v8  ;;  %v6261_v38 = vsub.f32 %v6253_v42, %v6165_v9 }
 0x529   :  { %v5596_v43 = vadd.f32 %v5588_v33, %v9652_v30  ;;  %v6180_v54 = vmul.f32 2.0, %v6156_v49  ;;  %v6196_v57 = vadd.f32 %v6172_v60, %v6164_v58  ;;  %v6268_v7 = vsub.f32 %v6260_v53, %v6172_v60 }
 0x52a   :  { %v5650_v63 = vmul.f32 %v11344_v2, %v5634_v12  ;;  %v6220_v59 = vsub.f32 %v6212_v5, %v6156_v49 }
 0x52b   :  { %v7275_v46 = vpop.eup %7274  ;;  %v5604_v37 = vmul.f32 %v5596_v43, %v5516_v16  ;;  %v6276_v32 = vmul.f32 1.0208334, %v6268_v7  ;;  %v6188_v10 = vadd.f32 %v6180_v54, %v9646_v15  ;;  %v6204_v58 = vadd.f32 %v6196_v57, %v9646_v15 }
 0x52c   :  { %v5619_v17 = vmul.f32 %v7275_v46, %v5603_v26  ;;  %v6228_v20 = vmul.f32 2.0416667, %v6220_v59  ;;  %v5658_v61 = vmul.f32 %v10671_v35, %v5650_v63  ;;  %v6166_v54 = vmul.f32 %v10633_v45, %v10633_v45 }
 0x52d   :  { %7276 = vrcp.f32 %v5604_v37  ;;  %v6284_v36 = vadd.f32 %v6276_v32, %v9652_v30  ;;  %v6090_v19 = vpop.f32.mrf.mxu3  ;;  %v6254_v7 = vmul.f32 49.0, %v10760_v55  ;;  %v6214_v59 = vmul.f32 49.0, %v6141_v22 }
 0x52e   :  { %v5627_v6 = vsub.f32 2.0, %v5619_v17  ;;  %v6236_v0 = vadd.f32 %v6228_v20, %v9652_v30  ;;  %v6051_v47 = vpop.f32.mrf.mxu2  ;;  %v10811_v4 = vadd.f32 %v10734_v52, %v6090_v19  ;;  %v10813_v31 = vadd.f32 %v5658_v61, %v5657_v27 }
 0x52f   :  { %v6292_v26 = vmul.f32 %v6284_v36, %v6204_v58  ;;  %v6157_v8 = vmul.f32 %v6051_v47, %v11343_v14  ;;  %v6173_v44 = vmul.f32 %v6051_v47, %v6051_v47 }
 0x530   :  { %v10816_v5 = vpop.f32.mrf.mxu0  ;;  %v5635_v33 = vmul.f32 %v7275_v46, %v5627_v6  ;;  %v6332_v53 = vmul.f32 %v6236_v0, %v6188_v10  ;;  %v6143_v46 = vpop.f32.mrf.mxu1 }
 0x531   :  { %7278 = vrcp.f32 %v6292_v26  ;;  %v6197_v49 = vadd.f32 %v6173_v44, %v6165_v9  ;;  %v6269_v60 = vsub.f32 %v6261_v38, %v6173_v44  ;;  %v6181_v12 = vmul.f32 2.0, %v6157_v8 }
 0x532   :  { %v5651_v16 = vmul.f32 %v10649_v13, %v5635_v33  ;;  %v6221_v43 = vsub.f32 %v6213_v62, %v6157_v8  ;;  %v11345_v8 = vld [vmem:[#allocation35_spill] sm:$0xff] }
 0x533   :  { %v7277_v52 = vpop.eup %7276  ;;  %v6277_v57 = vmul.f32 1.0208334, %v6269_v60  ;;  %6835 = vmatmul.bf16.gmra.mxu2 %v10688_v50  ;;  %v6205_v63 = vadd.f32 %v6197_v49, %v9646_v15  ;;  %v6189_v42 = vadd.f32 %v6181_v12, %v9646_v15  ;;  %v6167_v44 = vmul.f32 %v11345_v8, %v11345_v8  ;;  %v11346_v49 = vld [vmem:[#allocation70_spill] sm:$0xff]  ;;  %v11347_v12 = vld [vmem:[#allocation73_spill] sm:$0xff] }
 0x534   :  { %v5620_v14 = vmul.f32 %v7277_v52, %v5604_v37  ;;  %v6229_v2 = vmul.f32 2.0416667, %v6221_v43  ;;  %v6262_v37 = vsub.f32 %v6254_v7, %v6166_v54  ;;  %v5659_v60 = vmul.f32 %v11346_v49, %v5651_v16 }
 0x535   :  { %v6285_v9 = vadd.f32 %v6277_v57, %v9652_v30  ;;  %v6093_v13 = vpop.f32.mrf.mxu3 }
 0x536   :  { %v5628_v32 = vsub.f32 2.0, %v5620_v14  ;;  %v6237_v62 = vadd.f32 %v6229_v2, %v9652_v30  ;;  %v6054_v27 = vpop.f32.mrf.mxu2  ;;  %v10828_v17 = vadd.f32 %v10750_v21, %v6093_v13 }
 0x537   :  { %v7279_v55 = vpop.eup %7278  ;;  %v6293_v50 = vmul.f32 %v6285_v9, %v6205_v63  ;;  %v6158_v20 = vmul.f32 %v6054_v27, %v10633_v45  ;;  %v6174_v61 = vmul.f32 %v6054_v27, %v6054_v27  ;;  %v6255_v45 = vmul.f32 49.0, %v10774_v11  ;;  %v11348_v27 = vld [vmem:[#allocation32_spill] sm:$0xff] }
 0x538   :  { %v10831_v10 = vpop.f32.mrf.mxu0  ;;  %v5636_v22 = vmul.f32 %v7277_v52, %v5628_v32  ;;  %v6308_v58 = vmul.f32 %v7279_v55, %v6292_v26  ;;  %v6333_v36 = vmul.f32 %v6237_v62, %v6189_v42  ;;  %v6146_v42 = vpop.f32.mrf.mxu1 }
 0x539   :  { %7280 = vrcp.f32 %v6293_v50  ;;  %v6198_v19 = vadd.f32 %v6174_v61, %v6166_v54  ;;  %v6270_v6 = vsub.f32 %v6262_v37, %v6174_v61  ;;  %v6182_v38 = vmul.f32 2.0, %v6158_v20 }
 0x53a   :  { %v5652_v0 = vmul.f32 %v10658_v24, %v5636_v22  ;;  %v6316_v47 = vsub.f32 2.0, %v6308_v58  ;;  %v6222_v21 = vsub.f32 %v6214_v59, %v6158_v20  ;;  %v6215_v24 = vmul.f32 49.0, %v6143_v46 }
 0x53b   :  { %v6278_v33 = vmul.f32 1.0208334, %v6270_v6  ;;  %v6206_v54 = vadd.f32 %v6198_v19, %v9646_v15  ;;  %v6190_v14 = vadd.f32 %v6182_v38, %v9646_v15  ;;  %v6263_v13 = vsub.f32 %v6255_v45, %v6167_v44 }
 0x53c   :  { %v5660_v43 = vmul.f32 %v11347_v12, %v5652_v0  ;;  %v6324_v26 = vmul.f32 %v7279_v55, %v6316_v47  ;;  %v6230_v52 = vmul.f32 2.0416667, %v6222_v21  ;;  %v6168_v55 = vmul.f32 %v11348_v27, %v11348_v27 }
 0x53d   :  { %v6286_v57 = vadd.f32 %v6278_v33, %v9652_v30  ;;  %v6256_v61 = vmul.f32 49.0, %v10792_v18 }
 0x53e   :  { %v6340_v7 = vmul.f32 %v6332_v53, %v6324_v26  ;;  %v6238_v2 = vadd.f32 %v6230_v52, %v9652_v30  ;;  %v6056_v63 = vpop.f32.mrf.mxu2  ;;  %v5664_v9 = vadd.f32 %v5660_v43, %v5659_v60  ;;  %v6216_v43 = vmul.f32 49.0, %v6146_v42  ;;  %v11349_v42 = vld [vmem:[#allocation30_spill] sm:$0xff] }
 0x53f   :  { %v7281_v59 = vpop.eup %7280  ;;  %v6294_v11 = vmul.f32 %v6286_v57, %v6206_v54  ;;  %v6159_v16 = vmul.f32 %v6056_v63, %v11345_v8  ;;  %v6175_v32 = vmul.f32 %v6056_v63, %v6056_v63  ;;  %v6264_v8 = vsub.f32 %v6256_v61, %v6168_v55 }
 0x540   :  { %v10844_v62 = vpop.f32.mrf.mxu0  ;;  %v6309_v46 = vmul.f32 %v7281_v59, %v6293_v50  ;;  %v6334_v53 = vmul.f32 %v6238_v2, %v6190_v14  ;;  %v5666_v0 = vadd.f32 %v5664_v9, %v10813_v31  ;;  %v6148_v9 = vpop.f32.mrf.mxu1 }
 0x541   :  { %7282 = vrcp.f32 %v6294_v11  ;;  %v6199_v37 = vadd.f32 %v6175_v32, %v6167_v44  ;;  %v6271_v20 = vsub.f32 %v6263_v13, %v6175_v32  ;;  %v6183_v58 = vmul.f32 2.0, %v6159_v16 }
 0x542   :  { %v6317_v22 = vsub.f32 2.0, %v6309_v46  ;;  %v6223_v19 = vsub.f32 %v6215_v24, %v6159_v16  ;;  %v5667_v44 = vadd.f32 %v5666_v0, %v10779_v39  ;;  %v6348_v24 = vmul.f32 %v10528_v25, %v6340_v7 }
 0x543   :  { %v6279_v6 = vmul.f32 1.0208334, %v6271_v20  ;;  %6840 = vmatmul.bf16.gmra.mxu2 %v10578_v3  ;;  %v6207_v21 = vadd.f32 %v6199_v37, %v9646_v15  ;;  %v6191_v18 = vadd.f32 %v6183_v58, %v9646_v15  ;;  %v6257_v46 = vmul.f32 49.0, %v10811_v4 }
 0x544   :  { %v6325_v47 = vmul.f32 %v7281_v59, %v6317_v22  ;;  %v6231_v38 = vmul.f32 2.0416667, %v6223_v19  ;;  %v10860_v57 = vadd.f32 %v5667_v44, %v10727_v56  ;;  %v6217_v22 = vmul.f32 49.0, %v6148_v9 }
 0x545   :  { %v6287_v50 = vadd.f32 %v6279_v6, %v9652_v30  ;;  %v6258_v44 = vmul.f32 49.0, %v10828_v17 }
 0x546   :  { %v6341_v33 = vmul.f32 %v6333_v36, %v6325_v47  ;;  %v6239_v45 = vadd.f32 %v6231_v38, %v9652_v30  ;;  %v6059_v60 = vpop.f32.mrf.mxu2  ;;  %v6170_v38 = vmul.f32 %v10724_v48, %v10724_v48 }
 0x547   :  { %v7283_v26 = vpop.eup %7282  ;;  %v6295_v3 = vmul.f32 %v6287_v50, %v6207_v21  ;;  %v6160_v31 = vmul.f32 %v6059_v60, %v11348_v27  ;;  %v6176_v52 = vmul.f32 %v6059_v60, %v6059_v60  ;;  %v6169_v27 = vmul.f32 %v11349_v42, %v11349_v42 }
 0x548   :  { %v10857_v54 = vpop.f32.mrf.mxu0  ;;  %v6349_v39 = vmul.f32 %v10537_v51, %v6341_v33  ;;  %v6310_v36 = vmul.f32 %v7283_v26, %v6294_v11  ;;  %v6335_v14 = vmul.f32 %v6239_v45, %v6191_v18 }
 0x549   :  { %7284 = vrcp.f32 %v6295_v3  ;;  %v6200_v2 = vadd.f32 %v6176_v52, %v6168_v55  ;;  %v6272_v63 = vsub.f32 %v6264_v8, %v6176_v52  ;;  %v6184_v16 = vmul.f32 2.0, %v6160_v31  ;;  %v6095_v52 = vpop.f32.mrf.mxu3 }
 0x54a   :  { %v10864_v59 = vadd.f32 %v6349_v39, %v6348_v24  ;;  %v6318_v13 = vsub.f32 2.0, %v6310_v36  ;;  %v6224_v32 = vsub.f32 %v6216_v43, %v6160_v31  ;;  %v6265_v6 = vsub.f32 %v6257_v46, %v6169_v27  ;;  %v6151_v43 = vpop.f32.mrf.mxu1 }
 0x54b   :  { %v6280_v56 = vmul.f32 1.0208334, %v6272_v63  ;;  %v6208_v51 = vadd.f32 %v6200_v2, %v9646_v15  ;;  %v6192_v37 = vadd.f32 %v6184_v16, %v9646_v15  ;;  %v6266_v36 = vsub.f32 %v6258_v44, %v6170_v38 }
 0x54c   :  { %v6326_v25 = vmul.f32 %v7283_v26, %v6318_v13  ;;  %v6232_v7 = vmul.f32 2.0416667, %v6224_v32  ;;  %v6218_v17 = vmul.f32 49.0, %v6151_v43 }
 0x54d   :  { %v6288_v11 = vadd.f32 %v6280_v56, %v9652_v30 }
 0x54e   :  { %v6342_v55 = vmul.f32 %v6334_v53, %v6326_v25  ;;  %v6240_v20 = vadd.f32 %v6232_v7, %v9652_v30  ;;  %v6061_v61 = vpop.f32.mrf.mxu2 }
 0x54f   :  { %v7285_v58 = vpop.eup %7284  ;;  %v6296_v19 = vmul.f32 %v6288_v11, %v6208_v51  ;;  %v6161_v0 = vmul.f32 %v6061_v61, %v11349_v42  ;;  %v6177_v47 = vmul.f32 %v6061_v61, %v6061_v61 }
 0x550   :  { %v10874_v4 = vpop.f32.mrf.mxu0  ;;  %v6311_v21 = vmul.f32 %v7285_v58, %v6295_v3  ;;  %v6336_v50 = vmul.f32 %v6240_v20, %v6192_v37  ;;  %v6350_v46 = vmul.f32 %v10605_v41, %v6342_v55 }
 0x551   :  { %7286 = vrcp.f32 %v6296_v19  ;;  %v6201_v53 = vadd.f32 %v6177_v47, %v6169_v27  ;;  %v6273_v8 = vsub.f32 %v6265_v6, %v6177_v47  ;;  %v6185_v18 = vmul.f32 2.0, %v6161_v0 }
 0x552   :  { %v6319_v33 = vsub.f32 2.0, %v6311_v21  ;;  %v6225_v45 = vsub.f32 %v6217_v22, %v6161_v0  ;;  %v6251_v27 = vadd.f32 %v10763_v1, %v6095_v52 }
 0x553   :  { %v6281_v60 = vmul.f32 1.0208334, %v6273_v8  ;;  %v6209_v24 = vadd.f32 %v6201_v53, %v9646_v15  ;;  %v6193_v2 = vadd.f32 %v6185_v18, %v9646_v15 }
 0x554   :  { %v6327_v26 = vmul.f32 %v7285_v58, %v6319_v33  ;;  %v6233_v31 = vmul.f32 2.0416667, %v6225_v45  ;;  %v6259_v1 = vmul.f32 49.0, %v6251_v27 }
 0x555   :  { %v6289_v39 = vadd.f32 %v6281_v60, %v9652_v30 }
 0x556   :  { %v6343_v3 = vmul.f32 %v6335_v14, %v6327_v26  ;;  %v6241_v63 = vadd.f32 %v6233_v31, %v9652_v30  ;;  %v6064_v9 = vpop.f32.mrf.mxu2  ;;  %v6153_v26 = vpop.f32.mrf.mxu1 }
 0x557   :  { %v7287_v13 = vpop.eup %7286  ;;  %v6297_v16 = vmul.f32 %v6289_v39, %v6209_v24  ;;  %v6162_v32 = vmul.f32 %v6064_v9, %v10724_v48  ;;  %v6178_v42 = vmul.f32 %v6064_v9, %v6064_v9  ;;  %v6171_v48 = vmul.f32 %v10744_v34, %v10744_v34  ;;  %v6744_v24 = vpop.f32.mrf.mxu3 }
 0x558   :  { %v10885_v56 = vpop.f32.mrf.mxu0  ;;  %v6351_v25 = vmul.f32 %v10613_v40, %v6343_v3  ;;  %v6312_v14 = vmul.f32 %v7287_v13, %v6296_v19  ;;  %v6337_v7 = vmul.f32 %v6241_v63, %v6193_v2  ;;  %v6219_v3 = vmul.f32 49.0, %v6153_v26 }
 0x559   :  { %7288 = vrcp.f32 %v6297_v16  ;;  %v6202_v51 = vadd.f32 %v6178_v42, %v6170_v38  ;;  %v6274_v11 = vsub.f32 %v6266_v36, %v6178_v42  ;;  %v6186_v61 = vmul.f32 2.0, %v6162_v32 }
 0x55a   :  { %v6357_v37 = vadd.f32 %v6351_v25, %v6350_v46  ;;  %v6320_v20 = vsub.f32 2.0, %v6312_v14  ;;  %v6226_v22 = vsub.f32 %v6218_v17, %v6162_v32  ;;  %v6267_v44 = vsub.f32 %v6259_v1, %v6171_v48 }
 0x55b   :  { %v6282_v58 = vmul.f32 1.0208334, %v6274_v11  ;;  %v6210_v40 = vadd.f32 %v6202_v51, %v9646_v15  ;;  %v6194_v47 = vadd.f32 %v6186_v61, %v9646_v15 }
 0x55c   :  { %v6328_v6 = vmul.f32 %v7287_v13, %v6320_v20  ;;  %v6234_v0 = vmul.f32 2.0416667, %v6226_v22  ;;  %v10892_v41 = vadd.f32 %v6357_v37, %v10864_v59 }
 0x55d   :  { %v6290_v55 = vadd.f32 %v6282_v58, %v9652_v30 }
 0x55e   :  { %v6344_v19 = vmul.f32 %v6336_v50, %v6328_v6  ;;  %v6242_v38 = vadd.f32 %v6234_v0, %v9652_v30  ;;  %v6066_v21 = vpop.f32.mrf.mxu2 }
 0x55f   :  { %v7289_v53 = vpop.eup %7288  ;;  %v6298_v8 = vmul.f32 %v6290_v55, %v6210_v40  ;;  %v6179_v33 = vmul.f32 %v6066_v21, %v6066_v21  ;;  %v6163_v36 = vmul.f32 %v6066_v21, %v10744_v34  ;;  %v6746_v6 = vpop.f32.mrf.mxu3 }
 0x560   :  { %v6802_v18 = vpop.f32.mrf.mxu0  ;;  %v6313_v45 = vmul.f32 %v7289_v53, %v6297_v16  ;;  %v6338_v60 = vmul.f32 %v6242_v38, %v6194_v47  ;;  %v6352_v25 = vmul.f32 %v10668_v29, %v6344_v19  ;;  %v6868_v19 = vmul.f32 %v6746_v6, %v6746_v6 }
 0x561   :  { %7290 = vrcp.f32 %v6298_v8  ;;  %v6203_v59 = vadd.f32 %v6179_v33, %v6171_v48  ;;  %v6275_v43 = vsub.f32 %v6267_v44, %v6179_v33  ;;  %v6939_v31 = vadd.f32 %v6802_v18, %v10777_v28 }
 0x562   :  { %v6321_v52 = vsub.f32 2.0, %v6313_v45  ;;  %v6867_v28 = vmul.f32 %v6744_v24, %v6744_v24  ;;  %v6227_v51 = vsub.f32 %v6219_v3, %v6163_v36  ;;  %v6187_v55 = vmul.f32 2.0, %v6163_v36 }
 0x563   :  { %v6283_v50 = vmul.f32 1.0208334, %v6275_v43  ;;  %v6211_v2 = vadd.f32 %v6203_v59, %v9646_v15  ;;  %v6947_v9 = vmul.f32 49.0, %v6939_v31 }
 0x564   :  { %v6329_v39 = vmul.f32 %v7289_v53, %v6321_v52  ;;  %v6235_v58 = vmul.f32 2.0416667, %v6227_v51  ;;  %v6807_v53 = vpop.f32.mrf.mxu1  ;;  %v6195_v45 = vadd.f32 %v6187_v55, %v9646_v15 }
 0x565   :  { %v6291_v63 = vadd.f32 %v6283_v50, %v9652_v30 }
 0x566   :  { %v6345_v17 = vmul.f32 %v6337_v7, %v6329_v39  ;;  %v6715_v13 = vpop.f32.mrf.mxu2  ;;  %v6243_v44 = vadd.f32 %v6235_v58, %v9652_v30 }
 0x567   :  { %v7291_v16 = vpop.eup %7290  ;;  %v6299_v32 = vmul.f32 %v6291_v63, %v6211_v2  ;;  %v6859_v42 = vmul.f32 %v6715_v13, %v6715_v13  ;;  %v10902_v27 = vmul.f32 %v6744_v24, %v6715_v13 }
 0x568   :  { %v6804_v46 = vpop.f32.mrf.mxu0  ;;  %v6353_v14 = vmul.f32 %v10671_v35, %v6345_v17  ;;  %v6314_v34 = vmul.f32 %v7291_v16, %v6298_v8  ;;  %v6339_v31 = vmul.f32 %v6243_v44, %v6195_v45 }
 0x569   :  { %7292 = vrcp.f32 %v6299_v32  ;;  %v6955_v11 = vsub.f32 %v6947_v9, %v6859_v42  ;;  %v6940_v37 = vadd.f32 %v6804_v46, %v10795_v23  ;;  %v6891_v61 = vadd.f32 %v6867_v28, %v6859_v42  ;;  %v10921_v9 = vpop.f32.mrf.mxu3 }
 0x56a   :  { %v6358_v20 = vadd.f32 %v6353_v14, %v6352_v25  ;;  %v6322_v7 = vsub.f32 2.0, %v6314_v34 }
 0x56b   :  { %v6963_v22 = vsub.f32 %v6955_v11, %v6867_v28  ;;  %v6948_v0 = vmul.f32 49.0, %v6940_v37  ;;  %v6899_v47 = vadd.f32 %v6891_v61, %v9646_v15 }
 0x56c   :  { %v6330_v48 = vmul.f32 %v7291_v16, %v6322_v7  ;;  %v6809_v17 = vpop.f32.mrf.mxu1 }
 0x56d   :  { %v6971_v1 = vmul.f32 1.0208334, %v6963_v22 }
 0x56e   :  { %v6346_v40 = vmul.f32 %v6338_v60, %v6330_v48  ;;  %v6717_v29 = vpop.f32.mrf.mxu2 }
 0x56f   :  { %v7293_v35 = vpop.eup %7292  ;;  %v6860_v38 = vmul.f32 %v6717_v29, %v6717_v29  ;;  %v6979_v21 = vadd.f32 %v6971_v1, %v9652_v30  ;;  %v10909_v23 = vmul.f32 %v6746_v6, %v6717_v29 }
 0x570   :  { %v6315_v8 = vmul.f32 %v7293_v35, %v6299_v32  ;;  %v6354_v3 = vmul.f32 %v11346_v49, %v6346_v40 }
 0x571   :  { %v6987_v33 = vmul.f32 %v6979_v21, %v6899_v47  ;;  %v6956_v18 = vsub.f32 %v6948_v0, %v6860_v38  ;;  %v6892_v59 = vadd.f32 %v6868_v19, %v6860_v38  ;;  %v10929_v46 = vpop.f32.mrf.mxu3  ;;  %v6875_v21 = vmul.f32 2.0, %v10902_v27 }
 0x572   :  { %v6323_v60 = vsub.f32 2.0, %v6315_v8  ;;  %v6870_v55 = vmul.f32 %v10929_v46, %v10929_v46 }
 0x573   :  { %v6964_v43 = vsub.f32 %v6956_v18, %v6868_v19  ;;  %v6900_v39 = vadd.f32 %v6892_v59, %v9646_v15  ;;  %7294 = vrcp.f32 %v6987_v33 }
 0x574   :  { %v6331_v26 = vmul.f32 %v7293_v35, %v6323_v60  ;;  %v6812_v25 = vpop.f32.mrf.mxu1 }
 0x575   :  { %v6972_v52 = vmul.f32 1.0208334, %v6964_v43  ;;  %v6943_v19 = vadd.f32 %v6812_v25, %v10844_v62 }
 0x576   :  { %v6347_v50 = vmul.f32 %v6339_v31, %v6331_v26  ;;  %v10913_v24 = vpop.f32.mrf.mxu2  ;;  %v6883_v31 = vadd.f32 %v6875_v21, %v9646_v15 }
 0x577   :  { %v6980_v36 = vadd.f32 %v6972_v52, %v9652_v30  ;;  %v6951_v59 = vmul.f32 49.0, %v6943_v19 }
 0x578   :  { %v6355_v2 = vmul.f32 %v11347_v12, %v6347_v50 }
 0x579   :  { %v10919_v63 = vmul.f32 %v6980_v36, %v6900_v39  ;;  %v10933_v12 = vpop.f32.mrf.mxu3 }
 0x57a   :  { %v6359_v13 = vadd.f32 %v6355_v2, %v6354_v3 }
 0x57b   :  { %7296 = vrcp.f32 %v10919_v63 }
 0x57c   :  { %v6361_v16 = vadd.f32 %v6359_v13, %v6358_v20  ;;  %v6814_v14 = vpop.f32.mrf.mxu1  ;;  %v6861_v20 = vmul.f32 %v10913_v24, %v10913_v24 }
 0x57e   :  { %v10923_v32 = vpop.f32.mrf.mxu2  ;;  %v6362_v42 = vadd.f32 %v6361_v16, %v10892_v41  ;;  %v6941_v41 = vadd.f32 %v6807_v53, %v10816_v5  ;;  %v6869_v5 = vmul.f32 %v10921_v9, %v10921_v9 }
 0x57f   :  { %v6862_v61 = vmul.f32 %v10923_v32, %v10923_v32 }
 0x580   :  { %v10927_v28 = vadd.f32 %v6362_v42, %v10860_v57  ;;  %v6942_v57 = vadd.f32 %v6809_v17, %v10831_v10  ;;  %v6949_v7 = vmul.f32 49.0, %v6941_v41  ;;  %v7295_v10 = vpop.eup %7294  ;;  %v6893_v60 = vadd.f32 %v6869_v5, %v6861_v20 }
 0x581   :  { %v10939_v11 = vpop.f32.mrf.mxu3  ;;  %v7003_v53 = vmul.f32 %v7295_v10, %v6987_v33  ;;  %v7297_v36 = vpop.eup %7296 }
 0x582   :  { %v6950_v22 = vmul.f32 49.0, %v6942_v57  ;;  %v6957_v58 = vsub.f32 %v6949_v7, %v6861_v20  ;;  %v6901_v17 = vadd.f32 %v6893_v60, %v9646_v15  ;;  %v7004_v20 = vmul.f32 %v7297_v36, %v10919_v63 }
 0x583   :  { %v7011_v52 = vsub.f32 2.0, %v7003_v53 }
 0x584   :  { %v6817_v37 = vpop.f32.mrf.mxu1  ;;  %v6958_v0 = vsub.f32 %v6950_v22, %v6862_v61  ;;  %v6965_v40 = vsub.f32 %v6957_v58, %v6869_v5  ;;  %v7012_v63 = vsub.f32 2.0, %v7004_v20 }
 0x585   :  { %v6945_v47 = vadd.f32 %v6817_v37, %v10874_v4  ;;  %v7019_v7 = vmul.f32 %v7295_v10, %v7011_v52  ;;  %v6872_v10 = vmul.f32 %v10939_v11, %v10939_v11 }
 0x586   :  { %v10931_v49 = vpop.f32.mrf.mxu2  ;;  %v6966_v35 = vsub.f32 %v6958_v0, %v6870_v55  ;;  %v6973_v44 = vmul.f32 1.0208334, %v6965_v40  ;;  %v6876_v40 = vmul.f32 2.0, %v10909_v23 }
 0x587   :  { %v6863_v4 = vmul.f32 %v10931_v49, %v10931_v49  ;;  %v6953_v33 = vmul.f32 49.0, %v6945_v47 }
 0x588   :  { %v6974_v43 = vmul.f32 1.0208334, %v6966_v35  ;;  %v6981_v3 = vadd.f32 %v6973_v44, %v9652_v30 }
 0x589   :  { %v10949_v1 = vpop.f32.mrf.mxu3 }
 0x58a   :  { %v6982_v25 = vadd.f32 %v6974_v43, %v9652_v30  ;;  %v6989_v58 = vmul.f32 %v6981_v3, %v6901_v17  ;;  %v6873_v5 = vmul.f32 %v10949_v1, %v10949_v1  ;;  %v6853_v43 = vmul.f32 %v10921_v9, %v10913_v24  ;;  %v7491_v9 = vld [vmem:[#allocation12 + $0x8] sm:$0xff] }
 0x58c   :  { %v6819_v6 = vpop.f32.mrf.mxu1  ;;  %7298 = vrcp.f32 %v6989_v58 }
 0x58d   :  { %v6946_v29 = vadd.f32 %v6819_v6, %v10885_v56  ;;  %v6944_v56 = vadd.f32 %v6814_v14, %v10857_v54  ;;  %v6894_v54 = vadd.f32 %v6870_v55, %v6862_v61  ;;  %v6959_v14 = vsub.f32 %v6951_v59, %v6863_v4 }
 0x58e   :  { %v10935_v34 = vpop.f32.mrf.mxu2 }
 0x58f   :  { %v6954_v45 = vmul.f32 49.0, %v6946_v29  ;;  %v6864_v13 = vmul.f32 %v10935_v34, %v10935_v34  ;;  %v6952_v16 = vmul.f32 49.0, %v6944_v56  ;;  %v6902_v6 = vadd.f32 %v6894_v54, %v9646_v15 }
 0x591   :  { %v10969_v50 = vpop.f32.mrf.mxu3  ;;  %v6960_v55 = vsub.f32 %v6952_v16, %v6864_v13  ;;  %v6990_v35 = vmul.f32 %v6982_v25, %v6902_v6 }
 0x592   :  { %v6874_v41 = vmul.f32 %v10969_v50, %v10969_v50 }
 0x593   :  { %v6968_v44 = vsub.f32 %v6960_v55, %v6872_v10  ;;  %7300 = vrcp.f32 %v6990_v35 }
 0x596   :  { %v10937_v51 = vpop.f32.mrf.mxu2 }
 0x597   :  { %v6865_v26 = vmul.f32 %v10937_v51, %v10937_v51 }
 0x599   :  { %v6961_v37 = vsub.f32 %v6953_v33, %v6865_v26  ;;  %v7020_v33 = vmul.f32 %v7297_v36, %v7012_v63  ;;  %v6897_v3 = vadd.f32 %v6873_v5, %v6865_v26  ;;  %v6854_v26 = vmul.f32 %v10929_v46, %v10923_v32 }
 0x59b   :  { %v6905_v20 = vadd.f32 %v6897_v3, %v9646_v15 }
 0x59e   :  { %v10947_v48 = vpop.f32.mrf.mxu2 }
 0x59f   :  { %v6866_v18 = vmul.f32 %v10947_v48, %v10947_v48 }
 0x5a1   :  { %v6962_v2 = vsub.f32 %v6954_v45, %v6866_v18  ;;  %v6846_v45 = vpop.f32.mrf.mxu3 }
 0x5a3   :  { %v6970_v0 = vsub.f32 %v6962_v2, %v6874_v41  ;;  %v6976_v2 = vmul.f32 1.0208334, %v6968_v44 }
 0x5a5   :  { %v6978_v53 = vmul.f32 1.0208334, %v6970_v0  ;;  %v6984_v6 = vadd.f32 %v6976_v2, %v9652_v30 }
 0x5a6   :  { %v6831_v38 = vpop.f32.mrf.mxu2 }
 0x5a7   :  { %v6907_v8 = vmul.f32 49.0, %v6831_v38  ;;  %v6969_v38 = vsub.f32 %v6961_v37, %v6873_v5  ;;  %v6986_v54 = vadd.f32 %v6978_v53, %v9652_v30  ;;  %v6896_v37 = vadd.f32 %v6872_v10, %v6864_v13 }
 0x5a9   :  { %v6915_v62 = vsub.f32 %v6907_v8, %v10902_v27  ;;  %v6871_v27 = vmul.f32 %v10933_v12, %v10933_v12  ;;  %v6884_v8 = vadd.f32 %v6876_v40, %v9646_v15  ;;  %v6977_v56 = vmul.f32 1.0208334, %v6969_v38 }
 0x5ab   :  { %v6923_v39 = vmul.f32 2.0416667, %v6915_v62  ;;  %v6967_v47 = vsub.f32 %v6959_v14, %v6871_v27  ;;  %v6985_v14 = vadd.f32 %v6977_v56, %v9652_v30  ;;  %v6857_v56 = vmul.f32 %v10949_v1, %v10937_v51 }
 0x5ad   :  { %v6931_v42 = vadd.f32 %v6923_v39, %v9652_v30  ;;  %v6975_v59 = vmul.f32 1.0208334, %v6967_v47  ;;  %v6895_v39 = vadd.f32 %v6871_v27, %v6863_v4  ;;  %v6993_v0 = vmul.f32 %v6985_v14, %v6905_v20  ;;  %v7492_v14 = vld [vmem:[#allocation12 + $0x10] sm:$0xff] }
 0x5ae   :  { %v6833_v57 = vpop.f32.mrf.mxu2  ;;  %v6878_v47 = vmul.f32 2.0, %v6854_v26  ;;  %v6881_v20 = vmul.f32 2.0, %v6857_v56 }
 0x5af   :  { %v7027_v61 = vmul.f32 %v6931_v42, %v6883_v31  ;;  %v6908_v22 = vmul.f32 49.0, %v6833_v57  ;;  %v7299_v42 = vpop.eup %7298  ;;  %v6983_v25 = vadd.f32 %v6975_v59, %v9652_v30  ;;  %v6903_v27 = vadd.f32 %v6895_v39, %v9646_v15 }
 0x5b0   :  { %v7301_v4 = vpop.eup %7300  ;;  %v6913_v59 = vmul.f32 49.0, %v6846_v45 }
 0x5b1   :  { %v7035_v29 = vmul.f32 %v7027_v61, %v7019_v7  ;;  %v6916_v19 = vsub.f32 %v6908_v22, %v10909_v23  ;;  %v6898_v23 = vadd.f32 %v6874_v41, %v6866_v18  ;;  %v7490_v41 = vld [vmem:[#allocation12] sm:$0xff]  ;;  %v6877_v61 = vmul.f32 2.0, %v6853_v43 }
 0x5b2   :  { %v7005_v22 = vmul.f32 %v7299_v42, %v6989_v58  ;;  %v6991_v13 = vmul.f32 %v6983_v25, %v6903_v27  ;;  %v7006_v55 = vmul.f32 %v7301_v4, %v6990_v35 }
 0x5b3   :  { %v6924_v21 = vmul.f32 2.0416667, %v6916_v19  ;;  %v6906_v18 = vadd.f32 %v6898_v23, %v9646_v15  ;;  %v7043_v24 = vmul.f32 %v7490_v41, %v7035_v29  ;;  %v6904_v29 = vadd.f32 %v6896_v37, %v9646_v15  ;;  %v6848_v19 = vpop.f32.mrf.mxu3  ;;  %v7493_v37 = vld [vmem:[#allocation12 + $0x18] sm:$0xff] }
 0x5b4   :  { %v6885_v38 = vadd.f32 %v6877_v61, %v9646_v15  ;;  %v7013_v63 = vsub.f32 2.0, %v7005_v22  ;;  %v6914_v53 = vmul.f32 49.0, %v6848_v19 }
 0x5b5   :  { %v6932_v60 = vadd.f32 %v6924_v21, %v9652_v30  ;;  %v6994_v7 = vmul.f32 %v6986_v54, %v6906_v18  ;;  %v6992_v58 = vmul.f32 %v6984_v6, %v6904_v29  ;;  %v6858_v21 = vmul.f32 %v10969_v50, %v10947_v48 }
 0x5b6   :  { %v6836_v62 = vpop.f32.mrf.mxu2  ;;  %v7021_v23 = vmul.f32 %v7299_v42, %v7013_v63 }
 0x5b7   :  { %v7028_v31 = vmul.f32 %v6932_v60, %v6884_v8  ;;  %v6909_v52 = vmul.f32 49.0, %v6836_v62  ;;  %7302 = vrcp.f32 %v6994_v7  ;;  %v7014_v8 = vsub.f32 2.0, %v7006_v55 }
 0x5b8   :  { %7304 = vrcp.f32 %v6993_v0  ;;  %v6886_v60 = vadd.f32 %v6878_v47, %v9646_v15  ;;  %v6922_v48 = vsub.f32 %v6914_v53, %v6858_v21  ;;  %v6889_v47 = vadd.f32 %v6881_v20, %v9646_v15 }
 0x5b9   :  { %v7036_v17 = vmul.f32 %v7028_v31, %v7020_v33  ;;  %v6917_v16 = vsub.f32 %v6909_v52, %v6853_v43  ;;  %7306 = vrcp.f32 %v6991_v13  ;;  %v6855_v33 = vmul.f32 %v10933_v12, %v10931_v49 }
 0x5ba   :  { %7308 = vrcp.f32 %v6992_v58  ;;  %v7022_v52 = vmul.f32 %v7301_v4, %v7014_v8  ;;  %v6930_v51 = vmul.f32 2.0416667, %v6922_v48 }
 0x5bb   :  { %v7044_v36 = vmul.f32 %v7491_v9, %v7036_v17  ;;  %v6925_v57 = vmul.f32 2.0416667, %v6917_v16  ;;  %v6921_v17 = vsub.f32 %v6913_v59, %v6857_v56  ;;  %v6879_v12 = vmul.f32 2.0, %v6855_v33 }
 0x5bc   :  { %v6856_v9 = vmul.f32 %v10939_v11, %v10935_v34 }
 0x5bd   :  { %v11002_v5 = vadd.f32 %v7044_v36, %v7043_v24  ;;  %v6933_v32 = vadd.f32 %v6925_v57, %v9652_v30  ;;  %v7303_v43 = vpop.eup %7302  ;;  %v6882_v36 = vmul.f32 2.0, %v6858_v21  ;;  %v6929_v4 = vmul.f32 2.0416667, %v6921_v17 }
 0x5be   :  { %v6838_v40 = vpop.f32.mrf.mxu2  ;;  %v7305_v54 = vpop.eup %7304  ;;  %v7010_v45 = vmul.f32 %v7303_v43, %v6994_v7  ;;  %v6938_v7 = vadd.f32 %v6930_v51, %v9652_v30  ;;  %v6880_v29 = vmul.f32 2.0, %v6856_v9 }
 0x5bf   :  { %v6910_v46 = vmul.f32 49.0, %v6838_v40  ;;  %v7029_v35 = vmul.f32 %v6933_v32, %v6885_v38  ;;  %v7307_v2 = vpop.eup %7306  ;;  %v7009_v42 = vmul.f32 %v7305_v54, %v6993_v0  ;;  %v6890_v34 = vadd.f32 %v6882_v36, %v9646_v15 }
 0x5c0   :  { %v7309_v1 = vpop.eup %7308  ;;  %v7007_v24 = vmul.f32 %v7307_v2, %v6991_v13  ;;  %v7018_v57 = vsub.f32 2.0, %v7010_v45  ;;  %v6887_v13 = vadd.f32 %v6879_v12, %v9646_v15  ;;  %v6937_v11 = vadd.f32 %v6929_v4, %v9652_v30 }
 0x5c1   :  { %v6918_v10 = vsub.f32 %v6910_v46, %v6854_v26  ;;  %v7037_v31 = vmul.f32 %v7029_v35, %v7021_v23  ;;  %v7008_v27 = vmul.f32 %v7309_v1, %v6992_v58  ;;  %v7017_v22 = vsub.f32 2.0, %v7009_v42  ;;  %v7494_v23 = vld [vmem:[#allocation12 + $0x38] sm:$0xff] }
 0x5c2   :  { %v7015_v55 = vsub.f32 2.0, %v7007_v24  ;;  %v7026_v19 = vmul.f32 %v7303_v43, %v7018_v57  ;;  %v7034_v63 = vmul.f32 %v6938_v7, %v6890_v34  ;;  %v6888_v21 = vadd.f32 %v6880_v29, %v9646_v15 }
 0x5c3   :  { %v6926_v44 = vmul.f32 2.0416667, %v6918_v10  ;;  %v7045_v18 = vmul.f32 %v7492_v14, %v7037_v31  ;;  %v7016_v46 = vsub.f32 2.0, %v7008_v27  ;;  %v7025_v38 = vmul.f32 %v7305_v54, %v7017_v22 }
 0x5c4   :  { %v7042_v53 = vmul.f32 %v7034_v63, %v7026_v19  ;;  %v7023_v8 = vmul.f32 %v7307_v2, %v7015_v55 }
 0x5c5   :  { %v6934_v62 = vadd.f32 %v6926_v44, %v9652_v30  ;;  %v7024_v59 = vmul.f32 %v7309_v1, %v7016_v46 }
 0x5c6   :  { %v6841_v50 = vpop.f32.mrf.mxu2 }
 0x5c7   :  { %v7030_v39 = vmul.f32 %v6934_v62, %v6886_v60  ;;  %v6911_v3 = vmul.f32 49.0, %v6841_v50  ;;  %v7050_v62 = vmul.f32 %v7494_v23, %v7042_v53  ;;  %v7496_v50 = vld [vmem:[#allocation12 + $0x20] sm:$0xff] }
 0x5c9   :  { %v7038_v16 = vmul.f32 %v7030_v39, %v7022_v52  ;;  %v6919_v25 = vsub.f32 %v6911_v3, %v6855_v33  ;;  %v7495_v33 = vld [vmem:[#allocation12 + $0x30] sm:$0xff]  ;;  %v7497_v52 = vld [vmem:[#allocation12 + $0x28] sm:$0xff] }
 0x5cb   :  { %v7046_v41 = vmul.f32 %v7493_v37, %v7038_v16  ;;  %v6927_v49 = vmul.f32 2.0416667, %v6919_v25 }
 0x5cd   :  { %v7052_v26 = vadd.f32 %v7046_v41, %v7045_v18  ;;  %v6935_v6 = vadd.f32 %v6927_v49, %v9652_v30 }
 0x5ce   :  { %v6843_v61 = vpop.f32.mrf.mxu2 }
 0x5cf   :  { %v6912_v0 = vmul.f32 49.0, %v6843_v61  ;;  %v7055_v40 = vadd.f32 %v7052_v26, %v11002_v5  ;;  %v7031_v58 = vmul.f32 %v6935_v6, %v6887_v13  ;;  %v7033_v5 = vmul.f32 %v6937_v11, %v6889_v47 }
 0x5d1   :  { %v6920_v32 = vsub.f32 %v6912_v0, %v6856_v9  ;;  %v7041_v44 = vmul.f32 %v7033_v5, %v7025_v38  ;;  %v7039_v60 = vmul.f32 %v7031_v58, %v7023_v8 }
 0x5d3   :  { %v6928_v10 = vmul.f32 2.0416667, %v6920_v32  ;;  %v7049_v48 = vmul.f32 %v7495_v33, %v7041_v44  ;;  %v7047_v31 = vmul.f32 %v7496_v50, %v7039_v60 }
 0x5d5   :  { %v6936_v35 = vadd.f32 %v6928_v10, %v9652_v30  ;;  %v7054_v3 = vadd.f32 %v7050_v62, %v7049_v48 }
 0x5d7   :  { %v7032_v56 = vmul.f32 %v6936_v35, %v6888_v21 }
 0x5d9   :  { %v7040_v43 = vmul.f32 %v7032_v56, %v7024_v59 }
 0x5db   :  { %v7048_v39 = vmul.f32 %v7497_v52, %v7040_v43 }
 0x5dd   :  { %v7053_v15 = vadd.f32 %v7048_v39, %v7047_v31 }
 0x5df   :  { %v7056_v54 = vadd.f32 %v7054_v3, %v7053_v15 }
 0x5e1   :  { %v7057_v45 = vadd.f32 %v7056_v54, %v7055_v40 }
 0x5e3   :  { %v7064_v30 = vadd.f32 %v7057_v45, %v10927_v28 }
 0x5e5   :  { %7072 = vst [vmem:[#allocation13] sm:$0xff] %v7064_v30 }
 0x5e6   :  { %7083 = dma.vmem_to_hbm [thread:$0]  %s7079_s27, 128, %s7081_s30, [#allocation4]  }
 0x5e7   :  { %7662 = dma.done.wait [#allocation4], 128  }
 0x5e8   :  { %7663 = vsyncadd [#allocation4], 4294967168 }
 0x5e9   :  { %7088 = vsyncpa [#allocation3], 1 }
 0x5ea   :  { %7089 = vsyncpa [#allocation8], 1 }
 0x5eb   :  { %7090 = vsyncpa [#allocation11], 1 }
 0x5ec   :  { %7091 = vsyncpa [#allocation4], 1 }
 0x5ed   :  { %7092 = vsyncpa [#allocation5], 1 }

</bundles_post_ra>
